<compile_context>
chip_gen: v7x
topology: tpu7x:2x2x1
jax: 0.10.0
libtpu: 0.0.40
codegen_flags: <defaults>
</compile_context>

<pallas_src>
import functools

import jax
import jax.numpy as jnp
from jax.experimental import pallas as pl
from jax.experimental.pallas import tpu as pltpu


# ---------------------------------------------------------------------------
# Tiling helpers
# ---------------------------------------------------------------------------
def _pick_tile(n, cap=2048):
    """Largest TPU-friendly tile that divides n."""
    for t in (2048, 1024, 512, 256, 128, 64, 32, 16, 8):
        if t <= cap and n % t == 0:
            return t
    # TODO(synk): irregular point counts fall back to a single block; a masked
    # last tile would be needed to pipeline arbitrary N.
    return n


def _pick_cout_tile(co, cap=1024):
    for t in (1024, 896, 768, 640, 512, 384, 256, 128):
        if t <= cap and co % t == 0:
            return t
    return co


_VMEM_LIMIT = 48 * 1024 * 1024  # fits v7x's 64 MiB physical VMEM with headroom


# ---------------------------------------------------------------------------
# Pallas kernels
# ---------------------------------------------------------------------------
def _enc_stage1_kernel(x_ref, w1_ref, b1_ref, w2_ref, b2_ref, g_ref):
    """g = running max over points of relu(x@W1+b1)@W2+b2 (feat never hits HBM)."""
    @pl.when(pl.program_id(1) == 0)
    def _():
        g_ref[...] = jnp.full(g_ref.shape, -jnp.inf, g_ref.dtype)

    x = x_ref[0]                                              # (tile_n, 3) f32
    h = jnp.maximum(
        jnp.dot(x, w1_ref[...], preferred_element_type=jnp.float32) + b1_ref[...],
        0.0).astype(w2_ref.dtype)                             # bf16 for the MXU
    feat = jnp.dot(h, w2_ref[...], preferred_element_type=jnp.float32) + b2_ref[...]
    g_ref[...] = jnp.maximum(g_ref[...], jnp.max(feat, axis=0, keepdims=True)[None])


def _enc_stage2_kernel(x_ref, w1_ref, b1_ref, w2_ref, b2_ref,
                       wl_ref, bias_ref, w4_ref, b4_ref, gfv_ref):
    """Recompute feat from xyz in-kernel, then h=relu(feat@W_local + per-batch
    bias), z=h@W4+b4, fused running max over points."""
    @pl.when(pl.program_id(1) == 0)
    def _():
        gfv_ref[...] = jnp.full(gfv_ref.shape, -jnp.inf, gfv_ref.dtype)

    x = x_ref[0]                                              # (tile_n, 3) f32
    h = jnp.maximum(
        jnp.dot(x, w1_ref[...], preferred_element_type=jnp.float32) + b1_ref[...],
        0.0).astype(w2_ref.dtype)
    feat = (jnp.dot(h, w2_ref[...], preferred_element_type=jnp.float32)
            + b2_ref[...]).astype(wl_ref.dtype)
    h2 = jnp.maximum(
        jnp.dot(feat, wl_ref[...], preferred_element_type=jnp.float32) + bias_ref[0],
        0.0).astype(w4_ref.dtype)
    z = jnp.dot(h2, w4_ref[...], preferred_element_type=jnp.float32) + b4_ref[...]
    gfv_ref[...] = jnp.maximum(gfv_ref[...], jnp.max(z, axis=0, keepdims=True)[None])


def _decoder_d3_kernel(h_ref, w3_ref, b3_ref, o_ref):
    """Pure d3 weight streaming: (B, h_d) @ (h_d, tile_co); Cout axis is parallel."""
    h = h_ref[...].astype(w3_ref.dtype)
    o_ref[...] = (jnp.dot(h, w3_ref[...], preferred_element_type=jnp.float32)
                  + b3_ref[...]).astype(o_ref.dtype)


def _final_conv_kernel(c_ref, seed_ref, bias_ref, w1p_ref, w2_ref, b2_ref,
                       w3_ref, b3_ref, o_ref):
    """f1 (split-weight) -> f2 -> f3 -> +point_feat, fused.

    Tiles over coarse points; the g2 folding-grid repeat happens in-kernel as a
    static loop (the seed only contributes a per-s bias), so no (B, nd, 3)
    point_feat and no (latent+5)-wide concat are ever materialized.  Output is
    stored lane-dense as (g2, 3, tile_nc) planes.
    """
    g2 = seed_ref.shape[0]
    c = c_ref[0]                                              # (tile_nc, 3) f32
    seed = seed_ref[...]                                      # (g2, f)      f32
    # K=3 matmul runs once per coarse tile (1/g2 of the dense rows).
    base = (jnp.dot(c, w1p_ref[...], preferred_element_type=jnp.float32)
            + bias_ref[0])                                    # (tile_nc, f)
    for s in range(g2):                                       # static unroll (g2 = 4)
        h1 = jnp.maximum(base + seed[s:s + 1, :], 0.0).astype(w2_ref.dtype)
        h2 = jnp.maximum(
            jnp.dot(h1, w2_ref[...], preferred_element_type=jnp.float32) + b2_ref[...],
            0.0)
        # TODO(synk): the padded N=3 h2@W3 MXU pass could move to the VPU on v5e.
        out = (jnp.dot(h2, w3_ref[...], preferred_element_type=jnp.float32)
               + b3_ref[...] + c)                             # +point_feat residual
        o_ref[0, s] = out.T.astype(o_ref.dtype)               # lane-dense (3, tile_nc)


# ---------------------------------------------------------------------------
# pallas_call wrappers
# ---------------------------------------------------------------------------
def encoder_stage1(xyz, w1, b1, w2, b2, *, tile_n):
    B, N, _ = xyz.shape
    c1, c2 = w1.shape[1], w2.shape[1]
    g = pl.pallas_call(
        _enc_stage1_kernel,
        out_shape=jax.ShapeDtypeStruct((B, 1, c2), jnp.float32),
        grid_spec=pltpu.PrefetchScalarGridSpec(
            num_scalar_prefetch=0,
            grid=(B, N // tile_n),
            in_specs=[
                pl.BlockSpec((1, tile_n, 3), lambda b, i: (b, i, 0)),
                pl.BlockSpec((3, c1), lambda b, i: (0, 0)),
                pl.BlockSpec((1, c1), lambda b, i: (0, 0)),
                pl.BlockSpec((c1, c2), lambda b, i: (0, 0)),
                pl.BlockSpec((1, c2), lambda b, i: (0, 0)),
            ],
            out_specs=pl.BlockSpec((1, 1, c2), lambda b, i: (b, 0, 0)),
        ),
        compiler_params=pltpu.CompilerParams(
            dimension_semantics=("parallel", "arbitrary"),
            vmem_limit_bytes=_VMEM_LIMIT),
    )(xyz, w1, b1, w2, b2)
    return g[:, 0, :]


def encoder_stage2(xyz, w1, b1, w2, b2, wl, bias_b, w4, b4, *, tile_n):
    B, N, _ = xyz.shape
    c1, c2 = w1.shape[1], w2.shape[1]
    h_e, latent = wl.shape[1], w4.shape[1]
    gfv = pl.pallas_call(
        _enc_stage2_kernel,
        out_shape=jax.ShapeDtypeStruct((B, 1, latent), jnp.float32),
        grid_spec=pltpu.PrefetchScalarGridSpec(
            num_scalar_prefetch=0,
            grid=(B, N // tile_n),
            in_specs=[
                pl.BlockSpec((1, tile_n, 3), lambda b, i: (b, i, 0)),
                pl.BlockSpec((3, c1), lambda b, i: (0, 0)),
                pl.BlockSpec((1, c1), lambda b, i: (0, 0)),
                pl.BlockSpec((c1, c2), lambda b, i: (0, 0)),
                pl.BlockSpec((1, c2), lambda b, i: (0, 0)),
                pl.BlockSpec((c2, h_e), lambda b, i: (0, 0)),
                pl.BlockSpec((1, 1, h_e), lambda b, i: (b, 0, 0)),
                pl.BlockSpec((h_e, latent), lambda b, i: (0, 0)),
                pl.BlockSpec((1, latent), lambda b, i: (0, 0)),
            ],
            out_specs=pl.BlockSpec((1, 1, latent), lambda b, i: (b, 0, 0)),
        ),
        compiler_params=pltpu.CompilerParams(
            dimension_semantics=("parallel", "arbitrary"),
            vmem_limit_bytes=_VMEM_LIMIT),
    )(xyz, w1, b1, w2, b2, wl, bias_b, w4, b4)
    return gfv[:, 0, :]


def decoder_d3(h2, w3, b3, *, tile_co):
    B, h_d = h2.shape
    co = w3.shape[1]
    return pl.pallas_call(
        _decoder_d3_kernel,
        out_shape=jax.ShapeDtypeStruct((B, co), jnp.float32),
        grid_spec=pltpu.PrefetchScalarGridSpec(
            num_scalar_prefetch=0,
            grid=(co // tile_co,),
            in_specs=[
                pl.BlockSpec((B, h_d), lambda j: (0, 0)),
                pl.BlockSpec((h_d, tile_co), lambda j: (0, j)),
                pl.BlockSpec((1, tile_co), lambda j: (0, j)),
            ],
            out_specs=pl.BlockSpec((B, tile_co), lambda j: (0, j)),
        ),
        compiler_params=pltpu.CompilerParams(
            dimension_semantics=("parallel",),
            vmem_limit_bytes=_VMEM_LIMIT),
    )(h2, w3, b3)


def final_conv(coarse, seed_term, bias_g, w1p, w2, b2, w3, b3, *, tile_nc):
    B, nc, _ = coarse.shape
    g2, f = seed_term.shape
    return pl.pallas_call(
        _final_conv_kernel,
        out_shape=jax.ShapeDtypeStruct((B, g2, 3, nc), jnp.float32),
        grid_spec=pltpu.PrefetchScalarGridSpec(
            num_scalar_prefetch=0,
            grid=(B, nc // tile_nc),
            in_specs=[
                pl.BlockSpec((1, tile_nc, 3), lambda b, i: (b, i, 0)),
                pl.BlockSpec((g2, f), lambda b, i: (0, 0)),
                pl.BlockSpec((1, 1, f), lambda b, i: (b, 0, 0)),
                pl.BlockSpec((3, f), lambda b, i: (0, 0)),
                pl.BlockSpec((f, f), lambda b, i: (0, 0)),
                pl.BlockSpec((1, f), lambda b, i: (0, 0)),
                pl.BlockSpec((f, 3), lambda b, i: (0, 0)),
                pl.BlockSpec((1, 3), lambda b, i: (0, 0)),
            ],
            out_specs=pl.BlockSpec((1, g2, 3, tile_nc), lambda b, i: (b, 0, 0, i)),
        ),
        compiler_params=pltpu.CompilerParams(
            dimension_semantics=("parallel", "parallel"),
            vmem_limit_bytes=_VMEM_LIMIT),
    )(coarse, seed_term, bias_g, w1p, w2, b2, w3, b3)


# ---------------------------------------------------------------------------
# Parameters (deterministic, PyTorch-default-style init; eval-mode BN folded)
# ---------------------------------------------------------------------------
def _uniform(key, shape, fan_in):
    bound = 1.0 / float(fan_in) ** 0.5
    return jax.random.uniform(key, shape, jnp.float32, -bound, bound)


def make_layer(key, c_in, c_out):
    kw, kb = jax.random.split(key)
    return _uniform(kw, (c_in, c_out), c_in), _uniform(kb, (1, c_out), c_in)


def fold_bn(w, b, c, eps=1e-5):
    gamma = jnp.ones((c,), jnp.float32)
    beta = jnp.zeros((c,), jnp.float32)
    mean = jnp.zeros((c,), jnp.float32)
    var = jnp.ones((c,), jnp.float32)
    scale = gamma / jnp.sqrt(var + eps)
    return w * scale[None, :], (b - mean[None, :]) * scale[None, :] + beta[None, :]


def init_params(key, cfg):
    keys = jax.random.split(key, 10)
    p = {}
    p["e1"] = fold_bn(*make_layer(keys[0], 3, cfg["c1"]), cfg["c1"])
    p["e2"] = make_layer(keys[1], cfg["c1"], cfg["c2"])
    p["e3"] = fold_bn(*make_layer(keys[2], 2 * cfg["c2"], cfg["h_e"]), cfg["h_e"])
    p["e4"] = make_layer(keys[3], cfg["h_e"], cfg["latent"])
    p["d1"] = make_layer(keys[4], cfg["latent"], cfg["h_d"])
    p["d2"] = make_layer(keys[5], cfg["h_d"], cfg["h_d"])
    p["d3"] = make_layer(keys[6], cfg["h_d"], 3 * cfg["num_coarse"])
    cin = cfg["latent"] + 2 + 3
    p["f1"] = fold_bn(*make_layer(keys[7], cin, cfg["f"]), cfg["f"])
    p["f2"] = fold_bn(*make_layer(keys[8], cfg["f"], cfg["f"]), cfg["f"])
    p["f3"] = make_layer(keys[9], cfg["f"], 3)
    return p


def prep_params(p, cfg):
    """Split / cast the folded parameters into the kernel-ready layout."""
    bf16 = jnp.bfloat16
    c2, latent = cfg["c2"], cfg["latent"]
    q = {}
    q["e1"] = p["e1"]                                       # (3,c1),(1,c1) f32 (tiny K)
    q["e2"] = (p["e2"][0].astype(bf16), p["e2"][1])
    w_e3, b_e3 = p["e3"]
    q["e3_wg"] = w_e3[:c2]                                  # global half -> per-batch bias
    q["e3_wl"] = w_e3[c2:].astype(bf16)                     # local half  -> streamed
    q["e3_b"] = b_e3
    q["e4"] = (p["e4"][0].astype(bf16), p["e4"][1])
    q["d1"] = p["d1"]                                       # tiny B-row matmuls stay JAX/f32
    q["d2"] = p["d2"]
    q["d3"] = (p["d3"][0].astype(bf16), p["d3"][1])
    w_f1, b_f1 = p["f1"]
    q["f1_wg"] = w_f1[:latent]                              # global rows -> per-batch bias
    q["f1_ws"] = w_f1[latent:latent + 2]                    # seed rows   -> (g2,f) term
    q["f1_wp"] = w_f1[latent + 2:]                          # point rows  -> streamed (3,f)
    q["f1_b"] = b_f1
    q["f2"] = (p["f2"][0].astype(bf16), p["f2"][1])
    q["f3"] = p["f3"]                                       # (f,3),(1,3) f32
    return q


def make_folding_seed(grid_size):
    lin = jnp.linspace(-0.15, 0.15, grid_size, dtype=jnp.float32)
    a = jnp.tile(lin.reshape(1, grid_size), (grid_size, 1)).reshape(1, -1)
    b = jnp.tile(lin.reshape(grid_size, 1), (1, grid_size)).reshape(1, -1)
    return jnp.concatenate([a, b], axis=0)                  # (2, grid_size**2)


# ---------------------------------------------------------------------------
# Forward pass
# ---------------------------------------------------------------------------
def encoder_forward(q, xyz, cfg):
    B, N, _ = xyz.shape
    tile_n = _pick_tile(N, cap=2048)
    # Stage 1 only produces the per-cloud max; feat never round-trips HBM.
    g = encoder_stage1(xyz, *q["e1"], *q["e2"], tile_n=tile_n)
    # Fold the broadcast global feature into a per-batch bias (kills the (B,N,2*c2)
    # concat); the tiny (B,c2)@(c2,h_e) matmul stays in JAX.
    bias_e3 = (g @ q["e3_wg"] + q["e3_b"]).reshape(B, 1, -1)
    # Stage 2 recomputes feat from xyz in-kernel (cheap) instead of re-reading it.
    gfv = encoder_stage2(xyz, *q["e1"], *q["e2"], q["e3_wl"], bias_e3,
                         *q["e4"], tile_n=tile_n)
    return gfv


def decoder_forward(q, gfv, folding_seed, cfg):
    B = gfv.shape[0]
    nc, nd, g2 = cfg["num_coarse"], cfg["num_dense"], cfg["grid_size"] ** 2

    # d1/d2 are tiny B-row matmuls -> plain JAX; only d3 weight streaming is a kernel.
    h = jax.nn.relu(gfv @ q["d1"][0] + q["d1"][1])
    h = jax.nn.relu(h @ q["d2"][0] + q["d2"][1])
    tile_co = _pick_cout_tile(3 * nc)
    coarse = decoder_d3(h, *q["d3"], tile_co=tile_co).reshape(B, nc, 3)

    # Per-grid seed term (g2,f) and per-batch global term replace the (B,nd,latent+5)
    # concat; point_feat is never materialized (repeat happens in-kernel).
    seed_term = folding_seed.T @ q["f1_ws"]                  # (g2, f)
    bias_f1 = (gfv @ q["f1_wg"] + q["f1_b"]).reshape(B, 1, -1)
    tile_nc = _pick_tile(nc, cap=512)                        # tile_nd = g2*tile_nc <= 2048
    out4 = final_conv(coarse, seed_term, bias_f1, q["f1_wp"],
                      *q["f2"], *q["f3"], tile_nc=tile_nc)   # (B, g2, 3, nc) lane-dense
    fine = jnp.transpose(out4, (0, 3, 1, 2)).reshape(B, nd, 3)
    return coarse, fine


def autoencoder_forward(q, folding_seed, x, cfg):
    gfv = encoder_forward(q, x, cfg)
    coarse, fine = decoder_forward(q, gfv, folding_seed, cfg)
    return gfv, coarse, fine


# ---------------------------------------------------------------------------
# Pure-JAX reference (f32 weights) for correctness checking
# ---------------------------------------------------------------------------
def reference_forward(p, folding_seed, x, cfg):
    B, N, _ = x.shape
    nc, nd, g2 = cfg["num_coarse"], cfg["num_dense"], cfg["grid_size"] ** 2
    relu = jax.nn.relu
    h = relu(x @ p["e1"][0] + p["e1"][1])
    feat = h @ p["e2"][0] + p["e2"][1]
    g = jnp.max(feat, axis=1)
    cat = jnp.concatenate(
        [jnp.broadcast_to(g[:, None], (B, N, feat.shape[-1])), feat], axis=-1)
    h = relu(cat @ p["e3"][0] + p["e3"][1])
    z = h @ p["e4"][0] + p["e4"][1]
    gfv = jnp.max(z, axis=1)
    h = relu(gfv @ p["d1"][0] + p["d1"][1])
    h = relu(h @ p["d2"][0] + p["d2"][1])
    coarse = (h @ p["d3"][0] + p["d3"][1]).reshape(B, nc, 3)
    point_feat = jnp.repeat(coarse, g2, axis=1)
    seed = jnp.broadcast_to(jnp.tile(folding_seed.T, (nc, 1))[None], (B, nd, 2))
    gexp = jnp.broadcast_to(gfv[:, None], (B, nd, gfv.shape[-1]))
    feat2 = jnp.concatenate([gexp, seed, point_feat], axis=-1)
    h = relu(feat2 @ p["f1"][0] + p["f1"][1])
    h = relu(h @ p["f2"][0] + p["f2"][1])
    fine = (h @ p["f3"][0] + p["f3"][1]) + point_feat
    return gfv, coarse, fine


# ---------------------------------------------------------------------------
if __name__ == "__main__":
    # Small, architecture-consistent configuration (full model uses c1=128, c2=256,
    # h_e=512, latent=1024, h_d=1024, f=512, num_dense=4096).
    cfg = dict(
        num_dense=1024,
        grid_size=2,
        num_coarse=1024 // 4,
        latent=128,
        c1=128,
        c2=128,
        h_e=128,
        h_d=128,
        f=128,
    )

    key = jax.random.PRNGKey(0)
    k_param, k_x = jax.random.split(key)
    params = init_params(k_param, cfg)
    kparams = prep_params(params, cfg)
    folding_seed = make_folding_seed(cfg["grid_size"])

    B, N = 2, 1024
    x = jax.random.normal(k_x, (B, N, 3), jnp.float32)       # point cloud (B, N, 3)

    fwd = jax.jit(functools.partial(autoencoder_forward, cfg=cfg))
    gfv, coarse, fine = fwd(kparams, folding_seed, x)
    jax.block_until_ready((gfv, coarse, fine))

    assert gfv.shape == (B, cfg["latent"])
    assert coarse.shape == (B, cfg["num_coarse"], 3)
    assert fine.shape == (B, cfg["num_dense"], 3)

    # Cross-check against the pure-JAX reference (kernels use bf16 weights /
    # activations, so compare with a generous tolerance relative to output scale).
    gfv_r, coarse_r, fine_r = reference_forward(params, folding_seed, x, cfg)
    for got, want in ((gfv, gfv_r), (coarse, coarse_r), (fine, fine_r)):
        err = float(jnp.max(jnp.abs(got - want)) / (jnp.max(jnp.abs(want)) + 1e-6))
        assert err < 0.1, f"mismatch vs reference: rel-to-scale err={err:.4f}"

    print("KERNEL_OK")
</pallas_src>

<mosaic_0001>
module attributes {stable_mosaic.version = 11 : i64} {
  func.func @_enc_stage2_kernel(%arg0: i32, %arg1: i32, %arg2: memref<1x1024x3xf32, #tpu.memory_space<vmem>>, %arg3: memref<3x128xf32, #tpu.memory_space<vmem>>, %arg4: memref<1x128xf32, #tpu.memory_space<vmem>>, %arg5: memref<128x128xbf16, #tpu.memory_space<vmem>>, %arg6: memref<1x128xf32, #tpu.memory_space<vmem>>, %arg7: memref<128x128xbf16, #tpu.memory_space<vmem>>, %arg8: memref<1x1x128xf32, #tpu.memory_space<vmem>>, %arg9: memref<128x128xbf16, #tpu.memory_space<vmem>>, %arg10: memref<1x128xf32, #tpu.memory_space<vmem>>, %arg11: memref<1x1x128xf32, #tpu.memory_space<vmem>>) attributes {dimension_semantics = [#tpu.dimension_semantics<parallel>, #tpu.dimension_semantics<arbitrary>], iteration_bounds = array<i64: 2, 1>, scalar_prefetch = 0 : i64, scratch_operands = 0 : i64, tpu.core_type = #tpu.core_type<tc>, window_params = [{transform_indices = @transform_0, window_bounds = array<i64: 1, 1024, 3>}, {pipeline_mode = #tpu.pipeline_mode<synchronous>, transform_indices = @transform_1, window_bounds = array<i64: 3, 128>}, {pipeline_mode = #tpu.pipeline_mode<synchronous>, transform_indices = @transform_2, window_bounds = array<i64: 1, 128>}, {pipeline_mode = #tpu.pipeline_mode<synchronous>, transform_indices = @transform_3, window_bounds = array<i64: 128, 128>}, {pipeline_mode = #tpu.pipeline_mode<synchronous>, transform_indices = @transform_4, window_bounds = array<i64: 1, 128>}, {pipeline_mode = #tpu.pipeline_mode<synchronous>, transform_indices = @transform_5, window_bounds = array<i64: 128, 128>}, {transform_indices = @transform_6, window_bounds = array<i64: 1, 1, 128>}, {pipeline_mode = #tpu.pipeline_mode<synchronous>, transform_indices = @transform_7, window_bounds = array<i64: 128, 128>}, {pipeline_mode = #tpu.pipeline_mode<synchronous>, transform_indices = @transform_8, window_bounds = array<i64: 1, 128>}, {transform_indices = @transform_9, window_bounds = array<i64: 1, 1, 128>}]} {
    %c0_i32 = arith.constant 0 : i32
    %0 = arith.cmpi eq, %arg1, %c0_i32 : i32
    %1 = arith.extui %0 : i1 to i32
    %c0_i32_0 = arith.constant 0 : i32
    %2 = arith.cmpi ne, %1, %c0_i32_0 : i32
    scf.if %2 {
      %cst_32 = arith.constant 0xFF800000 : f32
      %39 = vector.broadcast %cst_32 : f32 to vector<1x1x128xf32>
      %c0_33 = arith.constant 0 : index
      %c0_34 = arith.constant 0 : index
      %c0_35 = arith.constant 0 : index
      %40 = vector.load %arg11[%c0_33, %c0_34, %c0_35] : memref<1x1x128xf32, #tpu.memory_space<vmem>>, vector<1x1x128xf32>
      tpu.vector_store %arg11[%c0_33, %c0_34, %c0_35], %39 {strides = array<i32>} : memref<1x1x128xf32, #tpu.memory_space<vmem>>, vector<1x1x128xf32>,
    } else {
    }
    %c0 = arith.constant 0 : index
    %c0_1 = arith.constant 0 : index
    %c0_2 = arith.constant 0 : index
    %3 = vector.load %arg2[%c0, %c0_1, %c0_2] : memref<1x1024x3xf32, #tpu.memory_space<vmem>>, vector<1x1024x3xf32>
    %4 = vector.shape_cast %3 : vector<1x1024x3xf32> to vector<1024x3xf32>
    %c0_3 = arith.constant 0 : index
    %c0_4 = arith.constant 0 : index
    %5 = vector.load %arg3[%c0_3, %c0_4] : memref<3x128xf32, #tpu.memory_space<vmem>>, vector<3x128xf32>
    %cst = arith.constant dense<0.000000e+00> : vector<1024x128xf32>
    %6 = tpu.matmul %4, %5, %cst {dimension_numbers = #tpu.dot_dimension_numbers<[1], [0], [0], [1], [0, 0, 1, 1], [], []>} : vector<1024x3xf32>, vector<3x128xf32>, vector<1024x128xf32> -> vector<1024x128xf32>
    %c0_5 = arith.constant 0 : index
    %c0_6 = arith.constant 0 : index
    %7 = vector.load %arg4[%c0_5, %c0_6] : memref<1x128xf32, #tpu.memory_space<vmem>>, vector<1x128xf32>
    %8 = vector.broadcast %7 : vector<1x128xf32> to vector<1024x128xf32>
    %9 = arith.addf %6, %8 : vector<1024x128xf32>
    %cst_7 = arith.constant 0.000000e+00 : f32
    %10 = vector.broadcast %cst_7 : f32 to vector<1024x128xf32>
    %11 = arith.maximumf %9, %10 : vector<1024x128xf32>
    %12 = arith.truncf %11 : vector<1024x128xf32> to vector<1024x128xbf16>
    %c0_8 = arith.constant 0 : index
    %c0_9 = arith.constant 0 : index
    %13 = vector.load %arg5[%c0_8, %c0_9] : memref<128x128xbf16, #tpu.memory_space<vmem>>, vector<128x128xbf16>
    %cst_10 = arith.constant dense<0.000000e+00> : vector<1024x128xf32>
    %14 = tpu.matmul %12, %13, %cst_10 {dimension_numbers = #tpu.dot_dimension_numbers<[1], [0], [0], [1], [0, 0, 1, 1], [], []>} : vector<1024x128xbf16>, vector<128x128xbf16>, vector<1024x128xf32> -> vector<1024x128xf32>
    %c0_11 = arith.constant 0 : index
    %c0_12 = arith.constant 0 : index
    %15 = vector.load %arg6[%c0_11, %c0_12] : memref<1x128xf32, #tpu.memory_space<vmem>>, vector<1x128xf32>
    %16 = vector.broadcast %15 : vector<1x128xf32> to vector<1024x128xf32>
    %17 = arith.addf %14, %16 : vector<1024x128xf32>
    %18 = arith.truncf %17 : vector<1024x128xf32> to vector<1024x128xbf16>
    %c0_13 = arith.constant 0 : index
    %c0_14 = arith.constant 0 : index
    %19 = vector.load %arg7[%c0_13, %c0_14] : memref<128x128xbf16, #tpu.memory_space<vmem>>, vector<128x128xbf16>
    %cst_15 = arith.constant dense<0.000000e+00> : vector<1024x128xf32>
    %20 = tpu.matmul %18, %19, %cst_15 {dimension_numbers = #tpu.dot_dimension_numbers<[1], [0], [0], [1], [0, 0, 1, 1], [], []>} : vector<1024x128xbf16>, vector<128x128xbf16>, vector<1024x128xf32> -> vector<1024x128xf32>
    %c0_16 = arith.constant 0 : index
    %c0_17 = arith.constant 0 : index
    %c0_18 = arith.constant 0 : index
    %21 = vector.load %arg8[%c0_16, %c0_17, %c0_18] : memref<1x1x128xf32, #tpu.memory_space<vmem>>, vector<1x1x128xf32>
    %22 = vector.shape_cast %21 : vector<1x1x128xf32> to vector<1x128xf32>
    %23 = vector.broadcast %22 : vector<1x128xf32> to vector<1024x128xf32>
    %24 = arith.addf %20, %23 : vector<1024x128xf32>
    %cst_19 = arith.constant 0.000000e+00 : f32
    %25 = vector.broadcast %cst_19 : f32 to vector<1024x128xf32>
    %26 = arith.maximumf %24, %25 : vector<1024x128xf32>
    %27 = arith.truncf %26 : vector<1024x128xf32> to vector<1024x128xbf16>
    %c0_20 = arith.constant 0 : index
    %c0_21 = arith.constant 0 : index
    %28 = vector.load %arg9[%c0_20, %c0_21] : memref<128x128xbf16, #tpu.memory_space<vmem>>, vector<128x128xbf16>
    %cst_22 = arith.constant dense<0.000000e+00> : vector<1024x128xf32>
    %29 = tpu.matmul %27, %28, %cst_22 {dimension_numbers = #tpu.dot_dimension_numbers<[1], [0], [0], [1], [0, 0, 1, 1], [], []>} : vector<1024x128xbf16>, vector<128x128xbf16>, vector<1024x128xf32> -> vector<1024x128xf32>
    %c0_23 = arith.constant 0 : index
    %c0_24 = arith.constant 0 : index
    %30 = vector.load %arg10[%c0_23, %c0_24] : memref<1x128xf32, #tpu.memory_space<vmem>>, vector<1x128xf32>
    %31 = vector.broadcast %30 : vector<1x128xf32> to vector<1024x128xf32>
    %32 = arith.addf %29, %31 : vector<1024x128xf32>
    %c0_25 = arith.constant 0 : index
    %c0_26 = arith.constant 0 : index
    %c0_27 = arith.constant 0 : index
    %33 = vector.load %arg11[%c0_25, %c0_26, %c0_27] : memref<1x1x128xf32, #tpu.memory_space<vmem>>, vector<1x1x128xf32>
    %cst_28 = arith.constant dense<0xFF800000> : vector<128xf32>
    %34 = vector.multi_reduction <maximumf>, %32, %cst_28 [0] : vector<1024x128xf32> to vector<128xf32>
    %35 = vector.shape_cast %34 : vector<128xf32> to vector<1x128xf32>
    %36 = vector.shape_cast %35 : vector<1x128xf32> to vector<1x1x128xf32>
    %37 = arith.maximumf %33, %36 : vector<1x1x128xf32>
    %c0_29 = arith.constant 0 : index
    %c0_30 = arith.constant 0 : index
    %c0_31 = arith.constant 0 : index
    %38 = vector.load %arg11[%c0_29, %c0_30, %c0_31] : memref<1x1x128xf32, #tpu.memory_space<vmem>>, vector<1x1x128xf32>
    tpu.vector_store %arg11[%c0_29, %c0_30, %c0_31], %37 {strides = array<i32>} : memref<1x1x128xf32, #tpu.memory_space<vmem>>, vector<1x1x128xf32>,
    return
  }
  func.func @transform_0(%arg0: i32, %arg1: i32) -> (i32, i32, i32) {
    %c0_i32 = arith.constant 0 : i32
    %c0_i32_0 = arith.constant 0 : i32
    return %arg0, %arg1, %c0_i32 : i32, i32, i32
  }
  func.func @transform_1(%arg0: i32, %arg1: i32) -> (i32, i32) {
    %c0_i32 = arith.constant 0 : i32
    %c0_i32_0 = arith.constant 0 : i32
    %c0_i32_1 = arith.constant 0 : i32
    return %c0_i32, %c0_i32_0 : i32, i32
  }
  func.func @transform_2(%arg0: i32, %arg1: i32) -> (i32, i32) {
    %c0_i32 = arith.constant 0 : i32
    %c0_i32_0 = arith.constant 0 : i32
    %c0_i32_1 = arith.constant 0 : i32
    return %c0_i32, %c0_i32_0 : i32, i32
  }
  func.func @transform_3(%arg0: i32, %arg1: i32) -> (i32, i32) {
    %c0_i32 = arith.constant 0 : i32
    %c0_i32_0 = arith.constant 0 : i32
    %c0_i32_1 = arith.constant 0 : i32
    return %c0_i32, %c0_i32_0 : i32, i32
  }
  func.func @transform_4(%arg0: i32, %arg1: i32) -> (i32, i32) {
    %c0_i32 = arith.constant 0 : i32
    %c0_i32_0 = arith.constant 0 : i32
    %c0_i32_1 = arith.constant 0 : i32
    return %c0_i32, %c0_i32_0 : i32, i32
  }
  func.func @transform_5(%arg0: i32, %arg1: i32) -> (i32, i32) {
    %c0_i32 = arith.constant 0 : i32
    %c0_i32_0 = arith.constant 0 : i32
    %c0_i32_1 = arith.constant 0 : i32
    return %c0_i32, %c0_i32_0 : i32, i32
  }
  func.func @transform_6(%arg0: i32, %arg1: i32) -> (i32, i32, i32) {
    %c0_i32 = arith.constant 0 : i32
    %c0_i32_0 = arith.constant 0 : i32
    %c0_i32_1 = arith.constant 0 : i32
    return %arg0, %c0_i32, %c0_i32_0 : i32, i32, i32
  }
  func.func @transform_7(%arg0: i32, %arg1: i32) -> (i32, i32) {
    %c0_i32 = arith.constant 0 : i32
    %c0_i32_0 = arith.constant 0 : i32
    %c0_i32_1 = arith.constant 0 : i32
    return %c0_i32, %c0_i32_0 : i32, i32
  }
  func.func @transform_8(%arg0: i32, %arg1: i32) -> (i32, i32) {
    %c0_i32 = arith.constant 0 : i32
    %c0_i32_0 = arith.constant 0 : i32
    %c0_i32_1 = arith.constant 0 : i32
    return %c0_i32, %c0_i32_0 : i32, i32
  }
  func.func @transform_9(%arg0: i32, %arg1: i32) -> (i32, i32, i32) {
    %c0_i32 = arith.constant 0 : i32
    %c0_i32_0 = arith.constant 0 : i32
    %c0_i32_1 = arith.constant 0 : i32
    return %arg0, %c0_i32, %c0_i32_0 : i32, i32, i32
  }
}

module attributes {stable_mosaic.version = 11 : i64} {
  func.func @_enc_stage1_kernel(%arg0: i32, %arg1: i32, %arg2: memref<1x1024x3xf32, #tpu.memory_space<vmem>>, %arg3: memref<3x128xf32, #tpu.memory_space<vmem>>, %arg4: memref<1x128xf32, #tpu.memory_space<vmem>>, %arg5: memref<128x128xbf16, #tpu.memory_space<vmem>>, %arg6: memref<1x128xf32, #tpu.memory_space<vmem>>, %arg7: memref<1x1x128xf32, #tpu.memory_space<vmem>>) attributes {dimension_semantics = [#tpu.dimension_semantics<parallel>, #tpu.dimension_semantics<arbitrary>], iteration_bounds = array<i64: 2, 1>, scalar_prefetch = 0 : i64, scratch_operands = 0 : i64, tpu.core_type = #tpu.core_type<tc>, window_params = [{transform_indices = @transform_0, window_bounds = array<i64: 1, 1024, 3>}, {pipeline_mode = #tpu.pipeline_mode<synchronous>, transform_indices = @transform_1, window_bounds = array<i64: 3, 128>}, {pipeline_mode = #tpu.pipeline_mode<synchronous>, transform_indices = @transform_2, window_bounds = array<i64: 1, 128>}, {pipeline_mode = #tpu.pipeline_mode<synchronous>, transform_indices = @transform_3, window_bounds = array<i64: 128, 128>}, {pipeline_mode = #tpu.pipeline_mode<synchronous>, transform_indices = @transform_4, window_bounds = array<i64: 1, 128>}, {transform_indices = @transform_5, window_bounds = array<i64: 1, 1, 128>}]} {
    %c0_i32 = arith.constant 0 : i32
    %0 = arith.cmpi eq, %arg1, %c0_i32 : i32
    %1 = arith.extui %0 : i1 to i32
    %c0_i32_0 = arith.constant 0 : i32
    %2 = arith.cmpi ne, %1, %c0_i32_0 : i32
    scf.if %2 {
      %cst_20 = arith.constant 0xFF800000 : f32
      %24 = vector.broadcast %cst_20 : f32 to vector<1x1x128xf32>
      %c0_21 = arith.constant 0 : index
      %c0_22 = arith.constant 0 : index
      %c0_23 = arith.constant 0 : index
      %25 = vector.load %arg7[%c0_21, %c0_22, %c0_23] : memref<1x1x128xf32, #tpu.memory_space<vmem>>, vector<1x1x128xf32>
      tpu.vector_store %arg7[%c0_21, %c0_22, %c0_23], %24 {strides = array<i32>} : memref<1x1x128xf32, #tpu.memory_space<vmem>>, vector<1x1x128xf32>,
    } else {
    }
    %c0 = arith.constant 0 : index
    %c0_1 = arith.constant 0 : index
    %c0_2 = arith.constant 0 : index
    %3 = vector.load %arg2[%c0, %c0_1, %c0_2] : memref<1x1024x3xf32, #tpu.memory_space<vmem>>, vector<1x1024x3xf32>
    %4 = vector.shape_cast %3 : vector<1x1024x3xf32> to vector<1024x3xf32>
    %c0_3 = arith.constant 0 : index
    %c0_4 = arith.constant 0 : index
    %5 = vector.load %arg3[%c0_3, %c0_4] : memref<3x128xf32, #tpu.memory_space<vmem>>, vector<3x128xf32>
    %cst = arith.constant dense<0.000000e+00> : vector<1024x128xf32>
    %6 = tpu.matmul %4, %5, %cst {dimension_numbers = #tpu.dot_dimension_numbers<[1], [0], [0], [1], [0, 0, 1, 1], [], []>} : vector<1024x3xf32>, vector<3x128xf32>, vector<1024x128xf32> -> vector<1024x128xf32>
    %c0_5 = arith.constant 0 : index
    %c0_6 = arith.constant 0 : index
    %7 = vector.load %arg4[%c0_5, %c0_6] : memref<1x128xf32, #tpu.memory_space<vmem>>, vector<1x128xf32>
    %8 = vector.broadcast %7 : vector<1x128xf32> to vector<1024x128xf32>
    %9 = arith.addf %6, %8 : vector<1024x128xf32>
    %cst_7 = arith.constant 0.000000e+00 : f32
    %10 = vector.broadcast %cst_7 : f32 to vector<1024x128xf32>
    %11 = arith.maximumf %9, %10 : vector<1024x128xf32>
    %12 = arith.truncf %11 : vector<1024x128xf32> to vector<1024x128xbf16>
    %c0_8 = arith.constant 0 : index
    %c0_9 = arith.constant 0 : index
    %13 = vector.load %arg5[%c0_8, %c0_9] : memref<128x128xbf16, #tpu.memory_space<vmem>>, vector<128x128xbf16>
    %cst_10 = arith.constant dense<0.000000e+00> : vector<1024x128xf32>
    %14 = tpu.matmul %12, %13, %cst_10 {dimension_numbers = #tpu.dot_dimension_numbers<[1], [0], [0], [1], [0, 0, 1, 1], [], []>} : vector<1024x128xbf16>, vector<128x128xbf16>, vector<1024x128xf32> -> vector<1024x128xf32>
    %c0_11 = arith.constant 0 : index
    %c0_12 = arith.constant 0 : index
    %15 = vector.load %arg6[%c0_11, %c0_12] : memref<1x128xf32, #tpu.memory_space<vmem>>, vector<1x128xf32>
    %16 = vector.broadcast %15 : vector<1x128xf32> to vector<1024x128xf32>
    %17 = arith.addf %14, %16 : vector<1024x128xf32>
    %c0_13 = arith.constant 0 : index
    %c0_14 = arith.constant 0 : index
    %c0_15 = arith.constant 0 : index
    %18 = vector.load %arg7[%c0_13, %c0_14, %c0_15] : memref<1x1x128xf32, #tpu.memory_space<vmem>>, vector<1x1x128xf32>
    %cst_16 = arith.constant dense<0xFF800000> : vector<128xf32>
    %19 = vector.multi_reduction <maximumf>, %17, %cst_16 [0] : vector<1024x128xf32> to vector<128xf32>
    %20 = vector.shape_cast %19 : vector<128xf32> to vector<1x128xf32>
    %21 = vector.shape_cast %20 : vector<1x128xf32> to vector<1x1x128xf32>
    %22 = arith.maximumf %18, %21 : vector<1x1x128xf32>
    %c0_17 = arith.constant 0 : index
    %c0_18 = arith.constant 0 : index
    %c0_19 = arith.constant 0 : index
    %23 = vector.load %arg7[%c0_17, %c0_18, %c0_19] : memref<1x1x128xf32, #tpu.memory_space<vmem>>, vector<1x1x128xf32>
    tpu.vector_store %arg7[%c0_17, %c0_18, %c0_19], %22 {strides = array<i32>} : memref<1x1x128xf32, #tpu.memory_space<vmem>>, vector<1x1x128xf32>,
    return
  }
  func.func @transform_0(%arg0: i32, %arg1: i32) -> (i32, i32, i32) {
    %c0_i32 = arith.constant 0 : i32
    %c0_i32_0 = arith.constant 0 : i32
    return %arg0, %arg1, %c0_i32 : i32, i32, i32
  }
  func.func @transform_1(%arg0: i32, %arg1: i32) -> (i32, i32) {
    %c0_i32 = arith.constant 0 : i32
    %c0_i32_0 = arith.constant 0 : i32
    %c0_i32_1 = arith.constant 0 : i32
    return %c0_i32, %c0_i32_0 : i32, i32
  }
  func.func @transform_2(%arg0: i32, %arg1: i32) -> (i32, i32) {
    %c0_i32 = arith.constant 0 : i32
    %c0_i32_0 = arith.constant 0 : i32
    %c0_i32_1 = arith.constant 0 : i32
    return %c0_i32, %c0_i32_0 : i32, i32
  }
  func.func @transform_3(%arg0: i32, %arg1: i32) -> (i32, i32) {
    %c0_i32 = arith.constant 0 : i32
    %c0_i32_0 = arith.constant 0 : i32
    %c0_i32_1 = arith.constant 0 : i32
    return %c0_i32, %c0_i32_0 : i32, i32
  }
  func.func @transform_4(%arg0: i32, %arg1: i32) -> (i32, i32) {
    %c0_i32 = arith.constant 0 : i32
    %c0_i32_0 = arith.constant 0 : i32
    %c0_i32_1 = arith.constant 0 : i32
    return %c0_i32, %c0_i32_0 : i32, i32
  }
  func.func @transform_5(%arg0: i32, %arg1: i32) -> (i32, i32, i32) {
    %c0_i32 = arith.constant 0 : i32
    %c0_i32_0 = arith.constant 0 : i32
    %c0_i32_1 = arith.constant 0 : i32
    return %arg0, %c0_i32, %c0_i32_0 : i32, i32, i32
  }
}

module attributes {stable_mosaic.version = 11 : i64} {
  func.func @_decoder_d3_kernel(%arg0: i32, %arg1: memref<2x128xf32, #tpu.memory_space<vmem>>, %arg2: memref<128x768xbf16, #tpu.memory_space<vmem>>, %arg3: memref<1x768xf32, #tpu.memory_space<vmem>>, %arg4: memref<2x768xf32, #tpu.memory_space<vmem>>) attributes {dimension_semantics = [#tpu.dimension_semantics<parallel>], iteration_bounds = array<i64: 1>, scalar_prefetch = 0 : i64, scratch_operands = 0 : i64, tpu.core_type = #tpu.core_type<tc>, window_params = [{pipeline_mode = #tpu.pipeline_mode<synchronous>, transform_indices = @transform_0, window_bounds = array<i64: 2, 128>}, {transform_indices = @transform_1, window_bounds = array<i64: 128, 768>}, {transform_indices = @transform_2, window_bounds = array<i64: 1, 768>}, {transform_indices = @transform_3, window_bounds = array<i64: 2, 768>}]} {
    %c0 = arith.constant 0 : index
    %c0_0 = arith.constant 0 : index
    %0 = vector.load %arg1[%c0, %c0_0] : memref<2x128xf32, #tpu.memory_space<vmem>>, vector<2x128xf32>
    %1 = arith.truncf %0 : vector<2x128xf32> to vector<2x128xbf16>
    %c0_1 = arith.constant 0 : index
    %c0_2 = arith.constant 0 : index
    %2 = vector.load %arg2[%c0_1, %c0_2] : memref<128x768xbf16, #tpu.memory_space<vmem>>, vector<128x768xbf16>
    %cst = arith.constant dense<0.000000e+00> : vector<2x768xf32>
    %3 = tpu.matmul %1, %2, %cst {dimension_numbers = #tpu.dot_dimension_numbers<[1], [0], [0], [1], [0, 0, 1, 1], [], []>} : vector<2x128xbf16>, vector<128x768xbf16>, vector<2x768xf32> -> vector<2x768xf32>
    %c0_3 = arith.constant 0 : index
    %c0_4 = arith.constant 0 : index
    %4 = vector.load %arg3[%c0_3, %c0_4] : memref<1x768xf32, #tpu.memory_space<vmem>>, vector<1x768xf32>
    %5 = vector.broadcast %4 : vector<1x768xf32> to vector<2x768xf32>
    %6 = arith.addf %3, %5 : vector<2x768xf32>
    %c0_5 = arith.constant 0 : index
    %c0_6 = arith.constant 0 : index
    %7 = vector.load %arg4[%c0_5, %c0_6] : memref<2x768xf32, #tpu.memory_space<vmem>>, vector<2x768xf32>
    tpu.vector_store %arg4[%c0_5, %c0_6], %6 {strides = array<i32>} : memref<2x768xf32, #tpu.memory_space<vmem>>, vector<2x768xf32>,
    return
  }
  func.func @transform_0(%arg0: i32) -> (i32, i32) {
    %c0_i32 = arith.constant 0 : i32
    %c0_i32_0 = arith.constant 0 : i32
    %c0_i32_1 = arith.constant 0 : i32
    return %c0_i32, %c0_i32_0 : i32, i32
  }
  func.func @transform_1(%arg0: i32) -> (i32, i32) {
    %c0_i32 = arith.constant 0 : i32
    %c0_i32_0 = arith.constant 0 : i32
    return %c0_i32, %arg0 : i32, i32
  }
  func.func @transform_2(%arg0: i32) -> (i32, i32) {
    %c0_i32 = arith.constant 0 : i32
    %c0_i32_0 = arith.constant 0 : i32
    return %c0_i32, %arg0 : i32, i32
  }
  func.func @transform_3(%arg0: i32) -> (i32, i32) {
    %c0_i32 = arith.constant 0 : i32
    %c0_i32_0 = arith.constant 0 : i32
    return %c0_i32, %arg0 : i32, i32
  }
}

module attributes {stable_mosaic.version = 11 : i64} {
  func.func @_final_conv_kernel(%arg0: i32, %arg1: i32, %arg2: memref<1x256x3xf32, #tpu.memory_space<vmem>>, %arg3: memref<4x128xf32, #tpu.memory_space<vmem>>, %arg4: memref<1x1x128xf32, #tpu.memory_space<vmem>>, %arg5: memref<3x128xf32, #tpu.memory_space<vmem>>, %arg6: memref<128x128xbf16, #tpu.memory_space<vmem>>, %arg7: memref<1x128xf32, #tpu.memory_space<vmem>>, %arg8: memref<128x3xf32, #tpu.memory_space<vmem>>, %arg9: memref<1x3xf32, #tpu.memory_space<vmem>>, %arg10: memref<1x4x3x256xf32, #tpu.memory_space<vmem>>) attributes {dimension_semantics = [#tpu.dimension_semantics<parallel>, #tpu.dimension_semantics<parallel>], iteration_bounds = array<i64: 2, 1>, scalar_prefetch = 0 : i64, scratch_operands = 0 : i64, tpu.core_type = #tpu.core_type<tc>, window_params = [{transform_indices = @transform_0, window_bounds = array<i64: 1, 256, 3>}, {pipeline_mode = #tpu.pipeline_mode<synchronous>, transform_indices = @transform_1, window_bounds = array<i64: 4, 128>}, {transform_indices = @transform_2, window_bounds = array<i64: 1, 1, 128>}, {pipeline_mode = #tpu.pipeline_mode<synchronous>, transform_indices = @transform_3, window_bounds = array<i64: 3, 128>}, {pipeline_mode = #tpu.pipeline_mode<synchronous>, transform_indices = @transform_4, window_bounds = array<i64: 128, 128>}, {pipeline_mode = #tpu.pipeline_mode<synchronous>, transform_indices = @transform_5, window_bounds = array<i64: 1, 128>}, {pipeline_mode = #tpu.pipeline_mode<synchronous>, transform_indices = @transform_6, window_bounds = array<i64: 128, 3>}, {pipeline_mode = #tpu.pipeline_mode<synchronous>, transform_indices = @transform_7, window_bounds = array<i64: 1, 3>}, {transform_indices = @transform_8, window_bounds = array<i64: 1, 4, 3, 256>}]} {
    %c0 = arith.constant 0 : index
    %c0_0 = arith.constant 0 : index
    %c0_1 = arith.constant 0 : index
    %0 = vector.load %arg2[%c0, %c0_0, %c0_1] : memref<1x256x3xf32, #tpu.memory_space<vmem>>, vector<1x256x3xf32>
    %1 = vector.shape_cast %0 : vector<1x256x3xf32> to vector<256x3xf32>
    %c0_2 = arith.constant 0 : index
    %c0_3 = arith.constant 0 : index
    %2 = vector.load %arg3[%c0_2, %c0_3] : memref<4x128xf32, #tpu.memory_space<vmem>>, vector<4x128xf32>
    %c0_4 = arith.constant 0 : index
    %c0_5 = arith.constant 0 : index
    %3 = vector.load %arg5[%c0_4, %c0_5] : memref<3x128xf32, #tpu.memory_space<vmem>>, vector<3x128xf32>
    %cst = arith.constant dense<0.000000e+00> : vector<256x128xf32>
    %4 = tpu.matmul %1, %3, %cst {dimension_numbers = #tpu.dot_dimension_numbers<[1], [0], [0], [1], [0, 0, 1, 1], [], []>} : vector<256x3xf32>, vector<3x128xf32>, vector<256x128xf32> -> vector<256x128xf32>
    %c0_6 = arith.constant 0 : index
    %c0_7 = arith.constant 0 : index
    %c0_8 = arith.constant 0 : index
    %5 = vector.load %arg4[%c0_6, %c0_7, %c0_8] : memref<1x1x128xf32, #tpu.memory_space<vmem>>, vector<1x1x128xf32>
    %6 = vector.shape_cast %5 : vector<1x1x128xf32> to vector<1x128xf32>
    %7 = vector.broadcast %6 : vector<1x128xf32> to vector<256x128xf32>
    %8 = arith.addf %4, %7 : vector<256x128xf32>
    %9 = vector.extract_strided_slice %2 {offsets = [0, 0], sizes = [1, 128], strides = [1, 1]} : vector<4x128xf32> to vector<1x128xf32>
    %10 = vector.broadcast %9 : vector<1x128xf32> to vector<256x128xf32>
    %11 = arith.addf %8, %10 : vector<256x128xf32>
    %cst_9 = arith.constant 0.000000e+00 : f32
    %12 = vector.broadcast %cst_9 : f32 to vector<256x128xf32>
    %13 = arith.maximumf %11, %12 : vector<256x128xf32>
    %14 = arith.truncf %13 : vector<256x128xf32> to vector<256x128xbf16>
    %c0_10 = arith.constant 0 : index
    %c0_11 = arith.constant 0 : index
    %15 = vector.load %arg6[%c0_10, %c0_11] : memref<128x128xbf16, #tpu.memory_space<vmem>>, vector<128x128xbf16>
    %cst_12 = arith.constant dense<0.000000e+00> : vector<256x128xf32>
    %16 = tpu.matmul %14, %15, %cst_12 {dimension_numbers = #tpu.dot_dimension_numbers<[1], [0], [0], [1], [0, 0, 1, 1], [], []>} : vector<256x128xbf16>, vector<128x128xbf16>, vector<256x128xf32> -> vector<256x128xf32>
    %c0_13 = arith.constant 0 : index
    %c0_14 = arith.constant 0 : index
    %17 = vector.load %arg7[%c0_13, %c0_14] : memref<1x128xf32, #tpu.memory_space<vmem>>, vector<1x128xf32>
    %18 = vector.broadcast %17 : vector<1x128xf32> to vector<256x128xf32>
    %19 = arith.addf %16, %18 : vector<256x128xf32>
    %cst_15 = arith.constant 0.000000e+00 : f32
    %20 = vector.broadcast %cst_15 : f32 to vector<256x128xf32>
    %21 = arith.maximumf %19, %20 : vector<256x128xf32>
    %c0_16 = arith.constant 0 : index
    %c0_17 = arith.constant 0 : index
    %22 = vector.load %arg8[%c0_16, %c0_17] : memref<128x3xf32, #tpu.memory_space<vmem>>, vector<128x3xf32>
    %cst_18 = arith.constant dense<0.000000e+00> : vector<256x3xf32>
    %23 = tpu.matmul %21, %22, %cst_18 {dimension_numbers = #tpu.dot_dimension_numbers<[1], [0], [0], [1], [0, 0, 1, 1], [], []>} : vector<256x128xf32>, vector<128x3xf32>, vector<256x3xf32> -> vector<256x3xf32>
    %c0_19 = arith.constant 0 : index
    %c0_20 = arith.constant 0 : index
    %24 = vector.load %arg9[%c0_19, %c0_20] : memref<1x3xf32, #tpu.memory_space<vmem>>, vector<1x3xf32>
    %25 = vector.broadcast %24 : vector<1x3xf32> to vector<256x3xf32>
    %26 = arith.addf %23, %25 : vector<256x3xf32>
    %27 = arith.addf %26, %1 : vector<256x3xf32>
    %28 = tpu.transpose %27, [1, 0] : vector<256x3xf32> -> vector<3x256xf32>
    %c0_21 = arith.constant 0 : index
    %c0_22 = arith.constant 0 : index
    %c0_23 = arith.constant 0 : index
    %c0_24 = arith.constant 0 : index
    %29 = vector.load %arg10[%c0_21, %c0_22, %c0_23, %c0_24] : memref<1x4x3x256xf32, #tpu.memory_space<vmem>>, vector<1x1x3x256xf32>
    %30 = vector.shape_cast %29 : vector<1x1x3x256xf32> to vector<3x256xf32>
    %31 = vector.shape_cast %28 : vector<3x256xf32> to vector<1x1x3x256xf32>
    tpu.vector_store %arg10[%c0_21, %c0_22, %c0_23, %c0_24], %31 {strides = array<i32>} : memref<1x4x3x256xf32, #tpu.memory_space<vmem>>, vector<1x1x3x256xf32>,
    %32 = vector.extract_strided_slice %2 {offsets = [1, 0], sizes = [1, 128], strides = [1, 1]} : vector<4x128xf32> to vector<1x128xf32>
    %33 = vector.broadcast %32 : vector<1x128xf32> to vector<256x128xf32>
    %34 = arith.addf %8, %33 : vector<256x128xf32>
    %cst_25 = arith.constant 0.000000e+00 : f32
    %35 = vector.broadcast %cst_25 : f32 to vector<256x128xf32>
    %36 = arith.maximumf %34, %35 : vector<256x128xf32>
    %37 = arith.truncf %36 : vector<256x128xf32> to vector<256x128xbf16>
    %c0_26 = arith.constant 0 : index
    %c0_27 = arith.constant 0 : index
    %38 = vector.load %arg6[%c0_26, %c0_27] : memref<128x128xbf16, #tpu.memory_space<vmem>>, vector<128x128xbf16>
    %cst_28 = arith.constant dense<0.000000e+00> : vector<256x128xf32>
    %39 = tpu.matmul %37, %38, %cst_28 {dimension_numbers = #tpu.dot_dimension_numbers<[1], [0], [0], [1], [0, 0, 1, 1], [], []>} : vector<256x128xbf16>, vector<128x128xbf16>, vector<256x128xf32> -> vector<256x128xf32>
    %c0_29 = arith.constant 0 : index
    %c0_30 = arith.constant 0 : index
    %40 = vector.load %arg7[%c0_29, %c0_30] : memref<1x128xf32, #tpu.memory_space<vmem>>, vector<1x128xf32>
    %41 = vector.broadcast %40 : vector<1x128xf32> to vector<256x128xf32>
    %42 = arith.addf %39, %41 : vector<256x128xf32>
    %cst_31 = arith.constant 0.000000e+00 : f32
    %43 = vector.broadcast %cst_31 : f32 to vector<256x128xf32>
    %44 = arith.maximumf %42, %43 : vector<256x128xf32>
    %c0_32 = arith.constant 0 : index
    %c0_33 = arith.constant 0 : index
    %45 = vector.load %arg8[%c0_32, %c0_33] : memref<128x3xf32, #tpu.memory_space<vmem>>, vector<128x3xf32>
    %cst_34 = arith.constant dense<0.000000e+00> : vector<256x3xf32>
    %46 = tpu.matmul %44, %45, %cst_34 {dimension_numbers = #tpu.dot_dimension_numbers<[1], [0], [0], [1], [0, 0, 1, 1], [], []>} : vector<256x128xf32>, vector<128x3xf32>, vector<256x3xf32> -> vector<256x3xf32>
    %c0_35 = arith.constant 0 : index
    %c0_36 = arith.constant 0 : index
    %47 = vector.load %arg9[%c0_35, %c0_36] : memref<1x3xf32, #tpu.memory_space<vmem>>, vector<1x3xf32>
    %48 = vector.broadcast %47 : vector<1x3xf32> to vector<256x3xf32>
    %49 = arith.addf %46, %48 : vector<256x3xf32>
    %50 = arith.addf %49, %1 : vector<256x3xf32>
    %51 = tpu.transpose %50, [1, 0] : vector<256x3xf32> -> vector<3x256xf32>
    %c0_37 = arith.constant 0 : index
    %c1 = arith.constant 1 : index
    %c0_38 = arith.constant 0 : index
    %c0_39 = arith.constant 0 : index
    %52 = vector.load %arg10[%c0_37, %c1, %c0_38, %c0_39] : memref<1x4x3x256xf32, #tpu.memory_space<vmem>>, vector<1x1x3x256xf32>
    %53 = vector.shape_cast %52 : vector<1x1x3x256xf32> to vector<3x256xf32>
    %54 = vector.shape_cast %51 : vector<3x256xf32> to vector<1x1x3x256xf32>
    tpu.vector_store %arg10[%c0_37, %c1, %c0_38, %c0_39], %54 {strides = array<i32>} : memref<1x4x3x256xf32, #tpu.memory_space<vmem>>, vector<1x1x3x256xf32>,
    %55 = vector.extract_strided_slice %2 {offsets = [2, 0], sizes = [1, 128], strides = [1, 1]} : vector<4x128xf32> to vector<1x128xf32>
    %56 = vector.broadcast %55 : vector<1x128xf32> to vector<256x128xf32>
    %57 = arith.addf %8, %56 : vector<256x128xf32>
    %cst_40 = arith.constant 0.000000e+00 : f32
    %58 = vector.broadcast %cst_40 : f32 to vector<256x128xf32>
    %59 = arith.maximumf %57, %58 : vector<256x128xf32>
    %60 = arith.truncf %59 : vector<256x128xf32> to vector<256x128xbf16>
    %c0_41 = arith.constant 0 : index
    %c0_42 = arith.constant 0 : index
    %61 = vector.load %arg6[%c0_41, %c0_42] : memref<128x128xbf16, #tpu.memory_space<vmem>>, vector<128x128xbf16>
    %cst_43 = arith.constant dense<0.000000e+00> : vector<256x128xf32>
    %62 = tpu.matmul %60, %61, %cst_43 {dimension_numbers = #tpu.dot_dimension_numbers<[1], [0], [0], [1], [0, 0, 1, 1], [], []>} : vector<256x128xbf16>, vector<128x128xbf16>, vector<256x128xf32> -> vector<256x128xf32>
    %c0_44 = arith.constant 0 : index
    %c0_45 = arith.constant 0 : index
    %63 = vector.load %arg7[%c0_44, %c0_45] : memref<1x128xf32, #tpu.memory_space<vmem>>, vector<1x128xf32>
    %64 = vector.broadcast %63 : vector<1x128xf32> to vector<256x128xf32>
    %65 = arith.addf %62, %64 : vector<256x128xf32>
    %cst_46 = arith.constant 0.000000e+00 : f32
    %66 = vector.broadcast %cst_46 : f32 to vector<256x128xf32>
    %67 = arith.maximumf %65, %66 : vector<256x128xf32>
    %c0_47 = arith.constant 0 : index
    %c0_48 = arith.constant 0 : index
    %68 = vector.load %arg8[%c0_47, %c0_48] : memref<128x3xf32, #tpu.memory_space<vmem>>, vector<128x3xf32>
    %cst_49 = arith.constant dense<0.000000e+00> : vector<256x3xf32>
    %69 = tpu.matmul %67, %68, %cst_49 {dimension_numbers = #tpu.dot_dimension_numbers<[1], [0], [0], [1], [0, 0, 1, 1], [], []>} : vector<256x128xf32>, vector<128x3xf32>, vector<256x3xf32> -> vector<256x3xf32>
    %c0_50 = arith.constant 0 : index
    %c0_51 = arith.constant 0 : index
    %70 = vector.load %arg9[%c0_50, %c0_51] : memref<1x3xf32, #tpu.memory_space<vmem>>, vector<1x3xf32>
    %71 = vector.broadcast %70 : vector<1x3xf32> to vector<256x3xf32>
    %72 = arith.addf %69, %71 : vector<256x3xf32>
    %73 = arith.addf %72, %1 : vector<256x3xf32>
    %74 = tpu.transpose %73, [1, 0] : vector<256x3xf32> -> vector<3x256xf32>
    %c0_52 = arith.constant 0 : index
    %c2 = arith.constant 2 : index
    %c0_53 = arith.constant 0 : index
    %c0_54 = arith.constant 0 : index
    %75 = vector.load %arg10[%c0_52, %c2, %c0_53, %c0_54] : memref<1x4x3x256xf32, #tpu.memory_space<vmem>>, vector<1x1x3x256xf32>
    %76 = vector.shape_cast %75 : vector<1x1x3x256xf32> to vector<3x256xf32>
    %77 = vector.shape_cast %74 : vector<3x256xf32> to vector<1x1x3x256xf32>
    tpu.vector_store %arg10[%c0_52, %c2, %c0_53, %c0_54], %77 {strides = array<i32>} : memref<1x4x3x256xf32, #tpu.memory_space<vmem>>, vector<1x1x3x256xf32>,
    %78 = vector.extract_strided_slice %2 {offsets = [3, 0], sizes = [1, 128], strides = [1, 1]} : vector<4x128xf32> to vector<1x128xf32>
    %79 = vector.broadcast %78 : vector<1x128xf32> to vector<256x128xf32>
    %80 = arith.addf %8, %79 : vector<256x128xf32>
    %cst_55 = arith.constant 0.000000e+00 : f32
    %81 = vector.broadcast %cst_55 : f32 to vector<256x128xf32>
    %82 = arith.maximumf %80, %81 : vector<256x128xf32>
    %83 = arith.truncf %82 : vector<256x128xf32> to vector<256x128xbf16>
    %c0_56 = arith.constant 0 : index
    %c0_57 = arith.constant 0 : index
    %84 = vector.load %arg6[%c0_56, %c0_57] : memref<128x128xbf16, #tpu.memory_space<vmem>>, vector<128x128xbf16>
    %cst_58 = arith.constant dense<0.000000e+00> : vector<256x128xf32>
    %85 = tpu.matmul %83, %84, %cst_58 {dimension_numbers = #tpu.dot_dimension_numbers<[1], [0], [0], [1], [0, 0, 1, 1], [], []>} : vector<256x128xbf16>, vector<128x128xbf16>, vector<256x128xf32> -> vector<256x128xf32>
    %c0_59 = arith.constant 0 : index
    %c0_60 = arith.constant 0 : index
    %86 = vector.load %arg7[%c0_59, %c0_60] : memref<1x128xf32, #tpu.memory_space<vmem>>, vector<1x128xf32>
    %87 = vector.broadcast %86 : vector<1x128xf32> to vector<256x128xf32>
    %88 = arith.addf %85, %87 : vector<256x128xf32>
    %cst_61 = arith.constant 0.000000e+00 : f32
    %89 = vector.broadcast %cst_61 : f32 to vector<256x128xf32>
    %90 = arith.maximumf %88, %89 : vector<256x128xf32>
    %c0_62 = arith.constant 0 : index
    %c0_63 = arith.constant 0 : index
    %91 = vector.load %arg8[%c0_62, %c0_63] : memref<128x3xf32, #tpu.memory_space<vmem>>, vector<128x3xf32>
    %cst_64 = arith.constant dense<0.000000e+00> : vector<256x3xf32>
    %92 = tpu.matmul %90, %91, %cst_64 {dimension_numbers = #tpu.dot_dimension_numbers<[1], [0], [0], [1], [0, 0, 1, 1], [], []>} : vector<256x128xf32>, vector<128x3xf32>, vector<256x3xf32> -> vector<256x3xf32>
    %c0_65 = arith.constant 0 : index
    %c0_66 = arith.constant 0 : index
    %93 = vector.load %arg9[%c0_65, %c0_66] : memref<1x3xf32, #tpu.memory_space<vmem>>, vector<1x3xf32>
    %94 = vector.broadcast %93 : vector<1x3xf32> to vector<256x3xf32>
    %95 = arith.addf %92, %94 : vector<256x3xf32>
    %96 = arith.addf %95, %1 : vector<256x3xf32>
    %97 = tpu.transpose %96, [1, 0] : vector<256x3xf32> -> vector<3x256xf32>
    %c0_67 = arith.constant 0 : index
    %c3 = arith.constant 3 : index
    %c0_68 = arith.constant 0 : index
    %c0_69 = arith.constant 0 : index
    %98 = vector.load %arg10[%c0_67, %c3, %c0_68, %c0_69] : memref<1x4x3x256xf32, #tpu.memory_space<vmem>>, vector<1x1x3x256xf32>
    %99 = vector.shape_cast %98 : vector<1x1x3x256xf32> to vector<3x256xf32>
    %100 = vector.shape_cast %97 : vector<3x256xf32> to vector<1x1x3x256xf32>
    tpu.vector_store %arg10[%c0_67, %c3, %c0_68, %c0_69], %100 {strides = array<i32>} : memref<1x4x3x256xf32, #tpu.memory_space<vmem>>, vector<1x1x3x256xf32>,
    return
  }
  func.func @transform_0(%arg0: i32, %arg1: i32) -> (i32, i32, i32) {
    %c0_i32 = arith.constant 0 : i32
    %c0_i32_0 = arith.constant 0 : i32
    return %arg0, %arg1, %c0_i32 : i32, i32, i32
  }
  func.func @transform_1(%arg0: i32, %arg1: i32) -> (i32, i32) {
    %c0_i32 = arith.constant 0 : i32
    %c0_i32_0 = arith.constant 0 : i32
    %c0_i32_1 = arith.constant 0 : i32
    return %c0_i32, %c0_i32_0 : i32, i32
  }
  func.func @transform_2(%arg0: i32, %arg1: i32) -> (i32, i32, i32) {
    %c0_i32 = arith.constant 0 : i32
    %c0_i32_0 = arith.constant 0 : i32
    %c0_i32_1 = arith.constant 0 : i32
    return %arg0, %c0_i32, %c0_i32_0 : i32, i32, i32
  }
  func.func @transform_3(%arg0: i32, %arg1: i32) -> (i32, i32) {
    %c0_i32 = arith.constant 0 : i32
    %c0_i32_0 = arith.constant 0 : i32
    %c0_i32_1 = arith.constant 0 : i32
    return %c0_i32, %c0_i32_0 : i32, i32
  }
  func.func @transform_4(%arg0: i32, %arg1: i32) -> (i32, i32) {
    %c0_i32 = arith.constant 0 : i32
    %c0_i32_0 = arith.constant 0 : i32
    %c0_i32_1 = arith.constant 0 : i32
    return %c0_i32, %c0_i32_0 : i32, i32
  }
  func.func @transform_5(%arg0: i32, %arg1: i32) -> (i32, i32) {
    %c0_i32 = arith.constant 0 : i32
    %c0_i32_0 = arith.constant 0 : i32
    %c0_i32_1 = arith.constant 0 : i32
    return %c0_i32, %c0_i32_0 : i32, i32
  }
  func.func @transform_6(%arg0: i32, %arg1: i32) -> (i32, i32) {
    %c0_i32 = arith.constant 0 : i32
    %c0_i32_0 = arith.constant 0 : i32
    %c0_i32_1 = arith.constant 0 : i32
    return %c0_i32, %c0_i32_0 : i32, i32
  }
  func.func @transform_7(%arg0: i32, %arg1: i32) -> (i32, i32) {
    %c0_i32 = arith.constant 0 : i32
    %c0_i32_0 = arith.constant 0 : i32
    %c0_i32_1 = arith.constant 0 : i32
    return %c0_i32, %c0_i32_0 : i32, i32
  }
  func.func @transform_8(%arg0: i32, %arg1: i32) -> (i32, i32, i32, i32) {
    %c0_i32 = arith.constant 0 : i32
    %c0_i32_0 = arith.constant 0 : i32
    %c0_i32_1 = arith.constant 0 : i32
    return %arg0, %c0_i32, %c0_i32_0, %arg1 : i32, i32, i32, i32
  }
}

</mosaic_0001>

<bundles_post_ra>
// kernel: autoencoder_forward.6
= control target key start
LH: loop header
LB: loop body
LE: loop exit
PB: predicated region body
PF: predicated region fallthrough
CT: control target
= control target key end

     0   :  { %v622_v1 = vmov 0   ;;  %v67_v51 = vlaneseq  ;;  %v623_v57 = vmov 1983009808   ;;  %s803_s1 = inlined_call_operand.vmem [shape: bf16[128,768], index: 1, kind: input, shape index: {}]   ;;  %s804_s0 = inlined_call_operand.vmem [shape: f32[2,128], index: 0, kind: input, shape index: {}]   ;;  %s805_s2 = inlined_call_operand.vmem [shape: f32[1,768], index: 2, kind: input, shape index: {}]   ;;  %s806_s3 = inlined_call_operand.vmem [shape: f32[2,768], index: 3, kind: output, shape index: {}]  }
   0x1   :  { %v550_v0 = vld [vmem:[%s803_s1 + $0x4] ss:$24 sps:$4 sm:$0xff]   ;;  %369 = vmatprep.mubr.bf16.mxu0 %v622_v1  ;;  %410 = vmatprep.mubr.bf16.mxu1 %v622_v1  ;;  %v554_v3 = vld [vmem:[%s803_s1] ss:$24 sps:$4 sm:$0xff]   ;;  %v556_v5 = vld [vmem:[%s803_s1 + $0x34] ss:$24 sps:$4 sm:$0xff]   ;;  %v469_v58 = vunpack.c.l.s4 %v623_v57 }
   0x2   :  { %v552_v2 = vld [vmem:[%s803_s1 + $0xc] ss:$24 sps:$4 sm:$0xff]   ;;  %337 = vmatprep.subr.bf16.mxu0 %v550_v0  ;;  %v555_v4 = vld [vmem:[%s803_s1 + $0x8] ss:$24 sps:$4 sm:$0xff]   ;;  %v558_v6 = vld [vmem:[%s803_s1 + $0x3c] ss:$24 sps:$4 sm:$0xff]  }
   0x3   :  { %378 = vmatprep.subr.bf16.mxu1 %v552_v2  ;;  %338 = vmatpush1.bf16.msra.mxu0 %v554_v3  ;;  %v560_v7 = vld [vmem:[%s803_s1 + $0x30] ss:$24 sps:$4 sm:$0xff]   ;;  %v562_v9 = vld [vmem:[%s803_s1 + $0x64] ss:$24 sps:$4 sm:$0xff]   ;;  %v566_v11 = vld [vmem:[%s803_s1 + $0x60] ss:$24 sps:$4 sm:$0xff]   ;;  %v470_v63 = vunpack.c.0.s8 %v469_v58 }
   0x4   :  { %379 = vmatpush1.bf16.msra.mxu1 %v555_v4  ;;  %339 = vmatprep.subr.bf16.mxu0 %v556_v5  ;;  %v561_v8 = vld [vmem:[%s803_s1 + $0x38] ss:$24 sps:$4 sm:$0xff]   ;;  %v564_v10 = vld [vmem:[%s803_s1 + $0x6c] ss:$24 sps:$4 sm:$0xff]   ;;  %v567_v12 = vld [vmem:[%s803_s1 + $0x68] ss:$24 sps:$4 sm:$0xff]  }
   0x5   :  { %380 = vmatprep.subr.bf16.mxu1 %v558_v6  ;;  %v568_v13 = vld [vmem:[%s803_s1 + $0x94] ss:$24 sps:$4 sm:$0xff]   ;;  %v572_v15 = vld [vmem:[%s803_s1 + $0x90] ss:$24 sps:$4 sm:$0xff]   ;;  %v574_v17 = vld [vmem:[%s803_s1 + $0xc4] ss:$24 sps:$4 sm:$0xff]  }
   0x6   :  { %v570_v14 = vld [vmem:[%s803_s1 + $0x9c] ss:$24 sps:$4 sm:$0xff]   ;;  %v573_v16 = vld [vmem:[%s803_s1 + $0x98] ss:$24 sps:$4 sm:$0xff]   ;;  %v576_v18 = vld [vmem:[%s803_s1 + $0xcc] ss:$24 sps:$4 sm:$0xff]  }
   0x7   :  { %340 = vmatpush1.bf16.msra.mxu0 %v560_v7  ;;  %v578_v19 = vld [vmem:[%s803_s1 + $0xc0] ss:$24 sps:$4 sm:$0xff]   ;;  %v580_v21 = vld [vmem:[%s803_s1 + $0xf4] ss:$24 sps:$4 sm:$0xff]   ;;  %v584_v23 = vld [vmem:[%s803_s1 + $0xf0] ss:$24 sps:$4 sm:$0xff]  }
   0x8   :  { %381 = vmatpush1.bf16.msra.mxu1 %v561_v8  ;;  %341 = vmatprep.subr.bf16.mxu0 %v562_v9  ;;  %v579_v20 = vld [vmem:[%s803_s1 + $0xc8] ss:$24 sps:$4 sm:$0xff]   ;;  %v582_v22 = vld [vmem:[%s803_s1 + $0xfc] ss:$24 sps:$4 sm:$0xff]   ;;  %v585_v24 = vld [vmem:[%s803_s1 + $0xf8] ss:$24 sps:$4 sm:$0xff]  }
   0x9   :  { %382 = vmatprep.subr.bf16.mxu1 %v564_v10  ;;  %v586_v25 = vld [vmem:[%s803_s1 + $0x124] ss:$24 sps:$4 sm:$0xff]   ;;  %v590_v27 = vld [vmem:[%s803_s1 + $0x120] ss:$24 sps:$4 sm:$0xff]   ;;  %v592_v29 = vld [vmem:[%s803_s1 + $0x154] ss:$24 sps:$4 sm:$0xff]  }
   0xa   :  { %v588_v26 = vld [vmem:[%s803_s1 + $0x12c] ss:$24 sps:$4 sm:$0xff]   ;;  %v591_v28 = vld [vmem:[%s803_s1 + $0x128] ss:$24 sps:$4 sm:$0xff]   ;;  %v594_v30 = vld [vmem:[%s803_s1 + $0x15c] ss:$24 sps:$4 sm:$0xff]  }
   0xb   :  { %342 = vmatpush1.bf16.msra.mxu0 %v566_v11  ;;  %v596_v31 = vld [vmem:[%s803_s1 + $0x150] ss:$24 sps:$4 sm:$0xff]   ;;  %v15_v33 = vld [vmem:[%s804_s0] sm:$0x3]  ;;  %v600_v34 = vld [vmem:[%s803_s1 + $0x14] ss:$24 sps:$4 sm:$0xff]  }
   0xc   :  { %383 = vmatpush1.bf16.msra.mxu1 %v567_v12  ;;  %343 = vmatprep.subr.bf16.mxu0 %v568_v13  ;;  %v597_v32 = vld [vmem:[%s803_s1 + $0x158] ss:$24 sps:$4 sm:$0xff]   ;;  %v16_v35 = vpack.c.bf16 %v15_v33, %v15_v33  ;;  %v603_v37 = vld [vmem:[%s803_s1 + $0x44] ss:$24 sps:$4 sm:$0xff]   ;;  %v606_v39 = vld [vmem:[%s803_s1 + $0x74] ss:$24 sps:$4 sm:$0xff]  }
   0xd   :  { %384 = vmatprep.subr.bf16.mxu1 %v570_v14  ;;  %v598_v36 = vld [vmem:[%s803_s1 + $0x10] ss:$24 sps:$4 sm:$0xff]   ;;  %v601_v38 = vld [vmem:[%s803_s1 + $0x40] ss:$24 sps:$4 sm:$0xff]   ;;  %v609_v41 = vld [vmem:[%s803_s1 + $0xa4] ss:$24 sps:$4 sm:$0xff]  }
   0xe   :  { %v604_v40 = vld [vmem:[%s803_s1 + $0x70] ss:$24 sps:$4 sm:$0xff]   ;;  %v607_v42 = vld [vmem:[%s803_s1 + $0xa0] ss:$24 sps:$4 sm:$0xff]   ;;  %v612_v43 = vld [vmem:[%s803_s1 + $0xd4] ss:$24 sps:$4 sm:$0xff]  }
   0xf   :  { %344 = vmatpush1.bf16.msra.mxu0 %v572_v15  ;;  %v610_v44 = vld [vmem:[%s803_s1 + $0xd0] ss:$24 sps:$4 sm:$0xff]   ;;  %v615_v45 = vld [vmem:[%s803_s1 + $0x104] ss:$24 sps:$4 sm:$0xff]   ;;  %v613_v46 = vld [vmem:[%s803_s1 + $0x100] ss:$24 sps:$4 sm:$0xff]  }
  0x10   :  { %385 = vmatpush1.bf16.msra.mxu1 %v573_v16  ;;  %345 = vmatprep.subr.bf16.mxu0 %v574_v17  ;;  %v618_v47 = vld [vmem:[%s803_s1 + $0x134] ss:$24 sps:$4 sm:$0xff]   ;;  %v616_v48 = vld [vmem:[%s803_s1 + $0x130] ss:$24 sps:$4 sm:$0xff]   ;;  %v621_v49 = vld [vmem:[%s803_s1 + $0x164] ss:$24 sps:$4 sm:$0xff]  }
  0x11   :  { %386 = vmatprep.subr.bf16.mxu1 %v576_v18  ;;  %v619_v50 = vld [vmem:[%s803_s1 + $0x160] ss:$24 sps:$4 sm:$0xff]   ;;  %v68_v52 = vshrl.u32 %v67_v51, 7 }
  0x12   :  { %v65_v55 = vld [vmem:[%s805_s2] sm:$0x3f] }
  0x13   :  { %346 = vmatpush1.bf16.msra.mxu0 %v578_v19  ;;  %v69_v53 = vsub.s32 0, %v68_v52  ;;  %v77_v54 = vsub.s32 2, %v68_v52  ;;  %v73_v56 = vsub.s32 1, %v68_v52  ;;  %v81_v59 = vsub.s32 3, %v68_v52 }
  0x14   :  { %387 = vmatpush1.bf16.msra.mxu1 %v579_v20  ;;  %347 = vmatprep.subr.bf16.mxu0 %v580_v21  ;;  %v473_v8 = vsub.s32 %v470_v63, %v68_v52  ;;  %v85_v19 = vsub.s32 4, %v68_v52  ;;  %v89_v20 = vsub.s32 5, %v68_v52 }
  0x15   :  { %388 = vmatprep.subr.bf16.mxu1 %v582_v22  ;;  %v70_v60 = vrot.slane %v65_v55, %v69_v53  ;;  %v78_v61 = vrot.slane %v65_v55, %v77_v54  ;;  %v74_v62 = vrot.slane %v65_v55, %v73_v56  ;;  %v82_v0 = vrot.slane %v65_v55, %v81_v59 }
  0x16   :  { %v86_v21 = vrot.slane %v65_v55, %v85_v19  ;;  %v90_v22 = vrot.slane %v65_v55, %v89_v20 }
  0x17   :  { %348 = vmatpush1.bf16.msra.mxu0 %v584_v23 }
  0x18   :  { %389 = vmatpush1.bf16.msra.mxu1 %v585_v24  ;;  %349 = vmatprep.subr.bf16.mxu0 %v586_v25 }
  0x19   :  { %390 = vmatprep.subr.bf16.mxu1 %v588_v26 }
  0x1b   :  { %350 = vmatpush1.bf16.msra.mxu0 %v590_v27 }
  0x1c   :  { %391 = vmatpush1.bf16.msra.mxu1 %v591_v28  ;;  %351 = vmatprep.subr.bf16.mxu0 %v592_v29 }
  0x1d   :  { %392 = vmatprep.subr.bf16.mxu1 %v594_v30 }
  0x1f   :  { %352 = vmatpush1.bf16.msra.mxu0 %v596_v31 }
  0x20   :  { %393 = vmatpush1.bf16.msra.mxu1 %v597_v32  ;;  %419 = vmatprep.subr.bf16.mxu0 %v600_v34 }
  0x22   :  { %370 = vmatmul.mubr.bf16.vlgmr.msra.gmra.mrb[0].mxu0 %v16_v35 }
  0x23   :  { %411 = vmatmul.mubr.bf16.vlgmr.msra.gmra.mrb[0].mxu1 %v16_v35  ;;  %420 = vmatpush1.bf16.msra.mxu0 %v598_v36 }
  0x24   :  { %451 = vmatprep.mubr.bf16.mxu0 %v622_v1  ;;  %421 = vmatprep.subr.bf16.mxu0 %v603_v37 }
  0x27   :  { %422 = vmatpush1.bf16.msra.mxu0 %v601_v38 }
  0x28   :  { %423 = vmatprep.subr.bf16.mxu0 %v606_v39 }
  0x2b   :  { %424 = vmatpush1.bf16.msra.mxu0 %v604_v40 }
  0x2c   :  { %425 = vmatprep.subr.bf16.mxu0 %v609_v41 }
  0x2f   :  { %426 = vmatpush1.bf16.msra.mxu0 %v607_v42 }
  0x30   :  { %427 = vmatprep.subr.bf16.mxu0 %v612_v43 }
  0x33   :  { %428 = vmatpush1.bf16.msra.mxu0 %v610_v44 }
  0x34   :  { %429 = vmatprep.subr.bf16.mxu0 %v615_v45 }
  0x37   :  { %430 = vmatpush1.bf16.msra.mxu0 %v613_v46 }
  0x38   :  { %431 = vmatprep.subr.bf16.mxu0 %v618_v47 }
  0x3b   :  { %432 = vmatpush1.bf16.msra.mxu0 %v616_v48 }
  0x3c   :  { %433 = vmatprep.subr.bf16.mxu0 %v621_v49 }
  0x3f   :  { %434 = vmatpush1.bf16.msra.mxu0 %v619_v50 }
  0x42   :  { %452 = vmatmul.mubr.bf16.vlgmr.msra.gmra.mrb[4].mxu0 %v16_v35 }
  0xf5   :  { %v371_v1 = vpop.f32.mrb[0].mxu0 }
  0xf6   :  { %v412_v2 = vpop.f32.mrb[0].mxu1  ;;  %v372_v3 = vadd.f32 %v371_v1, %v70_v60  ;;  %v373_v5 = vpop.f32.mrb[1].mxu0 }
  0xf7   :  { %v413_v4 = vadd.f32 %v412_v2, %v78_v61  ;;  %v414_v6 = vpop.f32.mrb[1].mxu1  ;;  %v374_v7 = vadd.f32 %v373_v5, %v74_v62  ;;  %v375_v10 = vpop.f32.mrb[2].mxu0 }
  0xf8   :  { %v415_v9 = vadd.f32 %v414_v6, %v82_v0  ;;  %v416_v11 = vpop.f32.mrb[2].mxu1  ;;  %v376_v12 = vpop.f32.mrb[3].mxu0 }
  0xf9   :  { %v417_v13 = vpop.f32.mrb[3].mxu1  ;;  %v466_v14 = vcombine.low %v372_v3, %v374_v7 }
  0xfa   :  { %v467_v15 = vcombine.low %v413_v4, %v415_v9 }
  0xfb   :  { %v474_v16 = vrot.slane %v466_v14, %v473_v8 }
  0xfc   :  { %v481_v17 = vrot.slane %v467_v15, %v473_v8 }
  0xfe   :  { %v482_v18 = vcombine.low %v474_v16, %v481_v17 }
 0x100   :  { %493 = vst [vmem:[%s806_s3] sm:$0xff] %v482_v18 }
 0x115   :  { %v453_v23 = vpop.f32.mrb[4].mxu0 }
 0x116   :  { %v454_v24 = vadd.f32 %v453_v23, %v86_v21  ;;  %v455_v25 = vpop.f32.mrb[5].mxu0 }
 0x117   :  { %v456_v26 = vadd.f32 %v455_v25, %v90_v22  ;;  %v457_v27 = vpop.f32.mrb[6].mxu0 }
 0x118   :  { %v458_v28 = vpop.f32.mrb[7].mxu0 }
 0x119   :  { %v483_v29 = vcombine.low %v454_v24, %v456_v26 }
 0x11b   :  { %547 = vst.sshfl [vmem:[%s806_s3 + $0x8] sm:$0x33 pattern:$0x76325410] %v483_v29 }

// kernel: autoencoder_forward.4
= control target key start
LH: loop header
LB: loop body
LE: loop exit
PB: predicated region body
PF: predicated region fallthrough
CT: control target
= control target key end

     0   :  { %s3283_s18 = smov 0   ;;  %s3285_s19 = smov 0   ;;  %s3886_s0 = inlined_call_operand.vmem [shape: f32[2,1024,3], index: 0, kind: input, shape index: {}]   ;;  %s3887_s1 = inlined_call_operand.vmem [shape: f32[3,128], index: 1, kind: input, shape index: {}]   ;;  %s3888_s2 = inlined_call_operand.vmem [shape: f32[1,128], index: 2, kind: input, shape index: {}]   ;;  %s3889_s3 = inlined_call_operand.vmem [shape: bf16[128,128], index: 3, kind: input, shape index: {}]   ;;  %s3890_s4 = inlined_call_operand.vmem [shape: f32[1,128], index: 4, kind: input, shape index: {}]   ;;  %s3891_s5 = inlined_call_operand.vmem [shape: f32[2,1,128], index: 5, kind: output, shape index: {}]  }
   0x1   :  { %s3287_s20 = smov 0  }
   0x2 LB: > { %s27_s21 = sadd.s32 1, %s3246_s19  ;;  %p2494_p0 = scmp.ge.s32.totalorder %s3250_s20, 1  ;;  %s3250_s20 = sphi %s3287_s20, %s15_s20   ;;  %s3246_s19 = sphi %s3285_s19, %s3893_s19   ;;  %s3242_s18 = sphi %s3283_s18, %s3892_s18  }
   0x3   : > { %p29_p1 = scmp.ge.s32.totalorder %s27_s21, 2  ;;  %p206_p2 = scmp.lt.s32.totalorder %s3250_s20, 3 }
   0x5   : > { %s3895_s21 = smov (%p29_p1, %s27_s21), 0  ;;  %p207_p3 = pnand %p2494_p0, %p206_p2 }
   0x6   : > { %v383_v0 = vld [vmem:[%s3887_s1] sm:$0x7] (!%p207_p3)  ;;  %vm776_vm0 = vcmask (!%p207_p3), 1042432   ;;  %p237_p4 = scmp.lt.s32.totalorder (!%p207_p3), %s3242_s18, 1  ;;  %vm391_vm1 = vcmask (!%p207_p3), 23552   ;;  %v3220_v33 = vld [vmem:[%s3889_s3 + $0x8] sm:$0xff] (!%p207_p3)  }
   0x7   : > { %210 = sbr.rel (%p207_p3) target bundleno = 728 (0x2d8), region = 40  ;;  %2840 = vmatprep.subr.msk.mxu0 (!%p207_p3), %vm776_vm0, %v383_v0  ;;  %v3219_v16 = vld [vmem:[%s3889_s3] sm:$0xff] (!%p207_p3)   ;;  %v3221_v45 = vld [vmem:[%s3889_s3 + $0x10] sm:$0xff] (!%p207_p3)   ;;  %v3222_v48 = vld [vmem:[%s3889_s3 + $0x18] sm:$0xff] (!%p207_p3)  }
   0x8   : > { %2841 = vmatpush3.msk.msra.mxu0 (!%p207_p3), %vm776_vm0, %v383_v0  ;;  %3178 = vmatprep.subr.bf16.mxu1 (!%p207_p3), %v3219_v16  ;;  %v3223_v51 = vld [vmem:[%s3889_s3 + $0x20] sm:$0xff] (!%p207_p3)   ;;  %v3224_v54 = vld [vmem:[%s3889_s3 + $0x28] sm:$0xff] (!%p207_p3)   ;;  %v3225_v57 = vld [vmem:[%s3889_s3 + $0x30] sm:$0xff] (!%p207_p3)  }
   0x9   : > { %3034 = vmatprep.subr.bf16.mxu0 (!%p207_p3), %v3219_v16  ;;  %3186 = vmatpush3.bf16.msra.mxu1 (!%p207_p3), %v3219_v16  ;;  %v3226_v60 = vld [vmem:[%s3889_s3 + $0x38] sm:$0xff] (!%p207_p3)  }
   0xa   : > { %3179 = vmatprep.subr.bf16.mxu1 (!%p207_p3), %v3220_v33 }
   0xd   : > { %3187 = vmatpush3.bf16.msra.mxu1 (!%p207_p3), %v3220_v33 }
   0xe   : > { %s3897_s18 = smov (!%p237_p4, %s3242_s18), 1  ;;  %3180 = vmatprep.subr.bf16.mxu1 %v3221_v45 }
   0xf   : > { %s2638_s24 = sshll.u32 %s3897_s18, 10  ;;  %s3808_s6 = scalar_lea.vmem %s3891_s5, %s3897_s18 }
  0x10   : > { %s3310_s27 = scalar_lea.vmem %s3886_s0, %s2638_s24 }
  0x11   : > { %v255_v1 = vld [vmem:[%s3310_s27] sm:$0xff]  ;;  %v256_v2 = vld [vmem:[%s3310_s27 + $0x8] sm:$0xff]  ;;  %v257_v3 = vld [vmem:[%s3310_s27 + $0x10] sm:$0xff]  ;;  %3188 = vmatpush3.bf16.msra.mxu1 %v3221_v45 }
  0x12   : > { %2842 = vmatprep.mubr.msk.f32.mxu0 %vm391_vm1, %v255_v1  ;;  %v258_v4 = vld [vmem:[%s3310_s27 + $0x18] sm:$0xff]  ;;  %v259_v5 = vld [vmem:[%s3310_s27 + $0x20] sm:$0xff]  ;;  %v260_v6 = vld [vmem:[%s3310_s27 + $0x28] sm:$0xff]  ;;  %3181 = vmatprep.subr.bf16.mxu1 %v3222_v48 }
  0x13   : > { %2843 = vmatmul.mubr.msk.f32.vlgmr.msra.gmra.mrb[0].mxu0 %vm391_vm1, %v256_v2  ;;  %v261_v7 = vld [vmem:[%s3310_s27 + $0x30] sm:$0xff]  ;;  %v262_v8 = vld [vmem:[%s3310_s27 + $0x38] sm:$0xff]  ;;  %v263_v9 = vld [vmem:[%s3310_s27 + $0x40] sm:$0xff] }
  0x14   : > { %2845 = vmatprep.mubr.msk.f32.mxu0 %vm391_vm1, %v257_v3  ;;  %v264_v10 = vld [vmem:[%s3310_s27 + $0x48] sm:$0xff]  ;;  %v265_v11 = vld [vmem:[%s3310_s27 + $0x50] sm:$0xff]  ;;  %v266_v12 = vld [vmem:[%s3310_s27 + $0x58] sm:$0xff]  ;;  %3035 = vmatpush3.bf16.msra.mxu0 %v3219_v16 }
  0x15   : > { %v267_v13 = vld [vmem:[%s3310_s27 + $0x60] sm:$0xff]  ;;  %v268_v14 = vld [vmem:[%s3310_s27 + $0x68] sm:$0xff]  ;;  %v269_v15 = vld [vmem:[%s3310_s27 + $0x70] sm:$0xff]  ;;  %3036 = vmatprep.subr.bf16.mxu0 %v3220_v33  ;;  %3189 = vmatpush3.bf16.msra.mxu1 %v3222_v48 }
  0x16   : > { %v270_v17 = vld [vmem:[%s3310_s27 + $0x78] sm:$0xff]  ;;  %v271_v18 = vld [vmem:[%s3310_s27 + $0x80] sm:$0xff]  ;;  %v272_v19 = vld [vmem:[%s3310_s27 + $0x88] sm:$0xff]  ;;  %3182 = vmatprep.subr.bf16.mxu1 %v3223_v51 }
  0x17   : > { %2846 = vmatmul.mubr.msk.f32.gmra.mrb[2].mxu0 %vm391_vm1, %v258_v4  ;;  %v273_v20 = vld [vmem:[%s3310_s27 + $0x90] sm:$0xff]  ;;  %v274_v21 = vld [vmem:[%s3310_s27 + $0x98] sm:$0xff]  ;;  %v275_v22 = vld [vmem:[%s3310_s27 + $0xa0] sm:$0xff] }
  0x18   : > { %2848 = vmatprep.mubr.msk.f32.mxu0 %vm391_vm1, %v259_v5  ;;  %v276_v23 = vld [vmem:[%s3310_s27 + $0xa8] sm:$0xff]  ;;  %v277_v24 = vld [vmem:[%s3310_s27 + $0xb0] sm:$0xff]  ;;  %v278_v25 = vld [vmem:[%s3310_s27 + $0xb8] sm:$0xff]  ;;  %3037 = vmatpush3.bf16.msra.mxu0 %v3220_v33 }
  0x19   : > { %v279_v26 = vld [vmem:[%s3310_s27 + $0xc0] sm:$0xff]  ;;  %v280_v27 = vld [vmem:[%s3310_s27 + $0xc8] sm:$0xff]  ;;  %v281_v28 = vld [vmem:[%s3310_s27 + $0xd0] sm:$0xff]  ;;  %3038 = vmatprep.subr.bf16.mxu0 %v3221_v45  ;;  %3190 = vmatpush3.bf16.msra.mxu1 %v3223_v51 }
  0x1a   : > { %v282_v29 = vld [vmem:[%s3310_s27 + $0xd8] sm:$0xff]  ;;  %v283_v30 = vld [vmem:[%s3310_s27 + $0xe0] sm:$0xff]  ;;  %v284_v31 = vld [vmem:[%s3310_s27 + $0xe8] sm:$0xff]  ;;  %3183 = vmatprep.subr.bf16.mxu1 %v3224_v54 }
  0x1b   : > { %2849 = vmatmul.mubr.msk.f32.gmra.mrb[4].mxu0 %vm391_vm1, %v260_v6  ;;  %v285_v32 = vld [vmem:[%s3310_s27 + $0xf0] sm:$0xff]  ;;  %v286_v34 = vld [vmem:[%s3310_s27 + $0xf8] sm:$0xff]  ;;  %v287_v35 = vld [vmem:[%s3310_s27 + $0x100] sm:$0xff] }
  0x1c   : > { %2851 = vmatprep.mubr.msk.f32.mxu0 %vm391_vm1, %v261_v7  ;;  %v288_v36 = vld [vmem:[%s3310_s27 + $0x108] sm:$0xff]  ;;  %v289_v37 = vld [vmem:[%s3310_s27 + $0x110] sm:$0xff]  ;;  %v290_v38 = vld [vmem:[%s3310_s27 + $0x118] sm:$0xff]  ;;  %3039 = vmatpush3.bf16.msra.mxu0 %v3221_v45 }
  0x1d   : > { %v291_v39 = vld [vmem:[%s3310_s27 + $0x120] sm:$0xff]  ;;  %v292_v40 = vld [vmem:[%s3310_s27 + $0x128] sm:$0xff]  ;;  %v293_v41 = vld [vmem:[%s3310_s27 + $0x130] sm:$0xff]  ;;  %3040 = vmatprep.subr.bf16.mxu0 %v3222_v48  ;;  %3191 = vmatpush3.bf16.msra.mxu1 %v3224_v54 }
  0x1e   : > { %v294_v42 = vld [vmem:[%s3310_s27 + $0x138] sm:$0xff]  ;;  %v295_v43 = vld [vmem:[%s3310_s27 + $0x140] sm:$0xff]  ;;  %v296_v44 = vld [vmem:[%s3310_s27 + $0x148] sm:$0xff]  ;;  %3184 = vmatprep.subr.bf16.mxu1 %v3225_v57 }
  0x1f   : > { %2852 = vmatmul.mubr.msk.f32.gmra.mrb[6].mxu0 %vm391_vm1, %v262_v8  ;;  %v297_v46 = vld [vmem:[%s3310_s27 + $0x150] sm:$0xff]  ;;  %v298_v47 = vld [vmem:[%s3310_s27 + $0x158] sm:$0xff]  ;;  %v299_v49 = vld [vmem:[%s3310_s27 + $0x160] sm:$0xff] }
  0x20   : > { %2854 = vmatprep.mubr.msk.f32.mxu0 %vm391_vm1, %v263_v9  ;;  %v300_v50 = vld [vmem:[%s3310_s27 + $0x168] sm:$0xff]  ;;  %3041 = vmatpush3.bf16.msra.mxu0 %v3222_v48  ;;  %v301_v52 = vld [vmem:[%s3310_s27 + $0x170] sm:$0xff]  ;;  %v302_v53 = vld [vmem:[%s3310_s27 + $0x178] sm:$0xff] }
  0x21   : > { %3042 = vmatprep.subr.bf16.mxu0 %v3223_v51  ;;  %v303_v55 = vld [vmem:[%s3310_s27 + $0x180] sm:$0xff]  ;;  %v304_v56 = vld [vmem:[%s3310_s27 + $0x188] sm:$0xff]  ;;  %v305_v58 = vld [vmem:[%s3310_s27 + $0x190] sm:$0xff]  ;;  %3192 = vmatpush3.bf16.msra.mxu1 %v3225_v57 }
  0x22   : > { %v306_v59 = vld [vmem:[%s3310_s27 + $0x198] sm:$0xff]  ;;  %v307_v61 = vld [vmem:[%s3310_s27 + $0x1a0] sm:$0xff]  ;;  %3185 = vmatprep.subr.bf16.mxu1 %v3226_v60  ;;  %v308_v62 = vld [vmem:[%s3310_s27 + $0x1a8] sm:$0xff] }
  0x23   : > { %2855 = vmatmul.mubr.msk.f32.gmra.mrb[8].mxu0 %vm391_vm1, %v264_v10  ;;  %v309_v63 = vld [vmem:[%s3310_s27 + $0x1b0] sm:$0xff]  ;;  %v310_v0 = vld [vmem:[%s3310_s27 + $0x1b8] sm:$0xff]  ;;  %v311_v1 = vld [vmem:[%s3310_s27 + $0x1c0] sm:$0xff] }
  0x24   : > { %2857 = vmatprep.mubr.msk.f32.mxu0 %vm391_vm1, %v265_v11  ;;  %3043 = vmatpush3.bf16.msra.mxu0 %v3223_v51  ;;  %v312_v2 = vld [vmem:[%s3310_s27 + $0x1c8] sm:$0xff]  ;;  %v313_v3 = vld [vmem:[%s3310_s27 + $0x1d0] sm:$0xff]  ;;  %v314_v4 = vld [vmem:[%s3310_s27 + $0x1d8] sm:$0xff] }
  0x25   : > { %3044 = vmatprep.subr.bf16.mxu0 %v3224_v54  ;;  %3193 = vmatpush3.bf16.msra.mxu1 %v3226_v60  ;;  %v315_v5 = vld [vmem:[%s3310_s27 + $0x1e0] sm:$0xff]  ;;  %v316_v6 = vld [vmem:[%s3310_s27 + $0x1e8] sm:$0xff]  ;;  %v317_v7 = vld [vmem:[%s3310_s27 + $0x1f0] sm:$0xff] }
  0x26   : > { %v318_v8 = vld [vmem:[%s3310_s27 + $0x1f8] sm:$0xff]  ;;  %v319_v9 = vld [vmem:[%s3310_s27 + $0x200] sm:$0xff]  ;;  %v320_v10 = vld [vmem:[%s3310_s27 + $0x208] sm:$0xff] }
  0x27   : > { %2858 = vmatmul.mubr.msk.f32.gmra.mrb[10].mxu0 %vm391_vm1, %v266_v12  ;;  %v321_v11 = vld [vmem:[%s3310_s27 + $0x210] sm:$0xff]  ;;  %v322_v12 = vld [vmem:[%s3310_s27 + $0x218] sm:$0xff]  ;;  %v343_v33 = vld [vmem:[%s3310_s27 + $0x2c0] sm:$0xff] }
  0x28   : > { %2860 = vmatprep.mubr.msk.f32.mxu0 %vm391_vm1, %v267_v13  ;;  %3045 = vmatpush3.bf16.msra.mxu0 %v3224_v54  ;;  %v323_v13 = vld [vmem:[%s3310_s27 + $0x220] sm:$0xff]  ;;  %v326_v16 = vld [vmem:[%s3310_s27 + $0x238] sm:$0xff]  ;;  %v361_v51 = vld [vmem:[%s3310_s27 + $0x350] sm:$0xff] }
  0x29   : > { %3046 = vmatprep.subr.bf16.mxu0 %v3225_v57  ;;  %v355_v45 = vld [vmem:[%s3310_s27 + $0x320] sm:$0xff]  ;;  %v358_v48 = vld [vmem:[%s3310_s27 + $0x338] sm:$0xff] }
  0x2a   : > { %v363_v54 = vld [vmem:[%s3310_s27 + $0x360] sm:$0xff] }
  0x2b   : > { %2861 = vmatmul.mubr.msk.f32.gmra.mrb[12].mxu0 %vm391_vm1, %v268_v14  ;;  %v324_v14 = vld [vmem:[%s3310_s27 + $0x228] sm:$0xff] }
  0x2c   : > { %2863 = vmatprep.mubr.msk.f32.mxu0 %vm391_vm1, %v269_v15  ;;  %3047 = vmatpush3.bf16.msra.mxu0 %v3225_v57  ;;  %v325_v15 = vld [vmem:[%s3310_s27 + $0x230] sm:$0xff] }
  0x2d   : > { %3048 = vmatprep.subr.bf16.mxu0 %v3226_v60 }
  0x2f   : > { %2864 = vmatmul.mubr.msk.f32.gmra.mrb[14].mxu0 %vm391_vm1, %v270_v17  ;;  %v327_v17 = vld [vmem:[%s3310_s27 + $0x240] sm:$0xff] }
  0x30   : > { %2866 = vmatprep.mubr.msk.f32.mxu0 %vm391_vm1, %v271_v18  ;;  %3049 = vmatpush3.bf16.msra.mxu0 %v3226_v60  ;;  %v328_v18 = vld [vmem:[%s3310_s27 + $0x248] sm:$0xff] }
  0x33   : > { %2867 = vmatmul.mubr.msk.f32.gmra.mrb[16].mxu0 %vm391_vm1, %v272_v19  ;;  %v329_v19 = vld [vmem:[%s3310_s27 + $0x250] sm:$0xff] }
  0x34   : > { %2869 = vmatprep.mubr.msk.f32.mxu0 %vm391_vm1, %v273_v20  ;;  %v330_v20 = vld [vmem:[%s3310_s27 + $0x258] sm:$0xff] }
  0x37   : > { %2870 = vmatmul.mubr.msk.f32.gmra.mrb[18].mxu0 %vm391_vm1, %v274_v21  ;;  %v331_v21 = vld [vmem:[%s3310_s27 + $0x260] sm:$0xff] }
  0x38   : > { %2872 = vmatprep.mubr.msk.f32.mxu0 %vm391_vm1, %v275_v22  ;;  %v332_v22 = vld [vmem:[%s3310_s27 + $0x268] sm:$0xff] }
  0x3b   : > { %2873 = vmatmul.mubr.msk.f32.gmra.mrb[20].mxu0 %vm391_vm1, %v276_v23  ;;  %v333_v23 = vld [vmem:[%s3310_s27 + $0x270] sm:$0xff] }
  0x3c   : > { %2875 = vmatprep.mubr.msk.f32.mxu0 %vm391_vm1, %v277_v24  ;;  %v334_v24 = vld [vmem:[%s3310_s27 + $0x278] sm:$0xff] }
  0x3f   : > { %2876 = vmatmul.mubr.msk.f32.gmra.mrb[22].mxu0 %vm391_vm1, %v278_v25  ;;  %v335_v25 = vld [vmem:[%s3310_s27 + $0x280] sm:$0xff] }
  0x40   : > { %2878 = vmatprep.mubr.msk.f32.mxu0 %vm391_vm1, %v279_v26  ;;  %v336_v26 = vld [vmem:[%s3310_s27 + $0x288] sm:$0xff] }
  0x43   : > { %2879 = vmatmul.mubr.msk.f32.gmra.mrb[24].mxu0 %vm391_vm1, %v280_v27  ;;  %v337_v27 = vld [vmem:[%s3310_s27 + $0x290] sm:$0xff] }
  0x44   : > { %2881 = vmatprep.mubr.msk.f32.mxu0 %vm391_vm1, %v281_v28  ;;  %v338_v28 = vld [vmem:[%s3310_s27 + $0x298] sm:$0xff] }
  0x47   : > { %2882 = vmatmul.mubr.msk.f32.gmra.mrb[26].mxu0 %vm391_vm1, %v282_v29  ;;  %v339_v29 = vld [vmem:[%s3310_s27 + $0x2a0] sm:$0xff] }
  0x48   : > { %2884 = vmatprep.mubr.msk.f32.mxu0 %vm391_vm1, %v283_v30  ;;  %v340_v30 = vld [vmem:[%s3310_s27 + $0x2a8] sm:$0xff] }
  0x4b   : > { %2885 = vmatmul.mubr.msk.f32.gmra.mrb[28].mxu0 %vm391_vm1, %v284_v31  ;;  %v341_v31 = vld [vmem:[%s3310_s27 + $0x2b0] sm:$0xff] }
  0x4c   : > { %2887 = vmatprep.mubr.msk.f32.mxu0 %vm391_vm1, %v285_v32  ;;  %v342_v32 = vld [vmem:[%s3310_s27 + $0x2b8] sm:$0xff] }
  0x4f   : > { %2888 = vmatmul.mubr.msk.f32.gmra.mrb[30].mxu0 %vm391_vm1, %v286_v34  ;;  %v344_v34 = vld [vmem:[%s3310_s27 + $0x2c8] sm:$0xff] }
  0x50   : > { %2890 = vmatprep.mubr.msk.f32.mxu0 %vm391_vm1, %v287_v35  ;;  %v345_v35 = vld [vmem:[%s3310_s27 + $0x2d0] sm:$0xff] }
  0x53   : > { %2891 = vmatmul.mubr.msk.f32.gmra.mrb[32].mxu0 %vm391_vm1, %v288_v36  ;;  %v346_v36 = vld [vmem:[%s3310_s27 + $0x2d8] sm:$0xff] }
  0x54   : > { %2893 = vmatprep.mubr.msk.f32.mxu0 %vm391_vm1, %v289_v37  ;;  %v347_v37 = vld [vmem:[%s3310_s27 + $0x2e0] sm:$0xff] }
  0x57   : > { %2894 = vmatmul.mubr.msk.f32.gmra.mrb[34].mxu0 %vm391_vm1, %v290_v38  ;;  %v348_v38 = vld [vmem:[%s3310_s27 + $0x2e8] sm:$0xff] }
  0x58   : > { %2896 = vmatprep.mubr.msk.f32.mxu0 %vm391_vm1, %v291_v39  ;;  %v349_v39 = vld [vmem:[%s3310_s27 + $0x2f0] sm:$0xff] }
  0x5b   : > { %2897 = vmatmul.mubr.msk.f32.gmra.mrb[36].mxu0 %vm391_vm1, %v292_v40  ;;  %v350_v40 = vld [vmem:[%s3310_s27 + $0x2f8] sm:$0xff] }
  0x5c   : > { %2899 = vmatprep.mubr.msk.f32.mxu0 %vm391_vm1, %v293_v41  ;;  %v351_v41 = vld [vmem:[%s3310_s27 + $0x300] sm:$0xff] }
  0x5f   : > { %2900 = vmatmul.mubr.msk.f32.gmra.mrb[38].mxu0 %vm391_vm1, %v294_v42  ;;  %v352_v42 = vld [vmem:[%s3310_s27 + $0x308] sm:$0xff] }
  0x60   : > { %2902 = vmatprep.mubr.msk.f32.mxu0 %vm391_vm1, %v295_v43  ;;  %v353_v43 = vld [vmem:[%s3310_s27 + $0x310] sm:$0xff] }
  0x63   : > { %2903 = vmatmul.mubr.msk.f32.gmra.mrb[40].mxu0 %vm391_vm1, %v296_v44  ;;  %v354_v44 = vld [vmem:[%s3310_s27 + $0x318] sm:$0xff] }
  0x64   : > { %2905 = vmatprep.mubr.msk.f32.mxu0 %vm391_vm1, %v297_v46  ;;  %v356_v46 = vld [vmem:[%s3310_s27 + $0x328] sm:$0xff] }
  0x67   : > { %2906 = vmatmul.mubr.msk.f32.gmra.mrb[42].mxu0 %vm391_vm1, %v298_v47  ;;  %v357_v47 = vld [vmem:[%s3310_s27 + $0x330] sm:$0xff] }
  0x68   : > { %2908 = vmatprep.mubr.msk.f32.mxu0 %vm391_vm1, %v299_v49  ;;  %v359_v49 = vld [vmem:[%s3310_s27 + $0x340] sm:$0xff] }
  0x6b   : > { %2909 = vmatmul.mubr.msk.f32.gmra.mrb[44].mxu0 %vm391_vm1, %v300_v50  ;;  %v360_v50 = vld [vmem:[%s3310_s27 + $0x348] sm:$0xff] }
  0x6c   : > { %2911 = vmatprep.mubr.msk.f32.mxu0 %vm391_vm1, %v301_v52  ;;  %v3552_v52 = vld [vmem:[%s3888_s2] ss:$0 sm:$0xff] }
  0x6f   : > { %2912 = vmatmul.mubr.msk.f32.gmra.mrb[46].mxu0 %vm391_vm1, %v302_v53  ;;  %v362_v53 = vld [vmem:[%s3310_s27 + $0x358] sm:$0xff] }
  0x70   : > { %2914 = vmatprep.mubr.msk.f32.mxu0 %vm391_vm1, %v303_v55 }
  0x73   : > { %2915 = vmatmul.mubr.msk.f32.gmra.mrb[48].mxu0 %vm391_vm1, %v304_v56 }
  0x74   : > { %2917 = vmatprep.mubr.msk.f32.mxu0 %vm391_vm1, %v305_v58 }
  0x77   : > { %2918 = vmatmul.mubr.msk.f32.gmra.mrb[50].mxu0 %vm391_vm1, %v306_v59  ;;  %v364_v59 = vld [vmem:[%s3310_s27 + $0x368] sm:$0xff] }
  0x78   : > { %2920 = vmatprep.mubr.msk.f32.mxu0 %vm391_vm1, %v307_v61  ;;  %v365_v61 = vld [vmem:[%s3310_s27 + $0x370] sm:$0xff] }
  0x7b   : > { %2921 = vmatmul.mubr.msk.f32.gmra.mrb[52].mxu0 %vm391_vm1, %v308_v62 }
  0x7c   : > { %2923 = vmatprep.mubr.msk.f32.mxu0 %vm391_vm1, %v309_v63 }
  0x7f   : > { %2924 = vmatmul.mubr.msk.f32.gmra.mrb[54].mxu0 %vm391_vm1, %v310_v0 }
  0x80   : > { %2926 = vmatprep.mubr.msk.f32.mxu0 %vm391_vm1, %v311_v1 }
  0x83   : > { %2927 = vmatmul.mubr.msk.f32.gmra.mrb[56].mxu0 %vm391_vm1, %v312_v2 }
  0x84   : > { %2929 = vmatprep.mubr.msk.f32.mxu0 %vm391_vm1, %v313_v3 }
  0x87   : > { %2930 = vmatmul.mubr.msk.f32.gmra.mrb[58].mxu0 %vm391_vm1, %v314_v4  ;;  %v366_v4 = vld [vmem:[%s3310_s27 + $0x378] sm:$0xff] }
  0x88   : > { %2932 = vmatprep.mubr.msk.f32.mxu0 %vm391_vm1, %v315_v5 }
  0x8b   : > { %2933 = vmatmul.mubr.msk.f32.gmra.mrb[60].mxu0 %vm391_vm1, %v316_v6  ;;  %v367_v6 = vld [vmem:[%s3310_s27 + $0x380] sm:$0xff] }
  0x8c   : > { %2935 = vmatprep.mubr.msk.f32.mxu0 %vm391_vm1, %v317_v7 }
  0x8f   : > { %2936 = vmatmul.mubr.msk.f32.gmra.mrb[62].mxu0 %vm391_vm1, %v318_v8 }
  0x90   : > { %2938 = vmatprep.mubr.msk.f32.mxu0 %vm391_vm1, %v319_v9 }
  0x93   : > { %2939 = vmatmul.mubr.msk.f32.gmra.mrb[64].mxu0 %vm391_vm1, %v320_v10 }
  0x94   : > { %2941 = vmatprep.mubr.msk.f32.mxu0 %vm391_vm1, %v321_v11 }
  0x97   : > { %2942 = vmatmul.mubr.msk.f32.gmra.mrb[66].mxu0 %vm391_vm1, %v322_v12 }
  0x98   : > { %2944 = vmatprep.mubr.msk.f32.mxu0 %vm391_vm1, %v323_v13  ;;  %v368_v13 = vld [vmem:[%s3310_s27 + $0x388] sm:$0xff] }
  0x9b   : > { %2945 = vmatmul.mubr.msk.f32.gmra.mrb[68].mxu0 %vm391_vm1, %v324_v14 }
  0x9c   : > { %2947 = vmatprep.mubr.msk.f32.mxu0 %vm391_vm1, %v325_v15  ;;  %v369_v15 = vld [vmem:[%s3310_s27 + $0x390] sm:$0xff] }
  0x9f   : > { %2948 = vmatmul.mubr.msk.f32.gmra.mrb[70].mxu0 %vm391_vm1, %v326_v16 }
  0xa0   : > { %2950 = vmatprep.mubr.msk.f32.mxu0 %vm391_vm1, %v327_v17 }
  0xa3   : > { %2951 = vmatmul.mubr.msk.f32.gmra.mrb[72].mxu0 %vm391_vm1, %v328_v18 }
  0xa4   : > { %2953 = vmatprep.mubr.msk.f32.mxu0 %vm391_vm1, %v329_v19 }
  0xa7   : > { %2954 = vmatmul.mubr.msk.f32.gmra.mrb[74].mxu0 %vm391_vm1, %v330_v20 }
  0xa8   : > { %2956 = vmatprep.mubr.msk.f32.mxu0 %vm391_vm1, %v331_v21 }
  0xab   : > { %2957 = vmatmul.mubr.msk.f32.gmra.mrb[76].mxu0 %vm391_vm1, %v332_v22  ;;  %v370_v22 = vld [vmem:[%s3310_s27 + $0x398] sm:$0xff] }
  0xac   : > { %2959 = vmatprep.mubr.msk.f32.mxu0 %vm391_vm1, %v333_v23 }
  0xaf   : > { %2960 = vmatmul.mubr.msk.f32.gmra.mrb[78].mxu0 %vm391_vm1, %v334_v24  ;;  %v371_v24 = vld [vmem:[%s3310_s27 + $0x3a0] sm:$0xff] }
  0xb0   : > { %2962 = vmatprep.mubr.msk.f32.mxu0 %vm391_vm1, %v335_v25 }
  0xb3   : > { %2963 = vmatmul.mubr.msk.f32.gmra.mrb[80].mxu0 %vm391_vm1, %v336_v26 }
  0xb4   : > { %2965 = vmatprep.mubr.msk.f32.mxu0 %vm391_vm1, %v337_v27 }
  0xb7   : > { %2966 = vmatmul.mubr.msk.f32.gmra.mrb[82].mxu0 %vm391_vm1, %v338_v28 }
  0xb8   : > { %2968 = vmatprep.mubr.msk.f32.mxu0 %vm391_vm1, %v339_v29 }
  0xbb   : > { %2969 = vmatmul.mubr.msk.f32.gmra.mrb[84].mxu0 %vm391_vm1, %v340_v30 }
  0xbc   : > { %2971 = vmatprep.mubr.msk.f32.mxu0 %vm391_vm1, %v341_v31  ;;  %v372_v31 = vld [vmem:[%s3310_s27 + $0x3a8] sm:$0xff] }
  0xbf   : > { %2972 = vmatmul.mubr.msk.f32.gmra.mrb[86].mxu0 %vm391_vm1, %v342_v32 }
  0xc0   : > { %2974 = vmatprep.mubr.msk.f32.mxu0 %vm391_vm1, %v343_v33  ;;  %v373_v33 = vld [vmem:[%s3310_s27 + $0x3b0] sm:$0xff] }
  0xc3   : > { %2975 = vmatmul.mubr.msk.f32.gmra.mrb[88].mxu0 %vm391_vm1, %v344_v34 }
  0xc4   : > { %2977 = vmatprep.mubr.msk.f32.mxu0 %vm391_vm1, %v345_v35 }
  0xc7   : > { %2978 = vmatmul.mubr.msk.f32.gmra.mrb[90].mxu0 %vm391_vm1, %v346_v36 }
  0xc8   : > { %2980 = vmatprep.mubr.msk.f32.mxu0 %vm391_vm1, %v347_v37 }
  0xcb   : > { %2981 = vmatmul.mubr.msk.f32.gmra.mrb[92].mxu0 %vm391_vm1, %v348_v38 }
  0xcc   : > { %2983 = vmatprep.mubr.msk.f32.mxu0 %vm391_vm1, %v349_v39 }
  0xcf   : > { %2984 = vmatmul.mubr.msk.f32.gmra.mrb[94].mxu0 %vm391_vm1, %v350_v40  ;;  %v374_v40 = vld [vmem:[%s3310_s27 + $0x3b8] sm:$0xff] }
  0xd0   : > { %2986 = vmatprep.mubr.msk.f32.mxu0 %vm391_vm1, %v351_v41 }
  0xd3   : > { %2987 = vmatmul.mubr.msk.f32.gmra.mrb[96].mxu0 %vm391_vm1, %v352_v42  ;;  %v375_v42 = vld [vmem:[%s3310_s27 + $0x3c0] sm:$0xff] }
  0xd4   : > { %2989 = vmatprep.mubr.msk.f32.mxu0 %vm391_vm1, %v353_v43 }
  0xd7   : > { %2990 = vmatmul.mubr.msk.f32.gmra.mrb[98].mxu0 %vm391_vm1, %v354_v44 }
  0xd8   : > { %2992 = vmatprep.mubr.msk.f32.mxu0 %vm391_vm1, %v355_v45 }
  0xdb   : > { %2993 = vmatmul.mubr.msk.f32.gmra.mrb[100].mxu0 %vm391_vm1, %v356_v46 }
  0xdc   : > { %2995 = vmatprep.mubr.msk.f32.mxu0 %vm391_vm1, %v357_v47 }
  0xdf   : > { %2996 = vmatmul.mubr.msk.f32.gmra.mrb[102].mxu0 %vm391_vm1, %v358_v48 }
  0xe0   : > { %2998 = vmatprep.mubr.msk.f32.mxu0 %vm391_vm1, %v359_v49  ;;  %v376_v49 = vld [vmem:[%s3310_s27 + $0x3c8] sm:$0xff] }
  0xe3   : > { %2999 = vmatmul.mubr.msk.f32.gmra.mrb[104].mxu0 %vm391_vm1, %v360_v50 }
  0xe4   : > { %3001 = vmatprep.mubr.msk.f32.mxu0 %vm391_vm1, %v361_v51  ;;  %v377_v51 = vld [vmem:[%s3310_s27 + $0x3d0] sm:$0xff] }
  0xe6   : > { %v2844_v55 = vpop.f32.mrb[0].mxu0 }
  0xe7   : > { %v852_v56 = vadd.f32 %v2844_v55, %v3552_v52  ;;  %v846_v57 = vpop.f32.mrb[1].mxu0  ;;  %3002 = vmatmul.mubr.msk.f32.gmra.mrb[106].mxu0 %vm391_vm1, %v362_v53 }
  0xe8   : > { %v847_v58 = vadd.f32 %v3552_v52, %v846_v57  ;;  %3004 = vmatprep.mubr.msk.f32.mxu0 %vm391_vm1, %v363_v54 }
  0xe9   : > { %v1486_v60 = vmax.f32 %v852_v56, 0.0 }
  0xea   : > { %v1485_v62 = vmax.f32 %v847_v58, 0.0  ;;  %v2847_v63 = vpop.f32.mrb[2].mxu0 }
  0xeb   : > { %v862_v0 = vadd.f32 %v2847_v63, %v3552_v52  ;;  %v856_v1 = vpop.f32.mrb[3].mxu0  ;;  %3005 = vmatmul.mubr.msk.f32.gmra.mrb[108].mxu0 %vm391_vm1, %v364_v59  ;;  %v378_v59 = vld [vmem:[%s3310_s27 + $0x3d8] sm:$0xff] }
  0xec   : > { %v3565_v2 = vpack.c.bf16 %v1486_v60, %v1485_v62  ;;  %v857_v3 = vadd.f32 %v3552_v52, %v856_v1  ;;  %3007 = vmatprep.mubr.msk.f32.mxu0 %vm391_vm1, %v365_v61  ;;  %v379_v61 = vld [vmem:[%s3310_s27 + $0x3e0] sm:$0xff] }
  0xed   : > { %v1488_v5 = vmax.f32 %v862_v0, 0.0 }
  0xee   : > { %v1487_v7 = vmax.f32 %v857_v3, 0.0  ;;  %v2850_v8 = vpop.f32.mrb[4].mxu0 }
  0xef   : > { %v872_v9 = vadd.f32 %v2850_v8, %v3552_v52  ;;  %v866_v10 = vpop.f32.mrb[5].mxu0  ;;  %3008 = vmatmul.mubr.msk.f32.gmra.mrb[110].mxu0 %vm391_vm1, %v366_v4 }
  0xf0   : > { %v3573_v11 = vpack.c.bf16 %v1488_v5, %v1487_v7  ;;  %v867_v12 = vadd.f32 %v3552_v52, %v866_v10  ;;  %3010 = vmatprep.mubr.msk.f32.mxu0 %vm391_vm1, %v367_v6  ;;  %v380_v5 = vld [vmem:[%s3310_s27 + $0x3e8] sm:$0xff]  ;;  %v381_v7 = vld [vmem:[%s3310_s27 + $0x3f0] sm:$0xff] }
  0xf1   : > { %v1490_v14 = vmax.f32 %v872_v9, 0.0 }
  0xf2   : > { %v1489_v16 = vmax.f32 %v867_v12, 0.0  ;;  %v2853_v17 = vpop.f32.mrb[6].mxu0 }
  0xf3   : > { %v882_v18 = vadd.f32 %v2853_v17, %v3552_v52  ;;  %v876_v19 = vpop.f32.mrb[7].mxu0  ;;  %3011 = vmatmul.mubr.msk.f32.gmra.mrb[112].mxu0 %vm391_vm1, %v368_v13 }
  0xf4   : > { %v877_v20 = vadd.f32 %v3552_v52, %v876_v19  ;;  %3013 = vmatprep.mubr.msk.f32.mxu0 %vm391_vm1, %v369_v15  ;;  %v1615_v21 = vpack.c.bf16 %v1490_v14, %v1489_v16  ;;  %v382_v15 = vld [vmem:[%s3310_s27 + $0x3f8] sm:$0xff] }
  0xf5   : > { %v1492_v23 = vmax.f32 %v882_v18, 0.0 }
  0xf6   : > { %v1491_v25 = vmax.f32 %v877_v20, 0.0  ;;  %v2856_v26 = vpop.f32.mrb[8].mxu0  ;;  %3054 = vmatprep.mubr.bf16.mxu1 %v1615_v21 }
  0xf7   : > { %v892_v27 = vadd.f32 %v2856_v26, %v3552_v52  ;;  %v886_v28 = vpop.f32.mrb[9].mxu0  ;;  %3014 = vmatmul.mubr.msk.f32.gmra.mrb[114].mxu0 %vm391_vm1, %v370_v22 }
  0xf8   : > { %v1616_v29 = vpack.c.bf16 %v1492_v23, %v1491_v25  ;;  %v887_v30 = vadd.f32 %v3552_v52, %v886_v28  ;;  %3016 = vmatprep.mubr.msk.f32.mxu0 %vm391_vm1, %v371_v24 }
  0xf9   : > { %v1494_v32 = vmax.f32 %v892_v27, 0.0 }
  0xfa   : > { %v1493_v34 = vmax.f32 %v887_v30, 0.0  ;;  %v2859_v35 = vpop.f32.mrb[10].mxu0  ;;  %3055 = vmatmul.mubr.bf16.vlgmr.msra.gmra.mrb[0].mxu1 %v1616_v29 }
  0xfb   : > { %v902_v36 = vadd.f32 %v2859_v35, %v3552_v52  ;;  %v896_v37 = vpop.f32.mrb[11].mxu0  ;;  %3017 = vmatmul.mubr.msk.f32.gmra.mrb[116].mxu0 %vm391_vm1, %v372_v31 }
  0xfc   : > { %v1617_v38 = vpack.c.bf16 %v1494_v32, %v1493_v34  ;;  %v897_v39 = vadd.f32 %v3552_v52, %v896_v37  ;;  %3019 = vmatprep.mubr.msk.f32.mxu0 %vm391_vm1, %v373_v33 }
  0xfd   : > { %v1496_v41 = vmax.f32 %v902_v36, 0.0 }
  0xfe   : > { %v1495_v43 = vmax.f32 %v897_v39, 0.0  ;;  %v2862_v44 = vpop.f32.mrb[12].mxu0  ;;  %3058 = vmatprep.mubr.bf16.mxu1 %v1617_v38 }
  0xff   : > { %v912_v45 = vadd.f32 %v2862_v44, %v3552_v52  ;;  %v906_v46 = vpop.f32.mrb[13].mxu0  ;;  %3020 = vmatmul.mubr.msk.f32.gmra.mrb[118].mxu0 %vm391_vm1, %v374_v40 }
 0x100   : > { %v1618_v47 = vpack.c.bf16 %v1496_v41, %v1495_v43  ;;  %v907_v48 = vadd.f32 %v3552_v52, %v906_v46  ;;  %3022 = vmatprep.mubr.msk.f32.mxu0 %vm391_vm1, %v375_v42 }
 0x101   : > { %v1498_v50 = vmax.f32 %v912_v45, 0.0 }
 0x102   : > { %v1497_v53 = vmax.f32 %v907_v48, 0.0  ;;  %v2865_v54 = vpop.f32.mrb[14].mxu0  ;;  %3059 = vmatmul.mubr.bf16.gmra.mrb[4].mxu1 %v1618_v47 }
 0x103   : > { %v922_v55 = vadd.f32 %v2865_v54, %v3552_v52  ;;  %v916_v56 = vpop.f32.mrb[15].mxu0  ;;  %3023 = vmatmul.mubr.msk.f32.gmra.mrb[120].mxu0 %vm391_vm1, %v376_v49 }
 0x104   : > { %v1619_v57 = vpack.c.bf16 %v1498_v50, %v1497_v53  ;;  %v917_v58 = vadd.f32 %v3552_v52, %v916_v56  ;;  %3025 = vmatprep.mubr.msk.f32.mxu0 %vm391_vm1, %v377_v51 }
 0x105   : > { %v1500_v60 = vmax.f32 %v922_v55, 0.0 }
 0x106   : > { %v1499_v62 = vmax.f32 %v917_v58, 0.0  ;;  %v2868_v63 = vpop.f32.mrb[16].mxu0  ;;  %3062 = vmatprep.mubr.bf16.mxu1 %v1619_v57 }
 0x107   : > { %v932_v0 = vadd.f32 %v2868_v63, %v3552_v52  ;;  %v926_v1 = vpop.f32.mrb[17].mxu0  ;;  %3026 = vmatmul.mubr.msk.f32.gmra.mrb[122].mxu0 %vm391_vm1, %v378_v59 }
 0x108   : > { %v1620_v3 = vpack.c.bf16 %v1500_v60, %v1499_v62  ;;  %v927_v4 = vadd.f32 %v3552_v52, %v926_v1  ;;  %3028 = vmatprep.mubr.msk.f32.mxu0 %vm391_vm1, %v379_v61 }
 0x109   : > { %v1502_v6 = vmax.f32 %v932_v0, 0.0 }
 0x10a   : > { %v1501_v8 = vmax.f32 %v927_v4, 0.0  ;;  %v2871_v9 = vpop.f32.mrb[18].mxu0  ;;  %3063 = vmatmul.mubr.bf16.gmra.mrb[8].mxu1 %v1620_v3 }
 0x10b   : > { %v942_v10 = vadd.f32 %v2871_v9, %v3552_v52  ;;  %v936_v12 = vpop.f32.mrb[19].mxu0  ;;  %3029 = vmatmul.mubr.msk.f32.gmra.mrb[124].mxu0 %vm391_vm1, %v380_v5 }
 0x10c   : > { %v1621_v13 = vpack.c.bf16 %v1502_v6, %v1501_v8  ;;  %v937_v14 = vadd.f32 %v3552_v52, %v936_v12  ;;  %3031 = vmatprep.mubr.msk.f32.mxu0 %vm391_vm1, %v381_v7 }
 0x10d   : > { %v1504_v16 = vmax.f32 %v942_v10, 0.0 }
 0x10e   : > { %v1503_v17 = vmax.f32 %v937_v14, 0.0  ;;  %v2874_v18 = vpop.f32.mrb[20].mxu0  ;;  %3066 = vmatprep.mubr.bf16.mxu1 %v1621_v13 }
 0x10f   : > { %v952_v19 = vadd.f32 %v2874_v18, %v3552_v52  ;;  %v946_v20 = vpop.f32.mrb[21].mxu0  ;;  %3032 = vmatmul.mubr.msk.f32.gmra.mrb[126].mxu0 %vm391_vm1, %v382_v15 }
 0x110   : > { %v1622_v21 = vpack.c.bf16 %v1504_v16, %v1503_v17  ;;  %v947_v22 = vadd.f32 %v3552_v52, %v946_v20  ;;  %3050 = vmatprep.mubr.bf16.mxu0 %v3565_v2 }
 0x111   : > { %v1506_v23 = vmax.f32 %v952_v19, 0.0 }
 0x112   : > { %v1505_v24 = vmax.f32 %v947_v22, 0.0  ;;  %v2877_v25 = vpop.f32.mrb[22].mxu0  ;;  %3067 = vmatmul.mubr.bf16.gmra.mrb[12].mxu1 %v1622_v21 }
 0x113   : > { %v962_v26 = vadd.f32 %v2877_v25, %v3552_v52  ;;  %v956_v27 = vpop.f32.mrb[23].mxu0  ;;  %3051 = vmatmul.mubr.bf16.vlgmr.msra.gmra.mrb[128].mxu0 %v3573_v11 }
 0x114   : > { %v1623_v28 = vpack.c.bf16 %v1506_v23, %v1505_v24  ;;  %v957_v29 = vadd.f32 %v3552_v52, %v956_v27 }
 0x115   : > { %v1508_v30 = vmax.f32 %v962_v26, 0.0 }
 0x116   : > { %v1507_v31 = vmax.f32 %v957_v29, 0.0  ;;  %v2880_v32 = vpop.f32.mrb[24].mxu0  ;;  %3070 = vmatprep.mubr.bf16.mxu1 %v1623_v28 }
 0x117   : > { %v972_v33 = vadd.f32 %v2880_v32, %v3552_v52  ;;  %v966_v34 = vpop.f32.mrb[25].mxu0 }
 0x118   : > { %v1624_v2 = vpack.c.bf16 %v1508_v30, %v1507_v31  ;;  %v967_v35 = vadd.f32 %v3552_v52, %v966_v34 }
 0x119   : > { %v1510_v36 = vmax.f32 %v972_v33, 0.0 }
 0x11a   : > { %v1509_v37 = vmax.f32 %v967_v35, 0.0  ;;  %v2883_v38 = vpop.f32.mrb[26].mxu0  ;;  %3071 = vmatmul.mubr.bf16.gmra.mrb[16].mxu1 %v1624_v2 }
 0x11b   : > { %v982_v39 = vadd.f32 %v2883_v38, %v3552_v52  ;;  %v976_v11 = vpop.f32.mrb[27].mxu0 }
 0x11c   : > { %v1625_v40 = vpack.c.bf16 %v1510_v36, %v1509_v37  ;;  %v977_v41 = vadd.f32 %v3552_v52, %v976_v11 }
 0x11d   : > { %v1512_v42 = vmax.f32 %v982_v39, 0.0 }
 0x11e   : > { %v1511_v43 = vmax.f32 %v977_v41, 0.0  ;;  %v2886_v44 = vpop.f32.mrb[28].mxu0  ;;  %3074 = vmatprep.mubr.bf16.mxu1 %v1625_v40 }
 0x11f   : > { %v992_v45 = vadd.f32 %v2886_v44, %v3552_v52  ;;  %v986_v46 = vpop.f32.mrb[29].mxu0 }
 0x120   : > { %v1626_v47 = vpack.c.bf16 %v1512_v42, %v1511_v43  ;;  %v987_v48 = vadd.f32 %v3552_v52, %v986_v46 }
 0x121   : > { %v1514_v49 = vmax.f32 %v992_v45, 0.0 }
 0x122   : > { %v1513_v50 = vmax.f32 %v987_v48, 0.0  ;;  %v2889_v51 = vpop.f32.mrb[30].mxu0  ;;  %3075 = vmatmul.mubr.bf16.gmra.mrb[20].mxu1 %v1626_v47 }
 0x123   : > { %v1002_v53 = vadd.f32 %v2889_v51, %v3552_v52  ;;  %v996_v54 = vpop.f32.mrb[31].mxu0 }
 0x124   : > { %v1627_v55 = vpack.c.bf16 %v1514_v49, %v1513_v50  ;;  %v997_v56 = vadd.f32 %v3552_v52, %v996_v54 }
 0x125   : > { %v1516_v57 = vmax.f32 %v1002_v53, 0.0 }
 0x126   : > { %v1515_v58 = vmax.f32 %v997_v56, 0.0  ;;  %v2892_v59 = vpop.f32.mrb[32].mxu0  ;;  %3078 = vmatprep.mubr.bf16.mxu1 %v1627_v55 }
 0x127   : > { %v1012_v60 = vadd.f32 %v2892_v59, %v3552_v52  ;;  %v1006_v61 = vpop.f32.mrb[33].mxu0 }
 0x128   : > { %v1628_v62 = vpack.c.bf16 %v1516_v57, %v1515_v58  ;;  %v1007_v63 = vadd.f32 %v3552_v52, %v1006_v61 }
 0x129   : > { %v1518_v0 = vmax.f32 %v1012_v60, 0.0 }
 0x12a   : > { %v1517_v1 = vmax.f32 %v1007_v63, 0.0  ;;  %v2895_v3 = vpop.f32.mrb[34].mxu0  ;;  %3079 = vmatmul.mubr.bf16.gmra.mrb[24].mxu1 %v1628_v62 }
 0x12b   : > { %v1022_v4 = vadd.f32 %v2895_v3, %v3552_v52  ;;  %v1016_v5 = vpop.f32.mrb[35].mxu0 }
 0x12c   : > { %v1629_v6 = vpack.c.bf16 %v1518_v0, %v1517_v1  ;;  %v1017_v7 = vadd.f32 %v3552_v52, %v1016_v5 }
 0x12d   : > { %v1520_v8 = vmax.f32 %v1022_v4, 0.0 }
 0x12e   : > { %v1519_v9 = vmax.f32 %v1017_v7, 0.0  ;;  %v2898_v10 = vpop.f32.mrb[36].mxu0  ;;  %3082 = vmatprep.mubr.bf16.mxu1 %v1629_v6 }
 0x12f   : > { %v1032_v12 = vadd.f32 %v2898_v10, %v3552_v52  ;;  %v1026_v13 = vpop.f32.mrb[37].mxu0 }
 0x130   : > { %v1630_v14 = vpack.c.bf16 %v1520_v8, %v1519_v9  ;;  %v1027_v15 = vadd.f32 %v3552_v52, %v1026_v13 }
 0x131   : > { %v1522_v16 = vmax.f32 %v1032_v12, 0.0 }
 0x132   : > { %v1521_v17 = vmax.f32 %v1027_v15, 0.0  ;;  %v2901_v18 = vpop.f32.mrb[38].mxu0  ;;  %3083 = vmatmul.mubr.bf16.gmra.mrb[28].mxu1 %v1630_v14 }
 0x133   : > { %v1042_v19 = vadd.f32 %v2901_v18, %v3552_v52  ;;  %v1036_v20 = vpop.f32.mrb[39].mxu0 }
 0x134   : > { %v1631_v21 = vpack.c.bf16 %v1522_v16, %v1521_v17  ;;  %v1037_v22 = vadd.f32 %v3552_v52, %v1036_v20 }
 0x135   : > { %v1524_v23 = vmax.f32 %v1042_v19, 0.0 }
 0x136   : > { %v1523_v24 = vmax.f32 %v1037_v22, 0.0  ;;  %v2904_v25 = vpop.f32.mrb[40].mxu0  ;;  %3086 = vmatprep.mubr.bf16.mxu1 %v1631_v21 }
 0x137   : > { %v1052_v26 = vadd.f32 %v2904_v25, %v3552_v52  ;;  %v1046_v27 = vpop.f32.mrb[41].mxu0 }
 0x138   : > { %v1632_v28 = vpack.c.bf16 %v1524_v23, %v1523_v24  ;;  %v1047_v29 = vadd.f32 %v3552_v52, %v1046_v27 }
 0x139   : > { %v1526_v30 = vmax.f32 %v1052_v26, 0.0 }
 0x13a   : > { %v1525_v31 = vmax.f32 %v1047_v29, 0.0  ;;  %v2907_v32 = vpop.f32.mrb[42].mxu0  ;;  %3087 = vmatmul.mubr.bf16.gmra.mrb[32].mxu1 %v1632_v28 }
 0x13b   : > { %v1062_v33 = vadd.f32 %v2907_v32, %v3552_v52  ;;  %v1056_v34 = vpop.f32.mrb[43].mxu0 }
 0x13c   : > { %v1633_v2 = vpack.c.bf16 %v1526_v30, %v1525_v31  ;;  %v1057_v35 = vadd.f32 %v3552_v52, %v1056_v34 }
 0x13d   : > { %v1528_v36 = vmax.f32 %v1062_v33, 0.0 }
 0x13e   : > { %v1527_v37 = vmax.f32 %v1057_v35, 0.0  ;;  %v2910_v38 = vpop.f32.mrb[44].mxu0  ;;  %3090 = vmatprep.mubr.bf16.mxu1 %v1633_v2 }
 0x13f   : > { %v1072_v39 = vadd.f32 %v2910_v38, %v3552_v52  ;;  %v1066_v11 = vpop.f32.mrb[45].mxu0 }
 0x140   : > { %v1634_v40 = vpack.c.bf16 %v1528_v36, %v1527_v37  ;;  %v1067_v41 = vadd.f32 %v3552_v52, %v1066_v11 }
 0x141   : > { %v1530_v42 = vmax.f32 %v1072_v39, 0.0 }
 0x142   : > { %v1529_v43 = vmax.f32 %v1067_v41, 0.0  ;;  %v2913_v44 = vpop.f32.mrb[46].mxu0  ;;  %3091 = vmatmul.mubr.bf16.gmra.mrb[36].mxu1 %v1634_v40 }
 0x143   : > { %v1082_v45 = vadd.f32 %v2913_v44, %v3552_v52  ;;  %v1076_v46 = vpop.f32.mrb[47].mxu0 }
 0x144   : > { %v1635_v47 = vpack.c.bf16 %v1530_v42, %v1529_v43  ;;  %v1077_v48 = vadd.f32 %v3552_v52, %v1076_v46 }
 0x145   : > { %v1532_v49 = vmax.f32 %v1082_v45, 0.0 }
 0x146   : > { %v1531_v50 = vmax.f32 %v1077_v48, 0.0  ;;  %v2916_v51 = vpop.f32.mrb[48].mxu0  ;;  %3094 = vmatprep.mubr.bf16.mxu1 %v1635_v47 }
 0x147   : > { %v1092_v53 = vadd.f32 %v2916_v51, %v3552_v52  ;;  %v1086_v54 = vpop.f32.mrb[49].mxu0 }
 0x148   : > { %v1636_v55 = vpack.c.bf16 %v1532_v49, %v1531_v50  ;;  %v1087_v56 = vadd.f32 %v3552_v52, %v1086_v54 }
 0x149   : > { %v1534_v57 = vmax.f32 %v1092_v53, 0.0 }
 0x14a   : > { %v1533_v58 = vmax.f32 %v1087_v56, 0.0  ;;  %v2919_v59 = vpop.f32.mrb[50].mxu0  ;;  %3095 = vmatmul.mubr.bf16.gmra.mrb[40].mxu1 %v1636_v55 }
 0x14b   : > { %v1102_v60 = vadd.f32 %v2919_v59, %v3552_v52  ;;  %v1096_v61 = vpop.f32.mrb[51].mxu0 }
 0x14c   : > { %v1637_v62 = vpack.c.bf16 %v1534_v57, %v1533_v58  ;;  %v1097_v63 = vadd.f32 %v3552_v52, %v1096_v61 }
 0x14d   : > { %v1536_v0 = vmax.f32 %v1102_v60, 0.0 }
 0x14e   : > { %v1535_v1 = vmax.f32 %v1097_v63, 0.0  ;;  %v2922_v3 = vpop.f32.mrb[52].mxu0  ;;  %3098 = vmatprep.mubr.bf16.mxu1 %v1637_v62 }
 0x14f   : > { %v1112_v4 = vadd.f32 %v2922_v3, %v3552_v52  ;;  %v1106_v5 = vpop.f32.mrb[53].mxu0 }
 0x150   : > { %v1638_v6 = vpack.c.bf16 %v1536_v0, %v1535_v1  ;;  %v1107_v7 = vadd.f32 %v3552_v52, %v1106_v5 }
 0x151   : > { %v1538_v8 = vmax.f32 %v1112_v4, 0.0 }
 0x152   : > { %v1537_v9 = vmax.f32 %v1107_v7, 0.0  ;;  %v2925_v10 = vpop.f32.mrb[54].mxu0  ;;  %3099 = vmatmul.mubr.bf16.gmra.mrb[44].mxu1 %v1638_v6 }
 0x153   : > { %v1122_v12 = vadd.f32 %v2925_v10, %v3552_v52  ;;  %v1116_v13 = vpop.f32.mrb[55].mxu0 }
 0x154   : > { %v1639_v14 = vpack.c.bf16 %v1538_v8, %v1537_v9  ;;  %v1117_v15 = vadd.f32 %v3552_v52, %v1116_v13 }
 0x155   : > { %v1540_v16 = vmax.f32 %v1122_v12, 0.0 }
 0x156   : > { %v1539_v17 = vmax.f32 %v1117_v15, 0.0  ;;  %v2928_v18 = vpop.f32.mrb[56].mxu0  ;;  %3102 = vmatprep.mubr.bf16.mxu1 %v1639_v14 }
 0x157   : > { %v1132_v19 = vadd.f32 %v2928_v18, %v3552_v52  ;;  %v1126_v20 = vpop.f32.mrb[57].mxu0 }
 0x158   : > { %v1640_v21 = vpack.c.bf16 %v1540_v16, %v1539_v17  ;;  %v1127_v22 = vadd.f32 %v3552_v52, %v1126_v20 }
 0x159   : > { %v1542_v23 = vmax.f32 %v1132_v19, 0.0 }
 0x15a   : > { %v1541_v24 = vmax.f32 %v1127_v22, 0.0  ;;  %v2931_v25 = vpop.f32.mrb[58].mxu0  ;;  %3103 = vmatmul.mubr.bf16.gmra.mrb[48].mxu1 %v1640_v21 }
 0x15b   : > { %v1142_v26 = vadd.f32 %v2931_v25, %v3552_v52  ;;  %v1136_v27 = vpop.f32.mrb[59].mxu0 }
 0x15c   : > { %v1641_v28 = vpack.c.bf16 %v1542_v23, %v1541_v24  ;;  %v1137_v29 = vadd.f32 %v3552_v52, %v1136_v27 }
 0x15d   : > { %v1544_v30 = vmax.f32 %v1142_v26, 0.0 }
 0x15e   : > { %v1543_v31 = vmax.f32 %v1137_v29, 0.0  ;;  %v2934_v32 = vpop.f32.mrb[60].mxu0  ;;  %3106 = vmatprep.mubr.bf16.mxu1 %v1641_v28 }
 0x15f   : > { %v1152_v33 = vadd.f32 %v2934_v32, %v3552_v52  ;;  %v1146_v34 = vpop.f32.mrb[61].mxu0 }
 0x160   : > { %v1642_v2 = vpack.c.bf16 %v1544_v30, %v1543_v31  ;;  %v1147_v35 = vadd.f32 %v3552_v52, %v1146_v34 }
 0x161   : > { %v1546_v36 = vmax.f32 %v1152_v33, 0.0 }
 0x162   : > { %v1545_v37 = vmax.f32 %v1147_v35, 0.0  ;;  %v2937_v38 = vpop.f32.mrb[62].mxu0  ;;  %3107 = vmatmul.mubr.bf16.gmra.mrb[52].mxu1 %v1642_v2 }
 0x163   : > { %v1162_v39 = vadd.f32 %v2937_v38, %v3552_v52  ;;  %v1156_v11 = vpop.f32.mrb[63].mxu0 }
 0x164   : > { %v1643_v40 = vpack.c.bf16 %v1546_v36, %v1545_v37  ;;  %v1157_v41 = vadd.f32 %v3552_v52, %v1156_v11 }
 0x165   : > { %v1548_v42 = vmax.f32 %v1162_v39, 0.0 }
 0x166   : > { %v1547_v43 = vmax.f32 %v1157_v41, 0.0  ;;  %v2940_v44 = vpop.f32.mrb[64].mxu0  ;;  %3110 = vmatprep.mubr.bf16.mxu1 %v1643_v40 }
 0x167   : > { %v1172_v45 = vadd.f32 %v2940_v44, %v3552_v52  ;;  %v1166_v46 = vpop.f32.mrb[65].mxu0 }
 0x168   : > { %v1644_v47 = vpack.c.bf16 %v1548_v42, %v1547_v43  ;;  %v1167_v48 = vadd.f32 %v3552_v52, %v1166_v46 }
 0x169   : > { %v1550_v49 = vmax.f32 %v1172_v45, 0.0 }
 0x16a   : > { %v1549_v50 = vmax.f32 %v1167_v48, 0.0  ;;  %v2943_v51 = vpop.f32.mrb[66].mxu0  ;;  %3111 = vmatmul.mubr.bf16.gmra.mrb[56].mxu1 %v1644_v47 }
 0x16b   : > { %v1182_v53 = vadd.f32 %v2943_v51, %v3552_v52  ;;  %v1176_v54 = vpop.f32.mrb[67].mxu0 }
 0x16c   : > { %v1645_v55 = vpack.c.bf16 %v1550_v49, %v1549_v50  ;;  %v1177_v56 = vadd.f32 %v3552_v52, %v1176_v54 }
 0x16d   : > { %v1552_v57 = vmax.f32 %v1182_v53, 0.0 }
 0x16e   : > { %v1551_v58 = vmax.f32 %v1177_v56, 0.0  ;;  %v2946_v59 = vpop.f32.mrb[68].mxu0  ;;  %3114 = vmatprep.mubr.bf16.mxu1 %v1645_v55 }
 0x16f   : > { %v1192_v60 = vadd.f32 %v2946_v59, %v3552_v52  ;;  %v1186_v61 = vpop.f32.mrb[69].mxu0 }
 0x170   : > { %v1646_v62 = vpack.c.bf16 %v1552_v57, %v1551_v58  ;;  %v1187_v63 = vadd.f32 %v3552_v52, %v1186_v61 }
 0x171   : > { %v1554_v0 = vmax.f32 %v1192_v60, 0.0 }
 0x172   : > { %v1553_v1 = vmax.f32 %v1187_v63, 0.0  ;;  %v2949_v3 = vpop.f32.mrb[70].mxu0  ;;  %3115 = vmatmul.mubr.bf16.gmra.mrb[60].mxu1 %v1646_v62 }
 0x173   : > { %v1202_v4 = vadd.f32 %v2949_v3, %v3552_v52  ;;  %v1196_v5 = vpop.f32.mrb[71].mxu0 }
 0x174   : > { %v1647_v6 = vpack.c.bf16 %v1554_v0, %v1553_v1  ;;  %v1197_v7 = vadd.f32 %v3552_v52, %v1196_v5 }
 0x175   : > { %v1556_v8 = vmax.f32 %v1202_v4, 0.0 }
 0x176   : > { %v1555_v9 = vmax.f32 %v1197_v7, 0.0  ;;  %v2952_v10 = vpop.f32.mrb[72].mxu0  ;;  %3118 = vmatprep.mubr.bf16.mxu1 %v1647_v6 }
 0x177   : > { %v1212_v12 = vadd.f32 %v2952_v10, %v3552_v52  ;;  %v1206_v13 = vpop.f32.mrb[73].mxu0 }
 0x178   : > { %v1648_v14 = vpack.c.bf16 %v1556_v8, %v1555_v9  ;;  %v1207_v15 = vadd.f32 %v3552_v52, %v1206_v13 }
 0x179   : > { %v1558_v16 = vmax.f32 %v1212_v12, 0.0 }
 0x17a   : > { %v1557_v17 = vmax.f32 %v1207_v15, 0.0  ;;  %v2955_v18 = vpop.f32.mrb[74].mxu0  ;;  %3119 = vmatmul.mubr.bf16.gmra.mrb[64].mxu1 %v1648_v14 }
 0x17b   : > { %v1222_v19 = vadd.f32 %v2955_v18, %v3552_v52  ;;  %v1216_v20 = vpop.f32.mrb[75].mxu0 }
 0x17c   : > { %v1649_v21 = vpack.c.bf16 %v1558_v16, %v1557_v17  ;;  %v1217_v22 = vadd.f32 %v3552_v52, %v1216_v20 }
 0x17d   : > { %v1560_v23 = vmax.f32 %v1222_v19, 0.0 }
 0x17e   : > { %v1559_v24 = vmax.f32 %v1217_v22, 0.0  ;;  %v2958_v25 = vpop.f32.mrb[76].mxu0  ;;  %3122 = vmatprep.mubr.bf16.mxu1 %v1649_v21 }
 0x17f   : > { %v1232_v26 = vadd.f32 %v2958_v25, %v3552_v52  ;;  %v1226_v27 = vpop.f32.mrb[77].mxu0 }
 0x180   : > { %v1650_v28 = vpack.c.bf16 %v1560_v23, %v1559_v24  ;;  %v1227_v29 = vadd.f32 %v3552_v52, %v1226_v27 }
 0x181   : > { %v1562_v30 = vmax.f32 %v1232_v26, 0.0 }
 0x182   : > { %v1561_v31 = vmax.f32 %v1227_v29, 0.0  ;;  %v2961_v32 = vpop.f32.mrb[78].mxu0  ;;  %3123 = vmatmul.mubr.bf16.gmra.mrb[68].mxu1 %v1650_v28 }
 0x183   : > { %v1242_v33 = vadd.f32 %v2961_v32, %v3552_v52  ;;  %v1236_v34 = vpop.f32.mrb[79].mxu0 }
 0x184   : > { %v1651_v2 = vpack.c.bf16 %v1562_v30, %v1561_v31  ;;  %v1237_v35 = vadd.f32 %v3552_v52, %v1236_v34 }
 0x185   : > { %v1564_v36 = vmax.f32 %v1242_v33, 0.0 }
 0x186   : > { %v1563_v37 = vmax.f32 %v1237_v35, 0.0  ;;  %v2964_v38 = vpop.f32.mrb[80].mxu0  ;;  %3126 = vmatprep.mubr.bf16.mxu1 %v1651_v2 }
 0x187   : > { %v1252_v39 = vadd.f32 %v2964_v38, %v3552_v52  ;;  %v1246_v11 = vpop.f32.mrb[81].mxu0 }
 0x188   : > { %v1652_v40 = vpack.c.bf16 %v1564_v36, %v1563_v37  ;;  %v1247_v41 = vadd.f32 %v3552_v52, %v1246_v11 }
 0x189   : > { %v1566_v42 = vmax.f32 %v1252_v39, 0.0 }
 0x18a   : > { %v1565_v43 = vmax.f32 %v1247_v41, 0.0  ;;  %v2967_v44 = vpop.f32.mrb[82].mxu0  ;;  %3127 = vmatmul.mubr.bf16.gmra.mrb[72].mxu1 %v1652_v40 }
 0x18b   : > { %v1262_v45 = vadd.f32 %v2967_v44, %v3552_v52  ;;  %v1256_v46 = vpop.f32.mrb[83].mxu0 }
 0x18c   : > { %v1653_v47 = vpack.c.bf16 %v1566_v42, %v1565_v43  ;;  %v1257_v48 = vadd.f32 %v3552_v52, %v1256_v46 }
 0x18d   : > { %v1568_v49 = vmax.f32 %v1262_v45, 0.0 }
 0x18e   : > { %v1567_v50 = vmax.f32 %v1257_v48, 0.0  ;;  %v2970_v51 = vpop.f32.mrb[84].mxu0  ;;  %3130 = vmatprep.mubr.bf16.mxu1 %v1653_v47 }
 0x18f   : > { %v1272_v53 = vadd.f32 %v2970_v51, %v3552_v52  ;;  %v1266_v54 = vpop.f32.mrb[85].mxu0 }
 0x190   : > { %v1654_v55 = vpack.c.bf16 %v1568_v49, %v1567_v50  ;;  %v1267_v56 = vadd.f32 %v3552_v52, %v1266_v54 }
 0x191   : > { %v1570_v57 = vmax.f32 %v1272_v53, 0.0 }
 0x192   : > { %v1569_v58 = vmax.f32 %v1267_v56, 0.0  ;;  %v2973_v59 = vpop.f32.mrb[86].mxu0  ;;  %3131 = vmatmul.mubr.bf16.gmra.mrb[76].mxu1 %v1654_v55 }
 0x193   : > { %v1282_v60 = vadd.f32 %v2973_v59, %v3552_v52  ;;  %v1276_v61 = vpop.f32.mrb[87].mxu0 }
 0x194   : > { %v1655_v62 = vpack.c.bf16 %v1570_v57, %v1569_v58  ;;  %v1277_v63 = vadd.f32 %v3552_v52, %v1276_v61 }
 0x195   : > { %v1572_v0 = vmax.f32 %v1282_v60, 0.0 }
 0x196   : > { %v1571_v1 = vmax.f32 %v1277_v63, 0.0  ;;  %v2976_v3 = vpop.f32.mrb[88].mxu0  ;;  %3134 = vmatprep.mubr.bf16.mxu1 %v1655_v62 }
 0x197   : > { %v1292_v4 = vadd.f32 %v2976_v3, %v3552_v52  ;;  %v1286_v5 = vpop.f32.mrb[89].mxu0 }
 0x198   : > { %v1656_v6 = vpack.c.bf16 %v1572_v0, %v1571_v1  ;;  %v1287_v7 = vadd.f32 %v3552_v52, %v1286_v5 }
 0x199   : > { %v1574_v8 = vmax.f32 %v1292_v4, 0.0 }
 0x19a   : > { %v1573_v9 = vmax.f32 %v1287_v7, 0.0  ;;  %v2979_v10 = vpop.f32.mrb[90].mxu0  ;;  %3135 = vmatmul.mubr.bf16.gmra.mrb[80].mxu1 %v1656_v6 }
 0x19b   : > { %v1302_v12 = vadd.f32 %v2979_v10, %v3552_v52  ;;  %v1296_v13 = vpop.f32.mrb[91].mxu0 }
 0x19c   : > { %v1657_v14 = vpack.c.bf16 %v1574_v8, %v1573_v9  ;;  %v1297_v15 = vadd.f32 %v3552_v52, %v1296_v13 }
 0x19d   : > { %v1576_v16 = vmax.f32 %v1302_v12, 0.0 }
 0x19e   : > { %v1575_v17 = vmax.f32 %v1297_v15, 0.0  ;;  %v2982_v18 = vpop.f32.mrb[92].mxu0  ;;  %3138 = vmatprep.mubr.bf16.mxu1 %v1657_v14 }
 0x19f   : > { %v1312_v19 = vadd.f32 %v2982_v18, %v3552_v52  ;;  %v1306_v20 = vpop.f32.mrb[93].mxu0 }
 0x1a0   : > { %v1658_v21 = vpack.c.bf16 %v1576_v16, %v1575_v17  ;;  %v1307_v22 = vadd.f32 %v3552_v52, %v1306_v20 }
 0x1a1   : > { %v1578_v23 = vmax.f32 %v1312_v19, 0.0 }
 0x1a2   : > { %v1577_v24 = vmax.f32 %v1307_v22, 0.0  ;;  %v2985_v25 = vpop.f32.mrb[94].mxu0  ;;  %3139 = vmatmul.mubr.bf16.gmra.mrb[84].mxu1 %v1658_v21 }
 0x1a3   : > { %v1322_v26 = vadd.f32 %v2985_v25, %v3552_v52  ;;  %v1316_v27 = vpop.f32.mrb[95].mxu0 }
 0x1a4   : > { %v1659_v28 = vpack.c.bf16 %v1578_v23, %v1577_v24  ;;  %v1317_v29 = vadd.f32 %v3552_v52, %v1316_v27 }
 0x1a5   : > { %v1580_v30 = vmax.f32 %v1322_v26, 0.0 }
 0x1a6   : > { %v1579_v31 = vmax.f32 %v1317_v29, 0.0  ;;  %v2988_v32 = vpop.f32.mrb[96].mxu0  ;;  %3142 = vmatprep.mubr.bf16.mxu1 %v1659_v28 }
 0x1a7   : > { %v1332_v33 = vadd.f32 %v2988_v32, %v3552_v52  ;;  %v1326_v34 = vpop.f32.mrb[97].mxu0 }
 0x1a8   : > { %v1660_v2 = vpack.c.bf16 %v1580_v30, %v1579_v31  ;;  %v1327_v35 = vadd.f32 %v3552_v52, %v1326_v34 }
 0x1a9   : > { %v1582_v36 = vmax.f32 %v1332_v33, 0.0 }
 0x1aa   : > { %v1581_v37 = vmax.f32 %v1327_v35, 0.0  ;;  %v2991_v38 = vpop.f32.mrb[98].mxu0  ;;  %3143 = vmatmul.mubr.bf16.gmra.mrb[88].mxu1 %v1660_v2 }
 0x1ab   : > { %v1342_v39 = vadd.f32 %v2991_v38, %v3552_v52  ;;  %v1336_v11 = vpop.f32.mrb[99].mxu0 }
 0x1ac   : > { %v1661_v40 = vpack.c.bf16 %v1582_v36, %v1581_v37  ;;  %v1337_v41 = vadd.f32 %v3552_v52, %v1336_v11 }
 0x1ad   : > { %v1584_v42 = vmax.f32 %v1342_v39, 0.0 }
 0x1ae   : > { %v1583_v43 = vmax.f32 %v1337_v41, 0.0  ;;  %v2994_v44 = vpop.f32.mrb[100].mxu0  ;;  %3146 = vmatprep.mubr.bf16.mxu1 %v1661_v40 }
 0x1af   : > { %v1352_v45 = vadd.f32 %v2994_v44, %v3552_v52  ;;  %v1346_v46 = vpop.f32.mrb[101].mxu0  ;;  %v3227_v44 = vld [vmem:[%s3888_s2] ss:$0 sm:$0xff] }
 0x1b0   : > { %v1662_v47 = vpack.c.bf16 %v1584_v42, %v1583_v43  ;;  %v1347_v48 = vadd.f32 %v3552_v52, %v1346_v46 }
 0x1b1   : > { %v1586_v49 = vmax.f32 %v1352_v45, 0.0 }
 0x1b2   : > { %v1585_v50 = vmax.f32 %v1347_v48, 0.0  ;;  %v2997_v51 = vpop.f32.mrb[102].mxu0  ;;  %3147 = vmatmul.mubr.bf16.gmra.mrb[92].mxu1 %v1662_v47 }
 0x1b3   : > { %v1362_v53 = vadd.f32 %v2997_v51, %v3552_v52  ;;  %v1356_v54 = vpop.f32.mrb[103].mxu0 }
 0x1b4   : > { %v1663_v55 = vpack.c.bf16 %v1586_v49, %v1585_v50  ;;  %v1357_v56 = vadd.f32 %v3552_v52, %v1356_v54 }
 0x1b5   : > { %v1588_v57 = vmax.f32 %v1362_v53, 0.0 }
 0x1b6   : > { %v1587_v58 = vmax.f32 %v1357_v56, 0.0  ;;  %v3000_v59 = vpop.f32.mrb[104].mxu0  ;;  %3150 = vmatprep.mubr.bf16.mxu1 %v1663_v55 }
 0x1b7   : > { %v1372_v60 = vadd.f32 %v3000_v59, %v3552_v52  ;;  %v1366_v61 = vpop.f32.mrb[105].mxu0 }
 0x1b8   : > { %v1664_v62 = vpack.c.bf16 %v1588_v57, %v1587_v58  ;;  %v1367_v63 = vadd.f32 %v3552_v52, %v1366_v61 }
 0x1b9   : > { %v1590_v0 = vmax.f32 %v1372_v60, 0.0 }
 0x1ba   : > { %v1589_v1 = vmax.f32 %v1367_v63, 0.0  ;;  %v3003_v3 = vpop.f32.mrb[106].mxu0  ;;  %3151 = vmatmul.mubr.bf16.gmra.mrb[96].mxu1 %v1664_v62 }
 0x1bb   : > { %v1382_v4 = vadd.f32 %v3003_v3, %v3552_v52  ;;  %v1376_v5 = vpop.f32.mrb[107].mxu0 }
 0x1bc   : > { %v1665_v6 = vpack.c.bf16 %v1590_v0, %v1589_v1  ;;  %v1377_v7 = vadd.f32 %v3552_v52, %v1376_v5 }
 0x1bd   : > { %v1592_v8 = vmax.f32 %v1382_v4, 0.0 }
 0x1be   : > { %v1591_v9 = vmax.f32 %v1377_v7, 0.0  ;;  %v3006_v10 = vpop.f32.mrb[108].mxu0  ;;  %3154 = vmatprep.mubr.bf16.mxu1 %v1665_v6 }
 0x1bf   : > { %v1392_v12 = vadd.f32 %v3006_v10, %v3552_v52  ;;  %v1386_v13 = vpop.f32.mrb[109].mxu0 }
 0x1c0   : > { %v1666_v14 = vpack.c.bf16 %v1592_v8, %v1591_v9  ;;  %v1387_v15 = vadd.f32 %v3552_v52, %v1386_v13 }
 0x1c1   : > { %v1594_v16 = vmax.f32 %v1392_v12, 0.0 }
 0x1c2   : > { %v1593_v17 = vmax.f32 %v1387_v15, 0.0  ;;  %v3009_v18 = vpop.f32.mrb[110].mxu0  ;;  %3155 = vmatmul.mubr.bf16.gmra.mrb[100].mxu1 %v1666_v14 }
 0x1c3   : > { %v1402_v19 = vadd.f32 %v3009_v18, %v3552_v52  ;;  %v1396_v20 = vpop.f32.mrb[111].mxu0 }
 0x1c4   : > { %v1667_v21 = vpack.c.bf16 %v1594_v16, %v1593_v17  ;;  %v1397_v22 = vadd.f32 %v3552_v52, %v1396_v20 }
 0x1c5   : > { %v1596_v23 = vmax.f32 %v1402_v19, 0.0 }
 0x1c6   : > { %v1595_v24 = vmax.f32 %v1397_v22, 0.0  ;;  %v3012_v25 = vpop.f32.mrb[112].mxu0  ;;  %3158 = vmatprep.mubr.bf16.mxu1 %v1667_v21 }
 0x1c7   : > { %v1412_v26 = vadd.f32 %v3012_v25, %v3552_v52  ;;  %v1406_v27 = vpop.f32.mrb[113].mxu0 }
 0x1c8   : > { %v1668_v28 = vpack.c.bf16 %v1596_v23, %v1595_v24  ;;  %v1407_v29 = vadd.f32 %v3552_v52, %v1406_v27 }
 0x1c9   : > { %v1598_v30 = vmax.f32 %v1412_v26, 0.0  ;;  %v3734_v26 = vld [vmem:[%s3890_s4] ss:$0 sm:$0xff] }
 0x1ca   : > { %v1597_v31 = vmax.f32 %v1407_v29, 0.0  ;;  %v3015_v32 = vpop.f32.mrb[114].mxu0  ;;  %3159 = vmatmul.mubr.bf16.gmra.mrb[104].mxu1 %v1668_v28 }
 0x1cb   : > { %v1422_v33 = vadd.f32 %v3015_v32, %v3552_v52  ;;  %v1416_v34 = vpop.f32.mrb[115].mxu0 }
 0x1cc   : > { %v1669_v2 = vpack.c.bf16 %v1598_v30, %v1597_v31  ;;  %v1417_v35 = vadd.f32 %v3552_v52, %v1416_v34 }
 0x1cd   : > { %v1600_v36 = vmax.f32 %v1422_v33, 0.0  ;;  %v3719_v37 = vpop.f32.mrb[0].mxu1 }
 0x1ce   : > { %v1599_v38 = vmax.f32 %v1417_v35, 0.0  ;;  %v3018_v39 = vpop.f32.mrb[116].mxu0  ;;  %v3721_v11 = vpop.f32.mrb[1].mxu1  ;;  %3162 = vmatprep.mubr.bf16.mxu1 %v1669_v2  ;;  %v1807_v34 = vadd.f32 %v3719_v37, %v3734_v26 }
 0x1cf   : > { %v1432_v40 = vadd.f32 %v3018_v39, %v3552_v52  ;;  %v1426_v41 = vpop.f32.mrb[117].mxu0  ;;  %v3724_v42 = vpop.f32.mrb[2].mxu1 }
 0x1d0   : > { %v1670_v43 = vpack.c.bf16 %v1600_v36, %v1599_v38  ;;  %v1427_v45 = vadd.f32 %v3227_v44, %v1426_v41  ;;  %v3729_v46 = vpop.f32.mrb[3].mxu1  ;;  %v1799_v38 = vadd.f32 %v3734_v26, %v3721_v11  ;;  %v1810_v39 = vadd.f32 %v3724_v42, %v3734_v26 }
 0x1d1   : > { %v1602_v47 = vmax.f32 %v1432_v40, 0.0 }
 0x1d2   : > { %v1601_v48 = vmax.f32 %v1427_v45, 0.0  ;;  %v3021_v49 = vpop.f32.mrb[118].mxu0  ;;  %3163 = vmatmul.mubr.bf16.gmra.mrb[108].mxu1 %v1670_v43  ;;  %v1802_v45 = vadd.f32 %v3734_v26, %v3729_v46 }
 0x1d3   : > { %v1442_v50 = vadd.f32 %v3227_v44, %v3021_v49  ;;  %v1436_v51 = vpop.f32.mrb[119].mxu0 }
 0x1d4   : > { %v1671_v53 = vpack.c.bf16 %v1602_v47, %v1601_v48  ;;  %v1437_v54 = vadd.f32 %v3227_v44, %v1436_v51 }
 0x1d5   : > { %v1604_v52 = vmax.f32 %v1442_v50, 0.0  ;;  %v3060_v55 = vpop.f32.mrb[4].mxu1 }
 0x1d6   : > { %v1603_v56 = vmax.f32 %v1437_v54, 0.0  ;;  %v3024_v57 = vpop.f32.mrb[120].mxu0  ;;  %v1814_v58 = vpop.f32.mrb[5].mxu1  ;;  %3166 = vmatprep.mubr.bf16.mxu1 %v1671_v53  ;;  %v1823_v37 = vadd.f32 %v3060_v55, %v3734_v26 }
 0x1d7   : > { %v1452_v59 = vadd.f32 %v3227_v44, %v3024_v57  ;;  %v1446_v60 = vpop.f32.mrb[121].mxu0  ;;  %v3061_v61 = vpop.f32.mrb[6].mxu1  ;;  %v1815_v50 = vadd.f32 %v3734_v26, %v1814_v58 }
 0x1d8   : > { %v1672_v62 = vpack.c.bf16 %v1604_v52, %v1603_v56  ;;  %v1447_v63 = vadd.f32 %v3227_v44, %v1446_v60  ;;  %v1817_v0 = vpop.f32.mrb[7].mxu1  ;;  %v1826_v11 = vadd.f32 %v3061_v61, %v3734_v26 }
 0x1d9   : > { %v1606_v1 = vmax.f32 %v1452_v59, 0.0  ;;  %v1818_v53 = vadd.f32 %v3734_v26, %v1817_v0 }
 0x1da   : > { %v1605_v3 = vmax.f32 %v1447_v63, 0.0  ;;  %v3027_v4 = vpop.f32.mrb[122].mxu0  ;;  %3167 = vmatmul.mubr.bf16.gmra.mrb[112].mxu1 %v1672_v62 }
 0x1db   : > { %v1462_v5 = vadd.f32 %v3227_v44, %v3027_v4  ;;  %v1456_v6 = vpop.f32.mrb[123].mxu0 }
 0x1dc   : > { %v1673_v7 = vpack.c.bf16 %v1606_v1, %v1605_v3  ;;  %v1457_v8 = vadd.f32 %v3227_v44, %v1456_v6 }
 0x1dd   : > { %v1608_v9 = vmax.f32 %v1462_v5, 0.0  ;;  %v3064_v10 = vpop.f32.mrb[8].mxu1 }
 0x1de   : > { %v1607_v12 = vmax.f32 %v1457_v8, 0.0  ;;  %v3030_v13 = vpop.f32.mrb[124].mxu0  ;;  %v1830_v14 = vpop.f32.mrb[9].mxu1  ;;  %3170 = vmatprep.mubr.bf16.mxu1 %v1673_v7  ;;  %v1839_v54 = vadd.f32 %v3064_v10, %v3734_v26 }
 0x1df   : > { %v1472_v15 = vadd.f32 %v3227_v44, %v3030_v13  ;;  %v1466_v16 = vpop.f32.mrb[125].mxu0  ;;  %v3065_v17 = vpop.f32.mrb[10].mxu1  ;;  %v1831_v55 = vadd.f32 %v3734_v26, %v1830_v14 }
 0x1e0   : > { %v1674_v18 = vpack.c.bf16 %v1608_v9, %v1607_v12  ;;  %v1467_v19 = vadd.f32 %v3227_v44, %v1466_v16  ;;  %v1833_v20 = vpop.f32.mrb[11].mxu1  ;;  %v1842_v56 = vadd.f32 %v3065_v17, %v3734_v26 }
 0x1e1   : > { %v1610_v21 = vmax.f32 %v1472_v15, 0.0  ;;  %v1834_v58 = vadd.f32 %v3734_v26, %v1833_v20 }
 0x1e2   : > { %v1609_v22 = vmax.f32 %v1467_v19, 0.0  ;;  %v3033_v23 = vpop.f32.mrb[126].mxu0  ;;  %3171 = vmatmul.mubr.bf16.gmra.mrb[116].mxu1 %v1674_v18 }
 0x1e3   : > { %v1482_v24 = vadd.f32 %v3227_v44, %v3033_v23  ;;  %v1476_v25 = vpop.f32.mrb[127].mxu0 }
 0x1e4   : > { %v1675_v27 = vpack.c.bf16 %v1610_v21, %v1609_v22  ;;  %v1477_v28 = vadd.f32 %v3227_v44, %v1476_v25 }
 0x1e5   : > { %v1612_v29 = vmax.f32 %v1482_v24, 0.0  ;;  %v3068_v30 = vpop.f32.mrb[12].mxu1 }
 0x1e6   : > { %v1611_v31 = vmax.f32 %v1477_v28, 0.0  ;;  %v3052_v32 = vpop.f32.mrb[128].mxu0  ;;  %v1846_v33 = vpop.f32.mrb[13].mxu1  ;;  %3174 = vmatprep.mubr.bf16.mxu1 %v1675_v27  ;;  %v1855_v60 = vadd.f32 %v3068_v30, %v3734_v26 }
 0x1e7   : > { %v1791_v2 = vadd.f32 %v3052_v32, %v3734_v26  ;;  %v1782_v35 = vpop.f32.mrb[129].mxu0  ;;  %v3069_v36 = vpop.f32.mrb[14].mxu1  ;;  %v1847_v1 = vadd.f32 %v3734_v26, %v1846_v33 }
 0x1e8   : > { %v1676_v40 = vpack.c.bf16 %v1612_v29, %v1611_v31  ;;  %v1783_v41 = vadd.f32 %v3734_v26, %v1782_v35  ;;  %v3053_v43 = vpop.f32.mrb[130].mxu0  ;;  %v1849_v44 = vpop.f32.mrb[15].mxu1  ;;  %v1858_v6 = vadd.f32 %v3069_v36, %v3734_v26 }
 0x1e9   : > { %v2296_v47 = vmax.f32 %v1791_v2, %v1807_v34  ;;  %v1794_v48 = vadd.f32 %v3053_v43, %v3734_v26  ;;  %v1785_v49 = vpop.f32.mrb[131].mxu0  ;;  %v1850_v12 = vadd.f32 %v3734_v26, %v1849_v44 }
 0x1ea   : > { %v2294_v51 = vmax.f32 %v1783_v41, %v1799_v38  ;;  %v1786_v42 = vadd.f32 %v3734_v26, %v1785_v49  ;;  %3175 = vmatmul.mubr.bf16.gmra.mrb[120].mxu1 %v1676_v40 }
 0x1eb   : > { %v2300_v52 = vmax.f32 %v2296_v47, %v1823_v37  ;;  %v2297_v46 = vmax.f32 %v1794_v48, %v1810_v39 }
 0x1ec   : > { %v2298_v57 = vmax.f32 %v2294_v51, %v1815_v50  ;;  %v2295_v59 = vmax.f32 %v1786_v42, %v1802_v45 }
 0x1ed   : > { %v2301_v61 = vmax.f32 %v2297_v46, %v1826_v11  ;;  %v3072_v62 = vpop.f32.mrb[16].mxu1  ;;  %v2304_v63 = vmax.f32 %v2300_v52, %v1839_v54 }
 0x1ee   : > { %v2299_v0 = vmax.f32 %v2295_v59, %v1818_v53  ;;  %v1871_v3 = vadd.f32 %v3072_v62, %v3734_v26  ;;  %v1862_v4 = vpop.f32.mrb[17].mxu1  ;;  %v2302_v5 = vmax.f32 %v2298_v57, %v1831_v55 }
 0x1ef   : > { %v2308_v7 = vmax.f32 %v2304_v63, %v1855_v60  ;;  %v1863_v8 = vadd.f32 %v3734_v26, %v1862_v4  ;;  %v3073_v9 = vpop.f32.mrb[18].mxu1  ;;  %v2305_v10 = vmax.f32 %v2301_v61, %v1842_v56 }
 0x1f0   : > { %v2306_v13 = vmax.f32 %v2302_v5, %v1847_v1  ;;  %v1874_v14 = vadd.f32 %v3073_v9, %v3734_v26  ;;  %v1865_v15 = vpop.f32.mrb[19].mxu1  ;;  %v2303_v16 = vmax.f32 %v2299_v0, %v1834_v58 }
 0x1f1   : > { %v2312_v17 = vmax.f32 %v2308_v7, %v1871_v3  ;;  %v2309_v18 = vmax.f32 %v2305_v10, %v1858_v6  ;;  %v1866_v19 = vadd.f32 %v3734_v26, %v1865_v15 }
 0x1f2   : > { %v2310_v20 = vmax.f32 %v2306_v13, %v1863_v8  ;;  %v2307_v21 = vmax.f32 %v2303_v16, %v1850_v12 }
 0x1f3   : > { %v2313_v22 = vmax.f32 %v2309_v18, %v1874_v14 }
 0x1f4   : > { %v2311_v23 = vmax.f32 %v2307_v21, %v1866_v19 }
 0x1f5   : > { %v3076_v24 = vpop.f32.mrb[20].mxu1 }
 0x1f6   : > { %v1887_v25 = vadd.f32 %v3076_v24, %v3734_v26  ;;  %v1878_v27 = vpop.f32.mrb[21].mxu1 }
 0x1f7   : > { %v1879_v28 = vadd.f32 %v3734_v26, %v1878_v27  ;;  %v3077_v29 = vpop.f32.mrb[22].mxu1 }
 0x1f8   : > { %v2316_v30 = vmax.f32 %v2312_v17, %v1887_v25  ;;  %v1890_v31 = vadd.f32 %v3077_v29, %v3734_v26  ;;  %v1881_v32 = vpop.f32.mrb[23].mxu1 }
 0x1f9   : > { %v2314_v33 = vmax.f32 %v2310_v20, %v1879_v28  ;;  %v1882_v34 = vadd.f32 %v3734_v26, %v1881_v32 }
 0x1fa   : > { %v2317_v2 = vmax.f32 %v2313_v22, %v1890_v31 }
 0x1fb   : > { %v2315_v35 = vmax.f32 %v2311_v23, %v1882_v34 }
 0x1fd   : > { %v3080_v36 = vpop.f32.mrb[24].mxu1 }
 0x1fe   : > { %v1903_v38 = vadd.f32 %v3080_v36, %v3734_v26  ;;  %v1894_v39 = vpop.f32.mrb[25].mxu1 }
 0x1ff   : > { %v1895_v40 = vadd.f32 %v3734_v26, %v1894_v39  ;;  %v3081_v41 = vpop.f32.mrb[26].mxu1 }
 0x200   : > { %v2320_v43 = vmax.f32 %v2316_v30, %v1903_v38  ;;  %v1906_v44 = vadd.f32 %v3081_v41, %v3734_v26  ;;  %v1897_v45 = vpop.f32.mrb[27].mxu1 }
 0x201   : > { %v2318_v37 = vmax.f32 %v2314_v33, %v1895_v40  ;;  %v1898_v47 = vadd.f32 %v3734_v26, %v1897_v45 }
 0x202   : > { %v2321_v48 = vmax.f32 %v2317_v2, %v1906_v44 }
 0x203   : > { %v2319_v49 = vmax.f32 %v2315_v35, %v1898_v47 }
 0x205   : > { %v3084_v50 = vpop.f32.mrb[28].mxu1 }
 0x206   : > { %v1919_v11 = vadd.f32 %v3084_v50, %v3734_v26  ;;  %v1910_v51 = vpop.f32.mrb[29].mxu1 }
 0x207   : > { %v1911_v42 = vadd.f32 %v3734_v26, %v1910_v51  ;;  %v3085_v53 = vpop.f32.mrb[30].mxu1 }
 0x208   : > { %v2324_v54 = vmax.f32 %v2320_v43, %v1919_v11  ;;  %v1922_v52 = vadd.f32 %v3085_v53, %v3734_v26  ;;  %v1913_v46 = vpop.f32.mrb[31].mxu1 }
 0x209   : > { %v2322_v55 = vmax.f32 %v2318_v37, %v1911_v42  ;;  %v1914_v56 = vadd.f32 %v3734_v26, %v1913_v46 }
 0x20a   : > { %v2325_v57 = vmax.f32 %v2321_v48, %v1922_v52 }
 0x20b   : > { %v2323_v59 = vmax.f32 %v2319_v49, %v1914_v56 }
 0x20d   : > { %v3088_v58 = vpop.f32.mrb[32].mxu1 }
 0x20e   : > { %v1935_v60 = vadd.f32 %v3088_v58, %v3734_v26  ;;  %v1926_v61 = vpop.f32.mrb[33].mxu1 }
 0x20f   : > { %v1927_v62 = vadd.f32 %v3734_v26, %v1926_v61  ;;  %v3089_v63 = vpop.f32.mrb[34].mxu1 }
 0x210   : > { %v2328_v1 = vmax.f32 %v2324_v54, %v1935_v60  ;;  %v1938_v0 = vadd.f32 %v3089_v63, %v3734_v26  ;;  %v1929_v3 = vpop.f32.mrb[35].mxu1 }
 0x211   : > { %v2326_v4 = vmax.f32 %v2322_v55, %v1927_v62  ;;  %v1930_v5 = vadd.f32 %v3734_v26, %v1929_v3 }
 0x212   : > { %v2329_v6 = vmax.f32 %v2325_v57, %v1938_v0 }
 0x213   : > { %v2327_v7 = vmax.f32 %v2323_v59, %v1930_v5 }
 0x215   : > { %v3092_v8 = vpop.f32.mrb[36].mxu1 }
 0x216   : > { %v1951_v9 = vadd.f32 %v3092_v8, %v3734_v26  ;;  %v1942_v10 = vpop.f32.mrb[37].mxu1 }
 0x217   : > { %v1943_v12 = vadd.f32 %v3734_v26, %v1942_v10  ;;  %v3093_v13 = vpop.f32.mrb[38].mxu1 }
 0x218   : > { %v2332_v14 = vmax.f32 %v2328_v1, %v1951_v9  ;;  %v1954_v15 = vadd.f32 %v3093_v13, %v3734_v26  ;;  %v1945_v16 = vpop.f32.mrb[39].mxu1 }
 0x219   : > { %v2330_v17 = vmax.f32 %v2326_v4, %v1943_v12  ;;  %v1946_v18 = vadd.f32 %v3734_v26, %v1945_v16 }
 0x21a   : > { %v2333_v19 = vmax.f32 %v2329_v6, %v1954_v15 }
 0x21b   : > { %v2331_v20 = vmax.f32 %v2327_v7, %v1946_v18 }
 0x21d   : > { %v3096_v21 = vpop.f32.mrb[40].mxu1 }
 0x21e   : > { %v1967_v22 = vadd.f32 %v3096_v21, %v3734_v26  ;;  %v1958_v23 = vpop.f32.mrb[41].mxu1 }
 0x21f   : > { %v1959_v24 = vadd.f32 %v3734_v26, %v1958_v23  ;;  %v3097_v25 = vpop.f32.mrb[42].mxu1 }
 0x220   : > { %v2336_v27 = vmax.f32 %v2332_v14, %v1967_v22  ;;  %v1970_v28 = vadd.f32 %v3097_v25, %v3734_v26  ;;  %v1961_v29 = vpop.f32.mrb[43].mxu1 }
 0x221   : > { %v2334_v30 = vmax.f32 %v2330_v17, %v1959_v24  ;;  %v1962_v31 = vadd.f32 %v3734_v26, %v1961_v29 }
 0x222   : > { %v2337_v32 = vmax.f32 %v2333_v19, %v1970_v28  ;;  %v3252_v19 = vmov -inf  }
 0x223   : > { %v2335_v33 = vmax.f32 %v2331_v20, %v1962_v31  ;;  %254 = vst [vmem:[%s3808_s6] sm:$0x1] %v3252_v19 }
 0x225   : > { %v3100_v34 = vpop.f32.mrb[44].mxu1 }
 0x226   : > { %v1983_v2 = vadd.f32 %v3100_v34, %v3734_v26  ;;  %v1974_v35 = vpop.f32.mrb[45].mxu1 }
 0x227   : > { %v1975_v36 = vadd.f32 %v3734_v26, %v1974_v35  ;;  %v3101_v38 = vpop.f32.mrb[46].mxu1 }
 0x228   : > { %v2340_v39 = vmax.f32 %v2336_v27, %v1983_v2  ;;  %v1986_v40 = vadd.f32 %v3101_v38, %v3734_v26  ;;  %v1977_v41 = vpop.f32.mrb[47].mxu1 }
 0x229   : > { %v2338_v43 = vmax.f32 %v2334_v30, %v1975_v36  ;;  %v1978_v44 = vadd.f32 %v3734_v26, %v1977_v41 }
 0x22a   : > { %v2341_v45 = vmax.f32 %v2337_v32, %v1986_v40 }
 0x22b   : > { %v2339_v37 = vmax.f32 %v2335_v33, %v1978_v44 }
 0x22d   : > { %v3104_v47 = vpop.f32.mrb[48].mxu1 }
 0x22e   : > { %v1999_v48 = vadd.f32 %v3104_v47, %v3734_v26  ;;  %v1990_v49 = vpop.f32.mrb[49].mxu1 }
 0x22f   : > { %v1991_v50 = vadd.f32 %v3734_v26, %v1990_v49  ;;  %v3105_v11 = vpop.f32.mrb[50].mxu1 }
 0x230   : > { %v2344_v51 = vmax.f32 %v2340_v39, %v1999_v48  ;;  %v2002_v42 = vadd.f32 %v3105_v11, %v3734_v26  ;;  %v1993_v53 = vpop.f32.mrb[51].mxu1 }
 0x231   : > { %v2342_v54 = vmax.f32 %v2338_v43, %v1991_v50  ;;  %v1994_v52 = vadd.f32 %v3734_v26, %v1993_v53 }
 0x232   : > { %v2345_v46 = vmax.f32 %v2341_v45, %v2002_v42 }
 0x233   : > { %v2343_v55 = vmax.f32 %v2339_v37, %v1994_v52 }
 0x235   : > { %v3108_v56 = vpop.f32.mrb[52].mxu1 }
 0x236   : > { %v2015_v57 = vadd.f32 %v3108_v56, %v3734_v26  ;;  %v2006_v59 = vpop.f32.mrb[53].mxu1 }
 0x237   : > { %v2007_v58 = vadd.f32 %v3734_v26, %v2006_v59  ;;  %v3109_v60 = vpop.f32.mrb[54].mxu1 }
 0x238   : > { %v2348_v61 = vmax.f32 %v2344_v51, %v2015_v57  ;;  %v2018_v62 = vadd.f32 %v3109_v60, %v3734_v26  ;;  %v2009_v63 = vpop.f32.mrb[55].mxu1 }
 0x239   : > { %v2346_v1 = vmax.f32 %v2342_v54, %v2007_v58  ;;  %v2010_v0 = vadd.f32 %v3734_v26, %v2009_v63 }
 0x23a   : > { %v2349_v3 = vmax.f32 %v2345_v46, %v2018_v62 }
 0x23b   : > { %v2347_v4 = vmax.f32 %v2343_v55, %v2010_v0 }
 0x23d   : > { %v3112_v5 = vpop.f32.mrb[56].mxu1 }
 0x23e   : > { %v2031_v6 = vadd.f32 %v3112_v5, %v3734_v26  ;;  %v2022_v7 = vpop.f32.mrb[57].mxu1 }
 0x23f   : > { %v2023_v8 = vadd.f32 %v3734_v26, %v2022_v7  ;;  %v3113_v9 = vpop.f32.mrb[58].mxu1 }
 0x240   : > { %v2352_v10 = vmax.f32 %v2348_v61, %v2031_v6  ;;  %v2034_v12 = vadd.f32 %v3113_v9, %v3734_v26  ;;  %v2025_v13 = vpop.f32.mrb[59].mxu1 }
 0x241   : > { %v2350_v14 = vmax.f32 %v2346_v1, %v2023_v8  ;;  %v2026_v15 = vadd.f32 %v3734_v26, %v2025_v13 }
 0x242   : > { %v2353_v16 = vmax.f32 %v2349_v3, %v2034_v12 }
 0x243   : > { %v2351_v17 = vmax.f32 %v2347_v4, %v2026_v15 }
 0x245   : > { %v3116_v18 = vpop.f32.mrb[60].mxu1 }
 0x246   : > { %v2047_v20 = vadd.f32 %v3116_v18, %v3734_v26  ;;  %v2038_v21 = vpop.f32.mrb[61].mxu1 }
 0x247   : > { %v2039_v22 = vadd.f32 %v3734_v26, %v2038_v21  ;;  %v3117_v23 = vpop.f32.mrb[62].mxu1 }
 0x248   : > { %v2356_v24 = vmax.f32 %v2352_v10, %v2047_v20  ;;  %v2050_v25 = vadd.f32 %v3117_v23, %v3734_v26  ;;  %v2041_v27 = vpop.f32.mrb[63].mxu1 }
 0x249   : > { %v2354_v28 = vmax.f32 %v2350_v14, %v2039_v22  ;;  %v2042_v29 = vadd.f32 %v3734_v26, %v2041_v27 }
 0x24a   : > { %v2357_v30 = vmax.f32 %v2353_v16, %v2050_v25 }
 0x24b   : > { %v2355_v31 = vmax.f32 %v2351_v17, %v2042_v29 }
 0x24d   : > { %v3120_v32 = vpop.f32.mrb[64].mxu1 }
 0x24e   : > { %v2063_v33 = vadd.f32 %v3120_v32, %v3734_v26  ;;  %v2054_v34 = vpop.f32.mrb[65].mxu1 }
 0x24f   : > { %v2055_v2 = vadd.f32 %v3734_v26, %v2054_v34  ;;  %v3121_v35 = vpop.f32.mrb[66].mxu1 }
 0x250   : > { %v2360_v36 = vmax.f32 %v2356_v24, %v2063_v33  ;;  %v2066_v38 = vadd.f32 %v3121_v35, %v3734_v26  ;;  %v2057_v39 = vpop.f32.mrb[67].mxu1 }
 0x251   : > { %v2358_v40 = vmax.f32 %v2354_v28, %v2055_v2  ;;  %v2058_v41 = vadd.f32 %v3734_v26, %v2057_v39 }
 0x252   : > { %v2361_v43 = vmax.f32 %v2357_v30, %v2066_v38 }
 0x253   : > { %v2359_v44 = vmax.f32 %v2355_v31, %v2058_v41 }
 0x255   : > { %v3124_v45 = vpop.f32.mrb[68].mxu1 }
 0x256   : > { %v2079_v37 = vadd.f32 %v3124_v45, %v3734_v26  ;;  %v2070_v47 = vpop.f32.mrb[69].mxu1 }
 0x257   : > { %v2071_v48 = vadd.f32 %v3734_v26, %v2070_v47  ;;  %v3125_v49 = vpop.f32.mrb[70].mxu1 }
 0x258   : > { %v2364_v50 = vmax.f32 %v2360_v36, %v2079_v37  ;;  %v2082_v11 = vadd.f32 %v3125_v49, %v3734_v26  ;;  %v2073_v51 = vpop.f32.mrb[71].mxu1 }
 0x259   : > { %v2362_v42 = vmax.f32 %v2358_v40, %v2071_v48  ;;  %v2074_v53 = vadd.f32 %v3734_v26, %v2073_v51 }
 0x25a   : > { %v2365_v54 = vmax.f32 %v2361_v43, %v2082_v11 }
 0x25b   : > { %v2363_v52 = vmax.f32 %v2359_v44, %v2074_v53 }
 0x25d   : > { %v3128_v46 = vpop.f32.mrb[72].mxu1 }
 0x25e   : > { %v2095_v55 = vadd.f32 %v3128_v46, %v3734_v26  ;;  %v2086_v56 = vpop.f32.mrb[73].mxu1 }
 0x25f   : > { %v2087_v57 = vadd.f32 %v3734_v26, %v2086_v56  ;;  %v3129_v59 = vpop.f32.mrb[74].mxu1 }
 0x260   : > { %v2368_v58 = vmax.f32 %v2364_v50, %v2095_v55  ;;  %v2098_v60 = vadd.f32 %v3129_v59, %v3734_v26  ;;  %v2089_v61 = vpop.f32.mrb[75].mxu1 }
 0x261   : > { %v2366_v62 = vmax.f32 %v2362_v42, %v2087_v57  ;;  %v2090_v63 = vadd.f32 %v3734_v26, %v2089_v61 }
 0x262   : > { %v2369_v1 = vmax.f32 %v2365_v54, %v2098_v60 }
 0x263   : > { %v2367_v0 = vmax.f32 %v2363_v52, %v2090_v63 }
 0x265   : > { %v3132_v3 = vpop.f32.mrb[76].mxu1 }
 0x266   : > { %v2111_v4 = vadd.f32 %v3132_v3, %v3734_v26  ;;  %v2102_v5 = vpop.f32.mrb[77].mxu1 }
 0x267   : > { %v2103_v6 = vadd.f32 %v3734_v26, %v2102_v5  ;;  %v3133_v7 = vpop.f32.mrb[78].mxu1 }
 0x268   : > { %v2372_v8 = vmax.f32 %v2368_v58, %v2111_v4  ;;  %v2114_v9 = vadd.f32 %v3133_v7, %v3734_v26  ;;  %v2105_v10 = vpop.f32.mrb[79].mxu1 }
 0x269   : > { %v2370_v12 = vmax.f32 %v2366_v62, %v2103_v6  ;;  %v2106_v13 = vadd.f32 %v3734_v26, %v2105_v10 }
 0x26a   : > { %v2373_v14 = vmax.f32 %v2369_v1, %v2114_v9 }
 0x26b   : > { %v2371_v15 = vmax.f32 %v2367_v0, %v2106_v13 }
 0x26d   : > { %v3136_v16 = vpop.f32.mrb[80].mxu1 }
 0x26e   : > { %v2127_v17 = vadd.f32 %v3136_v16, %v3734_v26  ;;  %v2118_v18 = vpop.f32.mrb[81].mxu1 }
 0x26f   : > { %v2119_v19 = vadd.f32 %v3734_v26, %v2118_v18  ;;  %v3137_v20 = vpop.f32.mrb[82].mxu1 }
 0x270   : > { %v2376_v21 = vmax.f32 %v2372_v8, %v2127_v17  ;;  %v2130_v22 = vadd.f32 %v3137_v20, %v3734_v26  ;;  %v2121_v23 = vpop.f32.mrb[83].mxu1 }
 0x271   : > { %v2374_v24 = vmax.f32 %v2370_v12, %v2119_v19  ;;  %v2122_v25 = vadd.f32 %v3734_v26, %v2121_v23 }
 0x272   : > { %v2377_v27 = vmax.f32 %v2373_v14, %v2130_v22 }
 0x273   : > { %v2375_v28 = vmax.f32 %v2371_v15, %v2122_v25 }
 0x275   : > { %v3140_v29 = vpop.f32.mrb[84].mxu1 }
 0x276   : > { %v2143_v30 = vadd.f32 %v3140_v29, %v3734_v26  ;;  %v2134_v31 = vpop.f32.mrb[85].mxu1 }
 0x277   : > { %v2135_v32 = vadd.f32 %v3734_v26, %v2134_v31  ;;  %v3141_v33 = vpop.f32.mrb[86].mxu1 }
 0x278   : > { %v2380_v34 = vmax.f32 %v2376_v21, %v2143_v30  ;;  %v2146_v2 = vadd.f32 %v3141_v33, %v3734_v26  ;;  %v2137_v35 = vpop.f32.mrb[87].mxu1 }
 0x279   : > { %v2378_v36 = vmax.f32 %v2374_v24, %v2135_v32  ;;  %v2138_v38 = vadd.f32 %v3734_v26, %v2137_v35 }
 0x27a   : > { %v2381_v39 = vmax.f32 %v2377_v27, %v2146_v2 }
 0x27b   : > { %v2379_v40 = vmax.f32 %v2375_v28, %v2138_v38 }
 0x27d   : > { %v3144_v41 = vpop.f32.mrb[88].mxu1 }
 0x27e   : > { %v2159_v43 = vadd.f32 %v3144_v41, %v3734_v26  ;;  %v2150_v44 = vpop.f32.mrb[89].mxu1 }
 0x27f   : > { %v2151_v45 = vadd.f32 %v3734_v26, %v2150_v44  ;;  %v3145_v37 = vpop.f32.mrb[90].mxu1 }
 0x280   : > { %v2384_v47 = vmax.f32 %v2380_v34, %v2159_v43  ;;  %v2162_v48 = vadd.f32 %v3145_v37, %v3734_v26  ;;  %v2153_v49 = vpop.f32.mrb[91].mxu1 }
 0x281   : > { %v2382_v50 = vmax.f32 %v2378_v36, %v2151_v45  ;;  %v2154_v11 = vadd.f32 %v3734_v26, %v2153_v49 }
 0x282   : > { %v2385_v51 = vmax.f32 %v2381_v39, %v2162_v48 }
 0x283   : > { %v2383_v42 = vmax.f32 %v2379_v40, %v2154_v11 }
 0x285   : > { %v3148_v53 = vpop.f32.mrb[92].mxu1 }
 0x286   : > { %v2175_v54 = vadd.f32 %v3148_v53, %v3734_v26  ;;  %v2166_v52 = vpop.f32.mrb[93].mxu1 }
 0x287   : > { %v2167_v46 = vadd.f32 %v3734_v26, %v2166_v52  ;;  %v3149_v55 = vpop.f32.mrb[94].mxu1 }
 0x288   : > { %v2388_v56 = vmax.f32 %v2384_v47, %v2175_v54  ;;  %v2178_v57 = vadd.f32 %v3149_v55, %v3734_v26  ;;  %v2169_v59 = vpop.f32.mrb[95].mxu1 }
 0x289   : > { %v2386_v58 = vmax.f32 %v2382_v50, %v2167_v46  ;;  %v2170_v60 = vadd.f32 %v3734_v26, %v2169_v59 }
 0x28a   : > { %v2389_v61 = vmax.f32 %v2385_v51, %v2178_v57 }
 0x28b   : > { %v2387_v62 = vmax.f32 %v2383_v42, %v2170_v60 }
 0x28d   : > { %v3152_v63 = vpop.f32.mrb[96].mxu1 }
 0x28e   : > { %v2191_v1 = vadd.f32 %v3152_v63, %v3734_v26  ;;  %v2182_v0 = vpop.f32.mrb[97].mxu1 }
 0x28f   : > { %v2183_v3 = vadd.f32 %v3734_v26, %v2182_v0  ;;  %v3153_v4 = vpop.f32.mrb[98].mxu1 }
 0x290   : > { %v2392_v5 = vmax.f32 %v2388_v56, %v2191_v1  ;;  %v2194_v6 = vadd.f32 %v3153_v4, %v3734_v26  ;;  %v2185_v7 = vpop.f32.mrb[99].mxu1 }
 0x291   : > { %v2390_v8 = vmax.f32 %v2386_v58, %v2183_v3  ;;  %v2186_v9 = vadd.f32 %v3734_v26, %v2185_v7 }
 0x292   : > { %v2393_v10 = vmax.f32 %v2389_v61, %v2194_v6 }
 0x293   : > { %v2391_v12 = vmax.f32 %v2387_v62, %v2186_v9 }
 0x295   : > { %v3156_v13 = vpop.f32.mrb[100].mxu1 }
 0x296   : > { %v2207_v14 = vadd.f32 %v3156_v13, %v3734_v26  ;;  %v2198_v15 = vpop.f32.mrb[101].mxu1 }
 0x297   : > { %v2199_v16 = vadd.f32 %v3734_v26, %v2198_v15  ;;  %v3157_v17 = vpop.f32.mrb[102].mxu1 }
 0x298   : > { %v2396_v18 = vmax.f32 %v2392_v5, %v2207_v14  ;;  %v2210_v19 = vadd.f32 %v3157_v17, %v3734_v26  ;;  %v2201_v20 = vpop.f32.mrb[103].mxu1 }
 0x299   : > { %v2394_v21 = vmax.f32 %v2390_v8, %v2199_v16  ;;  %v2202_v22 = vadd.f32 %v3734_v26, %v2201_v20 }
 0x29a   : > { %v2397_v23 = vmax.f32 %v2393_v10, %v2210_v19 }
 0x29b   : > { %v2395_v24 = vmax.f32 %v2391_v12, %v2202_v22 }
 0x29d   : > { %v3160_v25 = vpop.f32.mrb[104].mxu1 }
 0x29e   : > { %v2223_v27 = vadd.f32 %v3160_v25, %v3734_v26  ;;  %v2214_v28 = vpop.f32.mrb[105].mxu1 }
 0x29f   : > { %v2215_v29 = vadd.f32 %v3734_v26, %v2214_v28  ;;  %v3161_v30 = vpop.f32.mrb[106].mxu1 }
 0x2a0   : > { %v2400_v31 = vmax.f32 %v2396_v18, %v2223_v27  ;;  %v2226_v32 = vadd.f32 %v3161_v30, %v3734_v26  ;;  %v2217_v33 = vpop.f32.mrb[107].mxu1 }
 0x2a1   : > { %v2398_v34 = vmax.f32 %v2394_v21, %v2215_v29  ;;  %v2218_v2 = vadd.f32 %v3734_v26, %v2217_v33 }
 0x2a2   : > { %v2401_v35 = vmax.f32 %v2397_v23, %v2226_v32 }
 0x2a3   : > { %v2399_v36 = vmax.f32 %v2395_v24, %v2218_v2 }
 0x2a5   : > { %v3164_v38 = vpop.f32.mrb[108].mxu1 }
 0x2a6   : > { %v2239_v39 = vadd.f32 %v3164_v38, %v3734_v26  ;;  %v2230_v40 = vpop.f32.mrb[109].mxu1 }
 0x2a7   : > { %v2231_v41 = vadd.f32 %v3734_v26, %v2230_v40  ;;  %v3165_v43 = vpop.f32.mrb[110].mxu1 }
 0x2a8   : > { %v2404_v44 = vmax.f32 %v2400_v31, %v2239_v39  ;;  %v2242_v45 = vadd.f32 %v3165_v43, %v3734_v26  ;;  %v2233_v37 = vpop.f32.mrb[111].mxu1  ;;  %v2293_v31 = vld [vmem:[%s3808_s6] sm:$0x1] }
 0x2a9   : > { %v2402_v47 = vmax.f32 %v2398_v34, %v2231_v41  ;;  %v2234_v48 = vadd.f32 %v3734_v26, %v2233_v37 }
 0x2aa   : > { %v2405_v49 = vmax.f32 %v2401_v35, %v2242_v45 }
 0x2ab   : > { %v2403_v50 = vmax.f32 %v2399_v36, %v2234_v48 }
 0x2ad   : > { %v3168_v11 = vpop.f32.mrb[112].mxu1 }
 0x2ae   : > { %v2255_v51 = vadd.f32 %v3168_v11, %v3734_v26  ;;  %v2246_v42 = vpop.f32.mrb[113].mxu1 }
 0x2af   : > { %v2247_v53 = vadd.f32 %v3734_v26, %v2246_v42  ;;  %v3169_v54 = vpop.f32.mrb[114].mxu1 }
 0x2b0   : > { %v2408_v52 = vmax.f32 %v2404_v44, %v2255_v51  ;;  %v2258_v46 = vadd.f32 %v3169_v54, %v3734_v26  ;;  %v2249_v55 = vpop.f32.mrb[115].mxu1 }
 0x2b1   : > { %v2406_v56 = vmax.f32 %v2402_v47, %v2247_v53  ;;  %v2250_v57 = vadd.f32 %v3734_v26, %v2249_v55 }
 0x2b2   : > { %v2409_v59 = vmax.f32 %v2405_v49, %v2258_v46 }
 0x2b3   : > { %v2407_v58 = vmax.f32 %v2403_v50, %v2250_v57 }
 0x2b5   : > { %v3172_v60 = vpop.f32.mrb[116].mxu1 }
 0x2b6   : > { %v2271_v61 = vadd.f32 %v3172_v60, %v3734_v26  ;;  %v2262_v62 = vpop.f32.mrb[117].mxu1 }
 0x2b7   : > { %v2263_v63 = vadd.f32 %v3734_v26, %v2262_v62  ;;  %v3173_v1 = vpop.f32.mrb[118].mxu1 }
 0x2b8   : > { %v2412_v0 = vmax.f32 %v2408_v52, %v2271_v61  ;;  %v2274_v3 = vadd.f32 %v3173_v1, %v3734_v26  ;;  %v2265_v4 = vpop.f32.mrb[119].mxu1 }
 0x2b9   : > { %v2410_v5 = vmax.f32 %v2406_v56, %v2263_v63  ;;  %v2266_v6 = vadd.f32 %v3734_v26, %v2265_v4 }
 0x2ba   : > { %v2413_v7 = vmax.f32 %v2409_v59, %v2274_v3 }
 0x2bb   : > { %v2411_v8 = vmax.f32 %v2407_v58, %v2266_v6 }
 0x2bd   : > { %v3176_v9 = vpop.f32.mrb[120].mxu1 }
 0x2be   : > { %v2287_v10 = vadd.f32 %v3176_v9, %v3734_v26  ;;  %v2278_v12 = vpop.f32.mrb[121].mxu1 }
 0x2bf   : > { %v2279_v13 = vadd.f32 %v3734_v26, %v2278_v12  ;;  %v3177_v14 = vpop.f32.mrb[122].mxu1 }
 0x2c0   : > { %v2416_v15 = vmax.f32 %v2412_v0, %v2287_v10  ;;  %v2290_v16 = vadd.f32 %v3177_v14, %v3734_v26  ;;  %v2281_v17 = vpop.f32.mrb[123].mxu1 }
 0x2c1   : > { %v2414_v18 = vmax.f32 %v2410_v5, %v2279_v13  ;;  %v2282_v19 = vadd.f32 %v3734_v26, %v2281_v17 }
 0x2c2   : > { %v2417_v20 = vmax.f32 %v2413_v7, %v2290_v16 }
 0x2c3   : > { %v2415_v21 = vmax.f32 %v2411_v8, %v2282_v19 }
 0x2c4   : > { %v2419_v22 = vmax.f32 %v2416_v15, %v2417_v20 }
 0x2c5   : > { %v2418_v23 = vmax.f32 %v2414_v18, %v2415_v21 }
 0x2c7   : > { %v2420_v24 = vmax.f32 %v2418_v23, %v2419_v22 }
 0x2c9   : > { %v2421_v25 = vrot.slane %v2420_v24, 4 }
 0x2cb   : > { %v2422_v27 = vmax.f32 %v2420_v24, %v2421_v25 }
 0x2cd   : > { %v2423_v28 = vrot.slane %v2422_v27, 2 }
 0x2cf   : > { %v2424_v29 = vmax.f32 %v2422_v27, %v2423_v28 }
 0x2d1   : > { %v2425_v30 = vrot.slane %v2424_v29, 1 }
 0x2d3   : > { %v2426_v32 = vmax.f32 %v2424_v29, %v2425_v30 }
 0x2d5   : > { %v2427_v33 = vmax.f32 %v2293_v31, %v2426_v32 }
 0x2d7   : > { %2428 = vst [vmem:[%s3808_s6] sm:$0x1] %v2427_v33 }
 0x2d8 PF: > { %s15_s20 = sadd.s32 1, %s3250_s20   ;;  %s3892_s18 = smov %s3246_s19 }
 0x2d9   : > { %p12_p5 = scmp.ge.s32.totalorder %s15_s20, 4   ;;  %s3893_s19 = smov %s3895_s21 }
 0x2db   :  { %14 = sbr.rel (!%p12_p5) target bundleno = 2 (0x2), region = 74 }

// kernel: autoencoder_forward.5
= control target key start
LH: loop header
LB: loop body
LE: loop exit
PB: predicated region body
PF: predicated region fallthrough
CT: control target
= control target key end

     0   :  { %s5390_s30 = smov 0   ;;  %s5392_s10 = smov 0   ;;  %s6347_s0 = inlined_call_operand.vmem [shape: f32[2,1024,3], index: 0, kind: input, shape index: {}]   ;;  %s6348_s1 = inlined_call_operand.vmem [shape: f32[3,128], index: 1, kind: input, shape index: {}]   ;;  %s6349_s2 = inlined_call_operand.vmem [shape: f32[1,128], index: 2, kind: input, shape index: {}]   ;;  %s6350_s3 = inlined_call_operand.vmem [shape: bf16[128,128], index: 3, kind: input, shape index: {}]   ;;  %s6351_s4 = inlined_call_operand.vmem [shape: f32[1,128], index: 4, kind: input, shape index: {}]   ;;  %s6352_s5 = inlined_call_operand.vmem [shape: bf16[128,128], index: 5, kind: input, shape index: {}]   ;;  %s6353_s6 = inlined_call_operand.vmem [shape: f32[2,1,128], index: 6, kind: input, shape index: {}]   ;;  %s6354_s7 = inlined_call_operand.vmem [shape: bf16[128,128], index: 7, kind: input, shape index: {}]   ;;  %s6355_s8 = inlined_call_operand.vmem [shape: f32[1,128], index: 8, kind: input, shape index: {}]   ;;  %s6356_s9 = inlined_call_operand.vmem [shape: f32[2,1,128], index: 9, kind: output, shape index: {}]  }
   0x1   :  { %s5394_s11 = smov 0  }
   0x2 LB: > { %s31_s12 = sadd.s32 1, %s5333_s10  ;;  %p4113_p0 = scmp.ge.s32.totalorder %s5337_s11, 1  ;;  %s5337_s11 = sphi %s5394_s11, %s19_s11   ;;  %s5333_s10 = sphi %s5392_s10, %s6358_s10   ;;  %s5329_s30 = sphi %s5390_s30, %s6357_s30  }
   0x3   : > { %p33_p1 = scmp.ge.s32.totalorder %s31_s12, 2  ;;  %p314_p2 = scmp.lt.s32.totalorder %s5337_s11, 3 }
   0x5   : > { %s6360_s12 = smov (%p33_p1, %s31_s12), 0  ;;  %p315_p3 = pnand %p4113_p0, %p314_p2 }
   0x6   : > { %v505_v0 = vld [vmem:[%s6348_s1] sm:$0x7] (!%p315_p3)  ;;  %vm898_vm0 = vcmask (!%p315_p3), 1042432   ;;  %p356_p4 = scmp.lt.s32.totalorder (!%p315_p3), %s5329_s30, 1  ;;  %vm513_vm1 = vcmask (!%p315_p3), 23552   ;;  %v5290_v39 = vld [vmem:[%s6350_s3 + $0x8] sm:$0xff] (!%p315_p3)  }
   0x7   : > { %318 = sbr.rel (%p315_p3) target bundleno = 1170 (0x492), region = 56  ;;  %4621 = vmatprep.subr.msk.mxu0 (!%p315_p3), %vm898_vm0, %v505_v0  ;;  %v5288_v32 = vld [vmem:[%s6352_s5] sm:$0xff] (!%p315_p3)   ;;  %v5291_v42 = vld [vmem:[%s6350_s3 + $0x10] sm:$0xff] (!%p315_p3)   ;;  %v5292_v45 = vld [vmem:[%s6350_s3 + $0x18] sm:$0xff] (!%p315_p3)  }
   0x8   : > { %4622 = vmatpush3.msk.msra.mxu0 (!%p315_p3), %vm898_vm0, %v505_v0  ;;  %v5289_v36 = vld [vmem:[%s6350_s3] sm:$0xff] (!%p315_p3)   ;;  %v5294_v51 = vld [vmem:[%s6350_s3 + $0x28] sm:$0xff] (!%p315_p3)   ;;  %v5295_v54 = vld [vmem:[%s6350_s3 + $0x30] sm:$0xff] (!%p315_p3)  }
   0x9   : > { %4959 = vmatprep.subr.bf16.mxu0 (!%p315_p3), %v5288_v32  ;;  %4815 = vmatprep.subr.bf16.mxu1 (!%p315_p3), %v5289_v36  ;;  %v5293_v48 = vld [vmem:[%s6350_s3 + $0x20] sm:$0xff] (!%p315_p3)   ;;  %v5297_v57 = vld [vmem:[%s6350_s3 + $0x38] sm:$0xff] (!%p315_p3)   ;;  %v5296_v59 = vld [vmem:[%s6352_s5 + $0x8] sm:$0xff] (!%p315_p3)  }
   0xa   : > { %4816 = vmatpush3.bf16.msra.mxu1 (!%p315_p3), %v5289_v36 }
   0xb   : > { %4817 = vmatprep.subr.bf16.mxu1 (!%p315_p3), %v5290_v39 }
   0xe   : > { %s6362_s30 = smov (!%p356_p4, %s5329_s30), 1  ;;  %4818 = vmatpush3.bf16.msra.mxu1 %v5290_v39 }
   0xf   : > { %s4275_s15 = sshll.u32 %s6362_s30, 10  ;;  %4819 = vmatprep.subr.bf16.mxu1 %v5291_v42  ;;  %s6038_s25 = scalar_lea.vmem %s6353_s6, %s6362_s30 }
  0x10   : > { %s5417_s18 = scalar_lea.vmem %s6347_s0, %s4275_s15  ;;  %s6269_s15 = scalar_lea.vmem %s6356_s9, %s6362_s30 }
  0x11   : > { %v377_v1 = vld [vmem:[%s5417_s18] sm:$0xff]  ;;  %v378_v2 = vld [vmem:[%s5417_s18 + $0x8] sm:$0xff]  ;;  %v379_v3 = vld [vmem:[%s5417_s18 + $0x10] sm:$0xff] }
  0x12   : > { %4623 = vmatprep.mubr.msk.f32.mxu0 %vm513_vm1, %v377_v1  ;;  %v380_v4 = vld [vmem:[%s5417_s18 + $0x18] sm:$0xff]  ;;  %v381_v5 = vld [vmem:[%s5417_s18 + $0x20] sm:$0xff]  ;;  %v382_v6 = vld [vmem:[%s5417_s18 + $0x28] sm:$0xff]  ;;  %4820 = vmatpush3.bf16.msra.mxu1 %v5291_v42 }
  0x13   : > { %4624 = vmatmul.mubr.msk.f32.vlgmr.msra.gmra.mrb[0].mxu0 %vm513_vm1, %v378_v2  ;;  %v383_v7 = vld [vmem:[%s5417_s18 + $0x30] sm:$0xff]  ;;  %v384_v8 = vld [vmem:[%s5417_s18 + $0x38] sm:$0xff]  ;;  %v385_v9 = vld [vmem:[%s5417_s18 + $0x40] sm:$0xff]  ;;  %4821 = vmatprep.subr.bf16.mxu1 %v5292_v45 }
  0x14   : > { %4626 = vmatprep.mubr.msk.f32.mxu0 %vm513_vm1, %v379_v3  ;;  %v386_v10 = vld [vmem:[%s5417_s18 + $0x48] sm:$0xff]  ;;  %v387_v11 = vld [vmem:[%s5417_s18 + $0x50] sm:$0xff]  ;;  %v388_v12 = vld [vmem:[%s5417_s18 + $0x58] sm:$0xff]  ;;  %4960 = vmatpush3.bf16.msra.mxu0 %v5288_v32 }
  0x15   : > { %v389_v13 = vld [vmem:[%s5417_s18 + $0x60] sm:$0xff]  ;;  %v390_v14 = vld [vmem:[%s5417_s18 + $0x68] sm:$0xff]  ;;  %v391_v15 = vld [vmem:[%s5417_s18 + $0x70] sm:$0xff]  ;;  %4961 = vmatprep.subr.bf16.mxu0 %v5296_v59 }
  0x16   : > { %v392_v16 = vld [vmem:[%s5417_s18 + $0x78] sm:$0xff]  ;;  %v393_v17 = vld [vmem:[%s5417_s18 + $0x80] sm:$0xff]  ;;  %v394_v18 = vld [vmem:[%s5417_s18 + $0x88] sm:$0xff]  ;;  %4822 = vmatpush3.bf16.msra.mxu1 %v5292_v45 }
  0x17   : > { %4627 = vmatmul.mubr.msk.f32.gmra.mrb[2].mxu0 %vm513_vm1, %v380_v4  ;;  %v395_v19 = vld [vmem:[%s5417_s18 + $0x90] sm:$0xff]  ;;  %v396_v20 = vld [vmem:[%s5417_s18 + $0x98] sm:$0xff]  ;;  %v397_v21 = vld [vmem:[%s5417_s18 + $0xa0] sm:$0xff]  ;;  %4823 = vmatprep.subr.bf16.mxu1 %v5293_v48 }
  0x18   : > { %4629 = vmatprep.mubr.msk.f32.mxu0 %vm513_vm1, %v381_v5  ;;  %v398_v22 = vld [vmem:[%s5417_s18 + $0xa8] sm:$0xff]  ;;  %v399_v23 = vld [vmem:[%s5417_s18 + $0xb0] sm:$0xff]  ;;  %v400_v24 = vld [vmem:[%s5417_s18 + $0xb8] sm:$0xff]  ;;  %4962 = vmatpush3.bf16.msra.mxu0 %v5296_v59 }
  0x19   : > { %v401_v25 = vld [vmem:[%s5417_s18 + $0xc0] sm:$0xff]  ;;  %v402_v26 = vld [vmem:[%s5417_s18 + $0xc8] sm:$0xff]  ;;  %v403_v27 = vld [vmem:[%s5417_s18 + $0xd0] sm:$0xff] }
  0x1a   : > { %v404_v28 = vld [vmem:[%s5417_s18 + $0xd8] sm:$0xff]  ;;  %v405_v29 = vld [vmem:[%s5417_s18 + $0xe0] sm:$0xff]  ;;  %v406_v30 = vld [vmem:[%s5417_s18 + $0xe8] sm:$0xff]  ;;  %4824 = vmatpush3.bf16.msra.mxu1 %v5293_v48 }
  0x1b   : > { %4630 = vmatmul.mubr.msk.f32.gmra.mrb[4].mxu0 %vm513_vm1, %v382_v6  ;;  %v407_v31 = vld [vmem:[%s5417_s18 + $0xf0] sm:$0xff]  ;;  %v408_v33 = vld [vmem:[%s5417_s18 + $0xf8] sm:$0xff]  ;;  %v409_v34 = vld [vmem:[%s5417_s18 + $0x100] sm:$0xff]  ;;  %4825 = vmatprep.subr.bf16.mxu1 %v5294_v51 }
  0x1c   : > { %4632 = vmatprep.mubr.msk.f32.mxu0 %vm513_vm1, %v383_v7  ;;  %v410_v35 = vld [vmem:[%s5417_s18 + $0x108] sm:$0xff]  ;;  %v411_v37 = vld [vmem:[%s5417_s18 + $0x110] sm:$0xff]  ;;  %v412_v38 = vld [vmem:[%s5417_s18 + $0x118] sm:$0xff] }
  0x1d   : > { %v413_v40 = vld [vmem:[%s5417_s18 + $0x120] sm:$0xff]  ;;  %v414_v41 = vld [vmem:[%s5417_s18 + $0x128] sm:$0xff]  ;;  %v415_v43 = vld [vmem:[%s5417_s18 + $0x130] sm:$0xff] }
  0x1e   : > { %v416_v44 = vld [vmem:[%s5417_s18 + $0x138] sm:$0xff]  ;;  %v417_v46 = vld [vmem:[%s5417_s18 + $0x140] sm:$0xff]  ;;  %v418_v47 = vld [vmem:[%s5417_s18 + $0x148] sm:$0xff]  ;;  %4826 = vmatpush3.bf16.msra.mxu1 %v5294_v51 }
  0x1f   : > { %4633 = vmatmul.mubr.msk.f32.gmra.mrb[6].mxu0 %vm513_vm1, %v384_v8  ;;  %v419_v49 = vld [vmem:[%s5417_s18 + $0x150] sm:$0xff]  ;;  %v420_v50 = vld [vmem:[%s5417_s18 + $0x158] sm:$0xff]  ;;  %v421_v52 = vld [vmem:[%s5417_s18 + $0x160] sm:$0xff]  ;;  %4827 = vmatprep.subr.bf16.mxu1 %v5295_v54 }
  0x20   : > { %4635 = vmatprep.mubr.msk.f32.mxu0 %vm513_vm1, %v385_v9  ;;  %v422_v53 = vld [vmem:[%s5417_s18 + $0x168] sm:$0xff]  ;;  %v423_v55 = vld [vmem:[%s5417_s18 + $0x170] sm:$0xff]  ;;  %v424_v56 = vld [vmem:[%s5417_s18 + $0x178] sm:$0xff] }
  0x21   : > { %v425_v58 = vld [vmem:[%s5417_s18 + $0x180] sm:$0xff]  ;;  %v426_v60 = vld [vmem:[%s5417_s18 + $0x188] sm:$0xff]  ;;  %v427_v61 = vld [vmem:[%s5417_s18 + $0x190] sm:$0xff] }
  0x22   : > { %4828 = vmatpush3.bf16.msra.mxu1 %v5295_v54  ;;  %v428_v62 = vld [vmem:[%s5417_s18 + $0x198] sm:$0xff]  ;;  %v429_v63 = vld [vmem:[%s5417_s18 + $0x1a0] sm:$0xff]  ;;  %v430_v0 = vld [vmem:[%s5417_s18 + $0x1a8] sm:$0xff] }
  0x23   : > { %4636 = vmatmul.mubr.msk.f32.gmra.mrb[8].mxu0 %vm513_vm1, %v386_v10  ;;  %4829 = vmatprep.subr.bf16.mxu1 %v5297_v57  ;;  %v431_v1 = vld [vmem:[%s5417_s18 + $0x1b0] sm:$0xff]  ;;  %v432_v2 = vld [vmem:[%s5417_s18 + $0x1b8] sm:$0xff]  ;;  %v433_v3 = vld [vmem:[%s5417_s18 + $0x1c0] sm:$0xff] }
  0x24   : > { %4638 = vmatprep.mubr.msk.f32.mxu0 %vm513_vm1, %v387_v11  ;;  %v434_v4 = vld [vmem:[%s5417_s18 + $0x1c8] sm:$0xff]  ;;  %v435_v5 = vld [vmem:[%s5417_s18 + $0x1d0] sm:$0xff]  ;;  %v436_v6 = vld [vmem:[%s5417_s18 + $0x1d8] sm:$0xff] }
  0x25   : > { %v437_v7 = vld [vmem:[%s5417_s18 + $0x1e0] sm:$0xff]  ;;  %v438_v8 = vld [vmem:[%s5417_s18 + $0x1e8] sm:$0xff]  ;;  %v439_v9 = vld [vmem:[%s5417_s18 + $0x1f0] sm:$0xff] }
  0x26   : > { %4830 = vmatpush3.bf16.msra.mxu1 %v5297_v57  ;;  %v440_v10 = vld [vmem:[%s5417_s18 + $0x1f8] sm:$0xff]  ;;  %v441_v11 = vld [vmem:[%s5417_s18 + $0x200] sm:$0xff]  ;;  %v467_v39 = vld [vmem:[%s5417_s18 + $0x2d0] sm:$0xff] }
  0x27   : > { %4639 = vmatmul.mubr.msk.f32.gmra.mrb[10].mxu0 %vm513_vm1, %v388_v12  ;;  %v442_v12 = vld [vmem:[%s5417_s18 + $0x208] sm:$0xff]  ;;  %v460_v32 = vld [vmem:[%s5417_s18 + $0x298] sm:$0xff]  ;;  %v473_v45 = vld [vmem:[%s5417_s18 + $0x300] sm:$0xff] }
  0x28   : > { %4641 = vmatprep.mubr.msk.f32.mxu0 %vm513_vm1, %v389_v13  ;;  %v5298_v13 = vld [vmem:[%s6352_s5 + $0x10] sm:$0xff]   ;;  %v464_v36 = vld [vmem:[%s5417_s18 + $0x2b8] sm:$0xff]  ;;  %v470_v42 = vld [vmem:[%s5417_s18 + $0x2e8] sm:$0xff] }
  0x29   : > { %4963 = vmatprep.subr.bf16.mxu0 %v5298_v13  ;;  %v475_v48 = vld [vmem:[%s5417_s18 + $0x310] sm:$0xff]  ;;  %v478_v51 = vld [vmem:[%s5417_s18 + $0x328] sm:$0xff]  ;;  %v481_v54 = vld [vmem:[%s5417_s18 + $0x340] sm:$0xff] }
  0x2a   : > { %4964 = vmatpush3.bf16.msra.mxu0 %v5298_v13  ;;  %v484_v57 = vld [vmem:[%s5417_s18 + $0x358] sm:$0xff]  ;;  %v485_v59 = vld [vmem:[%s5417_s18 + $0x360] sm:$0xff] }
  0x2b   : > { %4642 = vmatmul.mubr.msk.f32.gmra.mrb[12].mxu0 %vm513_vm1, %v390_v14  ;;  %v443_v14 = vld [vmem:[%s5417_s18 + $0x210] sm:$0xff] }
  0x2c   : > { %4644 = vmatprep.mubr.msk.f32.mxu0 %vm513_vm1, %v391_v15  ;;  %v444_v15 = vld [vmem:[%s5417_s18 + $0x218] sm:$0xff] }
  0x2f   : > { %4645 = vmatmul.mubr.msk.f32.gmra.mrb[14].mxu0 %vm513_vm1, %v392_v16  ;;  %v445_v16 = vld [vmem:[%s5417_s18 + $0x220] sm:$0xff] }
  0x30   : > { %4647 = vmatprep.mubr.msk.f32.mxu0 %vm513_vm1, %v393_v17  ;;  %v446_v17 = vld [vmem:[%s5417_s18 + $0x228] sm:$0xff] }
  0x33   : > { %4648 = vmatmul.mubr.msk.f32.gmra.mrb[16].mxu0 %vm513_vm1, %v394_v18  ;;  %v447_v18 = vld [vmem:[%s5417_s18 + $0x230] sm:$0xff] }
  0x34   : > { %4650 = vmatprep.mubr.msk.f32.mxu0 %vm513_vm1, %v395_v19  ;;  %v448_v19 = vld [vmem:[%s5417_s18 + $0x238] sm:$0xff] }
  0x37   : > { %4651 = vmatmul.mubr.msk.f32.gmra.mrb[18].mxu0 %vm513_vm1, %v396_v20  ;;  %v449_v20 = vld [vmem:[%s5417_s18 + $0x240] sm:$0xff] }
  0x38   : > { %4653 = vmatprep.mubr.msk.f32.mxu0 %vm513_vm1, %v397_v21  ;;  %v450_v21 = vld [vmem:[%s5417_s18 + $0x248] sm:$0xff] }
  0x3b   : > { %4654 = vmatmul.mubr.msk.f32.gmra.mrb[20].mxu0 %vm513_vm1, %v398_v22  ;;  %v451_v22 = vld [vmem:[%s5417_s18 + $0x250] sm:$0xff] }
  0x3c   : > { %4656 = vmatprep.mubr.msk.f32.mxu0 %vm513_vm1, %v399_v23  ;;  %v452_v23 = vld [vmem:[%s5417_s18 + $0x258] sm:$0xff] }
  0x3f   : > { %4657 = vmatmul.mubr.msk.f32.gmra.mrb[22].mxu0 %vm513_vm1, %v400_v24  ;;  %v453_v24 = vld [vmem:[%s5417_s18 + $0x260] sm:$0xff] }
  0x40   : > { %4659 = vmatprep.mubr.msk.f32.mxu0 %vm513_vm1, %v401_v25  ;;  %v454_v25 = vld [vmem:[%s5417_s18 + $0x268] sm:$0xff] }
  0x43   : > { %4660 = vmatmul.mubr.msk.f32.gmra.mrb[24].mxu0 %vm513_vm1, %v402_v26  ;;  %v455_v26 = vld [vmem:[%s5417_s18 + $0x270] sm:$0xff] }
  0x44   : > { %4662 = vmatprep.mubr.msk.f32.mxu0 %vm513_vm1, %v403_v27  ;;  %v456_v27 = vld [vmem:[%s5417_s18 + $0x278] sm:$0xff] }
  0x47   : > { %4663 = vmatmul.mubr.msk.f32.gmra.mrb[26].mxu0 %vm513_vm1, %v404_v28  ;;  %v457_v28 = vld [vmem:[%s5417_s18 + $0x280] sm:$0xff] }
  0x48   : > { %4665 = vmatprep.mubr.msk.f32.mxu0 %vm513_vm1, %v405_v29  ;;  %v458_v29 = vld [vmem:[%s5417_s18 + $0x288] sm:$0xff] }
  0x4b   : > { %4666 = vmatmul.mubr.msk.f32.gmra.mrb[28].mxu0 %vm513_vm1, %v406_v30  ;;  %v5299_v30 = vld [vmem:[%s6352_s5 + $0x18] sm:$0xff]  }
  0x4c   : > { %4668 = vmatprep.mubr.msk.f32.mxu0 %vm513_vm1, %v407_v31  ;;  %v459_v31 = vld [vmem:[%s5417_s18 + $0x290] sm:$0xff]  ;;  %4965 = vmatprep.subr.bf16.mxu0 %v5299_v30 }
  0x4d   : > { %4966 = vmatpush3.bf16.msra.mxu0 %v5299_v30  ;;  %v493_v30 = vld [vmem:[%s5417_s18 + $0x3a0] sm:$0xff] }
  0x4f   : > { %4669 = vmatmul.mubr.msk.f32.gmra.mrb[30].mxu0 %vm513_vm1, %v408_v33  ;;  %v461_v33 = vld [vmem:[%s5417_s18 + $0x2a0] sm:$0xff] }
  0x50   : > { %4671 = vmatprep.mubr.msk.f32.mxu0 %vm513_vm1, %v409_v34  ;;  %v462_v34 = vld [vmem:[%s5417_s18 + $0x2a8] sm:$0xff] }
  0x53   : > { %4672 = vmatmul.mubr.msk.f32.gmra.mrb[32].mxu0 %vm513_vm1, %v410_v35  ;;  %v463_v35 = vld [vmem:[%s5417_s18 + $0x2b0] sm:$0xff] }
  0x54   : > { %4674 = vmatprep.mubr.msk.f32.mxu0 %vm513_vm1, %v411_v37  ;;  %v465_v37 = vld [vmem:[%s5417_s18 + $0x2c0] sm:$0xff] }
  0x57   : > { %4675 = vmatmul.mubr.msk.f32.gmra.mrb[34].mxu0 %vm513_vm1, %v412_v38  ;;  %v466_v38 = vld [vmem:[%s5417_s18 + $0x2c8] sm:$0xff] }
  0x58   : > { %4677 = vmatprep.mubr.msk.f32.mxu0 %vm513_vm1, %v413_v40  ;;  %v468_v40 = vld [vmem:[%s5417_s18 + $0x2d8] sm:$0xff] }
  0x5b   : > { %4678 = vmatmul.mubr.msk.f32.gmra.mrb[36].mxu0 %vm513_vm1, %v414_v41  ;;  %v469_v41 = vld [vmem:[%s5417_s18 + $0x2e0] sm:$0xff] }
  0x5c   : > { %4680 = vmatprep.mubr.msk.f32.mxu0 %vm513_vm1, %v415_v43  ;;  %v471_v43 = vld [vmem:[%s5417_s18 + $0x2f0] sm:$0xff] }
  0x5f   : > { %4681 = vmatmul.mubr.msk.f32.gmra.mrb[38].mxu0 %vm513_vm1, %v416_v44  ;;  %v472_v44 = vld [vmem:[%s5417_s18 + $0x2f8] sm:$0xff] }
  0x60   : > { %4683 = vmatprep.mubr.msk.f32.mxu0 %vm513_vm1, %v417_v46  ;;  %v474_v46 = vld [vmem:[%s5417_s18 + $0x308] sm:$0xff] }
  0x63   : > { %4684 = vmatmul.mubr.msk.f32.gmra.mrb[40].mxu0 %vm513_vm1, %v418_v47  ;;  %v5300_v47 = vld [vmem:[%s6352_s5 + $0x20] sm:$0xff]  }
  0x64   : > { %4686 = vmatprep.mubr.msk.f32.mxu0 %vm513_vm1, %v419_v49  ;;  %4967 = vmatprep.subr.bf16.mxu0 %v5300_v47  ;;  %v476_v49 = vld [vmem:[%s5417_s18 + $0x318] sm:$0xff] }
  0x65   : > { %4968 = vmatpush3.bf16.msra.mxu0 %v5300_v47 }
  0x67   : > { %4687 = vmatmul.mubr.msk.f32.gmra.mrb[42].mxu0 %vm513_vm1, %v420_v50  ;;  %v477_v50 = vld [vmem:[%s5417_s18 + $0x320] sm:$0xff] }
  0x68   : > { %4689 = vmatprep.mubr.msk.f32.mxu0 %vm513_vm1, %v421_v52  ;;  %v479_v52 = vld [vmem:[%s5417_s18 + $0x330] sm:$0xff] }
  0x6b   : > { %4690 = vmatmul.mubr.msk.f32.gmra.mrb[44].mxu0 %vm513_vm1, %v422_v53  ;;  %v480_v53 = vld [vmem:[%s5417_s18 + $0x338] sm:$0xff] }
  0x6c   : > { %4692 = vmatprep.mubr.msk.f32.mxu0 %vm513_vm1, %v423_v55  ;;  %v482_v55 = vld [vmem:[%s5417_s18 + $0x348] sm:$0xff] }
  0x6f   : > { %4693 = vmatmul.mubr.msk.f32.gmra.mrb[46].mxu0 %vm513_vm1, %v424_v56  ;;  %v483_v56 = vld [vmem:[%s5417_s18 + $0x350] sm:$0xff] }
  0x70   : > { %4695 = vmatprep.mubr.msk.f32.mxu0 %vm513_vm1, %v425_v58  ;;  %v5676_v58 = vld [vmem:[%s6349_s2] ss:$0 sm:$0xff] }
  0x73   : > { %4696 = vmatmul.mubr.msk.f32.gmra.mrb[48].mxu0 %vm513_vm1, %v426_v60 }
  0x74   : > { %4698 = vmatprep.mubr.msk.f32.mxu0 %vm513_vm1, %v427_v61 }
  0x77   : > { %4699 = vmatmul.mubr.msk.f32.gmra.mrb[50].mxu0 %vm513_vm1, %v428_v62 }
  0x78   : > { %4701 = vmatprep.mubr.msk.f32.mxu0 %vm513_vm1, %v429_v63  ;;  %v486_v63 = vld [vmem:[%s5417_s18 + $0x368] sm:$0xff] }
  0x7b   : > { %4702 = vmatmul.mubr.msk.f32.gmra.mrb[52].mxu0 %vm513_vm1, %v430_v0 }
  0x7c   : > { %4704 = vmatprep.mubr.msk.f32.mxu0 %vm513_vm1, %v431_v1  ;;  %v487_v1 = vld [vmem:[%s5417_s18 + $0x370] sm:$0xff] }
  0x7f   : > { %4705 = vmatmul.mubr.msk.f32.gmra.mrb[54].mxu0 %vm513_vm1, %v432_v2 }
  0x80   : > { %4707 = vmatprep.mubr.msk.f32.mxu0 %vm513_vm1, %v433_v3 }
  0x83   : > { %4708 = vmatmul.mubr.msk.f32.gmra.mrb[56].mxu0 %vm513_vm1, %v434_v4 }
  0x84   : > { %4710 = vmatprep.mubr.msk.f32.mxu0 %vm513_vm1, %v435_v5 }
  0x87   : > { %4711 = vmatmul.mubr.msk.f32.gmra.mrb[58].mxu0 %vm513_vm1, %v436_v6 }
  0x88   : > { %4713 = vmatprep.mubr.msk.f32.mxu0 %vm513_vm1, %v437_v7 }
  0x8b   : > { %4714 = vmatmul.mubr.msk.f32.gmra.mrb[60].mxu0 %vm513_vm1, %v438_v8 }
  0x8c   : > { %4716 = vmatprep.mubr.msk.f32.mxu0 %vm513_vm1, %v439_v9  ;;  %v488_v9 = vld [vmem:[%s5417_s18 + $0x378] sm:$0xff] }
  0x8f   : > { %4717 = vmatmul.mubr.msk.f32.gmra.mrb[62].mxu0 %vm513_vm1, %v440_v10 }
  0x90   : > { %4719 = vmatprep.mubr.msk.f32.mxu0 %vm513_vm1, %v441_v11  ;;  %v489_v11 = vld [vmem:[%s5417_s18 + $0x380] sm:$0xff] }
  0x93   : > { %4720 = vmatmul.mubr.msk.f32.gmra.mrb[64].mxu0 %vm513_vm1, %v442_v12 }
  0x94   : > { %4722 = vmatprep.mubr.msk.f32.mxu0 %vm513_vm1, %v443_v14 }
  0x97   : > { %4723 = vmatmul.mubr.msk.f32.gmra.mrb[66].mxu0 %vm513_vm1, %v444_v15 }
  0x98   : > { %4725 = vmatprep.mubr.msk.f32.mxu0 %vm513_vm1, %v445_v16 }
  0x9b   : > { %4726 = vmatmul.mubr.msk.f32.gmra.mrb[68].mxu0 %vm513_vm1, %v446_v17 }
  0x9c   : > { %4728 = vmatprep.mubr.msk.f32.mxu0 %vm513_vm1, %v447_v18  ;;  %v490_v18 = vld [vmem:[%s5417_s18 + $0x388] sm:$0xff] }
  0x9f   : > { %4729 = vmatmul.mubr.msk.f32.gmra.mrb[70].mxu0 %vm513_vm1, %v448_v19  ;;  %v5301_v19 = vld [vmem:[%s6352_s5 + $0x28] sm:$0xff]  }
  0xa0   : > { %4731 = vmatprep.mubr.msk.f32.mxu0 %vm513_vm1, %v449_v20  ;;  %4969 = vmatprep.subr.bf16.mxu0 %v5301_v19 }
  0xa1   : > { %4970 = vmatpush3.bf16.msra.mxu0 %v5301_v19  ;;  %v504_v19 = vld [vmem:[%s5417_s18 + $0x3f8] sm:$0xff] }
  0xa3   : > { %4732 = vmatmul.mubr.msk.f32.gmra.mrb[72].mxu0 %vm513_vm1, %v450_v21  ;;  %v491_v21 = vld [vmem:[%s5417_s18 + $0x390] sm:$0xff] }
  0xa4   : > { %4734 = vmatprep.mubr.msk.f32.mxu0 %vm513_vm1, %v451_v22 }
  0xa7   : > { %4735 = vmatmul.mubr.msk.f32.gmra.mrb[74].mxu0 %vm513_vm1, %v452_v23 }
  0xa8   : > { %4737 = vmatprep.mubr.msk.f32.mxu0 %vm513_vm1, %v453_v24 }
  0xab   : > { %4738 = vmatmul.mubr.msk.f32.gmra.mrb[76].mxu0 %vm513_vm1, %v454_v25 }
  0xac   : > { %4740 = vmatprep.mubr.msk.f32.mxu0 %vm513_vm1, %v455_v26 }
  0xaf   : > { %4741 = vmatmul.mubr.msk.f32.gmra.mrb[78].mxu0 %vm513_vm1, %v456_v27 }
  0xb0   : > { %4743 = vmatprep.mubr.msk.f32.mxu0 %vm513_vm1, %v457_v28  ;;  %v492_v28 = vld [vmem:[%s5417_s18 + $0x398] sm:$0xff] }
  0xb3   : > { %4744 = vmatmul.mubr.msk.f32.gmra.mrb[80].mxu0 %vm513_vm1, %v458_v29 }
  0xb4   : > { %4746 = vmatprep.mubr.msk.f32.mxu0 %vm513_vm1, %v459_v31 }
  0xb7   : > { %4747 = vmatmul.mubr.msk.f32.gmra.mrb[82].mxu0 %vm513_vm1, %v460_v32 }
  0xb8   : > { %4749 = vmatprep.mubr.msk.f32.mxu0 %vm513_vm1, %v461_v33 }
  0xbb   : > { %4750 = vmatmul.mubr.msk.f32.gmra.mrb[84].mxu0 %vm513_vm1, %v462_v34 }
  0xbc   : > { %4752 = vmatprep.mubr.msk.f32.mxu0 %vm513_vm1, %v463_v35 }
  0xbf   : > { %4753 = vmatmul.mubr.msk.f32.gmra.mrb[86].mxu0 %vm513_vm1, %v464_v36 }
  0xc0   : > { %4755 = vmatprep.mubr.msk.f32.mxu0 %vm513_vm1, %v465_v37  ;;  %v494_v37 = vld [vmem:[%s5417_s18 + $0x3a8] sm:$0xff] }
  0xc3   : > { %4756 = vmatmul.mubr.msk.f32.gmra.mrb[88].mxu0 %vm513_vm1, %v466_v38 }
  0xc4   : > { %4758 = vmatprep.mubr.msk.f32.mxu0 %vm513_vm1, %v467_v39  ;;  %v495_v39 = vld [vmem:[%s5417_s18 + $0x3b0] sm:$0xff] }
  0xc7   : > { %4759 = vmatmul.mubr.msk.f32.gmra.mrb[90].mxu0 %vm513_vm1, %v468_v40 }
  0xc8   : > { %4761 = vmatprep.mubr.msk.f32.mxu0 %vm513_vm1, %v469_v41 }
  0xcb   : > { %4762 = vmatmul.mubr.msk.f32.gmra.mrb[92].mxu0 %vm513_vm1, %v470_v42 }
  0xcc   : > { %4764 = vmatprep.mubr.msk.f32.mxu0 %vm513_vm1, %v471_v43 }
  0xcf   : > { %4765 = vmatmul.mubr.msk.f32.gmra.mrb[94].mxu0 %vm513_vm1, %v472_v44 }
  0xd0   : > { %4767 = vmatprep.mubr.msk.f32.mxu0 %vm513_vm1, %v473_v45 }
  0xd3   : > { %4768 = vmatmul.mubr.msk.f32.gmra.mrb[96].mxu0 %vm513_vm1, %v474_v46  ;;  %v496_v46 = vld [vmem:[%s5417_s18 + $0x3b8] sm:$0xff] }
  0xd4   : > { %4770 = vmatprep.mubr.msk.f32.mxu0 %vm513_vm1, %v475_v48  ;;  %v497_v48 = vld [vmem:[%s5417_s18 + $0x3c0] sm:$0xff] }
  0xd7   : > { %4771 = vmatmul.mubr.msk.f32.gmra.mrb[98].mxu0 %vm513_vm1, %v476_v49 }
  0xd8   : > { %4773 = vmatprep.mubr.msk.f32.mxu0 %vm513_vm1, %v477_v50 }
  0xdb   : > { %4774 = vmatmul.mubr.msk.f32.gmra.mrb[100].mxu0 %vm513_vm1, %v478_v51 }
  0xdc   : > { %4776 = vmatprep.mubr.msk.f32.mxu0 %vm513_vm1, %v479_v52 }
  0xdf   : > { %4777 = vmatmul.mubr.msk.f32.gmra.mrb[102].mxu0 %vm513_vm1, %v480_v53 }
  0xe0   : > { %4779 = vmatprep.mubr.msk.f32.mxu0 %vm513_vm1, %v481_v54 }
  0xe3   : > { %4780 = vmatmul.mubr.msk.f32.gmra.mrb[104].mxu0 %vm513_vm1, %v482_v55  ;;  %v498_v55 = vld [vmem:[%s5417_s18 + $0x3c8] sm:$0xff] }
  0xe4   : > { %4782 = vmatprep.mubr.msk.f32.mxu0 %vm513_vm1, %v483_v56 }
  0xe6   : > { %v4625_v60 = vpop.f32.mrb[0].mxu0 }
  0xe7   : > { %v968_v61 = vpop.f32.mrb[1].mxu0  ;;  %4783 = vmatmul.mubr.msk.f32.gmra.mrb[106].mxu0 %vm513_vm1, %v484_v57  ;;  %v974_v62 = vadd.f32 %v4625_v60, %v5676_v58  ;;  %v499_v57 = vld [vmem:[%s5417_s18 + $0x3d0] sm:$0xff] }
  0xe8   : > { %4785 = vmatprep.mubr.msk.f32.mxu0 %vm513_vm1, %v485_v59  ;;  %v969_v0 = vadd.f32 %v5676_v58, %v968_v61 }
  0xe9   : > { %v1608_v2 = vmax.f32 %v974_v62, 0.0 }
  0xea   : > { %v4628_v3 = vpop.f32.mrb[2].mxu0  ;;  %v1607_v4 = vmax.f32 %v969_v0, 0.0 }
  0xeb   : > { %v984_v5 = vadd.f32 %v4628_v3, %v5676_v58  ;;  %v978_v6 = vpop.f32.mrb[3].mxu0  ;;  %4786 = vmatmul.mubr.msk.f32.gmra.mrb[108].mxu0 %vm513_vm1, %v486_v63  ;;  %v501_v3 = vld [vmem:[%s5417_s18 + $0x3e0] sm:$0xff] }
  0xec   : > { %v979_v7 = vadd.f32 %v5676_v58, %v978_v6  ;;  %4788 = vmatprep.mubr.msk.f32.mxu0 %vm513_vm1, %v487_v1  ;;  %v1735_v8 = vpack.c.bf16 %v1608_v2, %v1607_v4  ;;  %v500_v1 = vld [vmem:[%s5417_s18 + $0x3d8] sm:$0xff] }
  0xed   : > { %v1610_v10 = vmax.f32 %v984_v5, 0.0 }
  0xee   : > { %v1609_v12 = vmax.f32 %v979_v7, 0.0  ;;  %v4631_v13 = vpop.f32.mrb[4].mxu0  ;;  %4831 = vmatprep.mubr.bf16.mxu1 %v1735_v8 }
  0xef   : > { %v994_v14 = vadd.f32 %v4631_v13, %v5676_v58  ;;  %v988_v15 = vpop.f32.mrb[5].mxu0  ;;  %4789 = vmatmul.mubr.msk.f32.gmra.mrb[110].mxu0 %vm513_vm1, %v488_v9 }
  0xf0   : > { %v989_v16 = vadd.f32 %v5676_v58, %v988_v15  ;;  %4791 = vmatprep.mubr.msk.f32.mxu0 %vm513_vm1, %v489_v11  ;;  %v1736_v17 = vpack.c.bf16 %v1610_v10, %v1609_v12  ;;  %v502_v10 = vld [vmem:[%s5417_s18 + $0x3e8] sm:$0xff]  ;;  %v503_v12 = vld [vmem:[%s5417_s18 + $0x3f0] sm:$0xff] }
  0xf1   : > { %v1612_v20 = vmax.f32 %v994_v14, 0.0 }
  0xf2   : > { %v1611_v22 = vmax.f32 %v989_v16, 0.0  ;;  %v4634_v23 = vpop.f32.mrb[6].mxu0  ;;  %4832 = vmatmul.mubr.bf16.vlgmr.msra.gmra.mrb[0].mxu1 %v1736_v17 }
  0xf3   : > { %v1004_v24 = vadd.f32 %v4634_v23, %v5676_v58  ;;  %v998_v25 = vpop.f32.mrb[7].mxu0  ;;  %4792 = vmatmul.mubr.msk.f32.gmra.mrb[112].mxu0 %vm513_vm1, %v490_v18 }
  0xf4   : > { %v1737_v26 = vpack.c.bf16 %v1612_v20, %v1611_v22  ;;  %v999_v27 = vadd.f32 %v5676_v58, %v998_v25  ;;  %4794 = vmatprep.mubr.msk.f32.mxu0 %vm513_vm1, %v491_v21 }
  0xf5   : > { %v1614_v29 = vmax.f32 %v1004_v24, 0.0 }
  0xf6   : > { %v1613_v31 = vmax.f32 %v999_v27, 0.0  ;;  %v4637_v32 = vpop.f32.mrb[8].mxu0  ;;  %4835 = vmatprep.mubr.bf16.mxu1 %v1737_v26  ;;  %v5302_v27 = vld [vmem:[%s6352_s5 + $0x30] sm:$0xff]  }
  0xf7   : > { %v1014_v33 = vadd.f32 %v4637_v32, %v5676_v58  ;;  %v1008_v34 = vpop.f32.mrb[9].mxu0  ;;  %4795 = vmatmul.mubr.msk.f32.gmra.mrb[114].mxu0 %vm513_vm1, %v492_v28  ;;  %4971 = vmatprep.subr.bf16.mxu0 %v5302_v27 }
  0xf8   : > { %v1738_v35 = vpack.c.bf16 %v1614_v29, %v1613_v31  ;;  %v1009_v36 = vadd.f32 %v5676_v58, %v1008_v34  ;;  %4797 = vmatprep.mubr.msk.f32.mxu0 %vm513_vm1, %v493_v30  ;;  %4972 = vmatpush3.bf16.msra.mxu0 %v5302_v27 }
  0xf9   : > { %v1616_v38 = vmax.f32 %v1014_v33, 0.0 }
  0xfa   : > { %v1615_v40 = vmax.f32 %v1009_v36, 0.0  ;;  %v4640_v41 = vpop.f32.mrb[10].mxu0  ;;  %4836 = vmatmul.mubr.bf16.gmra.mrb[4].mxu1 %v1738_v35 }
  0xfb   : > { %v1024_v42 = vadd.f32 %v4640_v41, %v5676_v58  ;;  %v1018_v43 = vpop.f32.mrb[11].mxu0  ;;  %4798 = vmatmul.mubr.msk.f32.gmra.mrb[116].mxu0 %vm513_vm1, %v494_v37 }
  0xfc   : > { %v1739_v44 = vpack.c.bf16 %v1616_v38, %v1615_v40  ;;  %v1019_v45 = vadd.f32 %v5676_v58, %v1018_v43  ;;  %4800 = vmatprep.mubr.msk.f32.mxu0 %vm513_vm1, %v495_v39 }
  0xfd   : > { %v1618_v47 = vmax.f32 %v1024_v42, 0.0 }
  0xfe   : > { %v1617_v49 = vmax.f32 %v1019_v45, 0.0  ;;  %v4643_v50 = vpop.f32.mrb[12].mxu0  ;;  %4839 = vmatprep.mubr.bf16.mxu1 %v1739_v44 }
  0xff   : > { %v1034_v51 = vadd.f32 %v4643_v50, %v5676_v58  ;;  %v1028_v52 = vpop.f32.mrb[13].mxu0  ;;  %4801 = vmatmul.mubr.msk.f32.gmra.mrb[118].mxu0 %vm513_vm1, %v496_v46 }
 0x100   : > { %v1740_v53 = vpack.c.bf16 %v1618_v47, %v1617_v49  ;;  %v1029_v54 = vadd.f32 %v5676_v58, %v1028_v52  ;;  %4803 = vmatprep.mubr.msk.f32.mxu0 %vm513_vm1, %v497_v48 }
 0x101   : > { %v1620_v56 = vmax.f32 %v1034_v51, 0.0 }
 0x102   : > { %v1619_v59 = vmax.f32 %v1029_v54, 0.0  ;;  %v4646_v60 = vpop.f32.mrb[14].mxu0  ;;  %4840 = vmatmul.mubr.bf16.gmra.mrb[8].mxu1 %v1740_v53 }
 0x103   : > { %v1044_v61 = vadd.f32 %v4646_v60, %v5676_v58  ;;  %v1038_v62 = vpop.f32.mrb[15].mxu0  ;;  %4804 = vmatmul.mubr.msk.f32.gmra.mrb[120].mxu0 %vm513_vm1, %v498_v55 }
 0x104   : > { %v1741_v63 = vpack.c.bf16 %v1620_v56, %v1619_v59  ;;  %v1039_v0 = vadd.f32 %v5676_v58, %v1038_v62  ;;  %4806 = vmatprep.mubr.msk.f32.mxu0 %vm513_vm1, %v499_v57 }
 0x105   : > { %v1622_v2 = vmax.f32 %v1044_v61, 0.0 }
 0x106   : > { %v1621_v4 = vmax.f32 %v1039_v0, 0.0  ;;  %v4649_v5 = vpop.f32.mrb[16].mxu0  ;;  %4843 = vmatprep.mubr.bf16.mxu1 %v1741_v63 }
 0x107   : > { %v1054_v6 = vadd.f32 %v4649_v5, %v5676_v58  ;;  %v1048_v7 = vpop.f32.mrb[17].mxu0  ;;  %4807 = vmatmul.mubr.msk.f32.gmra.mrb[122].mxu0 %vm513_vm1, %v500_v1 }
 0x108   : > { %v1742_v8 = vpack.c.bf16 %v1622_v2, %v1621_v4  ;;  %v1049_v9 = vadd.f32 %v5676_v58, %v1048_v7  ;;  %4809 = vmatprep.mubr.msk.f32.mxu0 %vm513_vm1, %v501_v3 }
 0x109   : > { %v1624_v11 = vmax.f32 %v1054_v6, 0.0 }
 0x10a   : > { %v1623_v13 = vmax.f32 %v1049_v9, 0.0  ;;  %v4652_v14 = vpop.f32.mrb[18].mxu0  ;;  %4844 = vmatmul.mubr.bf16.gmra.mrb[12].mxu1 %v1742_v8 }
 0x10b   : > { %v1064_v15 = vadd.f32 %v4652_v14, %v5676_v58  ;;  %v1058_v16 = vpop.f32.mrb[19].mxu0  ;;  %4810 = vmatmul.mubr.msk.f32.gmra.mrb[124].mxu0 %vm513_vm1, %v502_v10 }
 0x10c   : > { %v1743_v17 = vpack.c.bf16 %v1624_v11, %v1623_v13  ;;  %v1059_v18 = vadd.f32 %v5676_v58, %v1058_v16  ;;  %4812 = vmatprep.mubr.msk.f32.mxu0 %vm513_vm1, %v503_v12 }
 0x10d   : > { %v1626_v20 = vmax.f32 %v1064_v15, 0.0 }
 0x10e   : > { %v1625_v21 = vmax.f32 %v1059_v18, 0.0  ;;  %v4655_v22 = vpop.f32.mrb[20].mxu0  ;;  %4847 = vmatprep.mubr.bf16.mxu1 %v1743_v17 }
 0x10f   : > { %v1074_v23 = vadd.f32 %v4655_v22, %v5676_v58  ;;  %v1068_v24 = vpop.f32.mrb[21].mxu0  ;;  %4813 = vmatmul.mubr.msk.f32.gmra.mrb[126].mxu0 %vm513_vm1, %v504_v19 }
 0x110   : > { %v1744_v25 = vpack.c.bf16 %v1626_v20, %v1625_v21  ;;  %v1069_v26 = vadd.f32 %v5676_v58, %v1068_v24  ;;  %v5303_v21 = vld [vmem:[%s6352_s5 + $0x38] sm:$0xff]  }
 0x111   : > { %v1628_v28 = vmax.f32 %v1074_v23, 0.0  ;;  %4973 = vmatprep.subr.bf16.mxu0 %v5303_v21 }
 0x112   : > { %v1627_v29 = vmax.f32 %v1069_v26, 0.0  ;;  %v4658_v30 = vpop.f32.mrb[22].mxu0  ;;  %4848 = vmatmul.mubr.bf16.gmra.mrb[16].mxu1 %v1744_v25  ;;  %4974 = vmatpush3.bf16.msra.mxu0 %v5303_v21 }
 0x113   : > { %v1084_v31 = vadd.f32 %v4658_v30, %v5676_v58  ;;  %v1078_v32 = vpop.f32.mrb[23].mxu0 }
 0x114   : > { %v1745_v33 = vpack.c.bf16 %v1628_v28, %v1627_v29  ;;  %v1079_v34 = vadd.f32 %v5676_v58, %v1078_v32 }
 0x115   : > { %v1630_v35 = vmax.f32 %v1084_v31, 0.0 }
 0x116   : > { %v1629_v36 = vmax.f32 %v1079_v34, 0.0  ;;  %v4661_v37 = vpop.f32.mrb[24].mxu0  ;;  %4851 = vmatprep.mubr.bf16.mxu1 %v1745_v33 }
 0x117   : > { %v1094_v38 = vadd.f32 %v4661_v37, %v5676_v58  ;;  %v1088_v39 = vpop.f32.mrb[25].mxu0 }
 0x118   : > { %v1746_v40 = vpack.c.bf16 %v1630_v35, %v1629_v36  ;;  %v1089_v41 = vadd.f32 %v5676_v58, %v1088_v39  ;;  %v5773_v36 = vld [vmem:[%s6354_s7] sm:$0xff]  }
 0x119   : > { %v1632_v42 = vmax.f32 %v1094_v38, 0.0  ;;  %5247 = vmatprep.subr.bf16.mxu1 %v5773_v36  ;;  %5103 = vmatprep.subr.bf16.mxu0 %v5773_v36 }
 0x11a   : > { %v1631_v43 = vmax.f32 %v1089_v41, 0.0  ;;  %v4664_v44 = vpop.f32.mrb[26].mxu0  ;;  %4852 = vmatmul.mubr.bf16.gmra.mrb[20].mxu1 %v1746_v40 }
 0x11b   : > { %v1104_v45 = vadd.f32 %v4664_v44, %v5676_v58  ;;  %v1098_v46 = vpop.f32.mrb[27].mxu0  ;;  %5255 = vmatpush3.bf16.msra.mxu1 %v5773_v36 }
 0x11c   : > { %v1747_v47 = vpack.c.bf16 %v1632_v42, %v1631_v43  ;;  %v1099_v48 = vadd.f32 %v5676_v58, %v1098_v46 }
 0x11d   : > { %v1634_v49 = vmax.f32 %v1104_v45, 0.0 }
 0x11e   : > { %v1633_v50 = vmax.f32 %v1099_v48, 0.0  ;;  %v4667_v51 = vpop.f32.mrb[28].mxu0  ;;  %4855 = vmatprep.mubr.bf16.mxu1 %v1747_v47 }
 0x11f   : > { %v1114_v52 = vadd.f32 %v4667_v51, %v5676_v58  ;;  %v1108_v53 = vpop.f32.mrb[29].mxu0 }
 0x120   : > { %v1748_v54 = vpack.c.bf16 %v1634_v49, %v1633_v50  ;;  %v1109_v55 = vadd.f32 %v5676_v58, %v1108_v53 }
 0x121   : > { %v1636_v56 = vmax.f32 %v1114_v52, 0.0 }
 0x122   : > { %v1635_v57 = vmax.f32 %v1109_v55, 0.0  ;;  %v4670_v59 = vpop.f32.mrb[30].mxu0  ;;  %4856 = vmatmul.mubr.bf16.gmra.mrb[24].mxu1 %v1748_v54 }
 0x123   : > { %v1124_v60 = vadd.f32 %v4670_v59, %v5676_v58  ;;  %v1118_v61 = vpop.f32.mrb[31].mxu0 }
 0x124   : > { %v1749_v62 = vpack.c.bf16 %v1636_v56, %v1635_v57  ;;  %v1119_v63 = vadd.f32 %v5676_v58, %v1118_v61 }
 0x125   : > { %v1638_v0 = vmax.f32 %v1124_v60, 0.0 }
 0x126   : > { %v1637_v1 = vmax.f32 %v1119_v63, 0.0  ;;  %v4673_v2 = vpop.f32.mrb[32].mxu0  ;;  %4859 = vmatprep.mubr.bf16.mxu1 %v1749_v62 }
 0x127   : > { %v1134_v3 = vadd.f32 %v4673_v2, %v5676_v58  ;;  %v1128_v4 = vpop.f32.mrb[33].mxu0 }
 0x128   : > { %v1750_v5 = vpack.c.bf16 %v1638_v0, %v1637_v1  ;;  %v1129_v6 = vadd.f32 %v5676_v58, %v1128_v4 }
 0x129   : > { %v1640_v7 = vmax.f32 %v1134_v3, 0.0 }
 0x12a   : > { %v1639_v8 = vmax.f32 %v1129_v6, 0.0  ;;  %v4676_v9 = vpop.f32.mrb[34].mxu0  ;;  %4860 = vmatmul.mubr.bf16.gmra.mrb[28].mxu1 %v1750_v5 }
 0x12b   : > { %v1144_v10 = vadd.f32 %v4676_v9, %v5676_v58  ;;  %v1138_v11 = vpop.f32.mrb[35].mxu0 }
 0x12c   : > { %v1751_v12 = vpack.c.bf16 %v1640_v7, %v1639_v8  ;;  %v1139_v13 = vadd.f32 %v5676_v58, %v1138_v11 }
 0x12d   : > { %v1642_v14 = vmax.f32 %v1144_v10, 0.0 }
 0x12e   : > { %v1641_v15 = vmax.f32 %v1139_v13, 0.0  ;;  %v4679_v16 = vpop.f32.mrb[36].mxu0  ;;  %4863 = vmatprep.mubr.bf16.mxu1 %v1751_v12 }
 0x12f   : > { %v1154_v17 = vadd.f32 %v4679_v16, %v5676_v58  ;;  %v1148_v18 = vpop.f32.mrb[37].mxu0 }
 0x130   : > { %v1752_v19 = vpack.c.bf16 %v1642_v14, %v1641_v15  ;;  %v1149_v20 = vadd.f32 %v5676_v58, %v1148_v18 }
 0x131   : > { %v1644_v22 = vmax.f32 %v1154_v17, 0.0 }
 0x132   : > { %v1643_v23 = vmax.f32 %v1149_v20, 0.0  ;;  %v4682_v24 = vpop.f32.mrb[38].mxu0  ;;  %4864 = vmatmul.mubr.bf16.gmra.mrb[32].mxu1 %v1752_v19 }
 0x133   : > { %v1164_v25 = vadd.f32 %v4682_v24, %v5676_v58  ;;  %v1158_v26 = vpop.f32.mrb[39].mxu0 }
 0x134   : > { %v1753_v27 = vpack.c.bf16 %v1644_v22, %v1643_v23  ;;  %v1159_v28 = vadd.f32 %v5676_v58, %v1158_v26 }
 0x135   : > { %v1646_v29 = vmax.f32 %v1164_v25, 0.0 }
 0x136   : > { %v1645_v30 = vmax.f32 %v1159_v28, 0.0  ;;  %v4685_v31 = vpop.f32.mrb[40].mxu0  ;;  %4867 = vmatprep.mubr.bf16.mxu1 %v1753_v27 }
 0x137   : > { %v1174_v32 = vadd.f32 %v4685_v31, %v5676_v58  ;;  %v1168_v33 = vpop.f32.mrb[41].mxu0 }
 0x138   : > { %v1754_v34 = vpack.c.bf16 %v1646_v29, %v1645_v30  ;;  %v1169_v35 = vadd.f32 %v5676_v58, %v1168_v33  ;;  %v5797_v30 = vld [vmem:[%s6354_s7 + $0x8] sm:$0xff]  }
 0x139   : > { %v1648_v37 = vmax.f32 %v1174_v32, 0.0  ;;  %5248 = vmatprep.subr.bf16.mxu1 %v5797_v30 }
 0x13a   : > { %v1647_v38 = vmax.f32 %v1169_v35, 0.0  ;;  %v4688_v39 = vpop.f32.mrb[42].mxu0  ;;  %4868 = vmatmul.mubr.bf16.gmra.mrb[36].mxu1 %v1754_v34 }
 0x13b   : > { %v1184_v40 = vadd.f32 %v4688_v39, %v5676_v58  ;;  %v1178_v41 = vpop.f32.mrb[43].mxu0  ;;  %5256 = vmatpush3.bf16.msra.mxu1 %v5797_v30 }
 0x13c   : > { %v1755_v42 = vpack.c.bf16 %v1648_v37, %v1647_v38  ;;  %v1179_v43 = vadd.f32 %v5676_v58, %v1178_v41 }
 0x13d   : > { %v1650_v44 = vmax.f32 %v1184_v40, 0.0 }
 0x13e   : > { %v1649_v45 = vmax.f32 %v1179_v43, 0.0  ;;  %v4691_v46 = vpop.f32.mrb[44].mxu0  ;;  %4871 = vmatprep.mubr.bf16.mxu1 %v1755_v42 }
 0x13f   : > { %v1194_v47 = vadd.f32 %v4691_v46, %v5676_v58  ;;  %v1188_v48 = vpop.f32.mrb[45].mxu0 }
 0x140   : > { %v1756_v49 = vpack.c.bf16 %v1650_v44, %v1649_v45  ;;  %v1189_v50 = vadd.f32 %v5676_v58, %v1188_v48 }
 0x141   : > { %v1652_v51 = vmax.f32 %v1194_v47, 0.0 }
 0x142   : > { %v1651_v52 = vmax.f32 %v1189_v50, 0.0  ;;  %v4694_v53 = vpop.f32.mrb[46].mxu0  ;;  %4872 = vmatmul.mubr.bf16.gmra.mrb[40].mxu1 %v1756_v49 }
 0x143   : > { %v1204_v54 = vadd.f32 %v4694_v53, %v5676_v58  ;;  %v1198_v55 = vpop.f32.mrb[47].mxu0 }
 0x144   : > { %v1757_v56 = vpack.c.bf16 %v1652_v51, %v1651_v52  ;;  %v1199_v57 = vadd.f32 %v5676_v58, %v1198_v55 }
 0x145   : > { %v1654_v59 = vmax.f32 %v1204_v54, 0.0 }
 0x146   : > { %v1653_v60 = vmax.f32 %v1199_v57, 0.0  ;;  %v4697_v61 = vpop.f32.mrb[48].mxu0  ;;  %4875 = vmatprep.mubr.bf16.mxu1 %v1757_v56 }
 0x147   : > { %v1214_v62 = vadd.f32 %v4697_v61, %v5676_v58  ;;  %v1208_v63 = vpop.f32.mrb[49].mxu0 }
 0x148   : > { %v1758_v0 = vpack.c.bf16 %v1654_v59, %v1653_v60  ;;  %v1209_v1 = vadd.f32 %v5676_v58, %v1208_v63 }
 0x149   : > { %v1656_v2 = vmax.f32 %v1214_v62, 0.0 }
 0x14a   : > { %v1655_v3 = vmax.f32 %v1209_v1, 0.0  ;;  %v4700_v4 = vpop.f32.mrb[50].mxu0  ;;  %4876 = vmatmul.mubr.bf16.gmra.mrb[44].mxu1 %v1758_v0 }
 0x14b   : > { %v1224_v5 = vadd.f32 %v4700_v4, %v5676_v58  ;;  %v1218_v6 = vpop.f32.mrb[51].mxu0 }
 0x14c   : > { %v1759_v7 = vpack.c.bf16 %v1656_v2, %v1655_v3  ;;  %v1219_v8 = vadd.f32 %v5676_v58, %v1218_v6 }
 0x14d   : > { %v1658_v9 = vmax.f32 %v1224_v5, 0.0 }
 0x14e   : > { %v1657_v10 = vmax.f32 %v1219_v8, 0.0  ;;  %v4703_v11 = vpop.f32.mrb[52].mxu0  ;;  %4879 = vmatprep.mubr.bf16.mxu1 %v1759_v7 }
 0x14f   : > { %v1234_v12 = vadd.f32 %v4703_v11, %v5676_v58  ;;  %v1228_v13 = vpop.f32.mrb[53].mxu0 }
 0x150   : > { %v1760_v14 = vpack.c.bf16 %v1658_v9, %v1657_v10  ;;  %v1229_v15 = vadd.f32 %v5676_v58, %v1228_v13 }
 0x151   : > { %v1660_v16 = vmax.f32 %v1234_v12, 0.0 }
 0x152   : > { %v1659_v17 = vmax.f32 %v1229_v15, 0.0  ;;  %v4706_v18 = vpop.f32.mrb[54].mxu0  ;;  %4880 = vmatmul.mubr.bf16.gmra.mrb[48].mxu1 %v1760_v14 }
 0x153   : > { %v1244_v19 = vadd.f32 %v4706_v18, %v5676_v58  ;;  %v1238_v20 = vpop.f32.mrb[55].mxu0 }
 0x154   : > { %v1761_v21 = vpack.c.bf16 %v1660_v16, %v1659_v17  ;;  %v1239_v22 = vadd.f32 %v5676_v58, %v1238_v20  ;;  %v5817_v16 = vld [vmem:[%s6354_s7 + $0x10] sm:$0xff]  }
 0x155   : > { %v1662_v23 = vmax.f32 %v1244_v19, 0.0  ;;  %5249 = vmatprep.subr.bf16.mxu1 %v5817_v16 }
 0x156   : > { %v1661_v24 = vmax.f32 %v1239_v22, 0.0  ;;  %v4709_v25 = vpop.f32.mrb[56].mxu0  ;;  %4883 = vmatprep.mubr.bf16.mxu1 %v1761_v21  ;;  %5257 = vmatpush3.bf16.msra.mxu1 %v5817_v16 }
 0x157   : > { %v1254_v26 = vadd.f32 %v4709_v25, %v5676_v58  ;;  %v1248_v27 = vpop.f32.mrb[57].mxu0 }
 0x158   : > { %v1762_v28 = vpack.c.bf16 %v1662_v23, %v1661_v24  ;;  %v1249_v29 = vadd.f32 %v5676_v58, %v1248_v27 }
 0x159   : > { %v1664_v31 = vmax.f32 %v1254_v26, 0.0 }
 0x15a   : > { %v1663_v32 = vmax.f32 %v1249_v29, 0.0  ;;  %v4712_v33 = vpop.f32.mrb[58].mxu0  ;;  %4884 = vmatmul.mubr.bf16.gmra.mrb[52].mxu1 %v1762_v28 }
 0x15b   : > { %v1264_v34 = vadd.f32 %v4712_v33, %v5676_v58  ;;  %v1258_v35 = vpop.f32.mrb[59].mxu0 }
 0x15c   : > { %v1763_v37 = vpack.c.bf16 %v1664_v31, %v1663_v32  ;;  %v1259_v38 = vadd.f32 %v5676_v58, %v1258_v35 }
 0x15d   : > { %v1666_v39 = vmax.f32 %v1264_v34, 0.0 }
 0x15e   : > { %v1665_v40 = vmax.f32 %v1259_v38, 0.0  ;;  %v4715_v41 = vpop.f32.mrb[60].mxu0  ;;  %4887 = vmatprep.mubr.bf16.mxu1 %v1763_v37 }
 0x15f   : > { %v1274_v42 = vadd.f32 %v4715_v41, %v5676_v58  ;;  %v1268_v43 = vpop.f32.mrb[61].mxu0 }
 0x160   : > { %v1764_v44 = vpack.c.bf16 %v1666_v39, %v1665_v40  ;;  %v1269_v45 = vadd.f32 %v5676_v58, %v1268_v43 }
 0x161   : > { %v1668_v46 = vmax.f32 %v1274_v42, 0.0 }
 0x162   : > { %v1667_v47 = vmax.f32 %v1269_v45, 0.0  ;;  %v4718_v48 = vpop.f32.mrb[62].mxu0  ;;  %4888 = vmatmul.mubr.bf16.gmra.mrb[56].mxu1 %v1764_v44 }
 0x163   : > { %v1284_v49 = vadd.f32 %v4718_v48, %v5676_v58  ;;  %v1278_v50 = vpop.f32.mrb[63].mxu0 }
 0x164   : > { %v1765_v51 = vpack.c.bf16 %v1668_v46, %v1667_v47  ;;  %v1279_v52 = vadd.f32 %v5676_v58, %v1278_v50 }
 0x165   : > { %v1670_v53 = vmax.f32 %v1284_v49, 0.0 }
 0x166   : > { %v1669_v54 = vmax.f32 %v1279_v52, 0.0  ;;  %v4721_v55 = vpop.f32.mrb[64].mxu0  ;;  %4891 = vmatprep.mubr.bf16.mxu1 %v1765_v51 }
 0x167   : > { %v1294_v56 = vadd.f32 %v4721_v55, %v5676_v58  ;;  %v1288_v57 = vpop.f32.mrb[65].mxu0 }
 0x168   : > { %v1766_v59 = vpack.c.bf16 %v1670_v53, %v1669_v54  ;;  %v1289_v60 = vadd.f32 %v5676_v58, %v1288_v57 }
 0x169   : > { %v1672_v61 = vmax.f32 %v1294_v56, 0.0 }
 0x16a   : > { %v1671_v62 = vmax.f32 %v1289_v60, 0.0  ;;  %v4724_v63 = vpop.f32.mrb[66].mxu0  ;;  %4892 = vmatmul.mubr.bf16.gmra.mrb[60].mxu1 %v1766_v59 }
 0x16b   : > { %v1304_v0 = vadd.f32 %v4724_v63, %v5676_v58  ;;  %v1298_v1 = vpop.f32.mrb[67].mxu0 }
 0x16c   : > { %v1767_v2 = vpack.c.bf16 %v1672_v61, %v1671_v62  ;;  %v1299_v3 = vadd.f32 %v5676_v58, %v1298_v1 }
 0x16d   : > { %v1674_v4 = vmax.f32 %v1304_v0, 0.0 }
 0x16e   : > { %v1673_v5 = vmax.f32 %v1299_v3, 0.0  ;;  %v4727_v6 = vpop.f32.mrb[68].mxu0  ;;  %4895 = vmatprep.mubr.bf16.mxu1 %v1767_v2 }
 0x16f   : > { %v1314_v7 = vadd.f32 %v4727_v6, %v5676_v58  ;;  %v1308_v8 = vpop.f32.mrb[69].mxu0 }
 0x170   : > { %v1768_v9 = vpack.c.bf16 %v1674_v4, %v1673_v5  ;;  %v1309_v10 = vadd.f32 %v5676_v58, %v1308_v8 }
 0x171   : > { %v1676_v11 = vmax.f32 %v1314_v7, 0.0 }
 0x172   : > { %v1675_v12 = vmax.f32 %v1309_v10, 0.0  ;;  %v4730_v13 = vpop.f32.mrb[70].mxu0  ;;  %4896 = vmatmul.mubr.bf16.gmra.mrb[64].mxu1 %v1768_v9 }
 0x173   : > { %v1324_v14 = vadd.f32 %v4730_v13, %v5676_v58  ;;  %v1318_v15 = vpop.f32.mrb[71].mxu0 }
 0x174   : > { %v1769_v17 = vpack.c.bf16 %v1676_v11, %v1675_v12  ;;  %v1319_v18 = vadd.f32 %v5676_v58, %v1318_v15  ;;  %v5840_v12 = vld [vmem:[%s6354_s7 + $0x18] sm:$0xff]  }
 0x175   : > { %v1678_v19 = vmax.f32 %v1324_v14, 0.0  ;;  %5250 = vmatprep.subr.bf16.mxu1 %v5840_v12 }
 0x176   : > { %v1677_v20 = vmax.f32 %v1319_v18, 0.0  ;;  %v4733_v21 = vpop.f32.mrb[72].mxu0  ;;  %4899 = vmatprep.mubr.bf16.mxu1 %v1769_v17  ;;  %5258 = vmatpush3.bf16.msra.mxu1 %v5840_v12 }
 0x177   : > { %v1334_v22 = vadd.f32 %v4733_v21, %v5676_v58  ;;  %v1328_v23 = vpop.f32.mrb[73].mxu0 }
 0x178   : > { %v1770_v24 = vpack.c.bf16 %v1678_v19, %v1677_v20  ;;  %v1329_v25 = vadd.f32 %v5676_v58, %v1328_v23 }
 0x179   : > { %v1680_v26 = vmax.f32 %v1334_v22, 0.0 }
 0x17a   : > { %v1679_v27 = vmax.f32 %v1329_v25, 0.0  ;;  %v4736_v28 = vpop.f32.mrb[74].mxu0  ;;  %4900 = vmatmul.mubr.bf16.gmra.mrb[68].mxu1 %v1770_v24 }
 0x17b   : > { %v1344_v29 = vadd.f32 %v4736_v28, %v5676_v58  ;;  %v1338_v31 = vpop.f32.mrb[75].mxu0 }
 0x17c   : > { %v1771_v32 = vpack.c.bf16 %v1680_v26, %v1679_v27  ;;  %v1339_v33 = vadd.f32 %v5676_v58, %v1338_v31 }
 0x17d   : > { %v1682_v34 = vmax.f32 %v1344_v29, 0.0 }
 0x17e   : > { %v1681_v35 = vmax.f32 %v1339_v33, 0.0  ;;  %v4739_v37 = vpop.f32.mrb[76].mxu0  ;;  %4903 = vmatprep.mubr.bf16.mxu1 %v1771_v32 }
 0x17f   : > { %v1354_v38 = vadd.f32 %v4739_v37, %v5676_v58  ;;  %v1348_v39 = vpop.f32.mrb[77].mxu0 }
 0x180   : > { %v1772_v40 = vpack.c.bf16 %v1682_v34, %v1681_v35  ;;  %v1349_v41 = vadd.f32 %v5676_v58, %v1348_v39 }
 0x181   : > { %v1684_v42 = vmax.f32 %v1354_v38, 0.0 }
 0x182   : > { %v1683_v43 = vmax.f32 %v1349_v41, 0.0  ;;  %v4742_v44 = vpop.f32.mrb[78].mxu0  ;;  %4904 = vmatmul.mubr.bf16.gmra.mrb[72].mxu1 %v1772_v40 }
 0x183   : > { %v1364_v45 = vadd.f32 %v4742_v44, %v5676_v58  ;;  %v1358_v46 = vpop.f32.mrb[79].mxu0 }
 0x184   : > { %v1773_v47 = vpack.c.bf16 %v1684_v42, %v1683_v43  ;;  %v1359_v48 = vadd.f32 %v5676_v58, %v1358_v46 }
 0x185   : > { %v1686_v49 = vmax.f32 %v1364_v45, 0.0 }
 0x186   : > { %v1685_v50 = vmax.f32 %v1359_v48, 0.0  ;;  %v4745_v51 = vpop.f32.mrb[80].mxu0  ;;  %4907 = vmatprep.mubr.bf16.mxu1 %v1773_v47 }
 0x187   : > { %v1374_v52 = vadd.f32 %v4745_v51, %v5676_v58  ;;  %v1368_v53 = vpop.f32.mrb[81].mxu0 }
 0x188   : > { %v1774_v54 = vpack.c.bf16 %v1686_v49, %v1685_v50  ;;  %v1369_v55 = vadd.f32 %v5676_v58, %v1368_v53 }
 0x189   : > { %v1688_v56 = vmax.f32 %v1374_v52, 0.0 }
 0x18a   : > { %v1687_v57 = vmax.f32 %v1369_v55, 0.0  ;;  %v4748_v59 = vpop.f32.mrb[82].mxu0  ;;  %4908 = vmatmul.mubr.bf16.gmra.mrb[76].mxu1 %v1774_v54 }
 0x18b   : > { %v1384_v60 = vadd.f32 %v4748_v59, %v5676_v58  ;;  %v1378_v61 = vpop.f32.mrb[83].mxu0 }
 0x18c   : > { %v1775_v62 = vpack.c.bf16 %v1688_v56, %v1687_v57  ;;  %v1379_v63 = vadd.f32 %v5676_v58, %v1378_v61 }
 0x18d   : > { %v1690_v0 = vmax.f32 %v1384_v60, 0.0 }
 0x18e   : > { %v1689_v1 = vmax.f32 %v1379_v63, 0.0  ;;  %v4751_v2 = vpop.f32.mrb[84].mxu0  ;;  %4911 = vmatprep.mubr.bf16.mxu1 %v1775_v62 }
 0x18f   : > { %v1394_v3 = vadd.f32 %v4751_v2, %v5676_v58  ;;  %v1388_v4 = vpop.f32.mrb[85].mxu0 }
 0x190   : > { %v1776_v5 = vpack.c.bf16 %v1690_v0, %v1689_v1  ;;  %v1389_v6 = vadd.f32 %v5676_v58, %v1388_v4 }
 0x191   : > { %v1692_v7 = vmax.f32 %v1394_v3, 0.0 }
 0x192   : > { %v1691_v8 = vmax.f32 %v1389_v6, 0.0  ;;  %v4754_v9 = vpop.f32.mrb[86].mxu0  ;;  %4912 = vmatmul.mubr.bf16.gmra.mrb[80].mxu1 %v1776_v5 }
 0x193   : > { %v1404_v10 = vadd.f32 %v4754_v9, %v5676_v58  ;;  %v1398_v11 = vpop.f32.mrb[87].mxu0  ;;  %v5863_v9 = vld [vmem:[%s6354_s7 + $0x20] sm:$0xff]  }
 0x194   : > { %v1777_v13 = vpack.c.bf16 %v1692_v7, %v1691_v8  ;;  %v1399_v14 = vadd.f32 %v5676_v58, %v1398_v11  ;;  %5251 = vmatprep.subr.bf16.mxu1 %v5863_v9 }
 0x195   : > { %v1694_v15 = vmax.f32 %v1404_v10, 0.0  ;;  %5259 = vmatpush3.bf16.msra.mxu1 %v5863_v9 }
 0x196   : > { %v1693_v17 = vmax.f32 %v1399_v14, 0.0  ;;  %v4757_v18 = vpop.f32.mrb[88].mxu0  ;;  %4915 = vmatprep.mubr.bf16.mxu1 %v1777_v13 }
 0x197   : > { %v1414_v19 = vadd.f32 %v4757_v18, %v5676_v58  ;;  %v1408_v20 = vpop.f32.mrb[89].mxu0 }
 0x198   : > { %v1778_v21 = vpack.c.bf16 %v1694_v15, %v1693_v17  ;;  %v1409_v22 = vadd.f32 %v5676_v58, %v1408_v20 }
 0x199   : > { %v1696_v23 = vmax.f32 %v1414_v19, 0.0 }
 0x19a   : > { %v1695_v24 = vmax.f32 %v1409_v22, 0.0  ;;  %v4760_v25 = vpop.f32.mrb[90].mxu0  ;;  %4916 = vmatmul.mubr.bf16.gmra.mrb[84].mxu1 %v1778_v21 }
 0x19b   : > { %v1424_v26 = vadd.f32 %v4760_v25, %v5676_v58  ;;  %v1418_v27 = vpop.f32.mrb[91].mxu0 }
 0x19c   : > { %v1779_v28 = vpack.c.bf16 %v1696_v23, %v1695_v24  ;;  %v1419_v29 = vadd.f32 %v5676_v58, %v1418_v27 }
 0x19d   : > { %v1698_v31 = vmax.f32 %v1424_v26, 0.0 }
 0x19e   : > { %v1697_v32 = vmax.f32 %v1419_v29, 0.0  ;;  %v4763_v33 = vpop.f32.mrb[92].mxu0  ;;  %4919 = vmatprep.mubr.bf16.mxu1 %v1779_v28 }
 0x19f   : > { %v1434_v34 = vadd.f32 %v4763_v33, %v5676_v58  ;;  %v1428_v35 = vpop.f32.mrb[93].mxu0 }
 0x1a0   : > { %v1780_v37 = vpack.c.bf16 %v1698_v31, %v1697_v32  ;;  %v1429_v38 = vadd.f32 %v5676_v58, %v1428_v35 }
 0x1a1   : > { %v1700_v39 = vmax.f32 %v1434_v34, 0.0 }
 0x1a2   : > { %v1699_v40 = vmax.f32 %v1429_v38, 0.0  ;;  %v4766_v41 = vpop.f32.mrb[94].mxu0  ;;  %4920 = vmatmul.mubr.bf16.gmra.mrb[88].mxu1 %v1780_v37 }
 0x1a3   : > { %v1444_v42 = vadd.f32 %v4766_v41, %v5676_v58  ;;  %v1438_v43 = vpop.f32.mrb[95].mxu0 }
 0x1a4   : > { %v1781_v44 = vpack.c.bf16 %v1700_v39, %v1699_v40  ;;  %v1439_v45 = vadd.f32 %v5676_v58, %v1438_v43 }
 0x1a5   : > { %v1702_v46 = vmax.f32 %v1444_v42, 0.0 }
 0x1a6   : > { %v1701_v47 = vmax.f32 %v1439_v45, 0.0  ;;  %v4769_v48 = vpop.f32.mrb[96].mxu0  ;;  %4923 = vmatprep.mubr.bf16.mxu1 %v1781_v44 }
 0x1a7   : > { %v1454_v49 = vadd.f32 %v4769_v48, %v5676_v58  ;;  %v1448_v50 = vpop.f32.mrb[97].mxu0 }
 0x1a8   : > { %v1782_v51 = vpack.c.bf16 %v1702_v46, %v1701_v47  ;;  %v1449_v52 = vadd.f32 %v5676_v58, %v1448_v50  ;;  %v5879_v46 = vld [vmem:[%s6351_s4] ss:$0 sm:$0xff] }
 0x1a9   : > { %v1704_v53 = vmax.f32 %v1454_v49, 0.0  ;;  %v5884_v50 = vld [vmem:[%s6349_s2] ss:$0 sm:$0xff] }
 0x1aa   : > { %v1703_v54 = vmax.f32 %v1449_v52, 0.0  ;;  %v4772_v55 = vpop.f32.mrb[98].mxu0  ;;  %4924 = vmatmul.mubr.bf16.gmra.mrb[92].mxu1 %v1782_v51 }
 0x1ab   : > { %v1464_v56 = vadd.f32 %v4772_v55, %v5676_v58  ;;  %v1458_v57 = vpop.f32.mrb[99].mxu0 }
 0x1ac   : > { %v1783_v59 = vpack.c.bf16 %v1704_v53, %v1703_v54  ;;  %v1459_v60 = vadd.f32 %v5676_v58, %v1458_v57 }
 0x1ad   : > { %v1706_v61 = vmax.f32 %v1464_v56, 0.0 }
 0x1ae   : > { %v1705_v62 = vmax.f32 %v1459_v60, 0.0  ;;  %v4775_v63 = vpop.f32.mrb[100].mxu0  ;;  %4927 = vmatprep.mubr.bf16.mxu1 %v1783_v59 }
 0x1af   : > { %v1474_v0 = vadd.f32 %v4775_v63, %v5676_v58  ;;  %v1468_v1 = vpop.f32.mrb[101].mxu0 }
 0x1b0   : > { %v1784_v2 = vpack.c.bf16 %v1706_v61, %v1705_v62  ;;  %v1469_v3 = vadd.f32 %v5676_v58, %v1468_v1 }
 0x1b1   : > { %v1708_v4 = vmax.f32 %v1474_v0, 0.0 }
 0x1b2   : > { %v1707_v5 = vmax.f32 %v1469_v3, 0.0  ;;  %v4778_v6 = vpop.f32.mrb[102].mxu0  ;;  %4928 = vmatmul.mubr.bf16.gmra.mrb[96].mxu1 %v1784_v2 }
 0x1b3   : > { %v1484_v7 = vadd.f32 %v4778_v6, %v5676_v58  ;;  %v1478_v8 = vpop.f32.mrb[103].mxu0 }
 0x1b4   : > { %v1785_v10 = vpack.c.bf16 %v1708_v4, %v1707_v5  ;;  %v1479_v11 = vadd.f32 %v5676_v58, %v1478_v8 }
 0x1b5   : > { %v1710_v13 = vmax.f32 %v1484_v7, 0.0 }
 0x1b6   : > { %v1709_v14 = vmax.f32 %v1479_v11, 0.0  ;;  %v4781_v15 = vpop.f32.mrb[104].mxu0  ;;  %4931 = vmatprep.mubr.bf16.mxu1 %v1785_v10 }
 0x1b7   : > { %v1494_v17 = vadd.f32 %v4781_v15, %v5676_v58  ;;  %v1488_v18 = vpop.f32.mrb[105].mxu0 }
 0x1b8   : > { %v1786_v19 = vpack.c.bf16 %v1710_v13, %v1709_v14  ;;  %v1489_v20 = vadd.f32 %v5676_v58, %v1488_v18 }
 0x1b9   : > { %v1712_v21 = vmax.f32 %v1494_v17, 0.0 }
 0x1ba   : > { %v1711_v22 = vmax.f32 %v1489_v20, 0.0  ;;  %v4784_v23 = vpop.f32.mrb[106].mxu0  ;;  %4932 = vmatmul.mubr.bf16.gmra.mrb[100].mxu1 %v1786_v19 }
 0x1bb   : > { %v1504_v24 = vadd.f32 %v4784_v23, %v5676_v58  ;;  %v1498_v25 = vpop.f32.mrb[107].mxu0 }
 0x1bc   : > { %v1787_v26 = vpack.c.bf16 %v1712_v21, %v1711_v22  ;;  %v1499_v27 = vadd.f32 %v5676_v58, %v1498_v25 }
 0x1bd   : > { %v1714_v28 = vmax.f32 %v1504_v24, 0.0 }
 0x1be   : > { %v1713_v29 = vmax.f32 %v1499_v27, 0.0  ;;  %v4787_v31 = vpop.f32.mrb[108].mxu0  ;;  %4935 = vmatprep.mubr.bf16.mxu1 %v1787_v26 }
 0x1bf   : > { %v1514_v32 = vadd.f32 %v4787_v31, %v5676_v58  ;;  %v1508_v33 = vpop.f32.mrb[109].mxu0  ;;  %v5906_v31 = vld [vmem:[%s6354_s7 + $0x28] sm:$0xff]  }
 0x1c0   : > { %v1788_v34 = vpack.c.bf16 %v1714_v28, %v1713_v29  ;;  %v1509_v35 = vadd.f32 %v5676_v58, %v1508_v33  ;;  %5252 = vmatprep.subr.bf16.mxu1 %v5906_v31 }
 0x1c1   : > { %v1716_v37 = vmax.f32 %v1514_v32, 0.0  ;;  %5260 = vmatpush3.bf16.msra.mxu1 %v5906_v31 }
 0x1c2   : > { %v1715_v38 = vmax.f32 %v1509_v35, 0.0  ;;  %v4790_v39 = vpop.f32.mrb[110].mxu0  ;;  %4936 = vmatmul.mubr.bf16.gmra.mrb[104].mxu1 %v1788_v34 }
 0x1c3   : > { %v1524_v40 = vadd.f32 %v4790_v39, %v5676_v58  ;;  %v1518_v41 = vpop.f32.mrb[111].mxu0 }
 0x1c4   : > { %v1789_v42 = vpack.c.bf16 %v1716_v37, %v1715_v38  ;;  %v1519_v43 = vadd.f32 %v5676_v58, %v1518_v41 }
 0x1c5   : > { %v1718_v44 = vmax.f32 %v1524_v40, 0.0  ;;  %v4833_v45 = vpop.f32.mrb[0].mxu1 }
 0x1c6   : > { %v1717_v47 = vmax.f32 %v1519_v43, 0.0  ;;  %v4793_v48 = vpop.f32.mrb[112].mxu0  ;;  %v1904_v49 = vpop.f32.mrb[1].mxu1  ;;  %4939 = vmatprep.mubr.bf16.mxu1 %v1789_v42  ;;  %v1913_v54 = vadd.f32 %v4833_v45, %v5879_v46 }
 0x1c7   : > { %v1534_v51 = vadd.f32 %v5884_v50, %v4793_v48  ;;  %v1528_v52 = vpop.f32.mrb[113].mxu0  ;;  %v4834_v58 = vpop.f32.mrb[2].mxu1  ;;  %v1905_v60 = vadd.f32 %v5879_v46, %v1904_v49 }
 0x1c8   : > { %v1790_v53 = vpack.c.bf16 %v1718_v44, %v1717_v47  ;;  %v1529_v55 = vadd.f32 %v5884_v50, %v1528_v52  ;;  %v1916_v56 = vadd.f32 %v4834_v58, %v5879_v46  ;;  %v1907_v57 = vpop.f32.mrb[3].mxu1 }
 0x1c9   : > { %v1720_v59 = vmax.f32 %v1534_v51, 0.0  ;;  %v1908_v61 = vadd.f32 %v5879_v46, %v1907_v57 }
 0x1ca   : > { %v1719_v62 = vmax.f32 %v1529_v55, 0.0  ;;  %v2416_v63 = vpack.c.bf16 %v1916_v56, %v1913_v54  ;;  %v4796_v0 = vpop.f32.mrb[114].mxu0  ;;  %4940 = vmatmul.mubr.bf16.gmra.mrb[108].mxu1 %v1790_v53 }
 0x1cb   : > { %v2415_v1 = vpack.c.bf16 %v1908_v61, %v1905_v60  ;;  %v1544_v2 = vadd.f32 %v5884_v50, %v4796_v0  ;;  %v1538_v3 = vpop.f32.mrb[115].mxu0 }
 0x1cc   : > { %v1791_v4 = vpack.c.bf16 %v1720_v59, %v1719_v62  ;;  %v1539_v5 = vadd.f32 %v5884_v50, %v1538_v3 }
 0x1cd   : > { %v1722_v6 = vmax.f32 %v1544_v2, 0.0  ;;  %v4837_v7 = vpop.f32.mrb[4].mxu1  ;;  %4975 = vmatprep.mubr.bf16.mxu0 %v2415_v1 }
 0x1ce   : > { %v1721_v8 = vmax.f32 %v1539_v5, 0.0  ;;  %v4799_v10 = vpop.f32.mrb[116].mxu0  ;;  %v1920_v11 = vpop.f32.mrb[5].mxu1  ;;  %4943 = vmatprep.mubr.bf16.mxu1 %v1791_v4  ;;  %4976 = vmatmul.mubr.bf16.vlgmr.msra.gmra.mrb[128].mxu0 %v2416_v63  ;;  %v1929_v18 = vadd.f32 %v4837_v7, %v5879_v46 }
 0x1cf   : > { %v1554_v13 = vadd.f32 %v5884_v50, %v4799_v10  ;;  %v1548_v14 = vpop.f32.mrb[117].mxu0  ;;  %v4838_v15 = vpop.f32.mrb[6].mxu1  ;;  %5104 = vmatpush3.bf16.msra.mxu0 %v5773_v36  ;;  %v1921_v23 = vadd.f32 %v5879_v46, %v1920_v11 }
 0x1d0   : > { %v1792_v17 = vpack.c.bf16 %v1722_v6, %v1721_v8  ;;  %v1549_v19 = vadd.f32 %v5884_v50, %v1548_v14  ;;  %v1932_v20 = vadd.f32 %v4838_v15, %v5879_v46  ;;  %v1923_v21 = vpop.f32.mrb[7].mxu1  ;;  %5105 = vmatprep.subr.bf16.mxu0 %v5797_v30 }
 0x1d1   : > { %v1724_v22 = vmax.f32 %v1554_v13, 0.0  ;;  %v1924_v24 = vadd.f32 %v5879_v46, %v1923_v21 }
 0x1d2   : > { %v1723_v25 = vmax.f32 %v1549_v19, 0.0  ;;  %v2418_v26 = vpack.c.bf16 %v1932_v20, %v1929_v18  ;;  %v4802_v27 = vpop.f32.mrb[118].mxu0  ;;  %4944 = vmatmul.mubr.bf16.gmra.mrb[112].mxu1 %v1792_v17 }
 0x1d3   : > { %v2417_v36 = vpack.c.bf16 %v1924_v24, %v1921_v23  ;;  %v1564_v28 = vadd.f32 %v5884_v50, %v4802_v27  ;;  %v1558_v29 = vpop.f32.mrb[119].mxu0  ;;  %5106 = vmatpush3.bf16.msra.mxu0 %v5797_v30 }
 0x1d4   : > { %v1793_v32 = vpack.c.bf16 %v1724_v22, %v1723_v25  ;;  %v1559_v33 = vadd.f32 %v5884_v50, %v1558_v29  ;;  %5107 = vmatprep.subr.bf16.mxu0 %v5817_v16 }
 0x1d5   : > { %v1726_v34 = vmax.f32 %v1564_v28, 0.0  ;;  %v4841_v35 = vpop.f32.mrb[8].mxu1  ;;  %4979 = vmatprep.mubr.bf16.mxu0 %v2417_v36 }
 0x1d6   : > { %v1725_v37 = vmax.f32 %v1559_v33, 0.0  ;;  %v4805_v38 = vpop.f32.mrb[120].mxu0  ;;  %v1936_v39 = vpop.f32.mrb[9].mxu1  ;;  %4947 = vmatprep.mubr.bf16.mxu1 %v1793_v32  ;;  %4980 = vmatmul.mubr.bf16.gmra.mrb[132].mxu0 %v2418_v26  ;;  %v1945_v43 = vadd.f32 %v4841_v35, %v5879_v46 }
 0x1d7   : > { %v1574_v40 = vadd.f32 %v5884_v50, %v4805_v38  ;;  %v1568_v41 = vpop.f32.mrb[121].mxu0  ;;  %v4842_v42 = vpop.f32.mrb[10].mxu1  ;;  %5108 = vmatpush3.bf16.msra.mxu0 %v5817_v16  ;;  %v1937_v49 = vadd.f32 %v5879_v46, %v1936_v39 }
 0x1d8   : > { %v1794_v30 = vpack.c.bf16 %v1726_v34, %v1725_v37  ;;  %v1569_v44 = vadd.f32 %v5884_v50, %v1568_v41  ;;  %v1948_v45 = vadd.f32 %v4842_v42, %v5879_v46  ;;  %v1939_v47 = vpop.f32.mrb[11].mxu1  ;;  %5109 = vmatprep.subr.bf16.mxu0 %v5840_v12 }
 0x1d9   : > { %v1728_v48 = vmax.f32 %v1574_v40, 0.0  ;;  %v1940_v51 = vadd.f32 %v5879_v46, %v1939_v47 }
 0x1da   : > { %v1727_v52 = vmax.f32 %v1569_v44, 0.0  ;;  %v2420_v58 = vpack.c.bf16 %v1948_v45, %v1945_v43  ;;  %v4808_v53 = vpop.f32.mrb[122].mxu0  ;;  %4948 = vmatmul.mubr.bf16.gmra.mrb[116].mxu1 %v1794_v30  ;;  %v5310_v30 = vld [vmem:[%s6354_s7 + $0x30] sm:$0xff]  }
 0x1db   : > { %v2419_v16 = vpack.c.bf16 %v1940_v51, %v1937_v49  ;;  %v1584_v54 = vadd.f32 %v5884_v50, %v4808_v53  ;;  %v1578_v55 = vpop.f32.mrb[123].mxu0  ;;  %5110 = vmatpush3.bf16.msra.mxu0 %v5840_v12  ;;  %5253 = vmatprep.subr.bf16.mxu1 %v5310_v30 }
 0x1dc   : > { %v1795_v56 = vpack.c.bf16 %v1728_v48, %v1727_v52  ;;  %v1579_v57 = vadd.f32 %v5884_v50, %v1578_v55  ;;  %5111 = vmatprep.subr.bf16.mxu0 %v5863_v9  ;;  %5261 = vmatpush3.bf16.msra.mxu1 %v5310_v30 }
 0x1dd   : > { %v1730_v59 = vmax.f32 %v1584_v54, 0.0  ;;  %v4845_v60 = vpop.f32.mrb[12].mxu1  ;;  %4983 = vmatprep.mubr.bf16.mxu0 %v2419_v16 }
 0x1de   : > { %v1729_v61 = vmax.f32 %v1579_v57, 0.0  ;;  %v4811_v62 = vpop.f32.mrb[124].mxu0  ;;  %v1952_v63 = vpop.f32.mrb[13].mxu1  ;;  %4951 = vmatprep.mubr.bf16.mxu1 %v1795_v56  ;;  %4984 = vmatmul.mubr.bf16.gmra.mrb[136].mxu0 %v2420_v58  ;;  %v1961_v3 = vadd.f32 %v4845_v60, %v5879_v46 }
 0x1df   : > { %v1594_v0 = vadd.f32 %v5884_v50, %v4811_v62  ;;  %v1588_v1 = vpop.f32.mrb[125].mxu0  ;;  %v4846_v2 = vpop.f32.mrb[14].mxu1  ;;  %5112 = vmatpush3.bf16.msra.mxu0 %v5863_v9  ;;  %v1953_v8 = vadd.f32 %v5879_v46, %v1952_v63 }
 0x1e0   : > { %v1796_v12 = vpack.c.bf16 %v1730_v59, %v1729_v61  ;;  %v1589_v4 = vadd.f32 %v5884_v50, %v1588_v1  ;;  %v1964_v5 = vadd.f32 %v4846_v2, %v5879_v46  ;;  %v1955_v6 = vpop.f32.mrb[15].mxu1  ;;  %5113 = vmatprep.subr.bf16.mxu0 %v5906_v31 }
 0x1e1   : > { %v1732_v7 = vmax.f32 %v1594_v0, 0.0  ;;  %v1956_v10 = vadd.f32 %v5879_v46, %v1955_v6 }
 0x1e2   : > { %v1731_v11 = vmax.f32 %v1589_v4, 0.0  ;;  %v2422_v13 = vpack.c.bf16 %v1964_v5, %v1961_v3  ;;  %v4814_v14 = vpop.f32.mrb[126].mxu0  ;;  %4952 = vmatmul.mubr.bf16.gmra.mrb[120].mxu1 %v1796_v12 }
 0x1e3   : > { %v2421_v9 = vpack.c.bf16 %v1956_v10, %v1953_v8  ;;  %v1604_v15 = vadd.f32 %v5884_v50, %v4814_v14  ;;  %v1598_v17 = vpop.f32.mrb[127].mxu0  ;;  %5114 = vmatpush3.bf16.msra.mxu0 %v5906_v31 }
 0x1e4   : > { %v1797_v18 = vpack.c.bf16 %v1732_v7, %v1731_v11  ;;  %v1599_v19 = vadd.f32 %v5884_v50, %v1598_v17  ;;  %5115 = vmatprep.subr.bf16.mxu0 %v5310_v30 }
 0x1e5   : > { %v1734_v20 = vmax.f32 %v1604_v15, 0.0  ;;  %v4849_v21 = vpop.f32.mrb[16].mxu1  ;;  %4987 = vmatprep.mubr.bf16.mxu0 %v2421_v9 }
 0x1e6   : > { %v1733_v22 = vmax.f32 %v1599_v19, 0.0  ;;  %v1968_v23 = vpop.f32.mrb[17].mxu1  ;;  %4955 = vmatprep.mubr.bf16.mxu1 %v1797_v18  ;;  %4988 = vmatmul.mubr.bf16.gmra.mrb[140].mxu0 %v2422_v13  ;;  %v1977_v26 = vadd.f32 %v4849_v21, %v5879_v46  ;;  %v5311_v21 = vld [vmem:[%s6354_s7 + $0x38] sm:$0xff]  }
 0x1e7   : > { %v4850_v24 = vpop.f32.mrb[18].mxu1  ;;  %v1969_v28 = vadd.f32 %v5879_v46, %v1968_v23  ;;  %5116 = vmatpush3.bf16.msra.mxu0 %v5310_v30  ;;  %5254 = vmatprep.subr.bf16.mxu1 %v5311_v21 }
 0x1e8   : > { %v1798_v25 = vpack.c.bf16 %v1734_v20, %v1733_v22  ;;  %v1980_v27 = vadd.f32 %v4850_v24, %v5879_v46  ;;  %v1971_v36 = vpop.f32.mrb[19].mxu1  ;;  %5262 = vmatpush3.bf16.msra.mxu1 %v5311_v21  ;;  %5117 = vmatprep.subr.bf16.mxu0 %v5311_v21 }
 0x1e9   : > { %v1972_v29 = vadd.f32 %v5879_v46, %v1971_v36 }
 0x1ea   : > { %v2424_v31 = vpack.c.bf16 %v1980_v27, %v1977_v26  ;;  %4956 = vmatmul.mubr.bf16.gmra.mrb[124].mxu1 %v1798_v25 }
 0x1eb   : > { %v2423_v50 = vpack.c.bf16 %v1972_v29, %v1969_v28  ;;  %5118 = vmatpush3.bf16.msra.mxu0 %v5311_v21 }
 0x1ed   : > { %v4853_v32 = vpop.f32.mrb[20].mxu1  ;;  %4991 = vmatprep.mubr.bf16.mxu0 %v2423_v50 }
 0x1ee   : > { %v1984_v33 = vpop.f32.mrb[21].mxu1  ;;  %4992 = vmatmul.mubr.bf16.gmra.mrb[144].mxu0 %v2424_v31  ;;  %v1993_v35 = vadd.f32 %v4853_v32, %v5879_v46 }
 0x1ef   : > { %v4854_v34 = vpop.f32.mrb[22].mxu1  ;;  %v1985_v39 = vadd.f32 %v5879_v46, %v1984_v33 }
 0x1f0   : > { %v1996_v37 = vadd.f32 %v4854_v34, %v5879_v46  ;;  %v1987_v38 = vpop.f32.mrb[23].mxu1 }
 0x1f1   : > { %v1988_v40 = vadd.f32 %v5879_v46, %v1987_v38 }
 0x1f2   : > { %v2426_v41 = vpack.c.bf16 %v1996_v37, %v1993_v35 }
 0x1f3   : > { %v2425_v42 = vpack.c.bf16 %v1988_v40, %v1985_v39 }
 0x1f5   : > { %v4857_v43 = vpop.f32.mrb[24].mxu1  ;;  %4995 = vmatprep.mubr.bf16.mxu0 %v2425_v42 }
 0x1f6   : > { %v2000_v44 = vpop.f32.mrb[25].mxu1  ;;  %4996 = vmatmul.mubr.bf16.gmra.mrb[148].mxu0 %v2426_v41  ;;  %v2009_v47 = vadd.f32 %v4857_v43, %v5879_v46 }
 0x1f7   : > { %v4858_v45 = vpop.f32.mrb[26].mxu1  ;;  %v2001_v51 = vadd.f32 %v5879_v46, %v2000_v44 }
 0x1f8   : > { %v2012_v48 = vadd.f32 %v4858_v45, %v5879_v46  ;;  %v2003_v49 = vpop.f32.mrb[27].mxu1 }
 0x1f9   : > { %v2004_v52 = vadd.f32 %v5879_v46, %v2003_v49 }
 0x1fa   : > { %v2428_v58 = vpack.c.bf16 %v2012_v48, %v2009_v47 }
 0x1fb   : > { %v2427_v53 = vpack.c.bf16 %v2004_v52, %v2001_v51 }
 0x1fd   : > { %v4861_v16 = vpop.f32.mrb[28].mxu1  ;;  %4999 = vmatprep.mubr.bf16.mxu0 %v2427_v53 }
 0x1fe   : > { %v2016_v54 = vpop.f32.mrb[29].mxu1  ;;  %5000 = vmatmul.mubr.bf16.gmra.mrb[152].mxu0 %v2428_v58  ;;  %v2025_v56 = vadd.f32 %v4861_v16, %v5879_v46 }
 0x1ff   : > { %v4862_v55 = vpop.f32.mrb[30].mxu1  ;;  %v2017_v60 = vadd.f32 %v5879_v46, %v2016_v54 }
 0x200   : > { %v2028_v57 = vadd.f32 %v4862_v55, %v5879_v46  ;;  %v2019_v59 = vpop.f32.mrb[31].mxu1 }
 0x201   : > { %v2020_v61 = vadd.f32 %v5879_v46, %v2019_v59 }
 0x202   : > { %v2430_v62 = vpack.c.bf16 %v2028_v57, %v2025_v56 }
 0x203   : > { %v2429_v63 = vpack.c.bf16 %v2020_v61, %v2017_v60 }
 0x205   : > { %v4865_v0 = vpop.f32.mrb[32].mxu1  ;;  %5003 = vmatprep.mubr.bf16.mxu0 %v2429_v63 }
 0x206   : > { %v2032_v1 = vpop.f32.mrb[33].mxu1  ;;  %5004 = vmatmul.mubr.bf16.gmra.mrb[156].mxu0 %v2430_v62  ;;  %v2041_v12 = vadd.f32 %v4865_v0, %v5879_v46 }
 0x207   : > { %v4866_v2 = vpop.f32.mrb[34].mxu1  ;;  %v2033_v5 = vadd.f32 %v5879_v46, %v2032_v1 }
 0x208   : > { %v2044_v3 = vadd.f32 %v4866_v2, %v5879_v46  ;;  %v2035_v4 = vpop.f32.mrb[35].mxu1 }
 0x209   : > { %v2036_v6 = vadd.f32 %v5879_v46, %v2035_v4 }
 0x20a   : > { %v2432_v7 = vpack.c.bf16 %v2044_v3, %v2041_v12 }
 0x20b   : > { %v2431_v8 = vpack.c.bf16 %v2036_v6, %v2033_v5 }
 0x20d   : > { %v4869_v10 = vpop.f32.mrb[36].mxu1  ;;  %5007 = vmatprep.mubr.bf16.mxu0 %v2431_v8 }
 0x20e   : > { %v2048_v11 = vpop.f32.mrb[37].mxu1  ;;  %5008 = vmatmul.mubr.bf16.gmra.mrb[160].mxu0 %v2432_v7  ;;  %v2057_v14 = vadd.f32 %v4869_v10, %v5879_v46 }
 0x20f   : > { %v4870_v13 = vpop.f32.mrb[38].mxu1  ;;  %v2049_v17 = vadd.f32 %v5879_v46, %v2048_v11 }
 0x210   : > { %v2060_v9 = vadd.f32 %v4870_v13, %v5879_v46  ;;  %v2051_v15 = vpop.f32.mrb[39].mxu1 }
 0x211   : > { %v2052_v18 = vadd.f32 %v5879_v46, %v2051_v15 }
 0x212   : > { %v2434_v19 = vpack.c.bf16 %v2060_v9, %v2057_v14 }
 0x213   : > { %v2433_v20 = vpack.c.bf16 %v2052_v18, %v2049_v17 }
 0x215   : > { %v4873_v22 = vpop.f32.mrb[40].mxu1  ;;  %5011 = vmatprep.mubr.bf16.mxu0 %v2433_v20 }
 0x216   : > { %v2064_v23 = vpop.f32.mrb[41].mxu1  ;;  %5012 = vmatmul.mubr.bf16.gmra.mrb[164].mxu0 %v2434_v19  ;;  %v2073_v25 = vadd.f32 %v4873_v22, %v5879_v46 }
 0x217   : > { %v4874_v24 = vpop.f32.mrb[42].mxu1  ;;  %v2065_v36 = vadd.f32 %v5879_v46, %v2064_v23 }
 0x218   : > { %v2076_v26 = vadd.f32 %v4874_v24, %v5879_v46  ;;  %v2067_v27 = vpop.f32.mrb[43].mxu1 }
 0x219   : > { %v2068_v28 = vadd.f32 %v5879_v46, %v2067_v27 }
 0x21a   : > { %v2436_v29 = vpack.c.bf16 %v2076_v26, %v2073_v25 }
 0x21b   : > { %v2435_v31 = vpack.c.bf16 %v2068_v28, %v2065_v36 }
 0x21d   : > { %v4877_v50 = vpop.f32.mrb[44].mxu1  ;;  %5015 = vmatprep.mubr.bf16.mxu0 %v2435_v31 }
 0x21e   : > { %v2080_v32 = vpop.f32.mrb[45].mxu1  ;;  %5016 = vmatmul.mubr.bf16.gmra.mrb[168].mxu0 %v2436_v29  ;;  %v2089_v34 = vadd.f32 %v4877_v50, %v5879_v46 }
 0x21f   : > { %v4878_v33 = vpop.f32.mrb[46].mxu1  ;;  %v2081_v38 = vadd.f32 %v5879_v46, %v2080_v32 }
 0x220   : > { %v2092_v35 = vadd.f32 %v4878_v33, %v5879_v46  ;;  %v2083_v37 = vpop.f32.mrb[47].mxu1 }
 0x221   : > { %v2084_v39 = vadd.f32 %v5879_v46, %v2083_v37 }
 0x222   : > { %v2438_v40 = vpack.c.bf16 %v2092_v35, %v2089_v34 }
 0x223   : > { %v2437_v41 = vpack.c.bf16 %v2084_v39, %v2081_v38 }
 0x225   : > { %v4881_v42 = vpop.f32.mrb[48].mxu1  ;;  %5019 = vmatprep.mubr.bf16.mxu0 %v2437_v41 }
 0x226   : > { %v2096_v30 = vpop.f32.mrb[49].mxu1  ;;  %5020 = vmatmul.mubr.bf16.gmra.mrb[172].mxu0 %v2438_v40  ;;  %v2105_v44 = vadd.f32 %v4881_v42, %v5879_v46 }
 0x227   : > { %v4882_v43 = vpop.f32.mrb[50].mxu1  ;;  %v2097_v48 = vadd.f32 %v5879_v46, %v2096_v30 }
 0x228   : > { %v2108_v45 = vadd.f32 %v4882_v43, %v5879_v46  ;;  %v2099_v47 = vpop.f32.mrb[51].mxu1 }
 0x229   : > { %v2100_v49 = vadd.f32 %v5879_v46, %v2099_v47 }
 0x22a   : > { %v2440_v51 = vpack.c.bf16 %v2108_v45, %v2105_v44 }
 0x22b   : > { %v2439_v52 = vpack.c.bf16 %v2100_v49, %v2097_v48 }
 0x22d   : > { %v4885_v58 = vpop.f32.mrb[52].mxu1  ;;  %5023 = vmatprep.mubr.bf16.mxu0 %v2439_v52 }
 0x22e   : > { %v2112_v53 = vpop.f32.mrb[53].mxu1  ;;  %5024 = vmatmul.mubr.bf16.gmra.mrb[176].mxu0 %v2440_v51  ;;  %v2121_v54 = vadd.f32 %v4885_v58, %v5879_v46 }
 0x22f   : > { %v4886_v16 = vpop.f32.mrb[54].mxu1  ;;  %v2113_v57 = vadd.f32 %v5879_v46, %v2112_v53 }
 0x230   : > { %v2124_v55 = vadd.f32 %v4886_v16, %v5879_v46  ;;  %v2115_v56 = vpop.f32.mrb[55].mxu1 }
 0x231   : > { %v2116_v59 = vadd.f32 %v5879_v46, %v2115_v56 }
 0x232   : > { %v2442_v60 = vpack.c.bf16 %v2124_v55, %v2121_v54 }
 0x233   : > { %v2441_v61 = vpack.c.bf16 %v2116_v59, %v2113_v57 }
 0x235   : > { %v4889_v62 = vpop.f32.mrb[56].mxu1  ;;  %5027 = vmatprep.mubr.bf16.mxu0 %v2441_v61 }
 0x236   : > { %v2128_v63 = vpop.f32.mrb[57].mxu1  ;;  %5028 = vmatmul.mubr.bf16.gmra.mrb[180].mxu0 %v2442_v60  ;;  %v2137_v1 = vadd.f32 %v4889_v62, %v5879_v46 }
 0x237   : > { %v4890_v0 = vpop.f32.mrb[58].mxu1  ;;  %v2129_v3 = vadd.f32 %v5879_v46, %v2128_v63 }
 0x238   : > { %v2140_v2 = vadd.f32 %v4890_v0, %v5879_v46  ;;  %v2131_v12 = vpop.f32.mrb[59].mxu1 }
 0x239   : > { %v2132_v4 = vadd.f32 %v5879_v46, %v2131_v12 }
 0x23a   : > { %v2444_v5 = vpack.c.bf16 %v2140_v2, %v2137_v1 }
 0x23b   : > { %v2443_v6 = vpack.c.bf16 %v2132_v4, %v2129_v3 }
 0x23d   : > { %v4893_v7 = vpop.f32.mrb[60].mxu1  ;;  %5031 = vmatprep.mubr.bf16.mxu0 %v2443_v6 }
 0x23e   : > { %v2144_v8 = vpop.f32.mrb[61].mxu1  ;;  %5032 = vmatmul.mubr.bf16.gmra.mrb[184].mxu0 %v2444_v5  ;;  %v2153_v11 = vadd.f32 %v4893_v7, %v5879_v46 }
 0x23f   : > { %v4894_v10 = vpop.f32.mrb[62].mxu1  ;;  %v2145_v9 = vadd.f32 %v5879_v46, %v2144_v8 }
 0x240   : > { %v2156_v13 = vadd.f32 %v4894_v10, %v5879_v46  ;;  %v2147_v14 = vpop.f32.mrb[63].mxu1 }
 0x241   : > { %v2148_v15 = vadd.f32 %v5879_v46, %v2147_v14 }
 0x242   : > { %v2446_v17 = vpack.c.bf16 %v2156_v13, %v2153_v11 }
 0x243   : > { %v2445_v18 = vpack.c.bf16 %v2148_v15, %v2145_v9 }
 0x245   : > { %v4897_v19 = vpop.f32.mrb[64].mxu1  ;;  %5035 = vmatprep.mubr.bf16.mxu0 %v2445_v18 }
 0x246   : > { %v2160_v20 = vpop.f32.mrb[65].mxu1  ;;  %5036 = vmatmul.mubr.bf16.gmra.mrb[188].mxu0 %v2446_v17  ;;  %v2169_v22 = vadd.f32 %v4897_v19, %v5879_v46 }
 0x247   : > { %v4898_v21 = vpop.f32.mrb[66].mxu1  ;;  %v2161_v25 = vadd.f32 %v5879_v46, %v2160_v20 }
 0x248   : > { %v2172_v23 = vadd.f32 %v4898_v21, %v5879_v46  ;;  %v2163_v24 = vpop.f32.mrb[67].mxu1 }
 0x249   : > { %v2164_v26 = vadd.f32 %v5879_v46, %v2163_v24 }
 0x24a   : > { %v2448_v27 = vpack.c.bf16 %v2172_v23, %v2169_v22 }
 0x24b   : > { %v2447_v36 = vpack.c.bf16 %v2164_v26, %v2161_v25 }
 0x24d   : > { %v4901_v28 = vpop.f32.mrb[68].mxu1  ;;  %5039 = vmatprep.mubr.bf16.mxu0 %v2447_v36 }
 0x24e   : > { %v2176_v29 = vpop.f32.mrb[69].mxu1  ;;  %5040 = vmatmul.mubr.bf16.gmra.mrb[192].mxu0 %v2448_v27  ;;  %v2185_v50 = vadd.f32 %v4901_v28, %v5879_v46 }
 0x24f   : > { %v4902_v31 = vpop.f32.mrb[70].mxu1  ;;  %v2177_v34 = vadd.f32 %v5879_v46, %v2176_v29 }
 0x250   : > { %v2188_v32 = vadd.f32 %v4902_v31, %v5879_v46  ;;  %v2179_v33 = vpop.f32.mrb[71].mxu1 }
 0x251   : > { %v2180_v35 = vadd.f32 %v5879_v46, %v2179_v33 }
 0x252   : > { %v2450_v37 = vpack.c.bf16 %v2188_v32, %v2185_v50 }
 0x253   : > { %v2449_v38 = vpack.c.bf16 %v2180_v35, %v2177_v34 }
 0x255   : > { %v4905_v39 = vpop.f32.mrb[72].mxu1  ;;  %5043 = vmatprep.mubr.bf16.mxu0 %v2449_v38 }
 0x256   : > { %v2192_v40 = vpop.f32.mrb[73].mxu1  ;;  %5044 = vmatmul.mubr.bf16.gmra.mrb[196].mxu0 %v2450_v37  ;;  %v2201_v42 = vadd.f32 %v4905_v39, %v5879_v46 }
 0x257   : > { %v4906_v41 = vpop.f32.mrb[74].mxu1  ;;  %v2193_v44 = vadd.f32 %v5879_v46, %v2192_v40 }
 0x258   : > { %v2204_v30 = vadd.f32 %v4906_v41, %v5879_v46  ;;  %v2195_v43 = vpop.f32.mrb[75].mxu1 }
 0x259   : > { %v2196_v45 = vadd.f32 %v5879_v46, %v2195_v43 }
 0x25a   : > { %v2452_v47 = vpack.c.bf16 %v2204_v30, %v2201_v42 }
 0x25b   : > { %v2451_v48 = vpack.c.bf16 %v2196_v45, %v2193_v44 }
 0x25d   : > { %v4909_v49 = vpop.f32.mrb[76].mxu1  ;;  %5047 = vmatprep.mubr.bf16.mxu0 %v2451_v48 }
 0x25e   : > { %v2208_v51 = vpop.f32.mrb[77].mxu1  ;;  %5048 = vmatmul.mubr.bf16.gmra.mrb[200].mxu0 %v2452_v47  ;;  %v2217_v58 = vadd.f32 %v4909_v49, %v5879_v46 }
 0x25f   : > { %v4910_v52 = vpop.f32.mrb[78].mxu1  ;;  %v2209_v54 = vadd.f32 %v5879_v46, %v2208_v51 }
 0x260   : > { %v2220_v53 = vadd.f32 %v4910_v52, %v5879_v46  ;;  %v2211_v16 = vpop.f32.mrb[79].mxu1 }
 0x261   : > { %v2212_v55 = vadd.f32 %v5879_v46, %v2211_v16 }
 0x262   : > { %v2454_v56 = vpack.c.bf16 %v2220_v53, %v2217_v58 }
 0x263   : > { %v2453_v57 = vpack.c.bf16 %v2212_v55, %v2209_v54 }
 0x265   : > { %v4913_v59 = vpop.f32.mrb[80].mxu1  ;;  %5051 = vmatprep.mubr.bf16.mxu0 %v2453_v57 }
 0x266   : > { %v2224_v60 = vpop.f32.mrb[81].mxu1  ;;  %5052 = vmatmul.mubr.bf16.gmra.mrb[204].mxu0 %v2454_v56  ;;  %v2233_v62 = vadd.f32 %v4913_v59, %v5879_v46 }
 0x267   : > { %v4914_v61 = vpop.f32.mrb[82].mxu1  ;;  %v2225_v1 = vadd.f32 %v5879_v46, %v2224_v60 }
 0x268   : > { %v2236_v63 = vadd.f32 %v4914_v61, %v5879_v46  ;;  %v2227_v0 = vpop.f32.mrb[83].mxu1 }
 0x269   : > { %v2228_v2 = vadd.f32 %v5879_v46, %v2227_v0 }
 0x26a   : > { %v2456_v12 = vpack.c.bf16 %v2236_v63, %v2233_v62 }
 0x26b   : > { %v2455_v3 = vpack.c.bf16 %v2228_v2, %v2225_v1 }
 0x26d   : > { %v4917_v4 = vpop.f32.mrb[84].mxu1  ;;  %5055 = vmatprep.mubr.bf16.mxu0 %v2455_v3 }
 0x26e   : > { %v2240_v5 = vpop.f32.mrb[85].mxu1  ;;  %5056 = vmatmul.mubr.bf16.gmra.mrb[208].mxu0 %v2456_v12  ;;  %v2249_v7 = vadd.f32 %v4917_v4, %v5879_v46  ;;  %v6041_v4 = vld [vmem:[%s6038_s25] ss:$0 sm:$0xff] }
 0x26f   : > { %v4918_v6 = vpop.f32.mrb[86].mxu1  ;;  %v2241_v11 = vadd.f32 %v5879_v46, %v2240_v5 }
 0x270   : > { %v2252_v8 = vadd.f32 %v4918_v6, %v5879_v46  ;;  %v2243_v10 = vpop.f32.mrb[87].mxu1 }
 0x271   : > { %v2244_v13 = vadd.f32 %v5879_v46, %v2243_v10 }
 0x272   : > { %v2458_v14 = vpack.c.bf16 %v2252_v8, %v2249_v7 }
 0x273   : > { %v2457_v9 = vpack.c.bf16 %v2244_v13, %v2241_v11 }
 0x275   : > { %v4921_v15 = vpop.f32.mrb[88].mxu1  ;;  %5059 = vmatprep.mubr.bf16.mxu0 %v2457_v9 }
 0x276   : > { %v2256_v17 = vpop.f32.mrb[89].mxu1  ;;  %5060 = vmatmul.mubr.bf16.gmra.mrb[212].mxu0 %v2458_v14  ;;  %v2265_v19 = vadd.f32 %v4921_v15, %v5879_v46 }
 0x277   : > { %v4922_v18 = vpop.f32.mrb[90].mxu1  ;;  %v2257_v22 = vadd.f32 %v5879_v46, %v2256_v17 }
 0x278   : > { %v2268_v20 = vadd.f32 %v4922_v18, %v5879_v46  ;;  %v2259_v21 = vpop.f32.mrb[91].mxu1 }
 0x279   : > { %v2260_v23 = vadd.f32 %v5879_v46, %v2259_v21 }
 0x27a   : > { %v2460_v24 = vpack.c.bf16 %v2268_v20, %v2265_v19 }
 0x27b   : > { %v2459_v25 = vpack.c.bf16 %v2260_v23, %v2257_v22 }
 0x27d   : > { %v4925_v26 = vpop.f32.mrb[92].mxu1  ;;  %5063 = vmatprep.mubr.bf16.mxu0 %v2459_v25 }
 0x27e   : > { %v2272_v27 = vpop.f32.mrb[93].mxu1  ;;  %5064 = vmatmul.mubr.bf16.gmra.mrb[216].mxu0 %v2460_v24  ;;  %v2281_v28 = vadd.f32 %v4925_v26, %v5879_v46 }
 0x27f   : > { %v4926_v36 = vpop.f32.mrb[94].mxu1  ;;  %v2273_v50 = vadd.f32 %v5879_v46, %v2272_v27 }
 0x280   : > { %v2284_v29 = vadd.f32 %v4926_v36, %v5879_v46  ;;  %v2275_v31 = vpop.f32.mrb[95].mxu1 }
 0x281   : > { %v2276_v32 = vadd.f32 %v5879_v46, %v2275_v31 }
 0x282   : > { %v2462_v33 = vpack.c.bf16 %v2284_v29, %v2281_v28 }
 0x283   : > { %v2461_v34 = vpack.c.bf16 %v2276_v32, %v2273_v50 }
 0x285   : > { %v4929_v35 = vpop.f32.mrb[96].mxu1  ;;  %5067 = vmatprep.mubr.bf16.mxu0 %v2461_v34 }
 0x286   : > { %v2288_v37 = vpop.f32.mrb[97].mxu1  ;;  %5068 = vmatmul.mubr.bf16.gmra.mrb[220].mxu0 %v2462_v33  ;;  %v2297_v39 = vadd.f32 %v4929_v35, %v5879_v46 }
 0x287   : > { %v4930_v38 = vpop.f32.mrb[98].mxu1  ;;  %v2289_v42 = vadd.f32 %v5879_v46, %v2288_v37 }
 0x288   : > { %v2300_v40 = vadd.f32 %v4930_v38, %v5879_v46  ;;  %v2291_v41 = vpop.f32.mrb[99].mxu1 }
 0x289   : > { %v2292_v30 = vadd.f32 %v5879_v46, %v2291_v41 }
 0x28a   : > { %v2464_v43 = vpack.c.bf16 %v2300_v40, %v2297_v39 }
 0x28b   : > { %v2463_v44 = vpack.c.bf16 %v2292_v30, %v2289_v42 }
 0x28d   : > { %v4933_v45 = vpop.f32.mrb[100].mxu1  ;;  %5071 = vmatprep.mubr.bf16.mxu0 %v2463_v44 }
 0x28e   : > { %v2304_v47 = vpop.f32.mrb[101].mxu1  ;;  %5072 = vmatmul.mubr.bf16.gmra.mrb[224].mxu0 %v2464_v43  ;;  %v2313_v49 = vadd.f32 %v4933_v45, %v5879_v46 }
 0x28f   : > { %v4934_v48 = vpop.f32.mrb[102].mxu1  ;;  %v2305_v58 = vadd.f32 %v5879_v46, %v2304_v47 }
 0x290   : > { %v2316_v51 = vadd.f32 %v4934_v48, %v5879_v46  ;;  %v2307_v52 = vpop.f32.mrb[103].mxu1 }
 0x291   : > { %v2308_v53 = vadd.f32 %v5879_v46, %v2307_v52 }
 0x292   : > { %v2466_v16 = vpack.c.bf16 %v2316_v51, %v2313_v49 }
 0x293   : > { %v2465_v54 = vpack.c.bf16 %v2308_v53, %v2305_v58 }
 0x295   : > { %v4937_v55 = vpop.f32.mrb[104].mxu1  ;;  %5075 = vmatprep.mubr.bf16.mxu0 %v2465_v54 }
 0x296   : > { %v2320_v56 = vpop.f32.mrb[105].mxu1  ;;  %5076 = vmatmul.mubr.bf16.gmra.mrb[228].mxu0 %v2466_v16  ;;  %v2329_v59 = vadd.f32 %v4937_v55, %v5879_v46 }
 0x297   : > { %v4938_v57 = vpop.f32.mrb[106].mxu1  ;;  %v2321_v62 = vadd.f32 %v5879_v46, %v2320_v56 }
 0x298   : > { %v2332_v60 = vadd.f32 %v4938_v57, %v5879_v46  ;;  %v2323_v61 = vpop.f32.mrb[107].mxu1 }
 0x299   : > { %v2324_v63 = vadd.f32 %v5879_v46, %v2323_v61 }
 0x29a   : > { %v2468_v0 = vpack.c.bf16 %v2332_v60, %v2329_v59 }
 0x29b   : > { %v2467_v1 = vpack.c.bf16 %v2324_v63, %v2321_v62 }
 0x29d   : > { %v4941_v2 = vpop.f32.mrb[108].mxu1  ;;  %5079 = vmatprep.mubr.bf16.mxu0 %v2467_v1 }
 0x29e   : > { %v2336_v12 = vpop.f32.mrb[109].mxu1  ;;  %5080 = vmatmul.mubr.bf16.gmra.mrb[232].mxu0 %v2468_v0  ;;  %v2345_v5 = vadd.f32 %v4941_v2, %v5879_v46 }
 0x29f   : > { %v4942_v3 = vpop.f32.mrb[110].mxu1  ;;  %v2337_v8 = vadd.f32 %v5879_v46, %v2336_v12 }
 0x2a0   : > { %v2348_v6 = vadd.f32 %v4942_v3, %v5879_v46  ;;  %v2339_v7 = vpop.f32.mrb[111].mxu1 }
 0x2a1   : > { %v2340_v10 = vadd.f32 %v5879_v46, %v2339_v7  ;;  %v4977_v11 = vpop.f32.mrb[128].mxu0 }
 0x2a2   : > { %v2470_v13 = vpack.c.bf16 %v2348_v6, %v2345_v5  ;;  %v2593_v14 = vadd.f32 %v4977_v11, %v6041_v4  ;;  %v2584_v9 = vpop.f32.mrb[129].mxu0 }
 0x2a3   : > { %v2469_v15 = vpack.c.bf16 %v2340_v10, %v2337_v8  ;;  %v2585_v17 = vadd.f32 %v6041_v4, %v2584_v9  ;;  %v4978_v18 = vpop.f32.mrb[130].mxu0 }
 0x2a4   : > { %v2596_v19 = vadd.f32 %v4978_v18, %v6041_v4  ;;  %v2587_v20 = vpop.f32.mrb[131].mxu0  ;;  %v3097_v23 = vmax.f32 %v2593_v14, 0.0 }
 0x2a5   : > { %v2588_v21 = vadd.f32 %v6041_v4, %v2587_v20  ;;  %v4945_v22 = vpop.f32.mrb[112].mxu1  ;;  %5083 = vmatprep.mubr.bf16.mxu0 %v2469_v15  ;;  %v3095_v26 = vmax.f32 %v2585_v17, 0.0 }
 0x2a6   : > { %v3098_v24 = vmax.f32 %v2596_v19, 0.0  ;;  %v2352_v25 = vpop.f32.mrb[113].mxu1  ;;  %5084 = vmatmul.mubr.bf16.gmra.mrb[236].mxu0 %v2470_v13  ;;  %v2361_v29 = vadd.f32 %v4945_v22, %v5879_v46 }
 0x2a7   : > { %v3096_v27 = vmax.f32 %v2588_v21, 0.0  ;;  %v4946_v36 = vpop.f32.mrb[114].mxu1  ;;  %v2353_v33 = vadd.f32 %v5879_v46, %v2352_v25 }
 0x2a8   : > { %v6051_v28 = vpack.c.bf16 %v3098_v24, %v3097_v23  ;;  %v2364_v31 = vadd.f32 %v4946_v36, %v5879_v46  ;;  %v2355_v50 = vpop.f32.mrb[115].mxu1 }
 0x2a9   : > { %v6055_v32 = vpack.c.bf16 %v3096_v27, %v3095_v26  ;;  %v2356_v34 = vadd.f32 %v5879_v46, %v2355_v50  ;;  %v4981_v35 = vpop.f32.mrb[132].mxu0 }
 0x2aa   : > { %v2472_v37 = vpack.c.bf16 %v2364_v31, %v2361_v29  ;;  %v2609_v38 = vadd.f32 %v4981_v35, %v6041_v4  ;;  %v2600_v39 = vpop.f32.mrb[133].mxu0 }
 0x2ab   : > { %v2471_v40 = vpack.c.bf16 %v2356_v34, %v2353_v33  ;;  %v2601_v41 = vadd.f32 %v6041_v4, %v2600_v39  ;;  %v4982_v42 = vpop.f32.mrb[134].mxu0 }
 0x2ac   : > { %v2612_v30 = vadd.f32 %v4982_v42, %v6041_v4  ;;  %v2603_v43 = vpop.f32.mrb[135].mxu0  ;;  %v3101_v47 = vmax.f32 %v2609_v38, 0.0 }
 0x2ad   : > { %v2604_v44 = vadd.f32 %v6041_v4, %v2603_v43  ;;  %v4949_v45 = vpop.f32.mrb[116].mxu1  ;;  %5087 = vmatprep.mubr.bf16.mxu0 %v2471_v40  ;;  %v3099_v51 = vmax.f32 %v2601_v41, 0.0  ;;  %v5313_v41 = vld [vmem:[%s6351_s4] ss:$0 sm:$0xff] }
 0x2ae   : > { %v3102_v48 = vmax.f32 %v2612_v30, 0.0  ;;  %v2368_v49 = vpop.f32.mrb[117].mxu1  ;;  %5088 = vmatmul.mubr.bf16.gmra.mrb[240].mxu0 %v2472_v37  ;;  %v2377_v16 = vadd.f32 %v4949_v45, %v5879_v46 }
 0x2af   : > { %v3100_v52 = vmax.f32 %v2604_v44, 0.0  ;;  %v4950_v58 = vpop.f32.mrb[118].mxu1  ;;  %v2369_v57 = vadd.f32 %v5879_v46, %v2368_v49 }
 0x2b0   : > { %v3226_v53 = vpack.c.bf16 %v3102_v48, %v3101_v47  ;;  %v2380_v54 = vadd.f32 %v4950_v58, %v5879_v46  ;;  %v2371_v55 = vpop.f32.mrb[119].mxu1 }
 0x2b1   : > { %v3225_v56 = vpack.c.bf16 %v3100_v52, %v3099_v51  ;;  %v2372_v59 = vadd.f32 %v5879_v46, %v2371_v55  ;;  %v4985_v60 = vpop.f32.mrb[136].mxu0 }
 0x2b2   : > { %v2474_v61 = vpack.c.bf16 %v2380_v54, %v2377_v16  ;;  %v2625_v62 = vadd.f32 %v4985_v60, %v6041_v4  ;;  %v2616_v63 = vpop.f32.mrb[137].mxu0 }
 0x2b3   : > { %v2473_v0 = vpack.c.bf16 %v2372_v59, %v2369_v57  ;;  %v2617_v1 = vadd.f32 %v6041_v4, %v2616_v63  ;;  %v4986_v2 = vpop.f32.mrb[138].mxu0  ;;  %5123 = vmatprep.mubr.bf16.mxu1 %v3225_v56 }
 0x2b4   : > { %v2628_v12 = vadd.f32 %v4986_v2, %v6041_v4  ;;  %v2619_v3 = vpop.f32.mrb[139].mxu0  ;;  %5124 = vmatmul.mubr.bf16.vlgmr.msra.gmra.mrb[128].mxu1 %v3226_v53  ;;  %v3105_v7 = vmax.f32 %v2625_v62, 0.0 }
 0x2b5   : > { %v2620_v5 = vadd.f32 %v6041_v4, %v2619_v3  ;;  %v4953_v6 = vpop.f32.mrb[120].mxu1  ;;  %5091 = vmatprep.mubr.bf16.mxu0 %v2473_v0  ;;  %v3103_v11 = vmax.f32 %v2617_v1, 0.0 }
 0x2b6   : > { %v3106_v8 = vmax.f32 %v2628_v12, 0.0  ;;  %v2384_v10 = vpop.f32.mrb[121].mxu1  ;;  %5092 = vmatmul.mubr.bf16.gmra.mrb[244].mxu0 %v2474_v61  ;;  %v2393_v15 = vadd.f32 %v4953_v6, %v5879_v46 }
 0x2b7   : > { %v3104_v13 = vmax.f32 %v2620_v5, 0.0  ;;  %v4954_v14 = vpop.f32.mrb[122].mxu1  ;;  %v2385_v20 = vadd.f32 %v5879_v46, %v2384_v10 }
 0x2b8   : > { %v3228_v9 = vpack.c.bf16 %v3106_v8, %v3105_v7  ;;  %v2396_v17 = vadd.f32 %v4954_v14, %v5879_v46  ;;  %v2387_v18 = vpop.f32.mrb[123].mxu1 }
 0x2b9   : > { %v3227_v19 = vpack.c.bf16 %v3104_v13, %v3103_v11  ;;  %v2388_v21 = vadd.f32 %v5879_v46, %v2387_v18  ;;  %v4989_v22 = vpop.f32.mrb[140].mxu0 }
 0x2ba   : > { %v2476_v23 = vpack.c.bf16 %v2396_v17, %v2393_v15  ;;  %v2641_v24 = vadd.f32 %v4989_v22, %v6041_v4  ;;  %v2632_v25 = vpop.f32.mrb[141].mxu0 }
 0x2bb   : > { %v2475_v26 = vpack.c.bf16 %v2388_v21, %v2385_v20  ;;  %v2633_v27 = vadd.f32 %v6041_v4, %v2632_v25  ;;  %v4990_v36 = vpop.f32.mrb[142].mxu0  ;;  %5127 = vmatprep.mubr.bf16.mxu1 %v3227_v19 }
 0x2bc   : > { %v2644_v29 = vadd.f32 %v4990_v36, %v6041_v4  ;;  %v2635_v31 = vpop.f32.mrb[143].mxu0  ;;  %5128 = vmatmul.mubr.bf16.gmra.mrb[132].mxu1 %v3228_v9  ;;  %v3109_v34 = vmax.f32 %v2641_v24, 0.0 }
 0x2bd   : > { %v2636_v50 = vadd.f32 %v6041_v4, %v2635_v31  ;;  %v4957_v33 = vpop.f32.mrb[124].mxu1  ;;  %5095 = vmatprep.mubr.bf16.mxu0 %v2475_v26  ;;  %v3107_v37 = vmax.f32 %v2633_v27, 0.0 }
 0x2be   : > { %v3110_v46 = vmax.f32 %v2644_v29, 0.0  ;;  %v2400_v35 = vpop.f32.mrb[125].mxu1  ;;  %5096 = vmatmul.mubr.bf16.gmra.mrb[248].mxu0 %v2476_v23  ;;  %v2409_v42 = vadd.f32 %v5313_v41, %v4957_v33 }
 0x2bf   : > { %v3108_v38 = vmax.f32 %v2636_v50, 0.0  ;;  %v4958_v39 = vpop.f32.mrb[126].mxu1  ;;  %v2401_v45 = vadd.f32 %v5313_v41, %v2400_v35 }
 0x2c0   : > { %v3230_v40 = vpack.c.bf16 %v3110_v46, %v3109_v34  ;;  %v2412_v30 = vadd.f32 %v5313_v41, %v4958_v39  ;;  %v2403_v43 = vpop.f32.mrb[127].mxu1 }
 0x2c1   : > { %v3229_v44 = vpack.c.bf16 %v3108_v38, %v3107_v37  ;;  %v2404_v47 = vadd.f32 %v5313_v41, %v2403_v43  ;;  %v4993_v48 = vpop.f32.mrb[144].mxu0 }
 0x2c2   : > { %v2478_v49 = vpack.c.bf16 %v2412_v30, %v2409_v42  ;;  %v2657_v51 = vadd.f32 %v4993_v48, %v6041_v4  ;;  %v2648_v52 = vpop.f32.mrb[145].mxu0 }
 0x2c3   : > { %v2477_v58 = vpack.c.bf16 %v2404_v47, %v2401_v45  ;;  %v2649_v53 = vadd.f32 %v6041_v4, %v2648_v52  ;;  %v4994_v16 = vpop.f32.mrb[146].mxu0  ;;  %5131 = vmatprep.mubr.bf16.mxu1 %v3229_v44 }
 0x2c4   : > { %v2660_v54 = vadd.f32 %v4994_v16, %v6041_v4  ;;  %v2651_v55 = vpop.f32.mrb[147].mxu0  ;;  %5132 = vmatmul.mubr.bf16.gmra.mrb[136].mxu1 %v3230_v40  ;;  %v3113_v57 = vmax.f32 %v2657_v51, 0.0 }
 0x2c5   : > { %v2652_v56 = vadd.f32 %v6041_v4, %v2651_v55  ;;  %5099 = vmatprep.mubr.bf16.mxu0 %v2477_v58  ;;  %v3111_v60 = vmax.f32 %v2649_v53, 0.0 }
 0x2c6   : > { %v3114_v59 = vmax.f32 %v2660_v54, 0.0  ;;  %5100 = vmatmul.mubr.bf16.gmra.mrb[252].mxu0 %v2478_v49 }
 0x2c7   : > { %v3112_v61 = vmax.f32 %v2652_v56, 0.0  ;;  %5119 = vmatprep.mubr.bf16.mxu0 %v6055_v32 }
 0x2c8   : > { %v3232_v62 = vpack.c.bf16 %v3114_v59, %v3113_v57 }
 0x2c9   : > { %v3231_v63 = vpack.c.bf16 %v3112_v61, %v3111_v60  ;;  %v4997_v0 = vpop.f32.mrb[148].mxu0 }
 0x2ca   : > { %v2673_v1 = vadd.f32 %v4997_v0, %v6041_v4  ;;  %v2664_v2 = vpop.f32.mrb[149].mxu0 }
 0x2cb   : > { %v2665_v12 = vadd.f32 %v6041_v4, %v2664_v2  ;;  %v4998_v3 = vpop.f32.mrb[150].mxu0  ;;  %5135 = vmatprep.mubr.bf16.mxu1 %v3231_v63 }
 0x2cc   : > { %v2676_v5 = vadd.f32 %v4998_v3, %v6041_v4  ;;  %v2667_v6 = vpop.f32.mrb[151].mxu0  ;;  %5136 = vmatmul.mubr.bf16.gmra.mrb[140].mxu1 %v3232_v62  ;;  %v3117_v8 = vmax.f32 %v2673_v1, 0.0 }
 0x2cd   : > { %v2668_v7 = vadd.f32 %v6041_v4, %v2667_v6  ;;  %v3115_v32 = vmax.f32 %v2665_v12, 0.0 }
 0x2ce   : > { %v3118_v10 = vmax.f32 %v2676_v5, 0.0  ;;  %5120 = vmatmul.mubr.bf16.vlgmr.msra.gmra.mrb[0].mxu0 %v6051_v28 }
 0x2cf   : > { %v3116_v11 = vmax.f32 %v2668_v7, 0.0 }
 0x2d0   : > { %v3234_v13 = vpack.c.bf16 %v3118_v10, %v3117_v8 }
 0x2d1   : > { %v3233_v14 = vpack.c.bf16 %v3116_v11, %v3115_v32  ;;  %v5001_v9 = vpop.f32.mrb[152].mxu0 }
 0x2d2   : > { %v2689_v15 = vadd.f32 %v5001_v9, %v6041_v4  ;;  %v2680_v17 = vpop.f32.mrb[153].mxu0 }
 0x2d3   : > { %v2681_v18 = vadd.f32 %v6041_v4, %v2680_v17  ;;  %v5002_v19 = vpop.f32.mrb[154].mxu0  ;;  %5139 = vmatprep.mubr.bf16.mxu1 %v3233_v14 }
 0x2d4   : > { %v2692_v20 = vadd.f32 %v5002_v19, %v6041_v4  ;;  %v2683_v21 = vpop.f32.mrb[155].mxu0  ;;  %5140 = vmatmul.mubr.bf16.gmra.mrb[144].mxu1 %v3234_v13  ;;  %v3121_v23 = vmax.f32 %v2689_v15, 0.0 }
 0x2d5   : > { %v2684_v22 = vadd.f32 %v6041_v4, %v2683_v21  ;;  %v3119_v24 = vmax.f32 %v2681_v18, 0.0 }
 0x2d6   : > { %v3122_v28 = vmax.f32 %v2692_v20, 0.0 }
 0x2d7   : > { %v3120_v25 = vmax.f32 %v2684_v22, 0.0 }
 0x2d8   : > { %v3236_v26 = vpack.c.bf16 %v3122_v28, %v3121_v23 }
 0x2d9   : > { %v3235_v27 = vpack.c.bf16 %v3120_v25, %v3119_v24  ;;  %v5005_v36 = vpop.f32.mrb[156].mxu0 }
 0x2da   : > { %v2705_v29 = vadd.f32 %v5005_v36, %v6041_v4  ;;  %v2696_v31 = vpop.f32.mrb[157].mxu0 }
 0x2db   : > { %v2697_v50 = vadd.f32 %v6041_v4, %v2696_v31  ;;  %v5006_v33 = vpop.f32.mrb[158].mxu0  ;;  %5143 = vmatprep.mubr.bf16.mxu1 %v3235_v27 }
 0x2dc   : > { %v2708_v34 = vadd.f32 %v5006_v33, %v6041_v4  ;;  %v2699_v46 = vpop.f32.mrb[159].mxu0  ;;  %5144 = vmatmul.mubr.bf16.gmra.mrb[148].mxu1 %v3236_v26  ;;  %v3125_v37 = vmax.f32 %v2705_v29, 0.0 }
 0x2dd   : > { %v2700_v35 = vadd.f32 %v6041_v4, %v2699_v46  ;;  %v3123_v39 = vmax.f32 %v2697_v50, 0.0 }
 0x2de   : > { %v3126_v38 = vmax.f32 %v2708_v34, 0.0 }
 0x2df   : > { %v3124_v40 = vmax.f32 %v2700_v35, 0.0 }
 0x2e0   : > { %v3238_v41 = vpack.c.bf16 %v3126_v38, %v3125_v37 }
 0x2e1   : > { %v3237_v42 = vpack.c.bf16 %v3124_v40, %v3123_v39  ;;  %v5009_v30 = vpop.f32.mrb[160].mxu0 }
 0x2e2   : > { %v2721_v43 = vadd.f32 %v5009_v30, %v6041_v4  ;;  %v2712_v44 = vpop.f32.mrb[161].mxu0 }
 0x2e3   : > { %v2713_v45 = vadd.f32 %v6041_v4, %v2712_v44  ;;  %v5010_v47 = vpop.f32.mrb[162].mxu0  ;;  %5147 = vmatprep.mubr.bf16.mxu1 %v3237_v42 }
 0x2e4   : > { %v2724_v48 = vadd.f32 %v5010_v47, %v6041_v4  ;;  %v2715_v49 = vpop.f32.mrb[163].mxu0  ;;  %5148 = vmatmul.mubr.bf16.gmra.mrb[152].mxu1 %v3238_v41  ;;  %v3129_v52 = vmax.f32 %v2721_v43, 0.0 }
 0x2e5   : > { %v2716_v51 = vadd.f32 %v6041_v4, %v2715_v49  ;;  %v3127_v53 = vmax.f32 %v2713_v45, 0.0 }
 0x2e6   : > { %v3130_v58 = vmax.f32 %v2724_v48, 0.0 }
 0x2e7   : > { %v3128_v16 = vmax.f32 %v2716_v51, 0.0 }
 0x2e8   : > { %v3240_v54 = vpack.c.bf16 %v3130_v58, %v3129_v52 }
 0x2e9   : > { %v3239_v55 = vpack.c.bf16 %v3128_v16, %v3127_v53  ;;  %v5013_v56 = vpop.f32.mrb[164].mxu0 }
 0x2ea   : > { %v2737_v57 = vadd.f32 %v5013_v56, %v6041_v4  ;;  %v2728_v59 = vpop.f32.mrb[165].mxu0 }
 0x2eb   : > { %v2729_v60 = vadd.f32 %v6041_v4, %v2728_v59  ;;  %v5014_v61 = vpop.f32.mrb[166].mxu0  ;;  %5151 = vmatprep.mubr.bf16.mxu1 %v3239_v55 }
 0x2ec   : > { %v2740_v62 = vadd.f32 %v5014_v61, %v6041_v4  ;;  %v2731_v63 = vpop.f32.mrb[167].mxu0  ;;  %5152 = vmatmul.mubr.bf16.gmra.mrb[156].mxu1 %v3240_v54  ;;  %v3133_v1 = vmax.f32 %v2737_v57, 0.0 }
 0x2ed   : > { %v2732_v0 = vadd.f32 %v6041_v4, %v2731_v63  ;;  %v3131_v12 = vmax.f32 %v2729_v60, 0.0 }
 0x2ee   : > { %v3134_v2 = vmax.f32 %v2740_v62, 0.0 }
 0x2ef   : > { %v3132_v3 = vmax.f32 %v2732_v0, 0.0 }
 0x2f0   : > { %v3242_v5 = vpack.c.bf16 %v3134_v2, %v3133_v1 }
 0x2f1   : > { %v3241_v6 = vpack.c.bf16 %v3132_v3, %v3131_v12  ;;  %v5017_v7 = vpop.f32.mrb[168].mxu0 }
 0x2f2   : > { %v2753_v8 = vadd.f32 %v5017_v7, %v6041_v4  ;;  %v2744_v10 = vpop.f32.mrb[169].mxu0 }
 0x2f3   : > { %v2745_v32 = vadd.f32 %v6041_v4, %v2744_v10  ;;  %v5018_v11 = vpop.f32.mrb[170].mxu0  ;;  %5155 = vmatprep.mubr.bf16.mxu1 %v3241_v6 }
 0x2f4   : > { %v2756_v13 = vadd.f32 %v5018_v11, %v6041_v4  ;;  %v2747_v14 = vpop.f32.mrb[171].mxu0  ;;  %5156 = vmatmul.mubr.bf16.gmra.mrb[160].mxu1 %v3242_v5  ;;  %v3137_v15 = vmax.f32 %v2753_v8, 0.0 }
 0x2f5   : > { %v2748_v9 = vadd.f32 %v6041_v4, %v2747_v14  ;;  %v3135_v18 = vmax.f32 %v2745_v32, 0.0 }
 0x2f6   : > { %v3138_v17 = vmax.f32 %v2756_v13, 0.0 }
 0x2f7   : > { %v3136_v19 = vmax.f32 %v2748_v9, 0.0 }
 0x2f8   : > { %v3244_v20 = vpack.c.bf16 %v3138_v17, %v3137_v15 }
 0x2f9   : > { %v3243_v21 = vpack.c.bf16 %v3136_v19, %v3135_v18  ;;  %v5021_v22 = vpop.f32.mrb[172].mxu0 }
 0x2fa   : > { %v2769_v23 = vadd.f32 %v5021_v22, %v6041_v4  ;;  %v2760_v28 = vpop.f32.mrb[173].mxu0 }
 0x2fb   : > { %v2761_v24 = vadd.f32 %v6041_v4, %v2760_v28  ;;  %v5022_v25 = vpop.f32.mrb[174].mxu0  ;;  %5159 = vmatprep.mubr.bf16.mxu1 %v3243_v21 }
 0x2fc   : > { %v2772_v26 = vadd.f32 %v5022_v25, %v6041_v4  ;;  %v2763_v27 = vpop.f32.mrb[175].mxu0  ;;  %5160 = vmatmul.mubr.bf16.gmra.mrb[164].mxu1 %v3244_v20  ;;  %v3141_v29 = vmax.f32 %v2769_v23, 0.0 }
 0x2fd   : > { %v2764_v36 = vadd.f32 %v6041_v4, %v2763_v27  ;;  %v3139_v50 = vmax.f32 %v2761_v24, 0.0 }
 0x2fe   : > { %v3142_v31 = vmax.f32 %v2772_v26, 0.0 }
 0x2ff   : > { %v3140_v33 = vmax.f32 %v2764_v36, 0.0 }
 0x300   : > { %v3246_v34 = vpack.c.bf16 %v3142_v31, %v3141_v29 }
 0x301   : > { %v3245_v46 = vpack.c.bf16 %v3140_v33, %v3139_v50  ;;  %v5025_v35 = vpop.f32.mrb[176].mxu0 }
 0x302   : > { %v2785_v37 = vadd.f32 %v5025_v35, %v6041_v4  ;;  %v2776_v38 = vpop.f32.mrb[177].mxu0 }
 0x303   : > { %v2777_v39 = vadd.f32 %v6041_v4, %v2776_v38  ;;  %v5026_v40 = vpop.f32.mrb[178].mxu0  ;;  %5163 = vmatprep.mubr.bf16.mxu1 %v3245_v46 }
 0x304   : > { %v2788_v41 = vadd.f32 %v5026_v40, %v6041_v4  ;;  %v2779_v42 = vpop.f32.mrb[179].mxu0  ;;  %5164 = vmatmul.mubr.bf16.gmra.mrb[168].mxu1 %v3246_v34  ;;  %v3145_v43 = vmax.f32 %v2785_v37, 0.0 }
 0x305   : > { %v2780_v30 = vadd.f32 %v6041_v4, %v2779_v42  ;;  %v3143_v45 = vmax.f32 %v2777_v39, 0.0 }
 0x306   : > { %v3146_v44 = vmax.f32 %v2788_v41, 0.0 }
 0x307   : > { %v3144_v47 = vmax.f32 %v2780_v30, 0.0 }
 0x308   : > { %v3248_v48 = vpack.c.bf16 %v3146_v44, %v3145_v43 }
 0x309   : > { %v3247_v49 = vpack.c.bf16 %v3144_v47, %v3143_v45  ;;  %v5029_v51 = vpop.f32.mrb[180].mxu0 }
 0x30a   : > { %v2801_v52 = vadd.f32 %v5029_v51, %v6041_v4  ;;  %v2792_v58 = vpop.f32.mrb[181].mxu0 }
 0x30b   : > { %v2793_v53 = vadd.f32 %v6041_v4, %v2792_v58  ;;  %v5030_v16 = vpop.f32.mrb[182].mxu0  ;;  %5167 = vmatprep.mubr.bf16.mxu1 %v3247_v49 }
 0x30c   : > { %v2804_v54 = vadd.f32 %v5030_v16, %v6041_v4  ;;  %v2795_v55 = vpop.f32.mrb[183].mxu0  ;;  %5168 = vmatmul.mubr.bf16.gmra.mrb[172].mxu1 %v3248_v48  ;;  %v3149_v57 = vmax.f32 %v2801_v52, 0.0 }
 0x30d   : > { %v2796_v56 = vadd.f32 %v6041_v4, %v2795_v55  ;;  %v3147_v60 = vmax.f32 %v2793_v53, 0.0 }
 0x30e   : > { %v3150_v59 = vmax.f32 %v2804_v54, 0.0 }
 0x30f   : > { %v3148_v61 = vmax.f32 %v2796_v56, 0.0 }
 0x310   : > { %v3250_v62 = vpack.c.bf16 %v3150_v59, %v3149_v57 }
 0x311   : > { %v3249_v63 = vpack.c.bf16 %v3148_v61, %v3147_v60  ;;  %v5033_v0 = vpop.f32.mrb[184].mxu0 }
 0x312   : > { %v2817_v1 = vadd.f32 %v5033_v0, %v6041_v4  ;;  %v2808_v2 = vpop.f32.mrb[185].mxu0 }
 0x313   : > { %v2809_v12 = vadd.f32 %v6041_v4, %v2808_v2  ;;  %v5034_v3 = vpop.f32.mrb[186].mxu0  ;;  %5171 = vmatprep.mubr.bf16.mxu1 %v3249_v63 }
 0x314   : > { %v2820_v5 = vadd.f32 %v5034_v3, %v6041_v4  ;;  %v2811_v6 = vpop.f32.mrb[187].mxu0  ;;  %5172 = vmatmul.mubr.bf16.gmra.mrb[176].mxu1 %v3250_v62  ;;  %v3153_v8 = vmax.f32 %v2817_v1, 0.0 }
 0x315   : > { %v2812_v7 = vadd.f32 %v6041_v4, %v2811_v6  ;;  %v3151_v32 = vmax.f32 %v2809_v12, 0.0 }
 0x316   : > { %v3154_v10 = vmax.f32 %v2820_v5, 0.0 }
 0x317   : > { %v3152_v11 = vmax.f32 %v2812_v7, 0.0 }
 0x318   : > { %v3252_v13 = vpack.c.bf16 %v3154_v10, %v3153_v8 }
 0x319   : > { %v3251_v14 = vpack.c.bf16 %v3152_v11, %v3151_v32  ;;  %v5037_v9 = vpop.f32.mrb[188].mxu0 }
 0x31a   : > { %v2833_v15 = vadd.f32 %v5037_v9, %v6041_v4  ;;  %v2824_v17 = vpop.f32.mrb[189].mxu0 }
 0x31b   : > { %v2825_v18 = vadd.f32 %v6041_v4, %v2824_v17  ;;  %v5038_v19 = vpop.f32.mrb[190].mxu0  ;;  %5175 = vmatprep.mubr.bf16.mxu1 %v3251_v14 }
 0x31c   : > { %v2836_v20 = vadd.f32 %v5038_v19, %v6041_v4  ;;  %v2827_v21 = vpop.f32.mrb[191].mxu0  ;;  %5176 = vmatmul.mubr.bf16.gmra.mrb[180].mxu1 %v3252_v13  ;;  %v3157_v23 = vmax.f32 %v2833_v15, 0.0 }
 0x31d   : > { %v2828_v22 = vadd.f32 %v6041_v4, %v2827_v21  ;;  %v3155_v24 = vmax.f32 %v2825_v18, 0.0 }
 0x31e   : > { %v3158_v28 = vmax.f32 %v2836_v20, 0.0 }
 0x31f   : > { %v3156_v25 = vmax.f32 %v2828_v22, 0.0 }
 0x320   : > { %v3254_v26 = vpack.c.bf16 %v3158_v28, %v3157_v23 }
 0x321   : > { %v3253_v27 = vpack.c.bf16 %v3156_v25, %v3155_v24  ;;  %v5041_v36 = vpop.f32.mrb[192].mxu0 }
 0x322   : > { %v2849_v29 = vadd.f32 %v5041_v36, %v6041_v4  ;;  %v2840_v31 = vpop.f32.mrb[193].mxu0 }
 0x323   : > { %v2841_v50 = vadd.f32 %v6041_v4, %v2840_v31  ;;  %v5042_v33 = vpop.f32.mrb[194].mxu0  ;;  %5179 = vmatprep.mubr.bf16.mxu1 %v3253_v27 }
 0x324   : > { %v2852_v34 = vadd.f32 %v5042_v33, %v6041_v4  ;;  %v2843_v46 = vpop.f32.mrb[195].mxu0  ;;  %5180 = vmatmul.mubr.bf16.gmra.mrb[184].mxu1 %v3254_v26  ;;  %v3161_v37 = vmax.f32 %v2849_v29, 0.0 }
 0x325   : > { %v2844_v35 = vadd.f32 %v6041_v4, %v2843_v46  ;;  %v3159_v39 = vmax.f32 %v2841_v50, 0.0 }
 0x326   : > { %v3162_v38 = vmax.f32 %v2852_v34, 0.0 }
 0x327   : > { %v3160_v40 = vmax.f32 %v2844_v35, 0.0 }
 0x328   : > { %v3256_v41 = vpack.c.bf16 %v3162_v38, %v3161_v37 }
 0x329   : > { %v3255_v42 = vpack.c.bf16 %v3160_v40, %v3159_v39  ;;  %v5045_v30 = vpop.f32.mrb[196].mxu0 }
 0x32a   : > { %v2865_v43 = vadd.f32 %v5045_v30, %v6041_v4  ;;  %v2856_v44 = vpop.f32.mrb[197].mxu0 }
 0x32b   : > { %v2857_v45 = vadd.f32 %v6041_v4, %v2856_v44  ;;  %v5046_v47 = vpop.f32.mrb[198].mxu0  ;;  %5183 = vmatprep.mubr.bf16.mxu1 %v3255_v42 }
 0x32c   : > { %v2868_v48 = vadd.f32 %v5046_v47, %v6041_v4  ;;  %v2859_v49 = vpop.f32.mrb[199].mxu0  ;;  %5184 = vmatmul.mubr.bf16.gmra.mrb[188].mxu1 %v3256_v41  ;;  %v3165_v52 = vmax.f32 %v2865_v43, 0.0 }
 0x32d   : > { %v2860_v51 = vadd.f32 %v6041_v4, %v2859_v49  ;;  %v3163_v53 = vmax.f32 %v2857_v45, 0.0 }
 0x32e   : > { %v3166_v58 = vmax.f32 %v2868_v48, 0.0 }
 0x32f   : > { %v3164_v16 = vmax.f32 %v2860_v51, 0.0 }
 0x330   : > { %v3258_v54 = vpack.c.bf16 %v3166_v58, %v3165_v52 }
 0x331   : > { %v3257_v55 = vpack.c.bf16 %v3164_v16, %v3163_v53  ;;  %v5049_v56 = vpop.f32.mrb[200].mxu0 }
 0x332   : > { %v2881_v57 = vadd.f32 %v5049_v56, %v6041_v4  ;;  %v2872_v59 = vpop.f32.mrb[201].mxu0 }
 0x333   : > { %v2873_v60 = vadd.f32 %v6041_v4, %v2872_v59  ;;  %v5050_v61 = vpop.f32.mrb[202].mxu0  ;;  %5187 = vmatprep.mubr.bf16.mxu1 %v3257_v55 }
 0x334   : > { %v2884_v62 = vadd.f32 %v5050_v61, %v6041_v4  ;;  %v2875_v63 = vpop.f32.mrb[203].mxu0  ;;  %5188 = vmatmul.mubr.bf16.gmra.mrb[192].mxu1 %v3258_v54  ;;  %v3169_v1 = vmax.f32 %v2881_v57, 0.0 }
 0x335   : > { %v2876_v0 = vadd.f32 %v6041_v4, %v2875_v63  ;;  %v3167_v12 = vmax.f32 %v2873_v60, 0.0 }
 0x336   : > { %v3170_v2 = vmax.f32 %v2884_v62, 0.0 }
 0x337   : > { %v3168_v3 = vmax.f32 %v2876_v0, 0.0 }
 0x338   : > { %v3260_v5 = vpack.c.bf16 %v3170_v2, %v3169_v1 }
 0x339   : > { %v3259_v6 = vpack.c.bf16 %v3168_v3, %v3167_v12  ;;  %v5053_v7 = vpop.f32.mrb[204].mxu0 }
 0x33a   : > { %v2897_v8 = vadd.f32 %v5053_v7, %v6041_v4  ;;  %v2888_v10 = vpop.f32.mrb[205].mxu0 }
 0x33b   : > { %v2889_v32 = vadd.f32 %v6041_v4, %v2888_v10  ;;  %v5054_v11 = vpop.f32.mrb[206].mxu0  ;;  %5191 = vmatprep.mubr.bf16.mxu1 %v3259_v6 }
 0x33c   : > { %v2900_v13 = vadd.f32 %v5054_v11, %v6041_v4  ;;  %v2891_v14 = vpop.f32.mrb[207].mxu0  ;;  %5192 = vmatmul.mubr.bf16.gmra.mrb[196].mxu1 %v3260_v5  ;;  %v3173_v15 = vmax.f32 %v2897_v8, 0.0 }
 0x33d   : > { %v2892_v9 = vadd.f32 %v6041_v4, %v2891_v14  ;;  %v3171_v18 = vmax.f32 %v2889_v32, 0.0 }
 0x33e   : > { %v3174_v17 = vmax.f32 %v2900_v13, 0.0 }
 0x33f   : > { %v3172_v19 = vmax.f32 %v2892_v9, 0.0 }
 0x340   : > { %v3262_v20 = vpack.c.bf16 %v3174_v17, %v3173_v15 }
 0x341   : > { %v3261_v21 = vpack.c.bf16 %v3172_v19, %v3171_v18  ;;  %v5057_v22 = vpop.f32.mrb[208].mxu0 }
 0x342   : > { %v2913_v23 = vadd.f32 %v5057_v22, %v6041_v4  ;;  %v2904_v28 = vpop.f32.mrb[209].mxu0 }
 0x343   : > { %v2905_v24 = vadd.f32 %v6041_v4, %v2904_v28  ;;  %v5058_v25 = vpop.f32.mrb[210].mxu0  ;;  %5195 = vmatprep.mubr.bf16.mxu1 %v3261_v21 }
 0x344   : > { %v2916_v26 = vadd.f32 %v5058_v25, %v6041_v4  ;;  %v2907_v27 = vpop.f32.mrb[211].mxu0  ;;  %5196 = vmatmul.mubr.bf16.gmra.mrb[200].mxu1 %v3262_v20  ;;  %v3177_v29 = vmax.f32 %v2913_v23, 0.0 }
 0x345   : > { %v2908_v36 = vadd.f32 %v6041_v4, %v2907_v27  ;;  %v3175_v50 = vmax.f32 %v2905_v24, 0.0 }
 0x346   : > { %v3178_v31 = vmax.f32 %v2916_v26, 0.0 }
 0x347   : > { %v3176_v33 = vmax.f32 %v2908_v36, 0.0 }
 0x348   : > { %v3264_v34 = vpack.c.bf16 %v3178_v31, %v3177_v29 }
 0x349   : > { %v3263_v46 = vpack.c.bf16 %v3176_v33, %v3175_v50  ;;  %v5061_v35 = vpop.f32.mrb[212].mxu0 }
 0x34a   : > { %v2929_v37 = vadd.f32 %v5061_v35, %v6041_v4  ;;  %v2920_v38 = vpop.f32.mrb[213].mxu0 }
 0x34b   : > { %v2921_v39 = vadd.f32 %v6041_v4, %v2920_v38  ;;  %v5062_v40 = vpop.f32.mrb[214].mxu0  ;;  %5199 = vmatprep.mubr.bf16.mxu1 %v3263_v46 }
 0x34c   : > { %v2932_v41 = vadd.f32 %v5062_v40, %v6041_v4  ;;  %v2923_v42 = vpop.f32.mrb[215].mxu0  ;;  %5200 = vmatmul.mubr.bf16.gmra.mrb[204].mxu1 %v3264_v34  ;;  %v3181_v43 = vmax.f32 %v2929_v37, 0.0 }
 0x34d   : > { %v2924_v30 = vadd.f32 %v6041_v4, %v2923_v42  ;;  %v3179_v45 = vmax.f32 %v2921_v39, 0.0 }
 0x34e   : > { %v3182_v44 = vmax.f32 %v2932_v41, 0.0 }
 0x34f   : > { %v3180_v47 = vmax.f32 %v2924_v30, 0.0 }
 0x350   : > { %v3266_v48 = vpack.c.bf16 %v3182_v44, %v3181_v43 }
 0x351   : > { %v3265_v49 = vpack.c.bf16 %v3180_v47, %v3179_v45  ;;  %v5065_v51 = vpop.f32.mrb[216].mxu0 }
 0x352   : > { %v2945_v52 = vadd.f32 %v5065_v51, %v6041_v4  ;;  %v2936_v58 = vpop.f32.mrb[217].mxu0 }
 0x353   : > { %v2937_v53 = vadd.f32 %v6041_v4, %v2936_v58  ;;  %v5066_v16 = vpop.f32.mrb[218].mxu0  ;;  %5203 = vmatprep.mubr.bf16.mxu1 %v3265_v49 }
 0x354   : > { %v2948_v54 = vadd.f32 %v5066_v16, %v6041_v4  ;;  %v2939_v55 = vpop.f32.mrb[219].mxu0  ;;  %5204 = vmatmul.mubr.bf16.gmra.mrb[208].mxu1 %v3266_v48  ;;  %v3185_v57 = vmax.f32 %v2945_v52, 0.0 }
 0x355   : > { %v2940_v56 = vadd.f32 %v6041_v4, %v2939_v55  ;;  %v3183_v60 = vmax.f32 %v2937_v53, 0.0 }
 0x356   : > { %v3186_v59 = vmax.f32 %v2948_v54, 0.0 }
 0x357   : > { %v3184_v61 = vmax.f32 %v2940_v56, 0.0 }
 0x358   : > { %v3268_v62 = vpack.c.bf16 %v3186_v59, %v3185_v57 }
 0x359   : > { %v3267_v63 = vpack.c.bf16 %v3184_v61, %v3183_v60  ;;  %v5069_v0 = vpop.f32.mrb[220].mxu0 }
 0x35a   : > { %v2961_v1 = vadd.f32 %v5069_v0, %v6041_v4  ;;  %v2952_v2 = vpop.f32.mrb[221].mxu0 }
 0x35b   : > { %v2953_v12 = vadd.f32 %v6041_v4, %v2952_v2  ;;  %v5070_v3 = vpop.f32.mrb[222].mxu0  ;;  %5207 = vmatprep.mubr.bf16.mxu1 %v3267_v63 }
 0x35c   : > { %v2964_v5 = vadd.f32 %v5070_v3, %v6041_v4  ;;  %v2955_v6 = vpop.f32.mrb[223].mxu0  ;;  %5208 = vmatmul.mubr.bf16.gmra.mrb[212].mxu1 %v3268_v62  ;;  %v3189_v8 = vmax.f32 %v2961_v1, 0.0 }
 0x35d   : > { %v2956_v7 = vadd.f32 %v6041_v4, %v2955_v6  ;;  %v3187_v32 = vmax.f32 %v2953_v12, 0.0 }
 0x35e   : > { %v3190_v10 = vmax.f32 %v2964_v5, 0.0 }
 0x35f   : > { %v3188_v11 = vmax.f32 %v2956_v7, 0.0 }
 0x360   : > { %v3270_v13 = vpack.c.bf16 %v3190_v10, %v3189_v8 }
 0x361   : > { %v3269_v14 = vpack.c.bf16 %v3188_v11, %v3187_v32  ;;  %v5073_v9 = vpop.f32.mrb[224].mxu0 }
 0x362   : > { %v2977_v15 = vadd.f32 %v5073_v9, %v6041_v4  ;;  %v2968_v17 = vpop.f32.mrb[225].mxu0  ;;  %v5314_v9 = vld [vmem:[%s6038_s25] ss:$0 sm:$0xff] }
 0x363   : > { %v2969_v18 = vadd.f32 %v6041_v4, %v2968_v17  ;;  %v5074_v19 = vpop.f32.mrb[226].mxu0  ;;  %5211 = vmatprep.mubr.bf16.mxu1 %v3269_v14 }
 0x364   : > { %v2980_v20 = vadd.f32 %v5074_v19, %v6041_v4  ;;  %v2971_v21 = vpop.f32.mrb[227].mxu0  ;;  %5212 = vmatmul.mubr.bf16.gmra.mrb[216].mxu1 %v3270_v13  ;;  %v3193_v23 = vmax.f32 %v2977_v15, 0.0 }
 0x365   : > { %v2972_v22 = vadd.f32 %v6041_v4, %v2971_v21  ;;  %v3191_v24 = vmax.f32 %v2969_v18, 0.0 }
 0x366   : > { %v3194_v28 = vmax.f32 %v2980_v20, 0.0 }
 0x367   : > { %v3192_v25 = vmax.f32 %v2972_v22, 0.0 }
 0x368   : > { %v3272_v26 = vpack.c.bf16 %v3194_v28, %v3193_v23 }
 0x369   : > { %v3271_v27 = vpack.c.bf16 %v3192_v25, %v3191_v24  ;;  %v5077_v36 = vpop.f32.mrb[228].mxu0 }
 0x36a   : > { %v2993_v29 = vadd.f32 %v5077_v36, %v6041_v4  ;;  %v2984_v31 = vpop.f32.mrb[229].mxu0 }
 0x36b   : > { %v2985_v50 = vadd.f32 %v6041_v4, %v2984_v31  ;;  %v5078_v33 = vpop.f32.mrb[230].mxu0  ;;  %5215 = vmatprep.mubr.bf16.mxu1 %v3271_v27 }
 0x36c   : > { %v2996_v34 = vadd.f32 %v5078_v33, %v6041_v4  ;;  %v2987_v46 = vpop.f32.mrb[231].mxu0  ;;  %5216 = vmatmul.mubr.bf16.gmra.mrb[220].mxu1 %v3272_v26  ;;  %v3197_v37 = vmax.f32 %v2993_v29, 0.0 }
 0x36d   : > { %v2988_v35 = vadd.f32 %v6041_v4, %v2987_v46  ;;  %v3195_v39 = vmax.f32 %v2985_v50, 0.0 }
 0x36e   : > { %v3198_v38 = vmax.f32 %v2996_v34, 0.0 }
 0x36f   : > { %v3196_v40 = vmax.f32 %v2988_v35, 0.0 }
 0x370   : > { %v3274_v41 = vpack.c.bf16 %v3198_v38, %v3197_v37 }
 0x371   : > { %v3273_v42 = vpack.c.bf16 %v3196_v40, %v3195_v39  ;;  %v5081_v30 = vpop.f32.mrb[232].mxu0 }
 0x372   : > { %v3009_v43 = vadd.f32 %v5081_v30, %v6041_v4  ;;  %v3000_v44 = vpop.f32.mrb[233].mxu0 }
 0x373   : > { %v3001_v45 = vadd.f32 %v6041_v4, %v3000_v44  ;;  %v5082_v47 = vpop.f32.mrb[234].mxu0  ;;  %5219 = vmatprep.mubr.bf16.mxu1 %v3273_v42 }
 0x374   : > { %v3012_v48 = vadd.f32 %v5082_v47, %v6041_v4  ;;  %v3003_v49 = vpop.f32.mrb[235].mxu0  ;;  %5220 = vmatmul.mubr.bf16.gmra.mrb[224].mxu1 %v3274_v41  ;;  %v3201_v52 = vmax.f32 %v3009_v43, 0.0 }
 0x375   : > { %v3004_v51 = vadd.f32 %v6041_v4, %v3003_v49  ;;  %v3199_v53 = vmax.f32 %v3001_v45, 0.0 }
 0x376   : > { %v3202_v58 = vmax.f32 %v3012_v48, 0.0 }
 0x377   : > { %v3200_v16 = vmax.f32 %v3004_v51, 0.0 }
 0x378   : > { %v3276_v54 = vpack.c.bf16 %v3202_v58, %v3201_v52 }
 0x379   : > { %v3275_v55 = vpack.c.bf16 %v3200_v16, %v3199_v53  ;;  %v5085_v56 = vpop.f32.mrb[236].mxu0 }
 0x37a   : > { %v3025_v57 = vadd.f32 %v5085_v56, %v6041_v4  ;;  %v3016_v59 = vpop.f32.mrb[237].mxu0 }
 0x37b   : > { %v3017_v60 = vadd.f32 %v6041_v4, %v3016_v59  ;;  %v5086_v61 = vpop.f32.mrb[238].mxu0  ;;  %5223 = vmatprep.mubr.bf16.mxu1 %v3275_v55 }
 0x37c   : > { %v3028_v62 = vadd.f32 %v5086_v61, %v6041_v4  ;;  %v3019_v63 = vpop.f32.mrb[239].mxu0  ;;  %5224 = vmatmul.mubr.bf16.gmra.mrb[228].mxu1 %v3276_v54  ;;  %v3205_v1 = vmax.f32 %v3025_v57, 0.0 }
 0x37d   : > { %v3020_v0 = vadd.f32 %v6041_v4, %v3019_v63  ;;  %v3203_v12 = vmax.f32 %v3017_v60, 0.0 }
 0x37e   : > { %v3206_v2 = vmax.f32 %v3028_v62, 0.0 }
 0x37f   : > { %v3204_v3 = vmax.f32 %v3020_v0, 0.0 }
 0x380   : > { %v3278_v5 = vpack.c.bf16 %v3206_v2, %v3205_v1 }
 0x381   : > { %v3277_v6 = vpack.c.bf16 %v3204_v3, %v3203_v12  ;;  %v5089_v7 = vpop.f32.mrb[240].mxu0 }
 0x382   : > { %v3041_v8 = vadd.f32 %v5089_v7, %v6041_v4  ;;  %v3032_v10 = vpop.f32.mrb[241].mxu0 }
 0x383   : > { %v3033_v32 = vadd.f32 %v6041_v4, %v3032_v10  ;;  %v5090_v11 = vpop.f32.mrb[242].mxu0  ;;  %5227 = vmatprep.mubr.bf16.mxu1 %v3277_v6 }
 0x384   : > { %v3044_v13 = vadd.f32 %v5090_v11, %v6041_v4  ;;  %v3035_v14 = vpop.f32.mrb[243].mxu0  ;;  %5228 = vmatmul.mubr.bf16.gmra.mrb[232].mxu1 %v3278_v5  ;;  %v3209_v17 = vmax.f32 %v3041_v8, 0.0  ;;  %v6195_v8 = vld [vmem:[%s6355_s8] ss:$0 sm:$0xff] }
 0x385   : > { %v3036_v15 = vadd.f32 %v5314_v9, %v3035_v14  ;;  %v3207_v19 = vmax.f32 %v3033_v32, 0.0 }
 0x386   : > { %v3210_v18 = vmax.f32 %v3044_v13, 0.0 }
 0x387   : > { %v3208_v20 = vmax.f32 %v3036_v15, 0.0  ;;  %v6184_v21 = vpop.f32.mrb[128].mxu1 }
 0x388   : > { %v3280_v22 = vpack.c.bf16 %v3210_v18, %v3209_v17  ;;  %v6186_v23 = vpop.f32.mrb[129].mxu1 }
 0x389   : > { %v3279_v28 = vpack.c.bf16 %v3208_v20, %v3207_v19  ;;  %v5093_v24 = vpop.f32.mrb[244].mxu0  ;;  %v6188_v25 = vpop.f32.mrb[130].mxu1  ;;  %v3417_v19 = vadd.f32 %v6184_v21, %v6195_v8 }
 0x38a   : > { %v3057_v26 = vadd.f32 %v5314_v9, %v5093_v24  ;;  %v3048_v27 = vpop.f32.mrb[245].mxu0  ;;  %v6190_v4 = vpop.f32.mrb[131].mxu1 }
 0x38b   : > { %v3049_v36 = vadd.f32 %v5314_v9, %v3048_v27  ;;  %v5094_v29 = vpop.f32.mrb[246].mxu0  ;;  %5231 = vmatprep.mubr.bf16.mxu1 %v3279_v28  ;;  %v3409_v28 = vadd.f32 %v6195_v8, %v6186_v23  ;;  %v3420_v27 = vadd.f32 %v6188_v25, %v6195_v8 }
 0x38c   : > { %v3060_v31 = vadd.f32 %v5314_v9, %v5094_v29  ;;  %v3051_v50 = vpop.f32.mrb[247].mxu0  ;;  %5232 = vmatmul.mubr.bf16.gmra.mrb[236].mxu1 %v3280_v22  ;;  %v3213_v34 = vmax.f32 %v3057_v26, 0.0 }
 0x38d   : > { %v3052_v33 = vadd.f32 %v5314_v9, %v3051_v50  ;;  %v3211_v35 = vmax.f32 %v3049_v36, 0.0  ;;  %v3412_v50 = vadd.f32 %v6195_v8, %v6190_v4 }
 0x38e   : > { %v3214_v46 = vmax.f32 %v3060_v31, 0.0 }
 0x38f   : > { %v3212_v37 = vmax.f32 %v3052_v33, 0.0  ;;  %v5129_v38 = vpop.f32.mrb[132].mxu1 }
 0x390   : > { %v3282_v39 = vpack.c.bf16 %v3214_v46, %v3213_v34  ;;  %v3424_v40 = vpop.f32.mrb[133].mxu1  ;;  %v3433_v36 = vadd.f32 %v5129_v38, %v6195_v8 }
 0x391   : > { %v3281_v41 = vpack.c.bf16 %v3212_v37, %v3211_v35  ;;  %v5097_v42 = vpop.f32.mrb[248].mxu0  ;;  %v5130_v30 = vpop.f32.mrb[134].mxu1  ;;  %v3425_v33 = vadd.f32 %v6195_v8, %v3424_v40 }
 0x392   : > { %v3073_v43 = vadd.f32 %v5314_v9, %v5097_v42  ;;  %v3064_v44 = vpop.f32.mrb[249].mxu0  ;;  %v3427_v45 = vpop.f32.mrb[135].mxu1  ;;  %v3436_v46 = vadd.f32 %v5130_v30, %v6195_v8 }
 0x393   : > { %v3065_v47 = vadd.f32 %v5314_v9, %v3064_v44  ;;  %v5098_v48 = vpop.f32.mrb[250].mxu0  ;;  %5235 = vmatprep.mubr.bf16.mxu1 %v3281_v41  ;;  %v3428_v38 = vadd.f32 %v6195_v8, %v3427_v45 }
 0x394   : > { %v3076_v49 = vadd.f32 %v5314_v9, %v5098_v48  ;;  %v3067_v51 = vpop.f32.mrb[251].mxu0  ;;  %5236 = vmatmul.mubr.bf16.gmra.mrb[240].mxu1 %v3282_v39  ;;  %v3217_v58 = vmax.f32 %v3073_v43, 0.0 }
 0x395   : > { %v3068_v52 = vadd.f32 %v5314_v9, %v3067_v51  ;;  %v3215_v16 = vmax.f32 %v3065_v47, 0.0 }
 0x396   : > { %v3218_v53 = vmax.f32 %v3076_v49, 0.0 }
 0x397   : > { %v3216_v54 = vmax.f32 %v3068_v52, 0.0  ;;  %v5133_v55 = vpop.f32.mrb[136].mxu1 }
 0x398   : > { %v3284_v56 = vpack.c.bf16 %v3218_v53, %v3217_v58  ;;  %v3440_v57 = vpop.f32.mrb[137].mxu1  ;;  %v3449_v35 = vadd.f32 %v5133_v55, %v6195_v8 }
 0x399   : > { %v3283_v59 = vpack.c.bf16 %v3216_v54, %v3215_v16  ;;  %v5101_v60 = vpop.f32.mrb[252].mxu0  ;;  %v5134_v61 = vpop.f32.mrb[138].mxu1  ;;  %v3441_v39 = vadd.f32 %v6195_v8, %v3440_v57 }
 0x39a   : > { %v3089_v62 = vadd.f32 %v5314_v9, %v5101_v60  ;;  %v3080_v63 = vpop.f32.mrb[253].mxu0  ;;  %v3443_v0 = vpop.f32.mrb[139].mxu1  ;;  %v3452_v4 = vadd.f32 %v5134_v61, %v6195_v8 }
 0x39b   : > { %v3081_v1 = vadd.f32 %v5314_v9, %v3080_v63  ;;  %v5102_v2 = vpop.f32.mrb[254].mxu0  ;;  %5239 = vmatprep.mubr.bf16.mxu1 %v3283_v59  ;;  %v3444_v30 = vadd.f32 %v6195_v8, %v3443_v0 }
 0x39c   : > { %v3092_v12 = vadd.f32 %v5314_v9, %v5102_v2  ;;  %v3083_v3 = vpop.f32.mrb[255].mxu0  ;;  %5240 = vmatmul.mubr.bf16.gmra.mrb[244].mxu1 %v3284_v56  ;;  %v3221_v6 = vmax.f32 %v3089_v62, 0.0 }
 0x39d   : > { %v3084_v5 = vadd.f32 %v5314_v9, %v3083_v3  ;;  %v3219_v10 = vmax.f32 %v3081_v1, 0.0 }
 0x39e   : > { %v3222_v7 = vmax.f32 %v3092_v12, 0.0 }
 0x39f   : > { %v3220_v32 = vmax.f32 %v3084_v5, 0.0  ;;  %v5137_v11 = vpop.f32.mrb[140].mxu1 }
 0x3a0   : > { %v3286_v13 = vpack.c.bf16 %v3222_v7, %v3221_v6  ;;  %v3456_v14 = vpop.f32.mrb[141].mxu1  ;;  %v3465_v40 = vadd.f32 %v5137_v11, %v6195_v8 }
 0x3a1   : > { %v3285_v15 = vpack.c.bf16 %v3220_v32, %v3219_v10  ;;  %v5121_v17 = vpop.f32.mrb[0].mxu0  ;;  %v5138_v18 = vpop.f32.mrb[142].mxu1  ;;  %v3457_v49 = vadd.f32 %v6195_v8, %v3456_v14 }
 0x3a2   : > { %v3401_v9 = vadd.f32 %v5121_v17, %v6195_v8  ;;  %v3392_v20 = vpop.f32.mrb[1].mxu0  ;;  %v3459_v22 = vpop.f32.mrb[143].mxu1  ;;  %v3468_v45 = vadd.f32 %v5138_v18, %v6195_v8 }
 0x3a3   : > { %v3393_v24 = vadd.f32 %v6195_v8, %v3392_v20  ;;  %v5122_v26 = vpop.f32.mrb[2].mxu0  ;;  %5243 = vmatprep.mubr.bf16.mxu1 %v3285_v15  ;;  %v3460_v56 = vadd.f32 %v6195_v8, %v3459_v22 }
 0x3a4   : > { %v3906_v29 = vmax.f32 %v3401_v9, %v3417_v19  ;;  %v3404_v31 = vadd.f32 %v5122_v26, %v6195_v8  ;;  %v3395_v21 = vpop.f32.mrb[3].mxu0  ;;  %5244 = vmatmul.mubr.bf16.gmra.mrb[248].mxu1 %v3286_v13 }
 0x3a5   : > { %v3904_v23 = vmax.f32 %v3393_v24, %v3409_v28  ;;  %v3396_v34 = vadd.f32 %v6195_v8, %v3395_v21 }
 0x3a6   : > { %v3910_v25 = vmax.f32 %v3906_v29, %v3433_v36  ;;  %v3907_v37 = vmax.f32 %v3404_v31, %v3420_v27 }
 0x3a7   : > { %v3908_v41 = vmax.f32 %v3904_v23, %v3425_v33  ;;  %v3905_v42 = vmax.f32 %v3396_v34, %v3412_v50  ;;  %v5141_v43 = vpop.f32.mrb[144].mxu1 }
 0x3a8   : > { %v3911_v44 = vmax.f32 %v3907_v37, %v3436_v46  ;;  %v3914_v47 = vmax.f32 %v3910_v25, %v3449_v35  ;;  %v3472_v48 = vpop.f32.mrb[145].mxu1  ;;  %v3481_v53 = vadd.f32 %v5141_v43, %v6195_v8 }
 0x3a9   : > { %v3909_v51 = vmax.f32 %v3905_v42, %v3428_v38  ;;  %v3912_v52 = vmax.f32 %v3908_v41, %v3441_v39  ;;  %v5142_v58 = vpop.f32.mrb[146].mxu1  ;;  %v3473_v57 = vadd.f32 %v6195_v8, %v3472_v48 }
 0x3aa   : > { %v3918_v16 = vmax.f32 %v3914_v47, %v3465_v40  ;;  %v3915_v54 = vmax.f32 %v3911_v44, %v3452_v4  ;;  %v3475_v55 = vpop.f32.mrb[147].mxu1  ;;  %v3484_v62 = vadd.f32 %v5142_v58, %v6195_v8 }
 0x3ab   : > { %v3916_v59 = vmax.f32 %v3912_v52, %v3457_v49  ;;  %v3913_v60 = vmax.f32 %v3909_v51, %v3444_v30  ;;  %v3476_v1 = vadd.f32 %v6195_v8, %v3475_v55 }
 0x3ac   : > { %v3922_v61 = vmax.f32 %v3918_v16, %v3481_v53  ;;  %v3919_v63 = vmax.f32 %v3915_v54, %v3468_v45 }
 0x3ad   : > { %v3920_v0 = vmax.f32 %v3916_v59, %v3473_v57  ;;  %v3917_v2 = vmax.f32 %v3913_v60, %v3460_v56 }
 0x3ae   : > { %v3923_v12 = vmax.f32 %v3919_v63, %v3484_v62 }
 0x3af   : > { %v3921_v3 = vmax.f32 %v3917_v2, %v3476_v1  ;;  %v5145_v5 = vpop.f32.mrb[148].mxu1 }
 0x3b0   : > { %v3497_v6 = vadd.f32 %v5145_v5, %v6195_v8  ;;  %v3488_v7 = vpop.f32.mrb[149].mxu1 }
 0x3b1   : > { %v3489_v10 = vadd.f32 %v6195_v8, %v3488_v7  ;;  %v5146_v32 = vpop.f32.mrb[150].mxu1 }
 0x3b2   : > { %v3926_v11 = vmax.f32 %v3922_v61, %v3497_v6  ;;  %v3500_v13 = vadd.f32 %v5146_v32, %v6195_v8  ;;  %v3491_v14 = vpop.f32.mrb[151].mxu1 }
 0x3b3   : > { %v3924_v15 = vmax.f32 %v3920_v0, %v3489_v10  ;;  %v3492_v17 = vadd.f32 %v6195_v8, %v3491_v14 }
 0x3b4   : > { %v3927_v18 = vmax.f32 %v3923_v12, %v3500_v13 }
 0x3b5   : > { %v3925_v19 = vmax.f32 %v3921_v3, %v3492_v17 }
 0x3b7   : > { %v5149_v9 = vpop.f32.mrb[152].mxu1 }
 0x3b8   : > { %v3513_v20 = vadd.f32 %v5149_v9, %v6195_v8  ;;  %v3504_v22 = vpop.f32.mrb[153].mxu1 }
 0x3b9   : > { %v3505_v28 = vadd.f32 %v6195_v8, %v3504_v22  ;;  %v5150_v24 = vpop.f32.mrb[154].mxu1 }
 0x3ba   : > { %v3930_v26 = vmax.f32 %v3926_v11, %v3513_v20  ;;  %v3516_v27 = vadd.f32 %v5150_v24, %v6195_v8  ;;  %v3507_v36 = vpop.f32.mrb[155].mxu1 }
 0x3bb   : > { %v3928_v29 = vmax.f32 %v3924_v15, %v3505_v28  ;;  %v3508_v31 = vadd.f32 %v6195_v8, %v3507_v36 }
 0x3bc   : > { %v3931_v21 = vmax.f32 %v3927_v18, %v3516_v27 }
 0x3bd   : > { %v3929_v50 = vmax.f32 %v3925_v19, %v3508_v31 }
 0x3bf   : > { %v5153_v33 = vpop.f32.mrb[156].mxu1 }
 0x3c0   : > { %v3529_v23 = vadd.f32 %v5153_v33, %v6195_v8  ;;  %v3520_v34 = vpop.f32.mrb[157].mxu1 }
 0x3c1   : > { %v3521_v46 = vadd.f32 %v6195_v8, %v3520_v34  ;;  %v5154_v35 = vpop.f32.mrb[158].mxu1 }
 0x3c2   : > { %v3934_v25 = vmax.f32 %v3930_v26, %v3529_v23  ;;  %v3532_v37 = vadd.f32 %v5154_v35, %v6195_v8  ;;  %v3523_v38 = vpop.f32.mrb[159].mxu1 }
 0x3c3   : > { %v3932_v39 = vmax.f32 %v3928_v29, %v3521_v46  ;;  %v3524_v41 = vadd.f32 %v6195_v8, %v3523_v38 }
 0x3c4   : > { %v3935_v42 = vmax.f32 %v3931_v21, %v3532_v37 }
 0x3c5   : > { %v3933_v43 = vmax.f32 %v3929_v50, %v3524_v41 }
 0x3c7   : > { %v5157_v4 = vpop.f32.mrb[160].mxu1 }
 0x3c8   : > { %v3545_v40 = vadd.f32 %v5157_v4, %v6195_v8  ;;  %v3536_v44 = vpop.f32.mrb[161].mxu1 }
 0x3c9   : > { %v3537_v47 = vadd.f32 %v6195_v8, %v3536_v44  ;;  %v5158_v48 = vpop.f32.mrb[162].mxu1 }
 0x3ca   : > { %v3938_v30 = vmax.f32 %v3934_v25, %v3545_v40  ;;  %v3548_v49 = vadd.f32 %v5158_v48, %v6195_v8  ;;  %v3539_v51 = vpop.f32.mrb[163].mxu1 }
 0x3cb   : > { %v3936_v52 = vmax.f32 %v3932_v39, %v3537_v47  ;;  %v3540_v58 = vadd.f32 %v6195_v8, %v3539_v51 }
 0x3cc   : > { %v3939_v45 = vmax.f32 %v3935_v42, %v3548_v49 }
 0x3cd   : > { %v3937_v53 = vmax.f32 %v3933_v43, %v3540_v58 }
 0x3cf   : > { %v5161_v16 = vpop.f32.mrb[164].mxu1 }
 0x3d0   : > { %v3561_v54 = vadd.f32 %v5161_v16, %v6195_v8  ;;  %v3552_v55 = vpop.f32.mrb[165].mxu1 }
 0x3d1   : > { %v3553_v56 = vadd.f32 %v6195_v8, %v3552_v55  ;;  %v5162_v57 = vpop.f32.mrb[166].mxu1 }
 0x3d2   : > { %v3942_v59 = vmax.f32 %v3938_v30, %v3561_v54  ;;  %v3564_v60 = vadd.f32 %v5162_v57, %v6195_v8  ;;  %v3555_v61 = vpop.f32.mrb[167].mxu1 }
 0x3d3   : > { %v3940_v62 = vmax.f32 %v3936_v52, %v3553_v56  ;;  %v3556_v63 = vadd.f32 %v6195_v8, %v3555_v61 }
 0x3d4   : > { %v3943_v0 = vmax.f32 %v3939_v45, %v3564_v60 }
 0x3d5   : > { %v3941_v1 = vmax.f32 %v3937_v53, %v3556_v63 }
 0x3d7   : > { %v5165_v2 = vpop.f32.mrb[168].mxu1 }
 0x3d8   : > { %v3577_v12 = vadd.f32 %v5165_v2, %v6195_v8  ;;  %v3568_v3 = vpop.f32.mrb[169].mxu1 }
 0x3d9   : > { %v3569_v5 = vadd.f32 %v6195_v8, %v3568_v3  ;;  %v5166_v6 = vpop.f32.mrb[170].mxu1 }
 0x3da   : > { %v3946_v7 = vmax.f32 %v3942_v59, %v3577_v12  ;;  %v3580_v10 = vadd.f32 %v5166_v6, %v6195_v8  ;;  %v3571_v32 = vpop.f32.mrb[171].mxu1 }
 0x3db   : > { %v3944_v11 = vmax.f32 %v3940_v62, %v3569_v5  ;;  %v3572_v13 = vadd.f32 %v6195_v8, %v3571_v32 }
 0x3dc   : > { %v3947_v14 = vmax.f32 %v3943_v0, %v3580_v10  ;;  %v5339_v0 = vmov -inf  }
 0x3dd   : > { %v3945_v15 = vmax.f32 %v3941_v1, %v3572_v13  ;;  %376 = vst [vmem:[%s6269_s15] sm:$0x1] %v5339_v0 }
 0x3df   : > { %v5169_v17 = vpop.f32.mrb[172].mxu1 }
 0x3e0   : > { %v3593_v18 = vadd.f32 %v5169_v17, %v6195_v8  ;;  %v3584_v19 = vpop.f32.mrb[173].mxu1 }
 0x3e1   : > { %v3585_v9 = vadd.f32 %v6195_v8, %v3584_v19  ;;  %v5170_v20 = vpop.f32.mrb[174].mxu1 }
 0x3e2   : > { %v3950_v22 = vmax.f32 %v3946_v7, %v3593_v18  ;;  %v3596_v28 = vadd.f32 %v5170_v20, %v6195_v8  ;;  %v3587_v24 = vpop.f32.mrb[175].mxu1 }
 0x3e3   : > { %v3948_v26 = vmax.f32 %v3944_v11, %v3585_v9  ;;  %v3588_v27 = vadd.f32 %v6195_v8, %v3587_v24 }
 0x3e4   : > { %v3951_v36 = vmax.f32 %v3947_v14, %v3596_v28 }
 0x3e5   : > { %v3949_v29 = vmax.f32 %v3945_v15, %v3588_v27 }
 0x3e7   : > { %v5173_v31 = vpop.f32.mrb[176].mxu1 }
 0x3e8   : > { %v3609_v21 = vadd.f32 %v5173_v31, %v6195_v8  ;;  %v3600_v50 = vpop.f32.mrb[177].mxu1 }
 0x3e9   : > { %v3601_v33 = vadd.f32 %v6195_v8, %v3600_v50  ;;  %v5174_v23 = vpop.f32.mrb[178].mxu1 }
 0x3ea   : > { %v3954_v34 = vmax.f32 %v3950_v22, %v3609_v21  ;;  %v3612_v46 = vadd.f32 %v5174_v23, %v6195_v8  ;;  %v3603_v35 = vpop.f32.mrb[179].mxu1 }
 0x3eb   : > { %v3952_v25 = vmax.f32 %v3948_v26, %v3601_v33  ;;  %v3604_v37 = vadd.f32 %v6195_v8, %v3603_v35 }
 0x3ec   : > { %v3955_v38 = vmax.f32 %v3951_v36, %v3612_v46 }
 0x3ed   : > { %v3953_v39 = vmax.f32 %v3949_v29, %v3604_v37 }
 0x3ef   : > { %v5177_v41 = vpop.f32.mrb[180].mxu1 }
 0x3f0   : > { %v3625_v42 = vadd.f32 %v5177_v41, %v6195_v8  ;;  %v3616_v43 = vpop.f32.mrb[181].mxu1 }
 0x3f1   : > { %v3617_v4 = vadd.f32 %v6195_v8, %v3616_v43  ;;  %v5178_v40 = vpop.f32.mrb[182].mxu1 }
 0x3f2   : > { %v3958_v44 = vmax.f32 %v3954_v34, %v3625_v42  ;;  %v3628_v47 = vadd.f32 %v5178_v40, %v6195_v8  ;;  %v3619_v48 = vpop.f32.mrb[183].mxu1 }
 0x3f3   : > { %v3956_v30 = vmax.f32 %v3952_v25, %v3617_v4  ;;  %v3620_v49 = vadd.f32 %v6195_v8, %v3619_v48 }
 0x3f4   : > { %v3959_v51 = vmax.f32 %v3955_v38, %v3628_v47 }
 0x3f5   : > { %v3957_v52 = vmax.f32 %v3953_v39, %v3620_v49 }
 0x3f7   : > { %v5181_v58 = vpop.f32.mrb[184].mxu1 }
 0x3f8   : > { %v3641_v45 = vadd.f32 %v5181_v58, %v6195_v8  ;;  %v3632_v53 = vpop.f32.mrb[185].mxu1 }
 0x3f9   : > { %v3633_v16 = vadd.f32 %v6195_v8, %v3632_v53  ;;  %v5182_v54 = vpop.f32.mrb[186].mxu1 }
 0x3fa   : > { %v3962_v55 = vmax.f32 %v3958_v44, %v3641_v45  ;;  %v3644_v56 = vadd.f32 %v5182_v54, %v6195_v8  ;;  %v3635_v57 = vpop.f32.mrb[187].mxu1 }
 0x3fb   : > { %v3960_v59 = vmax.f32 %v3956_v30, %v3633_v16  ;;  %v3636_v60 = vadd.f32 %v6195_v8, %v3635_v57 }
 0x3fc   : > { %v3963_v61 = vmax.f32 %v3959_v51, %v3644_v56 }
 0x3fd   : > { %v3961_v62 = vmax.f32 %v3957_v52, %v3636_v60 }
 0x3ff   : > { %v5185_v63 = vpop.f32.mrb[188].mxu1 }
 0x400   : > { %v3657_v1 = vadd.f32 %v5185_v63, %v6195_v8  ;;  %v3648_v2 = vpop.f32.mrb[189].mxu1 }
 0x401   : > { %v3649_v12 = vadd.f32 %v6195_v8, %v3648_v2  ;;  %v5186_v3 = vpop.f32.mrb[190].mxu1 }
 0x402   : > { %v3966_v5 = vmax.f32 %v3962_v55, %v3657_v1  ;;  %v3660_v6 = vadd.f32 %v5186_v3, %v6195_v8  ;;  %v3651_v7 = vpop.f32.mrb[191].mxu1 }
 0x403   : > { %v3964_v10 = vmax.f32 %v3960_v59, %v3649_v12  ;;  %v3652_v32 = vadd.f32 %v6195_v8, %v3651_v7 }
 0x404   : > { %v3967_v11 = vmax.f32 %v3963_v61, %v3660_v6 }
 0x405   : > { %v3965_v13 = vmax.f32 %v3961_v62, %v3652_v32 }
 0x407   : > { %v5189_v14 = vpop.f32.mrb[192].mxu1 }
 0x408   : > { %v3673_v15 = vadd.f32 %v5189_v14, %v6195_v8  ;;  %v3664_v17 = vpop.f32.mrb[193].mxu1 }
 0x409   : > { %v3665_v18 = vadd.f32 %v6195_v8, %v3664_v17  ;;  %v5190_v19 = vpop.f32.mrb[194].mxu1 }
 0x40a   : > { %v3970_v9 = vmax.f32 %v3966_v5, %v3673_v15  ;;  %v3676_v20 = vadd.f32 %v5190_v19, %v6195_v8  ;;  %v3667_v22 = vpop.f32.mrb[195].mxu1 }
 0x40b   : > { %v3968_v28 = vmax.f32 %v3964_v10, %v3665_v18  ;;  %v3668_v24 = vadd.f32 %v6195_v8, %v3667_v22 }
 0x40c   : > { %v3971_v26 = vmax.f32 %v3967_v11, %v3676_v20 }
 0x40d   : > { %v3969_v27 = vmax.f32 %v3965_v13, %v3668_v24 }
 0x40f   : > { %v5193_v36 = vpop.f32.mrb[196].mxu1 }
 0x410   : > { %v3689_v29 = vadd.f32 %v5193_v36, %v6195_v8  ;;  %v3680_v31 = vpop.f32.mrb[197].mxu1 }
 0x411   : > { %v3681_v21 = vadd.f32 %v6195_v8, %v3680_v31  ;;  %v5194_v50 = vpop.f32.mrb[198].mxu1 }
 0x412   : > { %v3974_v33 = vmax.f32 %v3970_v9, %v3689_v29  ;;  %v3692_v23 = vadd.f32 %v5194_v50, %v6195_v8  ;;  %v3683_v34 = vpop.f32.mrb[199].mxu1 }
 0x413   : > { %v3972_v46 = vmax.f32 %v3968_v28, %v3681_v21  ;;  %v3684_v35 = vadd.f32 %v6195_v8, %v3683_v34 }
 0x414   : > { %v3975_v25 = vmax.f32 %v3971_v26, %v3692_v23 }
 0x415   : > { %v3973_v37 = vmax.f32 %v3969_v27, %v3684_v35 }
 0x417   : > { %v5197_v38 = vpop.f32.mrb[200].mxu1 }
 0x418   : > { %v3705_v39 = vadd.f32 %v5197_v38, %v6195_v8  ;;  %v3696_v41 = vpop.f32.mrb[201].mxu1 }
 0x419   : > { %v3697_v42 = vadd.f32 %v6195_v8, %v3696_v41  ;;  %v5198_v43 = vpop.f32.mrb[202].mxu1 }
 0x41a   : > { %v3978_v4 = vmax.f32 %v3974_v33, %v3705_v39  ;;  %v3708_v40 = vadd.f32 %v5198_v43, %v6195_v8  ;;  %v3699_v44 = vpop.f32.mrb[203].mxu1 }
 0x41b   : > { %v3976_v47 = vmax.f32 %v3972_v46, %v3697_v42  ;;  %v3700_v48 = vadd.f32 %v6195_v8, %v3699_v44 }
 0x41c   : > { %v3979_v30 = vmax.f32 %v3975_v25, %v3708_v40 }
 0x41d   : > { %v3977_v49 = vmax.f32 %v3973_v37, %v3700_v48 }
 0x41f   : > { %v5201_v51 = vpop.f32.mrb[204].mxu1 }
 0x420   : > { %v3721_v52 = vadd.f32 %v5201_v51, %v6195_v8  ;;  %v3712_v58 = vpop.f32.mrb[205].mxu1 }
 0x421   : > { %v3713_v45 = vadd.f32 %v6195_v8, %v3712_v58  ;;  %v5202_v53 = vpop.f32.mrb[206].mxu1 }
 0x422   : > { %v3982_v16 = vmax.f32 %v3978_v4, %v3721_v52  ;;  %v3724_v54 = vadd.f32 %v5202_v53, %v6195_v8  ;;  %v3715_v55 = vpop.f32.mrb[207].mxu1 }
 0x423   : > { %v3980_v56 = vmax.f32 %v3976_v47, %v3713_v45  ;;  %v3716_v57 = vadd.f32 %v6195_v8, %v3715_v55 }
 0x424   : > { %v3983_v59 = vmax.f32 %v3979_v30, %v3724_v54 }
 0x425   : > { %v3981_v60 = vmax.f32 %v3977_v49, %v3716_v57 }
 0x427   : > { %v5205_v61 = vpop.f32.mrb[208].mxu1 }
 0x428   : > { %v3737_v62 = vadd.f32 %v5205_v61, %v6195_v8  ;;  %v3728_v63 = vpop.f32.mrb[209].mxu1 }
 0x429   : > { %v3729_v0 = vadd.f32 %v6195_v8, %v3728_v63  ;;  %v5206_v1 = vpop.f32.mrb[210].mxu1 }
 0x42a   : > { %v3986_v2 = vmax.f32 %v3982_v16, %v3737_v62  ;;  %v3740_v12 = vadd.f32 %v5206_v1, %v6195_v8  ;;  %v3731_v3 = vpop.f32.mrb[211].mxu1 }
 0x42b   : > { %v3984_v5 = vmax.f32 %v3980_v56, %v3729_v0  ;;  %v3732_v6 = vadd.f32 %v6195_v8, %v3731_v3 }
 0x42c   : > { %v3987_v7 = vmax.f32 %v3983_v59, %v3740_v12 }
 0x42d   : > { %v3985_v10 = vmax.f32 %v3981_v60, %v3732_v6 }
 0x42f   : > { %v5209_v32 = vpop.f32.mrb[212].mxu1 }
 0x430   : > { %v3753_v11 = vadd.f32 %v5209_v32, %v6195_v8  ;;  %v3744_v13 = vpop.f32.mrb[213].mxu1 }
 0x431   : > { %v3745_v14 = vadd.f32 %v6195_v8, %v3744_v13  ;;  %v5210_v15 = vpop.f32.mrb[214].mxu1 }
 0x432   : > { %v3990_v17 = vmax.f32 %v3986_v2, %v3753_v11  ;;  %v3756_v18 = vadd.f32 %v5210_v15, %v6195_v8  ;;  %v3747_v19 = vpop.f32.mrb[215].mxu1 }
 0x433   : > { %v3988_v9 = vmax.f32 %v3984_v5, %v3745_v14  ;;  %v3748_v20 = vadd.f32 %v6195_v8, %v3747_v19 }
 0x434   : > { %v3991_v22 = vmax.f32 %v3987_v7, %v3756_v18 }
 0x435   : > { %v3989_v28 = vmax.f32 %v3985_v10, %v3748_v20 }
 0x437   : > { %v5213_v24 = vpop.f32.mrb[216].mxu1 }
 0x438   : > { %v3769_v26 = vadd.f32 %v5213_v24, %v6195_v8  ;;  %v3760_v27 = vpop.f32.mrb[217].mxu1 }
 0x439   : > { %v3761_v36 = vadd.f32 %v6195_v8, %v3760_v27  ;;  %v5214_v29 = vpop.f32.mrb[218].mxu1 }
 0x43a   : > { %v3994_v31 = vmax.f32 %v3990_v17, %v3769_v26  ;;  %v3772_v21 = vadd.f32 %v5214_v29, %v6195_v8  ;;  %v3763_v50 = vpop.f32.mrb[219].mxu1 }
 0x43b   : > { %v3992_v33 = vmax.f32 %v3988_v9, %v3761_v36  ;;  %v3764_v23 = vadd.f32 %v6195_v8, %v3763_v50 }
 0x43c   : > { %v3995_v34 = vmax.f32 %v3991_v22, %v3772_v21 }
 0x43d   : > { %v3993_v46 = vmax.f32 %v3989_v28, %v3764_v23 }
 0x43f   : > { %v5217_v35 = vpop.f32.mrb[220].mxu1 }
 0x440   : > { %v3785_v25 = vadd.f32 %v5217_v35, %v6195_v8  ;;  %v3776_v37 = vpop.f32.mrb[221].mxu1 }
 0x441   : > { %v3777_v38 = vadd.f32 %v6195_v8, %v3776_v37  ;;  %v5218_v39 = vpop.f32.mrb[222].mxu1 }
 0x442   : > { %v3998_v41 = vmax.f32 %v3994_v31, %v3785_v25  ;;  %v3788_v42 = vadd.f32 %v5218_v39, %v6195_v8  ;;  %v3779_v43 = vpop.f32.mrb[223].mxu1 }
 0x443   : > { %v3996_v4 = vmax.f32 %v3992_v33, %v3777_v38  ;;  %v3780_v40 = vadd.f32 %v6195_v8, %v3779_v43 }
 0x444   : > { %v3999_v44 = vmax.f32 %v3995_v34, %v3788_v42 }
 0x445   : > { %v3997_v47 = vmax.f32 %v3993_v46, %v3780_v40 }
 0x447   : > { %v5221_v48 = vpop.f32.mrb[224].mxu1 }
 0x448   : > { %v3801_v30 = vadd.f32 %v5221_v48, %v6195_v8  ;;  %v3792_v49 = vpop.f32.mrb[225].mxu1 }
 0x449   : > { %v3793_v51 = vadd.f32 %v6195_v8, %v3792_v49  ;;  %v5222_v52 = vpop.f32.mrb[226].mxu1 }
 0x44a   : > { %v4002_v58 = vmax.f32 %v3998_v41, %v3801_v30  ;;  %v3804_v45 = vadd.f32 %v5222_v52, %v6195_v8  ;;  %v3795_v53 = vpop.f32.mrb[227].mxu1 }
 0x44b   : > { %v4000_v16 = vmax.f32 %v3996_v4, %v3793_v51  ;;  %v3796_v54 = vadd.f32 %v6195_v8, %v3795_v53 }
 0x44c   : > { %v4003_v55 = vmax.f32 %v3999_v44, %v3804_v45 }
 0x44d   : > { %v4001_v56 = vmax.f32 %v3997_v47, %v3796_v54 }
 0x44f   : > { %v5225_v57 = vpop.f32.mrb[228].mxu1 }
 0x450   : > { %v3817_v59 = vadd.f32 %v5225_v57, %v6195_v8  ;;  %v3808_v60 = vpop.f32.mrb[229].mxu1 }
 0x451   : > { %v3809_v61 = vadd.f32 %v6195_v8, %v3808_v60  ;;  %v5226_v62 = vpop.f32.mrb[230].mxu1 }
 0x452   : > { %v4006_v63 = vmax.f32 %v4002_v58, %v3817_v59  ;;  %v3820_v0 = vadd.f32 %v5226_v62, %v6195_v8  ;;  %v3811_v1 = vpop.f32.mrb[231].mxu1 }
 0x453   : > { %v4004_v2 = vmax.f32 %v4000_v16, %v3809_v61  ;;  %v3812_v12 = vadd.f32 %v6195_v8, %v3811_v1 }
 0x454   : > { %v4007_v3 = vmax.f32 %v4003_v55, %v3820_v0 }
 0x455   : > { %v4005_v5 = vmax.f32 %v4001_v56, %v3812_v12 }
 0x457   : > { %v5229_v6 = vpop.f32.mrb[232].mxu1 }
 0x458   : > { %v3833_v7 = vadd.f32 %v5229_v6, %v6195_v8  ;;  %v3824_v10 = vpop.f32.mrb[233].mxu1 }
 0x459   : > { %v3825_v32 = vadd.f32 %v6195_v8, %v3824_v10  ;;  %v5230_v11 = vpop.f32.mrb[234].mxu1 }
 0x45a   : > { %v4010_v13 = vmax.f32 %v4006_v63, %v3833_v7  ;;  %v3836_v14 = vadd.f32 %v5230_v11, %v6195_v8  ;;  %v3827_v15 = vpop.f32.mrb[235].mxu1 }
 0x45b   : > { %v4008_v17 = vmax.f32 %v4004_v2, %v3825_v32  ;;  %v3828_v18 = vadd.f32 %v6195_v8, %v3827_v15 }
 0x45c   : > { %v4011_v19 = vmax.f32 %v4007_v3, %v3836_v14 }
 0x45d   : > { %v4009_v9 = vmax.f32 %v4005_v5, %v3828_v18 }
 0x45f   : > { %v5233_v20 = vpop.f32.mrb[236].mxu1 }
 0x460   : > { %v3849_v22 = vadd.f32 %v5233_v20, %v6195_v8  ;;  %v3840_v28 = vpop.f32.mrb[237].mxu1 }
 0x461   : > { %v3841_v24 = vadd.f32 %v6195_v8, %v3840_v28  ;;  %v5234_v26 = vpop.f32.mrb[238].mxu1 }
 0x462   : > { %v4014_v27 = vmax.f32 %v4010_v13, %v3849_v22  ;;  %v3852_v36 = vadd.f32 %v5234_v26, %v6195_v8  ;;  %v3843_v29 = vpop.f32.mrb[239].mxu1  ;;  %v3903_v13 = vld [vmem:[%s6269_s15] sm:$0x1] }
 0x463   : > { %v4012_v31 = vmax.f32 %v4008_v17, %v3841_v24  ;;  %v3844_v21 = vadd.f32 %v6195_v8, %v3843_v29 }
 0x464   : > { %v4015_v50 = vmax.f32 %v4011_v19, %v3852_v36 }
 0x465   : > { %v4013_v33 = vmax.f32 %v4009_v9, %v3844_v21 }
 0x467   : > { %v5237_v23 = vpop.f32.mrb[240].mxu1 }
 0x468   : > { %v3865_v34 = vadd.f32 %v5237_v23, %v6195_v8  ;;  %v3856_v46 = vpop.f32.mrb[241].mxu1 }
 0x469   : > { %v3857_v35 = vadd.f32 %v6195_v8, %v3856_v46  ;;  %v5238_v25 = vpop.f32.mrb[242].mxu1 }
 0x46a   : > { %v4018_v37 = vmax.f32 %v4014_v27, %v3865_v34  ;;  %v3868_v38 = vadd.f32 %v5238_v25, %v6195_v8  ;;  %v3859_v39 = vpop.f32.mrb[243].mxu1 }
 0x46b   : > { %v4016_v41 = vmax.f32 %v4012_v31, %v3857_v35  ;;  %v3860_v42 = vadd.f32 %v6195_v8, %v3859_v39 }
 0x46c   : > { %v4019_v43 = vmax.f32 %v4015_v50, %v3868_v38 }
 0x46d   : > { %v4017_v4 = vmax.f32 %v4013_v33, %v3860_v42 }
 0x46f   : > { %v5241_v40 = vpop.f32.mrb[244].mxu1 }
 0x470   : > { %v3881_v44 = vadd.f32 %v5241_v40, %v6195_v8  ;;  %v3872_v47 = vpop.f32.mrb[245].mxu1 }
 0x471   : > { %v3873_v48 = vadd.f32 %v6195_v8, %v3872_v47  ;;  %v5242_v30 = vpop.f32.mrb[246].mxu1 }
 0x472   : > { %v4022_v49 = vmax.f32 %v4018_v37, %v3881_v44  ;;  %v3884_v51 = vadd.f32 %v5242_v30, %v6195_v8  ;;  %v3875_v52 = vpop.f32.mrb[247].mxu1 }
 0x473   : > { %v4020_v58 = vmax.f32 %v4016_v41, %v3873_v48  ;;  %v3876_v45 = vadd.f32 %v6195_v8, %v3875_v52 }
 0x474   : > { %v4023_v53 = vmax.f32 %v4019_v43, %v3884_v51 }
 0x475   : > { %v4021_v16 = vmax.f32 %v4017_v4, %v3876_v45 }
 0x477   : > { %v5245_v54 = vpop.f32.mrb[248].mxu1 }
 0x478   : > { %v3897_v55 = vadd.f32 %v5245_v54, %v6195_v8  ;;  %v3888_v56 = vpop.f32.mrb[249].mxu1 }
 0x479   : > { %v3889_v57 = vadd.f32 %v6195_v8, %v3888_v56  ;;  %v5246_v59 = vpop.f32.mrb[250].mxu1 }
 0x47a   : > { %v4026_v60 = vmax.f32 %v4022_v49, %v3897_v55  ;;  %v3900_v61 = vadd.f32 %v5246_v59, %v6195_v8  ;;  %v3891_v62 = vpop.f32.mrb[251].mxu1 }
 0x47b   : > { %v4024_v63 = vmax.f32 %v4020_v58, %v3889_v57  ;;  %v3892_v0 = vadd.f32 %v6195_v8, %v3891_v62 }
 0x47c   : > { %v4027_v1 = vmax.f32 %v4023_v53, %v3900_v61 }
 0x47d   : > { %v4025_v2 = vmax.f32 %v4021_v16, %v3892_v0 }
 0x47e   : > { %v4029_v12 = vmax.f32 %v4026_v60, %v4027_v1 }
 0x47f   : > { %v4028_v3 = vmax.f32 %v4024_v63, %v4025_v2 }
 0x481   : > { %v4030_v5 = vmax.f32 %v4028_v3, %v4029_v12 }
 0x483   : > { %v4031_v6 = vrot.slane %v4030_v5, 4 }
 0x485   : > { %v4032_v7 = vmax.f32 %v4030_v5, %v4031_v6 }
 0x487   : > { %v4033_v10 = vrot.slane %v4032_v7, 2 }
 0x489   : > { %v4034_v32 = vmax.f32 %v4032_v7, %v4033_v10 }
 0x48b   : > { %v4035_v11 = vrot.slane %v4034_v32, 1 }
 0x48d   : > { %v4036_v14 = vmax.f32 %v4034_v32, %v4035_v11 }
 0x48f   : > { %v4037_v15 = vmax.f32 %v3903_v13, %v4036_v14 }
 0x491   : > { %4038 = vst [vmem:[%s6269_s15] sm:$0x1] %v4037_v15 }
 0x492 PF: > { %s19_s11 = sadd.s32 1, %s5337_s11   ;;  %s6357_s30 = smov %s5333_s10 }
 0x493   : > { %p16_p5 = scmp.ge.s32.totalorder %s19_s11, 4   ;;  %s6358_s10 = smov %s6360_s12 }
 0x495   :  { %18 = sbr.rel (!%p16_p5) target bundleno = 2 (0x2), region = 93 }

// kernel: autoencoder_forward.7
= control target key start
LH: loop header
LB: loop body
LE: loop exit
PB: predicated region body
PF: predicated region fallthrough
CT: control target
= control target key end

     0   :  { %s4875_s27 = smov 0   ;;  %s4877_s28 = smov 0   ;;  %s6301_s0 = inlined_call_operand.vmem [shape: f32[2,256,3], index: 0, kind: input, shape index: {}]   ;;  %s6302_s1 = inlined_call_operand.vmem [shape: f32[4,128], index: 1, kind: input, shape index: {}]   ;;  %s6303_s2 = inlined_call_operand.vmem [shape: f32[2,1,128], index: 2, kind: input, shape index: {}]   ;;  %s6304_s3 = inlined_call_operand.vmem [shape: f32[3,128], index: 3, kind: input, shape index: {}]   ;;  %s6305_s4 = inlined_call_operand.vmem [shape: bf16[128,128], index: 4, kind: input, shape index: {}]   ;;  %s6306_s5 = inlined_call_operand.vmem [shape: f32[1,128], index: 5, kind: input, shape index: {}]   ;;  %s6307_s6 = inlined_call_operand.vmem [shape: f32[128,3], index: 6, kind: input, shape index: {}]   ;;  %s6308_s7 = inlined_call_operand.vmem [shape: f32[1,3], index: 7, kind: input, shape index: {}]   ;;  %s6309_s8 = inlined_call_operand.vmem [shape: f32[2,4,3,256], index: 8, kind: output, shape index: {}]  }
   0x1   :  { %s4879_s29 = smov 0  }
   0x2 LB: > { %s30_s30 = sadd.s32 1, %s4824_s28  ;;  %p3618_p0 = scmp.ge.s32.totalorder %s4828_s29, 1  ;;  %s4828_s29 = sphi %s4879_s29, %s18_s29   ;;  %s4824_s28 = sphi %s4877_s28, %s6341_s28   ;;  %s4820_s27 = sphi %s4875_s27, %s6340_s27  }
   0x3   : > { %p32_p1 = scmp.ge.s32.totalorder %s30_s30, 2  ;;  %p291_p2 = scmp.lt.s32.totalorder %s4828_s29, 3 }
   0x5   : > { %s6343_s30 = smov (%p32_p1, %s30_s30), 0  ;;  %p292_p3 = pnand %p3618_p0, %p291_p2 }
   0x7   : > { %295 = sbr.rel (%p292_p3) target bundleno = 1038 (0x40e), region = 52 }
   0xe   : > { %v393_v0 = vld [vmem:[%s6304_s3] sm:$0x7]  ;;  %vm498_vm0 = vcmask 1042432   ;;  %p337_p4 = scmp.lt.s32.totalorder %s4820_s27, 1  ;;  %vm401_vm1 = vcmask 23552   ;;  %v4742_v9 = vld [vmem:[%s6305_s4 + $0x8] sm:$0xff]   ;;  %v727_v38 = vlaneseq }
   0xf   : > { %v4741_v1 = vld [vmem:[%s6305_s4] sm:$0xff]   ;;  %4025 = vmatprep.subr.msk.mxu0 %vm498_vm0, %v393_v0  ;;  %4715 = vmatprep.subr.msk.mxu1 %vm498_vm0, %v393_v0  ;;  %v4743_v16 = vld [vmem:[%s6305_s4 + $0x10] sm:$0xff]   ;;  %v4744_v20 = vld [vmem:[%s6305_s4 + $0x18] sm:$0xff]  }
  0x10   : > { %4026 = vmatpush3.msk.msra.mxu0 %vm498_vm0, %v393_v0  ;;  %s6345_s27 = smov (!%p337_p4, %s4820_s27), 1  ;;  %4716 = vmatpush3.msk.msra.mxu1 %vm498_vm0, %v393_v0  ;;  %v4745_v25 = vld [vmem:[%s6305_s4 + $0x20] sm:$0xff]   ;;  %v728_v39 = vshrl.u32 %v727_v38, 7  ;;  %v4746_v42 = vld [vmem:[%s6305_s4 + $0x28] sm:$0xff]   ;;  %v4747_v46 = vld [vmem:[%s6305_s4 + $0x30] sm:$0xff]  }
  0x11   : > { %4075 = vmatprep.subr.bf16.mxu1 %v4741_v1  ;;  %s3702_s13 = sshll.u32 %s6345_s27, 8  ;;  %v392_v43 = vld [vmem:[%s6302_s1] sm:$0xf]  ;;  %v4748_v47 = vld [vmem:[%s6305_s4 + $0x38] sm:$0xff]   ;;  %s348_s20 = scalar_lea.vmem %s6303_s2, %s6345_s27 }
  0x12   : > { %s4905_s16 = scalar_lea.vmem %s6301_s0, %s3702_s13  ;;  %v2124_v40 = vsub.s32 2, %v728_v39  ;;  %v2822_v41 = vsub.s32 3, %v728_v39  ;;  %v5002_v48 = vld [vmem:[%s6305_s4] sm:$0xff]   ;;  %v729_v49 = vsub.s32 0, %v728_v39  ;;  %v1426_v50 = vsub.s32 1, %v728_v39 }
  0x13   : > { %v360_v2 = vld [vmem:[%s4905_s16] sm:$0xff]  ;;  %v361_v3 = vld [vmem:[%s4905_s16 + $0x8] sm:$0xff]  ;;  %v362_v4 = vld [vmem:[%s4905_s16 + $0x10] sm:$0xff] }
  0x14   : > { %4027 = vmatprep.mubr.msk.f32.mxu0 %vm401_vm1, %v360_v2  ;;  %v363_v5 = vld [vmem:[%s4905_s16 + $0x18] sm:$0xff]  ;;  %v364_v6 = vld [vmem:[%s4905_s16 + $0x20] sm:$0xff]  ;;  %v377_v8 = vld [vmem:[%s4905_s16 + $0x88] sm:$0xff]  ;;  %v4989_v44 = vrot.slane %v392_v43, %v2124_v40  ;;  %v4991_v45 = vrot.slane %v392_v43, %v2822_v41  ;;  %v5011_v52 = vrot.slane %v392_v43, %v729_v49  ;;  %v5013_v53 = vrot.slane %v392_v43, %v1426_v50 }
  0x15   : > { %4028 = vmatmul.mubr.msk.f32.vlgmr.msra.gmra.mrb[0].mxu0 %vm401_vm1, %v361_v3  ;;  %v376_v7 = vld [vmem:[%s4905_s16 + $0x80] sm:$0xff]  ;;  %v378_v10 = vld [vmem:[%s4905_s16 + $0x90] sm:$0xff]  ;;  %v365_v11 = vld [vmem:[%s4905_s16 + $0x28] sm:$0xff] }
  0x16   : > { %4030 = vmatprep.mubr.msk.f32.mxu0 %vm401_vm1, %v362_v4  ;;  %4051 = vmatprep.mubr.msk.f32.mxu1 %vm401_vm1, %v376_v7  ;;  %v366_v12 = vld [vmem:[%s4905_s16 + $0x30] sm:$0xff]  ;;  %v379_v13 = vld [vmem:[%s4905_s16 + $0x98] sm:$0xff]  ;;  %v380_v15 = vld [vmem:[%s4905_s16 + $0xa0] sm:$0xff] }
  0x17   : > { %4052 = vmatmul.mubr.msk.f32.vlgmr.msra.gmra.mrb[0].mxu1 %vm401_vm1, %v377_v8  ;;  %v367_v14 = vld [vmem:[%s4905_s16 + $0x38] sm:$0xff]  ;;  %v368_v17 = vld [vmem:[%s4905_s16 + $0x40] sm:$0xff]  ;;  %v381_v18 = vld [vmem:[%s4905_s16 + $0xa8] sm:$0xff] }
  0x18   : > { %4054 = vmatprep.mubr.msk.f32.mxu1 %vm401_vm1, %v378_v10  ;;  %4076 = vmatpush3.bf16.msra.mxu1 %v4741_v1  ;;  %v382_v19 = vld [vmem:[%s4905_s16 + $0xb0] sm:$0xff]  ;;  %v369_v21 = vld [vmem:[%s4905_s16 + $0x48] sm:$0xff]  ;;  %v383_v23 = vld [vmem:[%s4905_s16 + $0xb8] sm:$0xff] }
  0x19   : > { %4031 = vmatmul.mubr.msk.f32.gmra.mrb[2].mxu0 %vm401_vm1, %v363_v5  ;;  %4077 = vmatprep.subr.bf16.mxu1 %v4742_v9  ;;  %v370_v22 = vld [vmem:[%s4905_s16 + $0x50] sm:$0xff]  ;;  %v384_v24 = vld [vmem:[%s4905_s16 + $0xc0] sm:$0xff]  ;;  %v371_v26 = vld [vmem:[%s4905_s16 + $0x58] sm:$0xff] }
  0x1a   : > { %4033 = vmatprep.mubr.msk.f32.mxu0 %vm401_vm1, %v364_v6  ;;  %v372_v27 = vld [vmem:[%s4905_s16 + $0x60] sm:$0xff]  ;;  %v385_v28 = vld [vmem:[%s4905_s16 + $0xc8] sm:$0xff]  ;;  %v386_v29 = vld [vmem:[%s4905_s16 + $0xd0] sm:$0xff] }
  0x1b   : > { %4055 = vmatmul.mubr.msk.f32.gmra.mrb[2].mxu1 %vm401_vm1, %v379_v13  ;;  %v373_v30 = vld [vmem:[%s4905_s16 + $0x68] sm:$0xff]  ;;  %v374_v31 = vld [vmem:[%s4905_s16 + $0x70] sm:$0xff]  ;;  %v387_v32 = vld [vmem:[%s4905_s16 + $0xd8] sm:$0xff] }
  0x1c   : > { %4057 = vmatprep.mubr.msk.f32.mxu1 %vm401_vm1, %v380_v15  ;;  %4078 = vmatpush3.bf16.msra.mxu1 %v4742_v9  ;;  %v388_v33 = vld [vmem:[%s4905_s16 + $0xe0] sm:$0xff]  ;;  %v375_v34 = vld [vmem:[%s4905_s16 + $0x78] sm:$0xff]  ;;  %v389_v35 = vld [vmem:[%s4905_s16 + $0xe8] sm:$0xff] }
  0x1d   : > { %4034 = vmatmul.mubr.msk.f32.gmra.mrb[4].mxu0 %vm401_vm1, %v365_v11  ;;  %4079 = vmatprep.subr.bf16.mxu1 %v4743_v16  ;;  %v390_v36 = vld [vmem:[%s4905_s16 + $0xf0] sm:$0xff]  ;;  %v391_v37 = vld [vmem:[%s4905_s16 + $0xf8] sm:$0xff]  ;;  %v5009_v51 = vld [vmem:[%s348_s20] ss:$0 sm:$0xff] }
  0x1e   : > { %4036 = vmatprep.mubr.msk.f32.mxu0 %vm401_vm1, %v366_v12 }
  0x1f   : > { %4058 = vmatmul.mubr.msk.f32.gmra.mrb[4].mxu1 %vm401_vm1, %v381_v18 }
  0x20   : > { %4060 = vmatprep.mubr.msk.f32.mxu1 %vm401_vm1, %v382_v19  ;;  %4080 = vmatpush3.bf16.msra.mxu1 %v4743_v16 }
  0x21   : > { %4037 = vmatmul.mubr.msk.f32.gmra.mrb[6].mxu0 %vm401_vm1, %v367_v14  ;;  %4081 = vmatprep.subr.bf16.mxu1 %v4744_v20 }
  0x22   : > { %4039 = vmatprep.mubr.msk.f32.mxu0 %vm401_vm1, %v368_v17 }
  0x23   : > { %4061 = vmatmul.mubr.msk.f32.gmra.mrb[6].mxu1 %vm401_vm1, %v383_v23 }
  0x24   : > { %4063 = vmatprep.mubr.msk.f32.mxu1 %vm401_vm1, %v384_v24  ;;  %4082 = vmatpush3.bf16.msra.mxu1 %v4744_v20 }
  0x25   : > { %4040 = vmatmul.mubr.msk.f32.gmra.mrb[8].mxu0 %vm401_vm1, %v369_v21  ;;  %4083 = vmatprep.subr.bf16.mxu1 %v4745_v25 }
  0x26   : > { %4042 = vmatprep.mubr.msk.f32.mxu0 %vm401_vm1, %v370_v22 }
  0x27   : > { %4064 = vmatmul.mubr.msk.f32.gmra.mrb[8].mxu1 %vm401_vm1, %v385_v28 }
  0x28   : > { %4066 = vmatprep.mubr.msk.f32.mxu1 %vm401_vm1, %v386_v29  ;;  %4084 = vmatpush3.bf16.msra.mxu1 %v4745_v25 }
  0x29   : > { %4043 = vmatmul.mubr.msk.f32.gmra.mrb[10].mxu0 %vm401_vm1, %v371_v26  ;;  %4085 = vmatprep.subr.bf16.mxu1 %v4746_v42 }
  0x2a   : > { %4045 = vmatprep.mubr.msk.f32.mxu0 %vm401_vm1, %v372_v27 }
  0x2b   : > { %4067 = vmatmul.mubr.msk.f32.gmra.mrb[10].mxu1 %vm401_vm1, %v387_v32 }
  0x2c   : > { %4069 = vmatprep.mubr.msk.f32.mxu1 %vm401_vm1, %v388_v33  ;;  %4086 = vmatpush3.bf16.msra.mxu1 %v4746_v42  ;;  %v4750_v42 = vld [vmem:[%s6305_s4 + $0x8] sm:$0xff]  }
  0x2d   : > { %4046 = vmatmul.mubr.msk.f32.gmra.mrb[12].mxu0 %vm401_vm1, %v373_v30  ;;  %4087 = vmatprep.subr.bf16.mxu1 %v4747_v46 }
  0x2e   : > { %4048 = vmatprep.mubr.msk.f32.mxu0 %vm401_vm1, %v374_v31 }
  0x2f   : > { %4070 = vmatmul.mubr.msk.f32.gmra.mrb[12].mxu1 %vm401_vm1, %v389_v35 }
  0x30   : > { %4072 = vmatprep.mubr.msk.f32.mxu1 %vm401_vm1, %v390_v36  ;;  %4088 = vmatpush3.bf16.msra.mxu1 %v4747_v46 }
  0x31   : > { %4049 = vmatmul.mubr.msk.f32.gmra.mrb[14].mxu0 %vm401_vm1, %v375_v34  ;;  %4089 = vmatprep.subr.bf16.mxu1 %v4748_v47 }
  0x33   : > { %4073 = vmatmul.mubr.msk.f32.gmra.mrb[14].mxu1 %vm401_vm1, %v391_v37 }
  0x34   : > { %4090 = vmatpush3.bf16.msra.mxu1 %v4748_v47 }
  0x35   : > { %4203 = vmatprep.subr.bf16.mxu1 %v5002_v48 }
  0xe8   : > { %v4029_v54 = vpop.f32.mrb[0].mxu0 }
  0xe9   : > { %v574_v55 = vadd.f32 %v4029_v54, %v5009_v51  ;;  %v568_v56 = vpop.f32.mrb[1].mxu0 }
  0xea   : > { %v569_v57 = vadd.f32 %v5009_v51, %v568_v56  ;;  %v4053_v6 = vpop.f32.mrb[0].mxu1 }
  0xeb   : > { %v732_v58 = vadd.f32 %v5011_v52, %v574_v55  ;;  %v5019_v59 = vadd.f32 %v5013_v53, %v574_v55  ;;  %v5022_v60 = vadd.f32 %v4989_v44, %v574_v55  ;;  %v5025_v61 = vadd.f32 %v4991_v45, %v574_v55  ;;  %v648_v11 = vpop.f32.mrb[1].mxu1 }
  0xec   : > { %v4032_v62 = vpop.f32.mrb[2].mxu0  ;;  %v731_v63 = vadd.f32 %v5011_v52, %v569_v57  ;;  %v5029_v0 = vadd.f32 %v5013_v53, %v569_v57  ;;  %v5032_v1 = vadd.f32 %v4989_v44, %v569_v57  ;;  %v5035_v2 = vadd.f32 %v4991_v45, %v569_v57 }
  0xed   : > { %v584_v3 = vadd.f32 %v4032_v62, %v5009_v51  ;;  %v578_v4 = vpop.f32.mrb[3].mxu0  ;;  %v764_v5 = vmax.f32 %v732_v58, 0.0  ;;  %v1461_v7 = vmax.f32 %v5019_v59, 0.0  ;;  %v5041_v10 = vadd.f32 %v4053_v6, %v5009_v51 }
  0xee   : > { %v579_v8 = vadd.f32 %v5009_v51, %v578_v4  ;;  %v763_v9 = vmax.f32 %v731_v63, 0.0  ;;  %v1460_v12 = vmax.f32 %v5029_v0, 0.0  ;;  %v4056_v27 = vpop.f32.mrb[2].mxu1  ;;  %v5059_v36 = vadd.f32 %v5009_v51, %v648_v11 }
  0xef   : > { %v734_v13 = vadd.f32 %v5011_v52, %v584_v3  ;;  %v1431_v14 = vadd.f32 %v5013_v53, %v584_v3  ;;  %v2129_v15 = vadd.f32 %v4989_v44, %v584_v3  ;;  %v2827_v16 = vadd.f32 %v4991_v45, %v584_v3  ;;  %v658_v32 = vpop.f32.mrb[3].mxu1 }
  0xf0   : > { %v733_v17 = vadd.f32 %v5011_v52, %v579_v8  ;;  %v1430_v18 = vadd.f32 %v5013_v53, %v579_v8  ;;  %v2128_v19 = vadd.f32 %v4989_v44, %v579_v8  ;;  %v2826_v20 = vadd.f32 %v4991_v45, %v579_v8  ;;  %v4035_v21 = vpop.f32.mrb[4].mxu0 }
  0xf1   : > { %v766_v22 = vmax.f32 %v734_v13, 0.0  ;;  %v1463_v23 = vmax.f32 %v1431_v14, 0.0  ;;  %v2161_v24 = vmax.f32 %v2129_v15, 0.0  ;;  %v2859_v25 = vmax.f32 %v2827_v16, 0.0  ;;  %v588_v26 = vpop.f32.mrb[5].mxu0 }
  0xf2   : > { %v765_v28 = vmax.f32 %v733_v17, 0.0  ;;  %v1462_v29 = vmax.f32 %v1430_v18, 0.0  ;;  %v2160_v30 = vmax.f32 %v2128_v19, 0.0  ;;  %v2858_v31 = vmax.f32 %v2826_v20, 0.0  ;;  %v4059_v54 = vpop.f32.mrb[4].mxu1 }
  0xf3   : > { %v5053_v33 = vadd.f32 %v4035_v21, %v5009_v51  ;;  %v5056_v34 = vadd.f32 %v5009_v51, %v588_v26  ;;  %v795_v35 = vpack.c.bf16 %v764_v5, %v763_v9  ;;  %v5078_v50 = vadd.f32 %v4056_v27, %v5009_v51  ;;  %v668_v58 = vpop.f32.mrb[5].mxu1  ;;  %v4751_v9 = vld [vmem:[%s6305_s4 + $0x10] sm:$0xff]  }
  0xf4   : > { %v796_v37 = vpack.c.bf16 %v766_v22, %v765_v28  ;;  %v5061_v38 = vpack.c.bf16 %v1463_v23, %v1462_v29  ;;  %v5063_v39 = vpack.c.bf16 %v2161_v24, %v2160_v30  ;;  %v5065_v40 = vpack.c.bf16 %v2859_v25, %v2858_v31  ;;  %v4038_v41 = vpop.f32.mrb[6].mxu0 }
  0xf5   : > { %4091 = vmatprep.mubr.bf16.mxu1 %v795_v35  ;;  %v5071_v43 = vadd.f32 %v4038_v41, %v5009_v51  ;;  %v598_v46 = vpop.f32.mrb[7].mxu0  ;;  %v735_v47 = vadd.f32 %v5011_v52, %v5056_v34  ;;  %v736_v49 = vadd.f32 %v5011_v52, %v5053_v33  ;;  %6316 = vst [vmem:[#allocation4_spill] sm:$0xff] %v5078_v50 }
  0xf6   : > { %6314 = vst [vmem:[#allocation2_spill] sm:$0xff] %v5063_v39  ;;  %6315 = vst [vmem:[#allocation3_spill] sm:$0xff] %v5065_v40  ;;  %v5081_v55 = vadd.f32 %v5009_v51, %v598_v46  ;;  %4092 = vmatmul.mubr.bf16.vlgmr.msra.gmra.mrb[16].mxu1 %v796_v37  ;;  %v5084_v56 = vadd.f32 %v5009_v51, %v658_v32  ;;  %v5087_v57 = vadd.f32 %v4059_v54, %v5009_v51  ;;  %v4062_v18 = vpop.f32.mrb[6].mxu1  ;;  %v4752_v32 = vld [vmem:[%s6305_s4 + $0x18] sm:$0xff]  }
  0xf7   : > { %v747_v62 = vadd.f32 %v5011_v52, %v5059_v36  ;;  %4204 = vmatpush3.bf16.msra.mxu1 %v5002_v48  ;;  %v767_v63 = vmax.f32 %v735_v47, 0.0  ;;  %v768_v3 = vmax.f32 %v736_v49, 0.0  ;;  %v738_v4 = vadd.f32 %v5011_v52, %v5071_v43  ;;  %v678_v24 = vpop.f32.mrb[7].mxu1 }
  0xf8   : > { %6317 = vst [vmem:[#allocation5_spill] sm:$0xff] %v5084_v56  ;;  %v5095_v5 = vadd.f32 %v5009_v51, %v668_v58  ;;  %v4041_v6 = vpop.f32.mrb[8].mxu0  ;;  %4205 = vmatprep.subr.bf16.mxu1 %v4750_v42  ;;  %v737_v8 = vadd.f32 %v5011_v52, %v5081_v55  ;;  %v748_v48 = vadd.f32 %v5011_v52, %v5041_v10 }
  0xf9   : > { %v779_v11 = vmax.f32 %v747_v62, 0.0  ;;  %v749_v13 = vadd.f32 %v5011_v52, %v5084_v56  ;;  %v5107_v14 = vadd.f32 %v4041_v6, %v5009_v51  ;;  %v608_v15 = vpop.f32.mrb[9].mxu0  ;;  %v797_v16 = vpack.c.bf16 %v768_v3, %v767_v63 }
  0xfa   : > { %v770_v17 = vmax.f32 %v738_v4, 0.0  ;;  %v750_v19 = vadd.f32 %v5011_v52, %v5078_v50  ;;  %v5112_v20 = vadd.f32 %v5009_v51, %v608_v15  ;;  %v769_v21 = vmax.f32 %v737_v8, 0.0  ;;  %v4065_v49 = vpop.f32.mrb[8].mxu1 }
  0xfb   : > { %v780_v22 = vmax.f32 %v748_v48, 0.0  ;;  %v5115_v23 = vadd.f32 %v4062_v18, %v5009_v51  ;;  %4095 = vmatprep.mubr.bf16.mxu1 %v797_v16  ;;  %4206 = vmatpush3.bf16.msra.mxu1 %v4750_v42  ;;  %v740_v25 = vadd.f32 %v5011_v52, %v5107_v14  ;;  %v5120_v26 = vadd.f32 %v5009_v51, %v678_v24  ;;  %v688_v3 = vpop.f32.mrb[9].mxu1 }
  0xfc   : > { %v781_v27 = vmax.f32 %v749_v13, 0.0  ;;  %v782_v28 = vmax.f32 %v750_v19, 0.0  ;;  %v4044_v29 = vpop.f32.mrb[10].mxu0  ;;  %v798_v30 = vpack.c.bf16 %v770_v17, %v769_v21  ;;  %v739_v31 = vadd.f32 %v5011_v52, %v5112_v20  ;;  %4207 = vmatprep.subr.bf16.mxu1 %v4751_v9  ;;  %v4753_v17 = vld [vmem:[%s6305_s4 + $0x20] sm:$0xff]  }
  0xfd   : > { %v5127_v35 = vpack.c.bf16 %v780_v22, %v779_v11  ;;  %v751_v37 = vadd.f32 %v5011_v52, %v5095_v5  ;;  %v5132_v41 = vadd.f32 %v4044_v29, %v5009_v51  ;;  %v618_v42 = vpop.f32.mrb[11].mxu0  ;;  %v772_v46 = vmax.f32 %v740_v25, 0.0 }
  0xfe   : > { %v5134_v47 = vpack.c.bf16 %v782_v28, %v781_v27  ;;  %v752_v54 = vadd.f32 %v5011_v52, %v5087_v57  ;;  %v5139_v58 = vadd.f32 %v5009_v51, %v618_v42  ;;  %4096 = vmatmul.mubr.bf16.gmra.mrb[20].mxu1 %v798_v30  ;;  %v771_v62 = vmax.f32 %v739_v31, 0.0  ;;  %v4068_v25 = vpop.f32.mrb[10].mxu1 }
  0xff   : > { %v5142_v63 = vadd.f32 %v4065_v49, %v5009_v51  ;;  %v783_v4 = vmax.f32 %v751_v37, 0.0  ;;  %v742_v6 = vadd.f32 %v5011_v52, %v5132_v41  ;;  %4208 = vmatpush3.bf16.msra.mxu1 %v4751_v9  ;;  %v5147_v8 = vadd.f32 %v5009_v51, %v688_v3  ;;  %v698_v31 = vpop.f32.mrb[11].mxu1 }
 0x100   : > { %v784_v48 = vmax.f32 %v752_v54, 0.0  ;;  %v753_v11 = vadd.f32 %v5011_v52, %v5120_v26  ;;  %v4047_v13 = vpop.f32.mrb[12].mxu0  ;;  %v799_v15 = vpack.c.bf16 %v772_v46, %v771_v62  ;;  %v741_v16 = vadd.f32 %v5011_v52, %v5139_v58  ;;  %4209 = vmatprep.subr.bf16.mxu1 %v4752_v32 }
 0x101   : > { %v754_v9 = vadd.f32 %v5011_v52, %v5115_v23  ;;  %v756_v18 = vadd.f32 %v5011_v52, %v5142_v63  ;;  %v5161_v19 = vadd.f32 %v4047_v13, %v5009_v51  ;;  %v628_v21 = vpop.f32.mrb[13].mxu0  ;;  %v774_v22 = vmax.f32 %v742_v6, 0.0  ;;  %v4754_v6 = vld [vmem:[%s6305_s4 + $0x28] sm:$0xff]  }
 0x102   : > { %v5163_v24 = vpack.c.bf16 %v784_v48, %v783_v4  ;;  %v785_v27 = vmax.f32 %v753_v11, 0.0  ;;  %v5166_v28 = vadd.f32 %v5009_v51, %v628_v21  ;;  %4099 = vmatprep.mubr.bf16.mxu1 %v799_v15  ;;  %v773_v29 = vmax.f32 %v741_v16, 0.0  ;;  %v4071_v16 = vpop.f32.mrb[12].mxu1 }
 0x103   : > { %v5169_v30 = vadd.f32 %v4068_v25, %v5009_v51  ;;  %v786_v37 = vmax.f32 %v754_v9, 0.0  ;;  %v744_v42 = vadd.f32 %v5011_v52, %v5161_v19  ;;  %4210 = vmatpush3.bf16.msra.mxu1 %v4752_v32  ;;  %v5174_v46 = vadd.f32 %v5009_v51, %v698_v31 }
 0x104   : > { %v755_v49 = vadd.f32 %v5011_v52, %v5147_v8  ;;  %v788_v54 = vmax.f32 %v756_v18, 0.0  ;;  %v4050_v62 = vpop.f32.mrb[14].mxu0  ;;  %v800_v3 = vpack.c.bf16 %v774_v22, %v773_v29  ;;  %v743_v4 = vadd.f32 %v5011_v52, %v5166_v28  ;;  %4211 = vmatprep.subr.bf16.mxu1 %v4753_v17 }
 0x105   : > { %v5183_v48 = vpack.c.bf16 %v786_v37, %v785_v27  ;;  %v758_v32 = vadd.f32 %v5011_v52, %v5169_v30  ;;  %v5188_v11 = vadd.f32 %v4050_v62, %v5009_v51  ;;  %v638_v13 = vpop.f32.mrb[15].mxu0  ;;  %v776_v15 = vmax.f32 %v744_v42, 0.0  ;;  %v708_v27 = vpop.f32.mrb[13].mxu1 }
 0x106   : > { %v787_v9 = vmax.f32 %v755_v49, 0.0  ;;  %v757_v18 = vadd.f32 %v5011_v52, %v5174_v46  ;;  %v5193_v21 = vadd.f32 %v5009_v51, %v638_v13  ;;  %4100 = vmatmul.mubr.bf16.gmra.mrb[24].mxu1 %v800_v3  ;;  %v775_v22 = vmax.f32 %v743_v4, 0.0  ;;  %v4755_v4 = vld [vmem:[%s6305_s4 + $0x30] sm:$0xff]   ;;  %v4074_v13 = vpop.f32.mrb[14].mxu1 }
 0x107   : > { %v5196_v25 = vadd.f32 %v4071_v16, %v5009_v51  ;;  %v790_v29 = vmax.f32 %v758_v32, 0.0  ;;  %v746_v31 = vadd.f32 %v5011_v52, %v5188_v11  ;;  %4212 = vmatpush3.bf16.msra.mxu1 %v4753_v17  ;;  %v5201_v37 = vadd.f32 %v5009_v51, %v708_v27  ;;  %v718_v0 = vpop.f32.mrb[15].mxu1 }
 0x108   : > { %v5203_v42 = vpack.c.bf16 %v788_v54, %v787_v9  ;;  %v789_v49 = vmax.f32 %v757_v18, 0.0  ;;  %v801_v62 = vpack.c.bf16 %v776_v15, %v775_v22  ;;  %v745_v3 = vadd.f32 %v5011_v52, %v5193_v21  ;;  %4213 = vmatprep.subr.bf16.mxu1 %v4754_v6 }
 0x109   : > { %v760_v32 = vadd.f32 %v5011_v52, %v5196_v25  ;;  %v5216_v17 = vpack.c.bf16 %v1461_v7, %v1460_v12  ;;  %v778_v54 = vmax.f32 %v746_v31, 0.0  ;;  %v759_v16 = vadd.f32 %v5011_v52, %v5201_v37 }
 0x10a   : > { %v5218_v15 = vpack.c.bf16 %v790_v29, %v789_v49  ;;  %v1432_v9 = vadd.f32 %v5013_v53, %v5056_v34  ;;  %4103 = vmatprep.mubr.bf16.mxu1 %v801_v62  ;;  %v777_v18 = vmax.f32 %v745_v3, 0.0  ;;  %v5225_v22 = vadd.f32 %v4074_v13, %v5009_v51  ;;  %v4756_v62 = vld [vmem:[%s6305_s4 + $0x38] sm:$0xff]  }
 0x10b   : > { %v792_v27 = vmax.f32 %v760_v32, 0.0  ;;  %v1433_v59 = vadd.f32 %v5013_v53, %v5053_v33  ;;  %4214 = vmatpush3.bf16.msra.mxu1 %v4754_v6  ;;  %v5230_v7 = vadd.f32 %v5009_v51, %v718_v0  ;;  %v791_v12 = vmax.f32 %v759_v16, 0.0 }
 0x10c   : > { %v1464_v29 = vmax.f32 %v1432_v9, 0.0  ;;  %v1434_v31 = vadd.f32 %v5013_v53, %v5081_v55  ;;  %v802_v49 = vpack.c.bf16 %v778_v54, %v777_v18  ;;  %4215 = vmatprep.subr.bf16.mxu1 %v4755_v4  ;;  %v762_v3 = vadd.f32 %v5011_v52, %v5225_v22 }
 0x10d   : > { %v1465_v32 = vmax.f32 %v1433_v59, 0.0  ;;  %v1435_v6 = vadd.f32 %v5013_v53, %v5071_v43  ;;  %v5241_v51 = vpack.c.bf16 %v792_v27, %v791_v12  ;;  %v761_v13 = vadd.f32 %v5011_v52, %v5230_v7 }
 0x10e   : > { %v1466_v16 = vmax.f32 %v1434_v31, 0.0  ;;  %v1436_v54 = vadd.f32 %v5013_v53, %v5112_v20  ;;  %4104 = vmatmul.mubr.bf16.gmra.mrb[28].mxu1 %v802_v49  ;;  %v794_v9 = vmax.f32 %v762_v3, 0.0  ;;  %v1437_v59 = vadd.f32 %v5013_v53, %v5107_v14 }
 0x10f   : > { %v5247_v18 = vpack.c.bf16 %v1465_v32, %v1464_v29  ;;  %v1467_v0 = vmax.f32 %v1435_v6, 0.0  ;;  %4107 = vmatprep.mubr.bf16.mxu1 %v5127_v35  ;;  %4216 = vmatpush3.bf16.msra.mxu1 %v4755_v4  ;;  %v793_v27 = vmax.f32 %v761_v13, 0.0  ;;  %v1438_v52 = vadd.f32 %v5013_v53, %v5139_v58  ;;  %v5259_v29 = vld [vmem:[%s6305_s4] sm:$0xff]  }
 0x110   : > { %v1468_v12 = vmax.f32 %v1436_v54, 0.0  ;;  %v1439_v31 = vadd.f32 %v5013_v53, %v5132_v41  ;;  %4217 = vmatprep.subr.bf16.mxu1 %v4756_v62  ;;  %v1469_v3 = vmax.f32 %v1437_v59, 0.0  ;;  %v1440_v35 = vadd.f32 %v5013_v53, %v5166_v28 }
 0x111   : > { %v5261_v49 = vpack.c.bf16 %v1467_v0, %v1466_v16  ;;  %v1441_v4 = vadd.f32 %v5013_v53, %v5161_v19  ;;  %v5267_v32 = vpack.c.bf16 %v794_v9, %v793_v27  ;;  %v1470_v6 = vmax.f32 %v1438_v52, 0.0 }
 0x112   : > { %v1471_v13 = vmax.f32 %v1439_v31, 0.0  ;;  %v1442_v54 = vadd.f32 %v5013_v53, %v5193_v21  ;;  %v5271_v40 = vpack.c.bf16 %v1469_v3, %v1468_v12  ;;  %v1472_v39 = vmax.f32 %v1440_v35, 0.0 }
 0x113   : > { %v1473_v50 = vmax.f32 %v1441_v4, 0.0  ;;  %v1443_v16 = vadd.f32 %v5013_v53, %v5188_v11  ;;  %4218 = vmatpush3.bf16.msra.mxu1 %v4756_v62  ;;  %v1448_v52 = vadd.f32 %v5013_v53, %v5095_v5  ;;  %v1449_v12 = vadd.f32 %v5013_v53, %v5087_v57 }
 0x114   : > { %v5275_v0 = vpack.c.bf16 %v1471_v13, %v1470_v6  ;;  %v1474_v59 = vmax.f32 %v1442_v54, 0.0  ;;  %4331 = vmatprep.subr.bf16.mxu1 %v5259_v29  ;;  %v1450_v62 = vadd.f32 %v5013_v53, %v5120_v26  ;;  %v1452_v4 = vadd.f32 %v5013_v53, %v5147_v8 }
 0x115   : > { %v5278_v9 = vpack.c.bf16 %v1473_v50, %v1472_v39  ;;  %v1475_v27 = vmax.f32 %v1443_v16, 0.0  ;;  %v1480_v3 = vmax.f32 %v1448_v52, 0.0  ;;  %v1481_v35 = vmax.f32 %v1449_v12, 0.0 }
 0x116   : > { %4108 = vmatmul.mubr.bf16.gmra.mrb[32].mxu1 %v5134_v47  ;;  %v1451_v39 = vadd.f32 %v5013_v53, %v5115_v23  ;;  %v1482_v50 = vmax.f32 %v1450_v62, 0.0  ;;  %v1453_v6 = vadd.f32 %v5013_v53, %v5142_v63  ;;  %v2159_v47 = vmax.f32 %v5022_v60, 0.0 }
 0x117   : > { %6318 = vst [vmem:[#allocation6_spill] sm:$0xff] %v5278_v9  ;;  %v5285_v31 = vpack.c.bf16 %v1475_v27, %v1474_v59  ;;  %4111 = vmatprep.mubr.bf16.mxu1 %v5163_v24  ;;  %v5297_v13 = vpack.c.bf16 %v1481_v35, %v1480_v3  ;;  %v1454_v24 = vadd.f32 %v5013_v53, %v5174_v46  ;;  %v1484_v59 = vmax.f32 %v1452_v4, 0.0 }
 0x118   : > { %v1483_v54 = vmax.f32 %v1451_v39, 0.0  ;;  %v1455_v16 = vadd.f32 %v5013_v53, %v5169_v30  ;;  %v1485_v27 = vmax.f32 %v1453_v6, 0.0  ;;  %v1456_v52 = vadd.f32 %v5013_v53, %v5201_v37 }
 0x119   : > { %6319 = vst [vmem:[#allocation7_spill] sm:$0xff] %v5285_v31  ;;  %6320 = vst [vmem:[#allocation8_spill] sm:$0xff] %v5297_v13  ;;  %v1457_v12 = vadd.f32 %v5013_v53, %v5196_v25  ;;  %v1486_v60 = vmax.f32 %v1454_v24, 0.0  ;;  %v1458_v35 = vadd.f32 %v5013_v53, %v5230_v7  ;;  %v1459_v4 = vadd.f32 %v5013_v53, %v5225_v22 }
 0x11a   : > { %v5307_v62 = vpack.c.bf16 %v1483_v54, %v1482_v50  ;;  %v1487_v3 = vmax.f32 %v1455_v16, 0.0  ;;  %v5311_v39 = vpack.c.bf16 %v1485_v27, %v1484_v59  ;;  %v1488_v13 = vmax.f32 %v1456_v52, 0.0 }
 0x11b   : > { %v1489_v31 = vmax.f32 %v1457_v12, 0.0  ;;  %v1490_v56 = vmax.f32 %v1458_v35, 0.0  ;;  %v2158_v9 = vmax.f32 %v5032_v1, 0.0  ;;  %v2130_v50 = vadd.f32 %v4989_v44, %v5056_v34 }
 0x11c   : > { %v5315_v6 = vpack.c.bf16 %v1487_v3, %v1486_v60  ;;  %v1491_v24 = vmax.f32 %v1459_v4, 0.0  ;;  %v2131_v16 = vadd.f32 %v4989_v44, %v5053_v33  ;;  %v2132_v59 = vadd.f32 %v4989_v44, %v5081_v55 }
 0x11d   : > { %v5321_v54 = vpack.c.bf16 %v1489_v31, %v1488_v13  ;;  %v5328_v27 = vpack.c.bf16 %v2159_v47, %v2158_v9  ;;  %v2162_v52 = vmax.f32 %v2130_v50, 0.0  ;;  %v2133_v1 = vadd.f32 %v4989_v44, %v5071_v43 }
 0x11e   : > { %4112 = vmatmul.mubr.bf16.gmra.mrb[36].mxu1 %v5183_v48  ;;  %v2134_v48 = vadd.f32 %v4989_v44, %v5112_v20  ;;  %v5334_v31 = vpack.c.bf16 %v1491_v24, %v1490_v56  ;;  %v2163_v13 = vmax.f32 %v2131_v16, 0.0  ;;  %v2164_v12 = vmax.f32 %v2132_v59, 0.0 }
 0x11f   : > { %4115 = vmatprep.mubr.bf16.mxu1 %v5203_v42  ;;  %6321 = vst [vmem:[#allocation9_spill] sm:$0xff] %v5328_v27  ;;  %v2135_v60 = vadd.f32 %v4989_v44, %v5107_v14  ;;  %v2165_v3 = vmax.f32 %v2133_v1, 0.0  ;;  %v2136_v42 = vadd.f32 %v4989_v44, %v5139_v58  ;;  %v2137_v9 = vadd.f32 %v4989_v44, %v5132_v41 }
 0x120   : > { %6322 = vst [vmem:[#allocation10_spill] sm:$0xff] %v5334_v31  ;;  %v2166_v35 = vmax.f32 %v2134_v48, 0.0  ;;  %v5342_v47 = vpack.c.bf16 %v2163_v13, %v2162_v52  ;;  %v2138_v56 = vadd.f32 %v4989_v44, %v5166_v28  ;;  %v2139_v50 = vadd.f32 %v4989_v44, %v5161_v19 }
 0x121   : > { %v2167_v4 = vmax.f32 %v2135_v60, 0.0  ;;  %v5348_v24 = vpack.c.bf16 %v2165_v3, %v2164_v12  ;;  %v2168_v16 = vmax.f32 %v2136_v42, 0.0  ;;  %v2169_v59 = vmax.f32 %v2137_v9, 0.0 }
 0x122   : > { %6323 = vst [vmem:[#allocation11_spill] sm:$0xff] %v5342_v47  ;;  %v2140_v1 = vadd.f32 %v4989_v44, %v5193_v21  ;;  %v2170_v27 = vmax.f32 %v2138_v56, 0.0  ;;  %v2171_v31 = vmax.f32 %v2139_v50, 0.0  ;;  %v2141_v52 = vadd.f32 %v4989_v44, %v5188_v11 }
 0x123   : > { %v5352_v48 = vpack.c.bf16 %v2167_v4, %v2166_v35  ;;  %v5356_v13 = vpack.c.bf16 %v2169_v59, %v2168_v16  ;;  %v2142_v47 = vadd.f32 %v4989_v44, %v5059_v36  ;;  %v2143_v12 = vadd.f32 %v4989_v44, %v5041_v10 }
 0x124   : > { %v2172_v60 = vmax.f32 %v2140_v1, 0.0  ;;  %v5363_v3 = vpack.c.bf16 %v2171_v31, %v2170_v27  ;;  %v2173_v35 = vmax.f32 %v2141_v52, 0.0  ;;  %v2146_v4 = vadd.f32 %v4989_v44, %v5095_v5 }
 0x125   : > { %v2174_v42 = vmax.f32 %v2142_v47, 0.0  ;;  %v2175_v9 = vmax.f32 %v2143_v12, 0.0  ;;  %v2147_v56 = vadd.f32 %v4989_v44, %v5087_v57  ;;  %v2148_v16 = vadd.f32 %v4989_v44, %v5120_v26 }
 0x126   : > { %4116 = vmatmul.mubr.bf16.gmra.mrb[40].mxu1 %v5218_v15  ;;  %v5370_v50 = vpack.c.bf16 %v2173_v35, %v2172_v60  ;;  %v2178_v15 = vmax.f32 %v2146_v4, 0.0  ;;  %v2150_v47 = vadd.f32 %v4989_v44, %v5147_v8  ;;  %v2151_v1 = vadd.f32 %v4989_v44, %v5142_v63 }
 0x127   : > { %4119 = vmatprep.mubr.bf16.mxu1 %v5241_v51  ;;  %v5374_v59 = vpack.c.bf16 %v2175_v9, %v2174_v42  ;;  %v2179_v27 = vmax.f32 %v2147_v56, 0.0  ;;  %v2149_v51 = vadd.f32 %v4989_v44, %v5115_v23  ;;  %v2180_v31 = vmax.f32 %v2148_v16, 0.0 }
 0x128   : > { %6324 = vst [vmem:[#allocation12_spill] sm:$0xff] %v5370_v50  ;;  %v2152_v12 = vadd.f32 %v4989_v44, %v5174_v46  ;;  %v2153_v35 = vadd.f32 %v4989_v44, %v5169_v30  ;;  %v2182_v42 = vmax.f32 %v2150_v47, 0.0  ;;  %v2183_v9 = vmax.f32 %v2151_v1, 0.0 }
 0x129   : > { %6325 = vst [vmem:[#allocation13_spill] sm:$0xff] %v5374_v59  ;;  %v5382_v52 = vpack.c.bf16 %v2179_v27, %v2178_v15  ;;  %v2181_v60 = vmax.f32 %v2149_v51, 0.0  ;;  %v2154_v4 = vadd.f32 %v4989_v44, %v5201_v37  ;;  %v2155_v56 = vadd.f32 %v4989_v44, %v5196_v25 }
 0x12a   : > { %v2184_v59 = vmax.f32 %v2152_v12, 0.0  ;;  %v2185_v15 = vmax.f32 %v2153_v35, 0.0  ;;  %v2156_v27 = vadd.f32 %v4989_v44, %v5230_v7  ;;  %v5397_v51 = vpack.c.bf16 %v2183_v9, %v2182_v42  ;;  %v1076_v35 = vld [vmem:[%s6307_s6 + $0x8] sm:$0xff]  ;;  %v1077_v42 = vld [vmem:[%s6307_s6 + $0x10] sm:$0xff] }
 0x12b   : > { %6326 = vst [vmem:[#allocation14_spill] sm:$0xff] %v5382_v52  ;;  %v5392_v16 = vpack.c.bf16 %v2181_v60, %v2180_v31  ;;  %v2186_v52 = vmax.f32 %v2154_v4, 0.0  ;;  %v2187_v47 = vmax.f32 %v2155_v56, 0.0  ;;  %v2157_v1 = vadd.f32 %v4989_v44, %v5225_v22 }
 0x12c   : > { %v5402_v50 = vpack.c.bf16 %v2185_v15, %v2184_v59  ;;  %v2188_v31 = vmax.f32 %v2156_v27, 0.0  ;;  %v2856_v60 = vmax.f32 %v5035_v2, 0.0  ;;  %v2857_v12 = vmax.f32 %v5025_v61, 0.0  ;;  %v1078_v61 = vld [vmem:[%s6307_s6 + $0x18] sm:$0xff] }
 0x12d   : > { %v2189_v59 = vmax.f32 %v2157_v1, 0.0  ;;  %v2828_v2 = vadd.f32 %v4991_v45, %v5056_v34  ;;  %v5426_v56 = vpack.c.bf16 %v1078_v61, %v1077_v42  ;;  %v2829_v15 = vadd.f32 %v4991_v45, %v5053_v33 }
 0x12e   : > { %4120 = vmatmul.mubr.bf16.gmra.mrb[44].mxu1 %v5267_v32  ;;  %v1075_v32 = vld [vmem:[%s6307_s6] sm:$0xff]  ;;  %v5424_v4 = vpack.c.bf16 %v2857_v12, %v2856_v60  ;;  %v2831_v1 = vadd.f32 %v4991_v45, %v5071_v43  ;;  %v2832_v34 = vadd.f32 %v4991_v45, %v5112_v20  ;;  %v2833_v33 = vadd.f32 %v4991_v45, %v5107_v14 }
 0x12f   : > { %4219 = vmatprep.mubr.bf16.mxu1 %v5216_v17  ;;  %v5415_v17 = vpack.c.bf16 %v2187_v47, %v2186_v52  ;;  %v5417_v9 = vpack.c.bf16 %v1076_v35, %v1075_v32  ;;  %v2830_v52 = vadd.f32 %v4991_v45, %v5081_v55  ;;  %v5432_v27 = vpack.c.bf16 %v2189_v59, %v2188_v31  ;;  %v4758_v31 = vld [vmem:[%s6305_s4 + $0x8] sm:$0xff]  }
 0x130   : > { %v2860_v47 = vmax.f32 %v2828_v2, 0.0  ;;  %v2861_v60 = vmax.f32 %v2829_v15, 0.0  ;;  %v2834_v55 = vadd.f32 %v4991_v45, %v5139_v58  ;;  %v2863_v43 = vmax.f32 %v2831_v1, 0.0 }
 0x131   : > { %4588 = vmatprep.subr.bf16.mxu0 %v5417_v9  ;;  %v2862_v12 = vmax.f32 %v2830_v52, 0.0  ;;  %v2864_v32 = vmax.f32 %v2832_v34, 0.0  ;;  %v2835_v20 = vadd.f32 %v4991_v45, %v5132_v41  ;;  %v2836_v35 = vadd.f32 %v4991_v45, %v5166_v28  ;;  %v1079_v41 = vld [vmem:[%s6307_s6 + $0x20] sm:$0xff]  ;;  %v1082_v34 = vld [vmem:[%s6307_s6 + $0x38] sm:$0xff] }
 0x132   : > { %4590 = vmatpush3.bf16.msra.mxu0 %v5417_v9  ;;  %v5452_v42 = vpack.c.bf16 %v2861_v60, %v2860_v47  ;;  %v2865_v14 = vmax.f32 %v2833_v33, 0.0  ;;  %v2866_v59 = vmax.f32 %v2834_v55, 0.0  ;;  %v2837_v58 = vadd.f32 %v4991_v45, %v5161_v19  ;;  %v1080_v19 = vld [vmem:[%s6307_s6 + $0x28] sm:$0xff] }
 0x133   : > { %4592 = vmatprep.subr.bf16.mxu0 %v5426_v56  ;;  %v5457_v61 = vpack.c.bf16 %v2863_v43, %v2862_v12  ;;  %v2867_v2 = vmax.f32 %v2835_v20, 0.0  ;;  %v2868_v15 = vmax.f32 %v2836_v35, 0.0  ;;  %v2838_v52 = vadd.f32 %v4991_v45, %v5193_v21 }
 0x134   : > { %v5472_v28 = vpack.c.bf16 %v2865_v14, %v2864_v32  ;;  %v2869_v47 = vmax.f32 %v2837_v58, 0.0  ;;  %v2839_v21 = vadd.f32 %v4991_v45, %v5188_v11  ;;  %v5482_v1 = vpack.c.bf16 %v1080_v19, %v1079_v41 }
 0x135   : > { %v5487_v60 = vpack.c.bf16 %v2867_v2, %v2866_v59  ;;  %v2870_v12 = vmax.f32 %v2838_v52, 0.0  ;;  %v2841_v11 = vadd.f32 %v4991_v45, %v5041_v10  ;;  %v2844_v35 = vadd.f32 %v4991_v45, %v5095_v5 }
 0x136   : > { %4220 = vmatmul.mubr.bf16.vlgmr.msra.gmra.mrb[48].mxu1 %v5061_v38  ;;  %v1081_v38 = vld [vmem:[%s6307_s6 + $0x30] sm:$0xff]  ;;  %4594 = vmatpush3.bf16.msra.mxu0 %v5426_v56  ;;  %v5493_v55 = vpack.c.bf16 %v2869_v47, %v2868_v15  ;;  %v2871_v43 = vmax.f32 %v2839_v21, 0.0  ;;  %v2845_v59 = vadd.f32 %v4991_v45, %v5087_v57  ;;  %v2846_v58 = vadd.f32 %v4991_v45, %v5120_v26  ;;  %v4760_v15 = vld [vmem:[%s6305_s4 + $0x18] sm:$0xff]   ;;  %v1083_v47 = vld [vmem:[%s6307_s6 + $0x40] sm:$0xff] }
 0x137   : > { %4332 = vmatpush3.bf16.msra.mxu1 %v5259_v29  ;;  %4223 = vmatprep.mubr.bf16.mxu1 %v5247_v18  ;;  %v2840_v18 = vadd.f32 %v4991_v45, %v5059_v36  ;;  %v4759_v29 = vld [vmem:[%s6305_s4 + $0x10] sm:$0xff]   ;;  %v5491_v33 = vpack.c.bf16 %v1082_v34, %v1081_v38  ;;  %v2873_v20 = vmax.f32 %v2841_v11, 0.0  ;;  %v2847_v2 = vadd.f32 %v4991_v45, %v5115_v23  ;;  %v4761_v21 = vld [vmem:[%s6305_s4 + $0x20] sm:$0xff]  }
 0x138   : > { %4333 = vmatprep.subr.bf16.mxu1 %v4758_v31  ;;  %4596 = vmatprep.subr.bf16.mxu0 %v5482_v1  ;;  %v5498_v14 = vpack.c.bf16 %v2871_v43, %v2870_v12  ;;  %v2877_v52 = vmax.f32 %v2845_v59, 0.0  ;;  %v2878_v57 = vmax.f32 %v2846_v58, 0.0  ;;  %v2848_v26 = vadd.f32 %v4991_v45, %v5147_v8  ;;  %v1084_v8 = vld [vmem:[%s6307_s6 + $0x48] sm:$0xff] }
 0x139   : > { %v2872_v32 = vmax.f32 %v2840_v18, 0.0  ;;  %v2879_v41 = vmax.f32 %v2847_v2, 0.0  ;;  %v2849_v23 = vadd.f32 %v4991_v45, %v5142_v63  ;;  %v2850_v19 = vadd.f32 %v4991_v45, %v5174_v46  ;;  %v1085_v63 = vld [vmem:[%s6307_s6 + $0x50] sm:$0xff] }
 0x13a   : > { %4598 = vmatpush3.bf16.msra.mxu0 %v5482_v1  ;;  %v2851_v38 = vadd.f32 %v4991_v45, %v5169_v30  ;;  %v2880_v30 = vmax.f32 %v2848_v26, 0.0  ;;  %v5542_v18 = vpack.c.bf16 %v1084_v8, %v1083_v47  ;;  %v2855_v58 = vadd.f32 %v4991_v45, %v5225_v22  ;;  %v1087_v26 = vld [vmem:[%s6307_s6 + $0x60] sm:$0xff]  ;;  %v6329_v8 = vld [vmem:[#allocation4_spill] sm:$0xff] }
 0x13b   : > { %4334 = vmatpush3.bf16.msra.mxu1 %v4758_v31  ;;  %v5510_v5 = vpack.c.bf16 %v2873_v20, %v2872_v32  ;;  %v2876_v31 = vmax.f32 %v2844_v35, 0.0  ;;  %4600 = vmatprep.subr.bf16.mxu0 %v5491_v33  ;;  %v5534_v46 = vpack.c.bf16 %v2879_v41, %v2878_v57  ;;  %v2881_v34 = vmax.f32 %v2849_v23, 0.0  ;;  %v6327_v41 = vld [vmem:[#allocation6_spill] sm:$0xff] }
 0x13c   : > { %4335 = vmatprep.subr.bf16.mxu1 %v4759_v29  ;;  %v2882_v12 = vmax.f32 %v2850_v19, 0.0  ;;  %v2883_v11 = vmax.f32 %v2851_v38, 0.0  ;;  %v2854_v20 = vadd.f32 %v4991_v45, %v5230_v7  ;;  %v2887_v7 = vmax.f32 %v2855_v58, 0.0  ;;  %v6328_v38 = vld [vmem:[#allocation5_spill] sm:$0xff]  ;;  %v6332_v58 = vld [vmem:[#allocation10_spill] sm:$0xff] }
 0x13d   : > { %v5554_v35 = vpack.c.bf16 %v2881_v34, %v2880_v30  ;;  %v1445_v57 = vadd.f32 %v5013_v53, %v5041_v10  ;;  %v4763_v10 = vld [vmem:[%s6305_s4 + $0x30] sm:$0xff]   ;;  %v1446_v47 = vadd.f32 %v5013_v53, %v6328_v38  ;;  %v4764_v30 = vld [vmem:[%s6305_s4 + $0x38] sm:$0xff]  }
 0x13e   : > { %4224 = vmatmul.mubr.bf16.gmra.mrb[52].mxu1 %v5261_v49  ;;  %v5532_v49 = vpack.c.bf16 %v2877_v52, %v2876_v31  ;;  %4602 = vmatpush3.bf16.msra.mxu0 %v5491_v33  ;;  %v5556_v59 = vpack.c.bf16 %v2883_v11, %v2882_v12  ;;  %v2886_v31 = vmax.f32 %v2854_v20, 0.0  ;;  %v1444_v52 = vadd.f32 %v5013_v53, %v5059_v36  ;;  %v1088_v36 = vld [vmem:[%s6307_s6 + $0x68] sm:$0xff]  ;;  %v4765_v11 = vld [vmem:[%s6305_s4] sm:$0xff]   ;;  %v6331_v20 = vld [vmem:[#allocation8_spill] sm:$0xff] }
 0x13f   : > { %4227 = vmatprep.mubr.bf16.mxu1 %v5271_v40  ;;  %4336 = vmatpush3.bf16.msra.mxu1 %v4759_v29  ;;  %v2852_v40 = vadd.f32 %v4991_v45, %v5201_v37  ;;  %v1086_v29 = vld [vmem:[%s6307_s6 + $0x58] sm:$0xff]  ;;  %v2853_v37 = vadd.f32 %v4991_v45, %v5196_v25  ;;  %v4762_v25 = vld [vmem:[%s6305_s4 + $0x28] sm:$0xff]   ;;  %v1477_v19 = vmax.f32 %v1445_v57, 0.0  ;;  %v1478_v34 = vmax.f32 %v1446_v47, 0.0  ;;  %v6336_v57 = vld [vmem:[#allocation12_spill] sm:$0xff] }
 0x140   : > { %4337 = vmatprep.subr.bf16.mxu1 %v4760_v15  ;;  %v5547_v43 = vpack.c.bf16 %v1086_v29, %v1085_v63  ;;  %4604 = vmatprep.subr.bf16.mxu0 %v5542_v18  ;;  %v1476_v23 = vmax.f32 %v1444_v52, 0.0  ;;  %v1447_v63 = vadd.f32 %v5013_v53, %v6329_v8  ;;  %v1089_v29 = vld [vmem:[%s6307_s6 + $0x70] sm:$0xff]  ;;  %v1090_v53 = vld [vmem:[%s6307_s6 + $0x78] sm:$0xff]  ;;  %v2145_v52 = vadd.f32 %v4989_v44, %v6329_v8 }
 0x141   : > { %v2884_v32 = vmax.f32 %v2852_v40, 0.0  ;;  %v2885_v2 = vmax.f32 %v2853_v37, 0.0  ;;  %v5606_v37 = vpack.c.bf16 %v1090_v53, %v1089_v29 }
 0x142   : > { %4606 = vmatpush3.bf16.msra.mxu0 %v5542_v18  ;;  %v1500_v40 = vpack.c.bf16 %v1477_v19, %v1476_v23  ;;  %v1479_v12 = vmax.f32 %v1447_v63, 0.0 }
 0x143   : > { %4338 = vmatpush3.bf16.msra.mxu1 %v4760_v15  ;;  %4608 = vmatprep.subr.bf16.mxu0 %v5547_v43  ;;  %v5569_v22 = vpack.c.bf16 %v2885_v2, %v2884_v32  ;;  %v5572_v15 = vpack.c.bf16 %v2887_v7, %v2886_v31  ;;  %v6333_v2 = vld [vmem:[#allocation9_spill] sm:$0xff]  ;;  %v4766_v31 = vld [vmem:[%s6305_s4 + $0x8] sm:$0xff]  }
 0x144   : > { %4339 = vmatprep.subr.bf16.mxu1 %v4761_v21  ;;  %v1501_v32 = vpack.c.bf16 %v1479_v12, %v1478_v34  ;;  %v6335_v7 = vld [vmem:[#allocation11_spill] sm:$0xff] }
 0x146   : > { %4228 = vmatmul.mubr.bf16.gmra.mrb[56].mxu1 %v5275_v0  ;;  %4610 = vmatpush3.bf16.msra.mxu0 %v5547_v43  ;;  %v5585_v0 = vpack.c.bf16 %v1088_v36, %v1087_v26  ;;  %v2177_v26 = vmax.f32 %v2145_v52, 0.0 }
 0x147   : > { %4231 = vmatprep.mubr.bf16.mxu1 %v6327_v41  ;;  %4340 = vmatpush3.bf16.msra.mxu1 %v4761_v21  ;;  %v6330_v21 = vld [vmem:[#allocation7_spill] sm:$0xff] }
 0x148   : > { %4341 = vmatprep.subr.bf16.mxu1 %v4762_v25  ;;  %4612 = vmatprep.subr.bf16.mxu0 %v5585_v0 }
 0x14a   : > { %4614 = vmatpush3.bf16.msra.mxu0 %v5585_v0 }
 0x14b   : > { %4342 = vmatpush3.bf16.msra.mxu1 %v4762_v25  ;;  %4616 = vmatprep.subr.bf16.mxu0 %v5606_v37  ;;  %v6334_v25 = vld [vmem:[#allocation2_spill] sm:$0xff] }
 0x14c   : > { %4343 = vmatprep.subr.bf16.mxu1 %v4763_v10 }
 0x14e   : > { %4232 = vmatmul.mubr.bf16.gmra.mrb[60].mxu1 %v6330_v21  ;;  %4618 = vmatpush3.bf16.msra.mxu0 %v5606_v37 }
 0x14f   : > { %4235 = vmatprep.mubr.bf16.mxu1 %v1500_v40  ;;  %4344 = vmatpush3.bf16.msra.mxu1 %v4763_v10  ;;  %v6338_v10 = vld [vmem:[#allocation14_spill] sm:$0xff] }
 0x150   : > { %4345 = vmatprep.subr.bf16.mxu1 %v4764_v30  ;;  %4620 = vmatprep.subr.bf16.mxu0 %v5417_v9 }
 0x153   : > { %4346 = vmatpush3.bf16.msra.mxu1 %v4764_v30 }
 0x154   : > { %4459 = vmatprep.subr.bf16.mxu1 %v4765_v11 }
 0x156   : > { %4236 = vmatmul.mubr.bf16.gmra.mrb[64].mxu1 %v1501_v32 }
 0x157   : > { %4239 = vmatprep.mubr.bf16.mxu1 %v6331_v20 }
 0x15e   : > { %4240 = vmatmul.mubr.bf16.gmra.mrb[68].mxu1 %v5307_v62  ;;  %v4767_v62 = vld [vmem:[%s6305_s4 + $0x10] sm:$0xff]  }
 0x15f   : > { %4243 = vmatprep.mubr.bf16.mxu1 %v5311_v39  ;;  %v4768_v39 = vld [vmem:[%s6305_s4 + $0x18] sm:$0xff]  }
 0x166   : > { %4244 = vmatmul.mubr.bf16.gmra.mrb[72].mxu1 %v5315_v6  ;;  %v4769_v6 = vld [vmem:[%s6305_s4 + $0x20] sm:$0xff]  }
 0x167   : > { %4247 = vmatprep.mubr.bf16.mxu1 %v5321_v54  ;;  %v4770_v54 = vld [vmem:[%s6305_s4 + $0x28] sm:$0xff]  }
 0x16e   : > { %4248 = vmatmul.mubr.bf16.gmra.mrb[76].mxu1 %v6332_v58 }
 0x16f   : > { %4347 = vmatprep.mubr.bf16.mxu1 %v6333_v2 }
 0x176   : > { %4348 = vmatmul.mubr.bf16.vlgmr.msra.gmra.mrb[80].mxu1 %v6334_v25 }
 0x177   : > { %4460 = vmatpush3.bf16.msra.mxu1 %v4765_v11  ;;  %4351 = vmatprep.mubr.bf16.mxu1 %v6335_v7 }
 0x178   : > { %4461 = vmatprep.subr.bf16.mxu1 %v4766_v31 }
 0x17b   : > { %4462 = vmatpush3.bf16.msra.mxu1 %v4766_v31 }
 0x17c   : > { %4463 = vmatprep.subr.bf16.mxu1 %v4767_v62 }
 0x17e   : > { %4352 = vmatmul.mubr.bf16.gmra.mrb[84].mxu1 %v5348_v24  ;;  %v4771_v24 = vld [vmem:[%s6305_s4 + $0x30] sm:$0xff]  }
 0x17f   : > { %4355 = vmatprep.mubr.bf16.mxu1 %v5352_v48  ;;  %4464 = vmatpush3.bf16.msra.mxu1 %v4767_v62  ;;  %v2144_v48 = vadd.f32 %v4989_v44, %v6328_v38  ;;  %v6339_v44 = vld [vmem:[#allocation3_spill] sm:$0xff] }
 0x180   : > { %4465 = vmatprep.subr.bf16.mxu1 %v4768_v39 }
 0x181   : > { %v2176_v41 = vmax.f32 %v2144_v48, 0.0 }
 0x183   : > { %4466 = vmatpush3.bf16.msra.mxu1 %v4768_v39  ;;  %v2199_v36 = vpack.c.bf16 %v2177_v26, %v2176_v41 }
 0x184   : > { %4467 = vmatprep.subr.bf16.mxu1 %v4769_v6 }
 0x186   : > { %4356 = vmatmul.mubr.bf16.gmra.mrb[88].mxu1 %v5356_v13  ;;  %v4772_v13 = vld [vmem:[%s6305_s4 + $0x38] sm:$0xff]  }
 0x187   : > { %4359 = vmatprep.mubr.bf16.mxu1 %v5363_v3  ;;  %4468 = vmatpush3.bf16.msra.mxu1 %v4769_v6  ;;  %v6337_v3 = vld [vmem:[#allocation13_spill] sm:$0xff] }
 0x188   : > { %4469 = vmatprep.subr.bf16.mxu1 %v4770_v54 }
 0x18b   : > { %4470 = vmatpush3.bf16.msra.mxu1 %v4770_v54 }
 0x18c   : > { %4471 = vmatprep.subr.bf16.mxu1 %v4771_v24 }
 0x18e   : > { %4360 = vmatmul.mubr.bf16.gmra.mrb[92].mxu1 %v6336_v57 }
 0x18f   : > { %4363 = vmatprep.mubr.bf16.mxu1 %v6337_v3  ;;  %4472 = vmatpush3.bf16.msra.mxu1 %v4771_v24 }
 0x190   : > { %4473 = vmatprep.subr.bf16.mxu1 %v4772_v13 }
 0x193   : > { %4474 = vmatpush3.bf16.msra.mxu1 %v4772_v13 }
 0x196   : > { %4364 = vmatmul.mubr.bf16.gmra.mrb[96].mxu1 %v2199_v36 }
 0x197   : > { %4367 = vmatprep.mubr.bf16.mxu1 %v6338_v10 }
 0x19e   : > { %4368 = vmatmul.mubr.bf16.gmra.mrb[100].mxu1 %v5392_v16 }
 0x19f   : > { %4371 = vmatprep.mubr.bf16.mxu1 %v5397_v51 }
 0x1a6   : > { %4372 = vmatmul.mubr.bf16.gmra.mrb[104].mxu1 %v5402_v50  ;;  %v5667_v50 = vld [vmem:[%s6306_s5] ss:$0 sm:$0xff] }
 0x1a7   : > { %4375 = vmatprep.mubr.bf16.mxu1 %v5415_v17 }
 0x1ae   : > { %4376 = vmatmul.mubr.bf16.gmra.mrb[108].mxu1 %v5432_v27 }
 0x1af   : > { %4475 = vmatprep.mubr.bf16.mxu1 %v5424_v4 }
 0x1b6   : > { %4476 = vmatmul.mubr.bf16.vlgmr.msra.gmra.mrb[112].mxu1 %v6339_v44 }
 0x1b7   : > { %4479 = vmatprep.mubr.bf16.mxu1 %v5452_v42 }
 0x1be   : > { %4480 = vmatmul.mubr.bf16.gmra.mrb[116].mxu1 %v5457_v61  ;;  %v2842_v61 = vadd.f32 %v4991_v45, %v6328_v38 }
 0x1bf   : > { %4483 = vmatprep.mubr.bf16.mxu1 %v5472_v28  ;;  %v2843_v28 = vadd.f32 %v4991_v45, %v6329_v8 }
 0x1c0   : > { %v2874_v63 = vmax.f32 %v2842_v61, 0.0 }
 0x1c1   : > { %v2875_v30 = vmax.f32 %v2843_v28, 0.0 }
 0x1c3   : > { %v2897_v53 = vpack.c.bf16 %v2875_v30, %v2874_v63 }
 0x1c6   : > { %4484 = vmatmul.mubr.bf16.gmra.mrb[120].mxu1 %v5487_v60 }
 0x1c7   : > { %4487 = vmatprep.mubr.bf16.mxu1 %v5493_v55 }
 0x1c9   : > { %v4093_v16 = vpop.f32.mrb[16].mxu1 }
 0x1ca   : > { %v916_v51 = vpop.f32.mrb[17].mxu1  ;;  %v925_v27 = vadd.f32 %v4093_v16, %v5667_v50 }
 0x1cb   : > { %v917_v17 = vadd.f32 %v5667_v50, %v916_v51  ;;  %v4094_v4 = vpop.f32.mrb[18].mxu1 }
 0x1cc   : > { %v919_v42 = vpop.f32.mrb[19].mxu1  ;;  %v928_v23 = vadd.f32 %v4094_v4, %v5667_v50  ;;  %v1045_v47 = vmax.f32 %v925_v27, 0.0 }
 0x1cd   : > { %v1043_v60 = vmax.f32 %v917_v17, 0.0  ;;  %v920_v55 = vadd.f32 %v5667_v50, %v919_v42 }
 0x1ce   : > { %4488 = vmatmul.mubr.bf16.gmra.mrb[124].mxu1 %v5498_v14  ;;  %v1046_v45 = vmax.f32 %v928_v23, 0.0 }
 0x1cf   : > { %v1044_v19 = vmax.f32 %v920_v55, 0.0  ;;  %4155 = vmatprep.mubr.f32.mxu0 %v1043_v60  ;;  %4491 = vmatprep.mubr.bf16.mxu1 %v5510_v5 }
 0x1d1   : > { %v4097_v40 = vpop.f32.mrb[20].mxu1  ;;  %4156 = vmatmul.mubr.f32.vlgmr.msra.gmra.mrb[16].mxu0 %v1044_v19 }
 0x1d2   : > { %4622 = vmatpush3.bf16.msra.mxu0 %v5417_v9  ;;  %v932_v38 = vpop.f32.mrb[21].mxu1  ;;  %4158 = vmatprep.mubr.f32.mxu0 %v1045_v47  ;;  %v941_v14 = vadd.f32 %v4097_v40, %v5667_v50 }
 0x1d3   : > { %v933_v8 = vadd.f32 %v5667_v50, %v932_v38  ;;  %v4098_v21 = vpop.f32.mrb[22].mxu1  ;;  %4624 = vmatprep.subr.bf16.mxu0 %v5426_v56 }
 0x1d4   : > { %v935_v29 = vpop.f32.mrb[23].mxu1  ;;  %v944_v12 = vadd.f32 %v4098_v21, %v5667_v50  ;;  %v1049_v32 = vmax.f32 %v941_v14, 0.0 }
 0x1d5   : > { %v1047_v5 = vmax.f32 %v933_v8, 0.0  ;;  %v936_v34 = vadd.f32 %v5667_v50, %v935_v29  ;;  %4159 = vmatmul.mubr.f32.gmra.mrb[18].mxu0 %v1046_v45 }
 0x1d6   : > { %4492 = vmatmul.mubr.bf16.gmra.mrb[128].mxu1 %v2897_v53  ;;  %4626 = vmatpush3.bf16.msra.mxu0 %v5426_v56  ;;  %v1050_v2 = vmax.f32 %v944_v12, 0.0 }
 0x1d7   : > { %v1048_v11 = vmax.f32 %v936_v34, 0.0  ;;  %4161 = vmatprep.mubr.f32.mxu0 %v1047_v5  ;;  %4495 = vmatprep.mubr.bf16.mxu1 %v5532_v49 }
 0x1d8   : > { %4628 = vmatprep.subr.bf16.mxu0 %v5482_v1 }
 0x1d9   : > { %v4101_v20 = vpop.f32.mrb[24].mxu1  ;;  %4162 = vmatmul.mubr.f32.gmra.mrb[20].mxu0 %v1048_v11 }
 0x1da   : > { %v948_v58 = vpop.f32.mrb[25].mxu1  ;;  %4164 = vmatprep.mubr.f32.mxu0 %v1049_v32  ;;  %4630 = vmatpush3.bf16.msra.mxu0 %v5482_v1  ;;  %v957_v7 = vadd.f32 %v4101_v20, %v5667_v50 }
 0x1db   : > { %v949_v31 = vadd.f32 %v5667_v50, %v948_v58  ;;  %v4102_v25 = vpop.f32.mrb[26].mxu1  ;;  %4632 = vmatprep.subr.bf16.mxu0 %v5491_v33 }
 0x1dc   : > { %v951_v62 = vpop.f32.mrb[27].mxu1  ;;  %v960_v6 = vadd.f32 %v4102_v25, %v5667_v50  ;;  %v1053_v24 = vmax.f32 %v957_v7, 0.0 }
 0x1dd   : > { %v1051_v39 = vmax.f32 %v949_v31, 0.0  ;;  %v952_v49 = vadd.f32 %v5667_v50, %v951_v62  ;;  %4165 = vmatmul.mubr.f32.gmra.mrb[22].mxu0 %v1050_v2 }
 0x1de   : > { %4496 = vmatmul.mubr.bf16.gmra.mrb[132].mxu1 %v5534_v46  ;;  %4634 = vmatpush3.bf16.msra.mxu0 %v5491_v33  ;;  %v1054_v13 = vmax.f32 %v960_v6, 0.0 }
 0x1df   : > { %v1052_v54 = vmax.f32 %v952_v49, 0.0  ;;  %4167 = vmatprep.mubr.f32.mxu0 %v1051_v39  ;;  %4499 = vmatprep.mubr.bf16.mxu1 %v5554_v35 }
 0x1e0   : > { %4636 = vmatprep.subr.bf16.mxu0 %v5542_v18 }
 0x1e1   : > { %v4105_v48 = vpop.f32.mrb[28].mxu1  ;;  %4168 = vmatmul.mubr.f32.gmra.mrb[24].mxu0 %v1052_v54 }
 0x1e2   : > { %v964_v52 = vpop.f32.mrb[29].mxu1  ;;  %4170 = vmatprep.mubr.f32.mxu0 %v1053_v24  ;;  %4638 = vmatpush3.bf16.msra.mxu0 %v5542_v18  ;;  %v973_v3 = vadd.f32 %v4105_v48, %v5667_v50 }
 0x1e3   : > { %v965_v46 = vadd.f32 %v5667_v50, %v964_v52  ;;  %v4106_v57 = vpop.f32.mrb[30].mxu1  ;;  %4640 = vmatprep.subr.bf16.mxu0 %v5547_v43 }
 0x1e4   : > { %v967_v41 = vpop.f32.mrb[31].mxu1  ;;  %v976_v36 = vadd.f32 %v4106_v57, %v5667_v50  ;;  %v1057_v44 = vmax.f32 %v973_v3, 0.0 }
 0x1e5   : > { %v1055_v26 = vmax.f32 %v965_v46, 0.0  ;;  %v968_v35 = vadd.f32 %v5667_v50, %v967_v41  ;;  %4171 = vmatmul.mubr.f32.gmra.mrb[26].mxu0 %v1054_v13 }
 0x1e6   : > { %4500 = vmatmul.mubr.bf16.gmra.mrb[136].mxu1 %v5556_v59  ;;  %4642 = vmatpush3.bf16.msra.mxu0 %v5547_v43  ;;  %v1058_v17 = vmax.f32 %v976_v36, 0.0 }
 0x1e7   : > { %v1056_v10 = vmax.f32 %v968_v35, 0.0  ;;  %4173 = vmatprep.mubr.f32.mxu0 %v1055_v26  ;;  %4503 = vmatprep.mubr.bf16.mxu1 %v5569_v22 }
 0x1e8   : > { %4644 = vmatprep.subr.bf16.mxu0 %v5585_v0 }
 0x1e9   : > { %v4109_v16 = vpop.f32.mrb[32].mxu1  ;;  %4174 = vmatmul.mubr.f32.gmra.mrb[28].mxu0 %v1056_v10 }
 0x1ea   : > { %v980_v51 = vpop.f32.mrb[33].mxu1  ;;  %4176 = vmatprep.mubr.f32.mxu0 %v1057_v44  ;;  %4646 = vmatpush3.bf16.msra.mxu0 %v5585_v0  ;;  %v989_v27 = vadd.f32 %v4109_v16, %v5667_v50 }
 0x1eb   : > { %v981_v59 = vadd.f32 %v5667_v50, %v980_v51  ;;  %v4110_v4 = vpop.f32.mrb[34].mxu1  ;;  %4648 = vmatprep.subr.bf16.mxu0 %v5606_v37 }
 0x1ec   : > { %v983_v42 = vpop.f32.mrb[35].mxu1  ;;  %v992_v28 = vadd.f32 %v4110_v4, %v5667_v50  ;;  %v1061_v55 = vmax.f32 %v989_v27, 0.0 }
 0x1ed   : > { %v1059_v61 = vmax.f32 %v981_v59, 0.0  ;;  %v984_v22 = vadd.f32 %v5667_v50, %v983_v42  ;;  %4177 = vmatmul.mubr.f32.gmra.mrb[30].mxu0 %v1058_v17 }
 0x1ee   : > { %4504 = vmatmul.mubr.bf16.gmra.mrb[140].mxu1 %v5572_v15  ;;  %4650 = vmatpush3.bf16.msra.mxu0 %v5606_v37  ;;  %v1062_v47 = vmax.f32 %v992_v28, 0.0 }
 0x1ef   : > { %v1060_v60 = vmax.f32 %v984_v22, 0.0  ;;  %4179 = vmatprep.mubr.f32.mxu0 %v1059_v61  ;;  %4652 = vmatprep.subr.bf16.mxu0 %v5417_v9 }
 0x1f1   : > { %v4113_v23 = vpop.f32.mrb[36].mxu1  ;;  %4180 = vmatmul.mubr.f32.gmra.mrb[32].mxu0 %v1060_v60 }
 0x1f2   : > { %v996_v19 = vpop.f32.mrb[37].mxu1  ;;  %4182 = vmatprep.mubr.f32.mxu0 %v1061_v55  ;;  %v1005_v40 = vadd.f32 %v4113_v23, %v5667_v50 }
 0x1f3   : > { %v997_v63 = vadd.f32 %v5667_v50, %v996_v19  ;;  %v4114_v30 = vpop.f32.mrb[38].mxu1 }
 0x1f4   : > { %v999_v15 = vpop.f32.mrb[39].mxu1  ;;  %v1008_v8 = vadd.f32 %v4114_v30, %v5667_v50  ;;  %v1065_v14 = vmax.f32 %v1005_v40, 0.0 }
 0x1f5   : > { %v1063_v38 = vmax.f32 %v997_v63, 0.0  ;;  %v1000_v45 = vadd.f32 %v5667_v50, %v999_v15  ;;  %4183 = vmatmul.mubr.f32.gmra.mrb[34].mxu0 %v1062_v47 }
 0x1f6   : > { %v1066_v5 = vmax.f32 %v1008_v8, 0.0 }
 0x1f7   : > { %v1064_v21 = vmax.f32 %v1000_v45, 0.0  ;;  %4185 = vmatprep.mubr.f32.mxu0 %v1063_v38 }
 0x1f9   : > { %v4117_v29 = vpop.f32.mrb[40].mxu1  ;;  %4186 = vmatmul.mubr.f32.gmra.mrb[36].mxu0 %v1064_v21 }
 0x1fa   : > { %v1012_v53 = vpop.f32.mrb[41].mxu1  ;;  %4188 = vmatprep.mubr.f32.mxu0 %v1065_v14  ;;  %v1021_v11 = vadd.f32 %v4117_v29, %v5667_v50 }
 0x1fb   : > { %v1013_v34 = vadd.f32 %v5667_v50, %v1012_v53  ;;  %v4118_v12 = vpop.f32.mrb[42].mxu1 }
 0x1fc   : > { %v1015_v32 = vpop.f32.mrb[43].mxu1  ;;  %v1024_v2 = vadd.f32 %v4118_v12, %v5667_v50  ;;  %v1069_v25 = vmax.f32 %v1021_v11, 0.0 }
 0x1fd   : > { %v1067_v20 = vmax.f32 %v1013_v34, 0.0  ;;  %v1016_v58 = vadd.f32 %v5667_v50, %v1015_v32  ;;  %4189 = vmatmul.mubr.f32.gmra.mrb[38].mxu0 %v1066_v5 }
 0x1fe   : > { %v1070_v39 = vmax.f32 %v1024_v2, 0.0 }
 0x1ff   : > { %v1068_v31 = vmax.f32 %v1016_v58, 0.0  ;;  %4191 = vmatprep.mubr.f32.mxu0 %v1067_v20 }
 0x201   : > { %v4121_v7 = vpop.f32.mrb[44].mxu1  ;;  %4192 = vmatmul.mubr.f32.gmra.mrb[40].mxu0 %v1068_v31 }
 0x202   : > { %v1028_v62 = vpop.f32.mrb[45].mxu1  ;;  %4194 = vmatprep.mubr.f32.mxu0 %v1069_v25  ;;  %v1037_v54 = vadd.f32 %v4121_v7, %v5667_v50 }
 0x203   : > { %v1029_v49 = vadd.f32 %v5667_v50, %v1028_v62  ;;  %v4122_v6 = vpop.f32.mrb[46].mxu1 }
 0x204   : > { %v1031_v24 = vpop.f32.mrb[47].mxu1  ;;  %v1040_v13 = vadd.f32 %v4122_v6, %v5667_v50  ;;  %v1073_v57 = vmax.f32 %v1037_v54, 0.0 }
 0x205   : > { %v1071_v48 = vmax.f32 %v1029_v49, 0.0  ;;  %v1032_v52 = vadd.f32 %v5667_v50, %v1031_v24  ;;  %4195 = vmatmul.mubr.f32.gmra.mrb[42].mxu0 %v1070_v39 }
 0x206   : > { %v1074_v26 = vmax.f32 %v1040_v13, 0.0 }
 0x207   : > { %v1072_v46 = vmax.f32 %v1032_v52, 0.0  ;;  %4197 = vmatprep.mubr.f32.mxu0 %v1071_v48 }
 0x209   : > { %4198 = vmatmul.mubr.f32.gmra.mrb[44].mxu0 %v1072_v46  ;;  %v4221_v3 = vpop.f32.mrb[48].mxu1 }
 0x20a   : > { %4200 = vmatprep.mubr.f32.mxu0 %v1073_v57  ;;  %v1613_v41 = vpop.f32.mrb[49].mxu1  ;;  %v1622_v10 = vadd.f32 %v4221_v3, %v5667_v50 }
 0x20b   : > { %v1614_v35 = vadd.f32 %v5667_v50, %v1613_v41  ;;  %v4222_v36 = vpop.f32.mrb[50].mxu1 }
 0x20c   : > { %v1616_v44 = vpop.f32.mrb[51].mxu1  ;;  %v1625_v17 = vadd.f32 %v4222_v36, %v5667_v50  ;;  %v1742_v4 = vmax.f32 %v1622_v10, 0.0 }
 0x20d   : > { %v1740_v16 = vmax.f32 %v1614_v35, 0.0  ;;  %v1617_v51 = vadd.f32 %v5667_v50, %v1616_v44  ;;  %4201 = vmatmul.mubr.f32.gmra.mrb[46].mxu0 %v1074_v26 }
 0x20e   : > { %v1743_v61 = vmax.f32 %v1625_v17, 0.0 }
 0x20f   : > { %v1741_v59 = vmax.f32 %v1617_v51, 0.0  ;;  %4283 = vmatprep.mubr.f32.mxu0 %v1740_v16 }
 0x211   : > { %v4225_v27 = vpop.f32.mrb[52].mxu1  ;;  %4284 = vmatmul.mubr.f32.vlgmr.msra.gmra.mrb[48].mxu0 %v1741_v59 }
 0x212   : > { %4654 = vmatpush3.bf16.msra.mxu0 %v5417_v9  ;;  %v1629_v42 = vpop.f32.mrb[53].mxu1  ;;  %4286 = vmatprep.mubr.f32.mxu0 %v1742_v4  ;;  %v1638_v60 = vadd.f32 %v4225_v27, %v5667_v50 }
 0x213   : > { %v1630_v22 = vadd.f32 %v5667_v50, %v1629_v42  ;;  %v4226_v28 = vpop.f32.mrb[54].mxu1  ;;  %4656 = vmatprep.subr.bf16.mxu0 %v5426_v56 }
 0x214   : > { %v1632_v55 = vpop.f32.mrb[55].mxu1  ;;  %v1641_v47 = vadd.f32 %v4226_v28, %v5667_v50  ;;  %v1746_v30 = vmax.f32 %v1638_v60, 0.0 }
 0x215   : > { %v1744_v23 = vmax.f32 %v1630_v22, 0.0  ;;  %v1633_v19 = vadd.f32 %v5667_v50, %v1632_v55  ;;  %4287 = vmatmul.mubr.f32.gmra.mrb[50].mxu0 %v1743_v61 }
 0x216   : > { %4658 = vmatpush3.bf16.msra.mxu0 %v5426_v56  ;;  %v1747_v38 = vmax.f32 %v1641_v47, 0.0 }
 0x217   : > { %v1745_v63 = vmax.f32 %v1633_v19, 0.0  ;;  %4289 = vmatprep.mubr.f32.mxu0 %v1744_v23  ;;  %4660 = vmatprep.subr.bf16.mxu0 %v5482_v1 }
 0x219   : > { %v4229_v40 = vpop.f32.mrb[56].mxu1  ;;  %4290 = vmatmul.mubr.f32.gmra.mrb[52].mxu0 %v1745_v63 }
 0x21a   : > { %v1645_v15 = vpop.f32.mrb[57].mxu1  ;;  %4292 = vmatprep.mubr.f32.mxu0 %v1746_v30  ;;  %4662 = vmatpush3.bf16.msra.mxu0 %v5482_v1  ;;  %v1654_v21 = vadd.f32 %v4229_v40, %v5667_v50 }
 0x21b   : > { %v1646_v45 = vadd.f32 %v5667_v50, %v1645_v15  ;;  %v4230_v8 = vpop.f32.mrb[58].mxu1  ;;  %4664 = vmatprep.subr.bf16.mxu0 %v5491_v33 }
 0x21c   : > { %v1648_v14 = vpop.f32.mrb[59].mxu1  ;;  %v1657_v5 = vadd.f32 %v4230_v8, %v5667_v50  ;;  %v1750_v12 = vmax.f32 %v1654_v21, 0.0 }
 0x21d   : > { %v1748_v29 = vmax.f32 %v1646_v45, 0.0  ;;  %v1649_v53 = vadd.f32 %v5667_v50, %v1648_v14  ;;  %4293 = vmatmul.mubr.f32.gmra.mrb[54].mxu0 %v1747_v38 }
 0x21e   : > { %4666 = vmatpush3.bf16.msra.mxu0 %v5491_v33  ;;  %v1751_v20 = vmax.f32 %v1657_v5, 0.0 }
 0x21f   : > { %v1749_v34 = vmax.f32 %v1649_v53, 0.0  ;;  %4295 = vmatprep.mubr.f32.mxu0 %v1748_v29  ;;  %4668 = vmatprep.subr.bf16.mxu0 %v5542_v18 }
 0x221   : > { %v4233_v11 = vpop.f32.mrb[60].mxu1  ;;  %4296 = vmatmul.mubr.f32.gmra.mrb[56].mxu0 %v1749_v34 }
 0x222   : > { %v1661_v32 = vpop.f32.mrb[61].mxu1  ;;  %4298 = vmatprep.mubr.f32.mxu0 %v1750_v12  ;;  %4670 = vmatpush3.bf16.msra.mxu0 %v5542_v18  ;;  %v1670_v33 = vadd.f32 %v4233_v11, %v5667_v50 }
 0x223   : > { %v1662_v58 = vadd.f32 %v5667_v50, %v1661_v32  ;;  %v4234_v2 = vpop.f32.mrb[62].mxu1  ;;  %4672 = vmatprep.subr.bf16.mxu0 %v5547_v43 }
 0x224   : > { %v1664_v31 = vpop.f32.mrb[63].mxu1  ;;  %v1673_v62 = vadd.f32 %v4234_v2, %v5667_v50  ;;  %v1754_v18 = vmax.f32 %v1670_v33, 0.0 }
 0x225   : > { %v1752_v25 = vmax.f32 %v1662_v58, 0.0  ;;  %v1665_v7 = vadd.f32 %v5667_v50, %v1664_v31  ;;  %4299 = vmatmul.mubr.f32.gmra.mrb[58].mxu0 %v1751_v20 }
 0x226   : > { %4674 = vmatpush3.bf16.msra.mxu0 %v5547_v43  ;;  %v1755_v54 = vmax.f32 %v1673_v62, 0.0 }
 0x227   : > { %v1753_v39 = vmax.f32 %v1665_v7, 0.0  ;;  %4301 = vmatprep.mubr.f32.mxu0 %v1752_v25  ;;  %4676 = vmatprep.subr.bf16.mxu0 %v5585_v0 }
 0x229   : > { %v4237_v49 = vpop.f32.mrb[64].mxu1  ;;  %4302 = vmatmul.mubr.f32.gmra.mrb[60].mxu0 %v1753_v39 }
 0x22a   : > { %v1677_v6 = vpop.f32.mrb[65].mxu1  ;;  %4304 = vmatprep.mubr.f32.mxu0 %v1754_v18  ;;  %4678 = vmatpush3.bf16.msra.mxu0 %v5585_v0  ;;  %v1686_v43 = vadd.f32 %v4237_v49, %v5667_v50 }
 0x22b   : > { %v1678_v24 = vadd.f32 %v5667_v50, %v1677_v6  ;;  %v4238_v48 = vpop.f32.mrb[66].mxu1  ;;  %4680 = vmatprep.subr.bf16.mxu0 %v5606_v37 }
 0x22c   : > { %v1680_v52 = vpop.f32.mrb[67].mxu1  ;;  %v1689_v57 = vadd.f32 %v4238_v48, %v5667_v50  ;;  %v1758_v0 = vmax.f32 %v1686_v43, 0.0 }
 0x22d   : > { %v1756_v13 = vmax.f32 %v1678_v24, 0.0  ;;  %v1681_v46 = vadd.f32 %v5667_v50, %v1680_v52  ;;  %4305 = vmatmul.mubr.f32.gmra.mrb[62].mxu0 %v1755_v54 }
 0x22e   : > { %4682 = vmatpush3.bf16.msra.mxu0 %v5606_v37  ;;  %v1759_v35 = vmax.f32 %v1689_v57, 0.0 }
 0x22f   : > { %v1757_v3 = vmax.f32 %v1681_v46, 0.0  ;;  %4307 = vmatprep.mubr.f32.mxu0 %v1756_v13  ;;  %4684 = vmatprep.subr.bf16.mxu0 %v5417_v9  ;;  %v3174_v13 = vld [vmem:[%s6307_s6 + $0x30] sm:$0xff]  ;;  %v3175_v46 = vld [vmem:[%s6307_s6 + $0x38] sm:$0xff] }
 0x231   : > { %v4241_v41 = vpop.f32.mrb[68].mxu1  ;;  %4308 = vmatmul.mubr.f32.gmra.mrb[64].mxu0 %v1757_v3 }
 0x232   : > { %v1693_v26 = vpop.f32.mrb[69].mxu1  ;;  %4310 = vmatprep.mubr.f32.mxu0 %v1758_v0  ;;  %v1702_v44 = vadd.f32 %v4241_v41, %v5667_v50  ;;  %v4695_v41 = vpack.c.bf16 %v3175_v46, %v3174_v13 }
 0x233   : > { %v1694_v36 = vadd.f32 %v5667_v50, %v1693_v26  ;;  %v4242_v10 = vpop.f32.mrb[70].mxu1 }
 0x234   : > { %v1696_v16 = vpop.f32.mrb[71].mxu1  ;;  %v1705_v17 = vadd.f32 %v4242_v10, %v5667_v50  ;;  %v1762_v4 = vmax.f32 %v1702_v44, 0.0 }
 0x235   : > { %v1760_v51 = vmax.f32 %v1694_v36, 0.0  ;;  %v1697_v37 = vadd.f32 %v5667_v50, %v1696_v16  ;;  %4311 = vmatmul.mubr.f32.gmra.mrb[66].mxu0 %v1759_v35  ;;  %v3176_v35 = vld [vmem:[%s6307_s6 + $0x40] sm:$0xff]  ;;  %v3177_v36 = vld [vmem:[%s6307_s6 + $0x48] sm:$0xff] }
 0x236   : > { %v1763_v61 = vmax.f32 %v1705_v17, 0.0 }
 0x237   : > { %v1761_v59 = vmax.f32 %v1697_v37, 0.0  ;;  %4313 = vmatprep.mubr.f32.mxu0 %v1760_v51  ;;  %v4699_v37 = vpack.c.bf16 %v3177_v36, %v3176_v35 }
 0x239   : > { %v4245_v27 = vpop.f32.mrb[72].mxu1  ;;  %4314 = vmatmul.mubr.f32.gmra.mrb[68].mxu0 %v1761_v59 }
 0x23a   : > { %v1709_v42 = vpop.f32.mrb[73].mxu1  ;;  %4316 = vmatprep.mubr.f32.mxu0 %v1762_v4  ;;  %v1718_v60 = vadd.f32 %v4245_v27, %v5667_v50  ;;  %v3178_v4 = vld [vmem:[%s6307_s6 + $0x50] sm:$0xff]  ;;  %v3179_v27 = vld [vmem:[%s6307_s6 + $0x58] sm:$0xff] }
 0x23b   : > { %v1710_v22 = vadd.f32 %v5667_v50, %v1709_v42  ;;  %v4246_v28 = vpop.f32.mrb[74].mxu1 }
 0x23c   : > { %v1712_v55 = vpop.f32.mrb[75].mxu1  ;;  %v1721_v47 = vadd.f32 %v4246_v28, %v5667_v50  ;;  %v1766_v30 = vmax.f32 %v1718_v60, 0.0  ;;  %v4703_v28 = vpack.c.bf16 %v3179_v27, %v3178_v4 }
 0x23d   : > { %v1764_v23 = vmax.f32 %v1710_v22, 0.0  ;;  %v1713_v19 = vadd.f32 %v5667_v50, %v1712_v55  ;;  %4317 = vmatmul.mubr.f32.gmra.mrb[70].mxu0 %v1763_v61  ;;  %v3180_v55 = vld [vmem:[%s6307_s6 + $0x60] sm:$0xff] }
 0x23e   : > { %v1767_v38 = vmax.f32 %v1721_v47, 0.0 }
 0x23f   : > { %v1765_v63 = vmax.f32 %v1713_v19, 0.0  ;;  %4319 = vmatprep.mubr.f32.mxu0 %v1764_v23  ;;  %v3181_v23 = vld [vmem:[%s6307_s6 + $0x68] sm:$0xff] }
 0x241   : > { %v4249_v40 = vpop.f32.mrb[76].mxu1  ;;  %4320 = vmatmul.mubr.f32.gmra.mrb[72].mxu0 %v1765_v63 }
 0x242   : > { %v1725_v15 = vpop.f32.mrb[77].mxu1  ;;  %4322 = vmatprep.mubr.f32.mxu0 %v1766_v30  ;;  %v1734_v21 = vadd.f32 %v4249_v40, %v5667_v50 }
 0x243   : > { %v1726_v45 = vadd.f32 %v5667_v50, %v1725_v15  ;;  %v4250_v8 = vpop.f32.mrb[78].mxu1  ;;  %v4707_v15 = vpack.c.bf16 %v3181_v23, %v3180_v55 }
 0x244   : > { %v1728_v14 = vpop.f32.mrb[79].mxu1  ;;  %v1737_v5 = vadd.f32 %v4250_v8, %v5667_v50  ;;  %v1770_v12 = vmax.f32 %v1734_v21, 0.0  ;;  %v3182_v8 = vld [vmem:[%s6307_s6 + $0x70] sm:$0xff]  ;;  %v3183_v21 = vld [vmem:[%s6307_s6 + $0x78] sm:$0xff] }
 0x245   : > { %v1768_v29 = vmax.f32 %v1726_v45, 0.0  ;;  %v1729_v53 = vadd.f32 %v5667_v50, %v1728_v14  ;;  %4323 = vmatmul.mubr.f32.gmra.mrb[74].mxu0 %v1767_v38 }
 0x246   : > { %v1771_v20 = vmax.f32 %v1737_v5, 0.0 }
 0x247   : > { %v1769_v34 = vmax.f32 %v1729_v53, 0.0  ;;  %4325 = vmatprep.mubr.f32.mxu0 %v1768_v29 }
 0x249   : > { %4326 = vmatmul.mubr.f32.gmra.mrb[76].mxu0 %v1769_v34  ;;  %v4349_v11 = vpop.f32.mrb[80].mxu1  ;;  %v4711_v34 = vpack.c.bf16 %v3183_v21, %v3182_v8 }
 0x24a   : > { %4328 = vmatprep.mubr.f32.mxu0 %v1770_v12  ;;  %v2311_v32 = vpop.f32.mrb[81].mxu1  ;;  %v2320_v33 = vadd.f32 %v4349_v11, %v5667_v50 }
 0x24b   : > { %v2312_v58 = vadd.f32 %v5667_v50, %v2311_v32  ;;  %v4350_v2 = vpop.f32.mrb[82].mxu1 }
 0x24c   : > { %v2314_v31 = vpop.f32.mrb[83].mxu1  ;;  %v2323_v62 = vadd.f32 %v4350_v2, %v5667_v50  ;;  %v2440_v18 = vmax.f32 %v2320_v33, 0.0 }
 0x24d   : > { %v2438_v25 = vmax.f32 %v2312_v58, 0.0  ;;  %v2315_v7 = vadd.f32 %v5667_v50, %v2314_v31  ;;  %4329 = vmatmul.mubr.f32.gmra.mrb[78].mxu0 %v1771_v20 }
 0x24e   : > { %v2441_v54 = vmax.f32 %v2323_v62, 0.0 }
 0x24f   : > { %v2439_v39 = vmax.f32 %v2315_v7, 0.0  ;;  %4411 = vmatprep.mubr.f32.mxu0 %v2438_v25 }
 0x251   : > { %v4353_v49 = vpop.f32.mrb[84].mxu1  ;;  %4412 = vmatmul.mubr.f32.vlgmr.msra.gmra.mrb[80].mxu0 %v2439_v39 }
 0x252   : > { %4686 = vmatpush3.bf16.msra.mxu0 %v5417_v9  ;;  %v2327_v6 = vpop.f32.mrb[85].mxu1  ;;  %4414 = vmatprep.mubr.f32.mxu0 %v2440_v18  ;;  %v2336_v43 = vadd.f32 %v4353_v49, %v5667_v50 }
 0x253   : > { %v2328_v24 = vadd.f32 %v5667_v50, %v2327_v6  ;;  %v4354_v48 = vpop.f32.mrb[86].mxu1  ;;  %4688 = vmatprep.subr.bf16.mxu0 %v5426_v56 }
 0x254   : > { %v2330_v52 = vpop.f32.mrb[87].mxu1  ;;  %v2339_v3 = vadd.f32 %v4354_v48, %v5667_v50  ;;  %v2444_v26 = vmax.f32 %v2336_v43, 0.0 }
 0x255   : > { %v2442_v9 = vmax.f32 %v2328_v24, 0.0  ;;  %v2331_v57 = vadd.f32 %v5667_v50, %v2330_v52  ;;  %4415 = vmatmul.mubr.f32.gmra.mrb[82].mxu0 %v2441_v54 }
 0x256   : > { %4690 = vmatpush3.bf16.msra.mxu0 %v5426_v56  ;;  %v2445_v56 = vmax.f32 %v2339_v3, 0.0 }
 0x257   : > { %v2443_v0 = vmax.f32 %v2331_v57, 0.0  ;;  %4417 = vmatprep.mubr.f32.mxu0 %v2442_v9  ;;  %4692 = vmatprep.subr.bf16.mxu0 %v5482_v1 }
 0x259   : > { %v4357_v10 = vpop.f32.mrb[88].mxu1  ;;  %4418 = vmatmul.mubr.f32.gmra.mrb[84].mxu0 %v2443_v0 }
 0x25a   : > { %v2343_v44 = vpop.f32.mrb[89].mxu1  ;;  %4420 = vmatprep.mubr.f32.mxu0 %v2444_v26  ;;  %4694 = vmatpush3.bf16.msra.mxu0 %v5482_v1  ;;  %v2352_v17 = vadd.f32 %v4357_v10, %v5667_v50 }
 0x25b   : > { %v2344_v16 = vadd.f32 %v5667_v50, %v2343_v44  ;;  %v4358_v51 = vpop.f32.mrb[90].mxu1  ;;  %4696 = vmatprep.subr.bf16.mxu0 %v4695_v41 }
 0x25c   : > { %v2346_v59 = vpop.f32.mrb[91].mxu1  ;;  %v2355_v61 = vadd.f32 %v4358_v51, %v5667_v50  ;;  %v2448_v60 = vmax.f32 %v2352_v17, 0.0 }
 0x25d   : > { %v2446_v42 = vmax.f32 %v2344_v16, 0.0  ;;  %v2347_v1 = vadd.f32 %v5667_v50, %v2346_v59  ;;  %4421 = vmatmul.mubr.f32.gmra.mrb[86].mxu0 %v2445_v56 }
 0x25e   : > { %4698 = vmatpush3.bf16.msra.mxu0 %v4695_v41  ;;  %v2449_v63 = vmax.f32 %v2355_v61, 0.0 }
 0x25f   : > { %v2447_v22 = vmax.f32 %v2347_v1, 0.0  ;;  %4423 = vmatprep.mubr.f32.mxu0 %v2446_v42  ;;  %4700 = vmatprep.subr.bf16.mxu0 %v4699_v37 }
 0x261   : > { %v4361_v19 = vpop.f32.mrb[92].mxu1  ;;  %4424 = vmatmul.mubr.f32.gmra.mrb[88].mxu0 %v2447_v22 }
 0x262   : > { %v2359_v47 = vpop.f32.mrb[93].mxu1  ;;  %4426 = vmatprep.mubr.f32.mxu0 %v2448_v60  ;;  %4702 = vmatpush3.bf16.msra.mxu0 %v4699_v37  ;;  %v2368_v38 = vadd.f32 %v4361_v19, %v5667_v50 }
 0x263   : > { %v2360_v30 = vadd.f32 %v5667_v50, %v2359_v47  ;;  %v4362_v40 = vpop.f32.mrb[94].mxu1  ;;  %4704 = vmatprep.subr.bf16.mxu0 %v4703_v28  ;;  %v5847_v47 = vld [vmem:[%s6306_s5] ss:$0 sm:$0xff] }
 0x264   : > { %v2362_v45 = vpop.f32.mrb[95].mxu1  ;;  %v2371_v53 = vadd.f32 %v4362_v40, %v5667_v50  ;;  %v2452_v12 = vmax.f32 %v2368_v38, 0.0 }
 0x265   : > { %v2450_v14 = vmax.f32 %v2360_v30, 0.0  ;;  %v2363_v29 = vadd.f32 %v5667_v50, %v2362_v45  ;;  %4427 = vmatmul.mubr.f32.gmra.mrb[90].mxu0 %v2449_v63 }
 0x266   : > { %4706 = vmatpush3.bf16.msra.mxu0 %v4703_v28  ;;  %v2453_v20 = vmax.f32 %v2371_v53, 0.0 }
 0x267   : > { %v2451_v5 = vmax.f32 %v2363_v29, 0.0  ;;  %4429 = vmatprep.mubr.f32.mxu0 %v2450_v14  ;;  %4708 = vmatprep.subr.bf16.mxu0 %v4707_v15 }
 0x269   : > { %v4365_v11 = vpop.f32.mrb[96].mxu1  ;;  %4430 = vmatmul.mubr.f32.gmra.mrb[92].mxu0 %v2451_v5 }
 0x26a   : > { %v2375_v32 = vpop.f32.mrb[97].mxu1  ;;  %4432 = vmatprep.mubr.f32.mxu0 %v2452_v12  ;;  %4710 = vmatpush3.bf16.msra.mxu0 %v4707_v15  ;;  %v2384_v33 = vadd.f32 %v4365_v11, %v5667_v50 }
 0x26b   : > { %v2376_v58 = vadd.f32 %v5667_v50, %v2375_v32  ;;  %v4366_v2 = vpop.f32.mrb[98].mxu1  ;;  %4712 = vmatprep.subr.bf16.mxu0 %v4711_v34 }
 0x26c   : > { %v2378_v31 = vpop.f32.mrb[99].mxu1  ;;  %v2387_v62 = vadd.f32 %v4366_v2, %v5667_v50  ;;  %v2456_v18 = vmax.f32 %v2384_v33, 0.0 }
 0x26d   : > { %v2454_v25 = vmax.f32 %v2376_v58, 0.0  ;;  %v2379_v7 = vadd.f32 %v5667_v50, %v2378_v31  ;;  %4433 = vmatmul.mubr.f32.gmra.mrb[94].mxu0 %v2453_v20 }
 0x26e   : > { %4714 = vmatpush3.bf16.msra.mxu0 %v4711_v34  ;;  %v2457_v54 = vmax.f32 %v2387_v62, 0.0 }
 0x26f   : > { %v2455_v39 = vmax.f32 %v2379_v7, 0.0  ;;  %4435 = vmatprep.mubr.f32.mxu0 %v2454_v25 }
 0x271   : > { %v4369_v49 = vpop.f32.mrb[100].mxu1  ;;  %4436 = vmatmul.mubr.f32.gmra.mrb[96].mxu0 %v2455_v39 }
 0x272   : > { %v2391_v6 = vpop.f32.mrb[101].mxu1  ;;  %4438 = vmatprep.mubr.f32.mxu0 %v2456_v18  ;;  %v2400_v43 = vadd.f32 %v4369_v49, %v5667_v50 }
 0x273   : > { %v2392_v24 = vadd.f32 %v5667_v50, %v2391_v6  ;;  %v4370_v48 = vpop.f32.mrb[102].mxu1 }
 0x274   : > { %v2394_v52 = vpop.f32.mrb[103].mxu1  ;;  %v2403_v9 = vadd.f32 %v4370_v48, %v5667_v50  ;;  %v2460_v3 = vmax.f32 %v2400_v43, 0.0 }
 0x275   : > { %v2458_v13 = vmax.f32 %v2392_v24, 0.0  ;;  %v2395_v46 = vadd.f32 %v5667_v50, %v2394_v52  ;;  %4439 = vmatmul.mubr.f32.gmra.mrb[98].mxu0 %v2457_v54 }
 0x276   : > { %v2461_v26 = vmax.f32 %v2403_v9, 0.0 }
 0x277   : > { %v2459_v57 = vmax.f32 %v2395_v46, 0.0  ;;  %4441 = vmatprep.mubr.f32.mxu0 %v2458_v13 }
 0x279   : > { %v4373_v0 = vpop.f32.mrb[104].mxu1  ;;  %4442 = vmatmul.mubr.f32.gmra.mrb[100].mxu0 %v2459_v57 }
 0x27a   : > { %v2407_v41 = vpop.f32.mrb[105].mxu1  ;;  %4444 = vmatprep.mubr.f32.mxu0 %v2460_v3  ;;  %v2416_v10 = vadd.f32 %v4373_v0, %v5667_v50 }
 0x27b   : > { %v2408_v35 = vadd.f32 %v5667_v50, %v2407_v41  ;;  %v4374_v36 = vpop.f32.mrb[106].mxu1 }
 0x27c   : > { %v2410_v44 = vpop.f32.mrb[107].mxu1  ;;  %v2419_v51 = vadd.f32 %v4374_v36, %v5667_v50  ;;  %v2464_v17 = vmax.f32 %v2416_v10, 0.0 }
 0x27d   : > { %v2462_v56 = vmax.f32 %v2408_v35, 0.0  ;;  %v2411_v16 = vadd.f32 %v5667_v50, %v2410_v44  ;;  %4445 = vmatmul.mubr.f32.gmra.mrb[102].mxu0 %v2461_v26  ;;  %v5865_v26 = vld [vmem:[%s6308_s7] ss:$0 sm:$0xff] }
 0x27e   : > { %v2465_v27 = vmax.f32 %v2419_v51, 0.0 }
 0x27f   : > { %v2463_v37 = vmax.f32 %v2411_v16, 0.0  ;;  %4447 = vmatprep.mubr.f32.mxu0 %v2462_v56 }
 0x281   : > { %v4377_v59 = vpop.f32.mrb[108].mxu1  ;;  %4448 = vmatmul.mubr.f32.gmra.mrb[104].mxu0 %v2463_v37 }
 0x282   : > { %v2423_v4 = vpop.f32.mrb[109].mxu1  ;;  %4450 = vmatprep.mubr.f32.mxu0 %v2464_v17  ;;  %v2432_v61 = vadd.f32 %v4377_v59, %v5667_v50 }
 0x283   : > { %v2424_v42 = vadd.f32 %v5667_v50, %v2423_v4  ;;  %v4378_v1 = vpop.f32.mrb[110].mxu1 }
 0x284   : > { %v2426_v22 = vpop.f32.mrb[111].mxu1  ;;  %v2435_v55 = vadd.f32 %v4378_v1, %v5667_v50  ;;  %v2468_v19 = vmax.f32 %v2432_v61, 0.0 }
 0x285   : > { %v2466_v28 = vmax.f32 %v2424_v42, 0.0  ;;  %v2427_v60 = vadd.f32 %v5667_v50, %v2426_v22  ;;  %4451 = vmatmul.mubr.f32.gmra.mrb[106].mxu0 %v2465_v27  ;;  %v5873_v42 = vld [vmem:[%s4905_s16] sm:$0xff] }
 0x286   : > { %v2469_v40 = vmax.f32 %v2435_v55, 0.0 }
 0x287   : > { %v2467_v23 = vmax.f32 %v2427_v60, 0.0  ;;  %4453 = vmatprep.mubr.f32.mxu0 %v2466_v28 }
 0x289   : > { %4454 = vmatmul.mubr.f32.gmra.mrb[108].mxu0 %v2467_v23  ;;  %v4477_v63 = vpop.f32.mrb[112].mxu1 }
 0x28a   : > { %4456 = vmatprep.mubr.f32.mxu0 %v2468_v19  ;;  %v3009_v30 = vpop.f32.mrb[113].mxu1  ;;  %v3018_v45 = vadd.f32 %v4477_v63, %v5847_v47 }
 0x28b   : > { %v3010_v15 = vadd.f32 %v5847_v47, %v3009_v30  ;;  %v4478_v38 = vpop.f32.mrb[114].mxu1 }
 0x28c   : > { %v3012_v8 = vpop.f32.mrb[115].mxu1  ;;  %v3021_v14 = vadd.f32 %v4478_v38, %v5847_v47  ;;  %v3138_v53 = vmax.f32 %v3018_v45, 0.0 }
 0x28d   : > { %v3136_v50 = vmax.f32 %v3010_v15, 0.0  ;;  %v3013_v21 = vadd.f32 %v5847_v47, %v3012_v8  ;;  %4457 = vmatmul.mubr.f32.gmra.mrb[110].mxu0 %v2469_v40  ;;  %v5880_v15 = vld [vmem:[%s4905_s16 + $0x8] sm:$0xff] }
 0x28e   : > { %v3139_v12 = vmax.f32 %v3021_v14, 0.0 }
 0x28f   : > { %v3137_v29 = vmax.f32 %v3013_v21, 0.0  ;;  %4539 = vmatprep.mubr.f32.mxu0 %v3136_v50 }
 0x291   : > { %v4481_v5 = vpop.f32.mrb[116].mxu1  ;;  %4540 = vmatmul.mubr.f32.vlgmr.msra.gmra.mrb[112].mxu0 %v3137_v29 }
 0x292   : > { %v3025_v34 = vpop.f32.mrb[117].mxu1  ;;  %4542 = vmatprep.mubr.f32.mxu0 %v3138_v53  ;;  %v3034_v20 = vadd.f32 %v4481_v5, %v5847_v47 }
 0x293   : > { %v3026_v11 = vadd.f32 %v5847_v47, %v3025_v34  ;;  %v4482_v32 = vpop.f32.mrb[118].mxu1  ;;  %v5887_v34 = vld [vmem:[%s4905_s16 + $0x10] sm:$0xff] }
 0x294   : > { %v3028_v58 = vpop.f32.mrb[119].mxu1  ;;  %v3037_v31 = vadd.f32 %v4482_v32, %v5847_v47  ;;  %v3142_v7 = vmax.f32 %v3034_v20, 0.0 }
 0x295   : > { %v3140_v2 = vmax.f32 %v3026_v11, 0.0  ;;  %v3029_v33 = vadd.f32 %v5847_v47, %v3028_v58  ;;  %4543 = vmatmul.mubr.f32.gmra.mrb[114].mxu0 %v3139_v12 }
 0x296   : > { %v3143_v18 = vmax.f32 %v3037_v31, 0.0 }
 0x297   : > { %v3141_v25 = vmax.f32 %v3029_v33, 0.0  ;;  %4545 = vmatprep.mubr.f32.mxu0 %v3140_v2 }
 0x299   : > { %v4485_v62 = vpop.f32.mrb[120].mxu1  ;;  %4546 = vmatmul.mubr.f32.gmra.mrb[116].mxu0 %v3141_v25 }
 0x29a   : > { %v3041_v39 = vpop.f32.mrb[121].mxu1  ;;  %4548 = vmatprep.mubr.f32.mxu0 %v3142_v7  ;;  %v3050_v54 = vadd.f32 %v4485_v62, %v5847_v47 }
 0x29b   : > { %v3042_v49 = vadd.f32 %v5847_v47, %v3041_v39  ;;  %v4486_v6 = vpop.f32.mrb[122].mxu1  ;;  %v5896_v39 = vld [vmem:[%s4905_s16 + $0x18] sm:$0xff] }
 0x29c   : > { %v3044_v24 = vpop.f32.mrb[123].mxu1  ;;  %v3053_v52 = vadd.f32 %v4486_v6, %v5847_v47  ;;  %v3146_v46 = vmax.f32 %v3050_v54, 0.0 }
 0x29d   : > { %v3144_v48 = vmax.f32 %v3042_v49, 0.0  ;;  %v3045_v43 = vadd.f32 %v5847_v47, %v3044_v24  ;;  %4549 = vmatmul.mubr.f32.gmra.mrb[118].mxu0 %v3143_v18 }
 0x29e   : > { %v3147_v3 = vmax.f32 %v3053_v52, 0.0 }
 0x29f   : > { %v3145_v13 = vmax.f32 %v3045_v43, 0.0  ;;  %4551 = vmatprep.mubr.f32.mxu0 %v3144_v48 }
 0x2a1   : > { %v4489_v9 = vpop.f32.mrb[124].mxu1  ;;  %4552 = vmatmul.mubr.f32.gmra.mrb[120].mxu0 %v3145_v13 }
 0x2a2   : > { %v3057_v57 = vpop.f32.mrb[125].mxu1  ;;  %4554 = vmatprep.mubr.f32.mxu0 %v3146_v46  ;;  %v3066_v35 = vadd.f32 %v4489_v9, %v5847_v47  ;;  %v5905_v46 = vld [vmem:[%s4905_s16 + $0x20] sm:$0xff] }
 0x2a3   : > { %v3058_v0 = vadd.f32 %v5847_v47, %v3057_v57  ;;  %v4490_v41 = vpop.f32.mrb[126].mxu1 }
 0x2a4   : > { %v4157_v36 = vpop.f32.mrb[16].mxu0  ;;  %v3060_v10 = vpop.f32.mrb[127].mxu1  ;;  %v3069_v37 = vadd.f32 %v4490_v41, %v5847_v47  ;;  %v3150_v59 = vmax.f32 %v3066_v35, 0.0 }
 0x2a5   : > { %v3148_v44 = vmax.f32 %v3058_v0, 0.0  ;;  %v3061_v56 = vadd.f32 %v5847_v47, %v3060_v10  ;;  %v1164_v16 = vpop.f32.mrb[17].mxu0  ;;  %4555 = vmatmul.mubr.f32.gmra.mrb[122].mxu0 %v3147_v3  ;;  %v1170_v4 = vadd.f32 %v4157_v36, %v5865_v26 }
 0x2a6   : > { %v1165_v51 = vadd.f32 %v5865_v26, %v1164_v16  ;;  %v3151_v60 = vmax.f32 %v3069_v37, 0.0 }
 0x2a7   : > { %v3149_v17 = vmax.f32 %v3061_v56, 0.0  ;;  %4557 = vmatprep.mubr.f32.mxu0 %v3148_v44  ;;  %v1324_v38 = vadd.f32 %v5880_v15, %v1170_v4 }
 0x2a8   : > { %v4160_v27 = vpop.f32.mrb[18].mxu0  ;;  %v1323_v1 = vadd.f32 %v5873_v42, %v1165_v51  ;;  %v5916_v51 = vld [vmem:[%s4905_s16 + $0x28] sm:$0xff] }
 0x2a9   : > { %v1174_v61 = vpop.f32.mrb[19].mxu0  ;;  %v4493_v22 = vpop.f32.mrb[128].mxu1  ;;  %4558 = vmatmul.mubr.f32.gmra.mrb[124].mxu0 %v3149_v17  ;;  %v1180_v29 = vadd.f32 %v4160_v27, %v5865_v26 }
 0x2aa   : > { %v3073_v28 = vpop.f32.mrb[129].mxu1  ;;  %4560 = vmatprep.mubr.f32.mxu0 %v3150_v59  ;;  %1355 = vxpose.xlu0.b32.start [1/16] (narrow) %v1323_v1, 8  ;;  %v1175_v19 = vadd.f32 %v5865_v26, %v1174_v61  ;;  %v3082_v63 = vadd.f32 %v4493_v22, %v5847_v47 }
 0x2ab   : > { %v3074_v55 = vadd.f32 %v5847_v47, %v3073_v28  ;;  %v4494_v23 = vpop.f32.mrb[130].mxu1  ;;  %v1326_v18 = vadd.f32 %v5896_v39, %v1180_v29 }
 0x2ac   : > { %v4163_v30 = vpop.f32.mrb[20].mxu0  ;;  %v3076_v40 = vpop.f32.mrb[131].mxu1  ;;  %v3085_v21 = vadd.f32 %v4494_v23, %v5847_v47  ;;  %v3154_v53 = vmax.f32 %v3082_v63, 0.0  ;;  %v1325_v12 = vadd.f32 %v5887_v34, %v1175_v19 }
 0x2ad   : > { %v3152_v45 = vmax.f32 %v3074_v55, 0.0  ;;  %v3077_v8 = vadd.f32 %v5847_v47, %v3076_v40  ;;  %v1184_v50 = vpop.f32.mrb[21].mxu0  ;;  %4561 = vmatmul.mubr.f32.gmra.mrb[126].mxu0 %v3151_v60  ;;  %v1190_v43 = vadd.f32 %v4163_v30, %v5865_v26  ;;  %v5927_v60 = vld [vmem:[%s4905_s16 + $0x30] sm:$0xff] }
 0x2ae   : > { %1356 = vxpose.xlu0.b32.cont [2/16] (narrow) %v1324_v38, 8  ;;  %v3155_v58 = vmax.f32 %v3085_v21, 0.0  ;;  %v1185_v31 = vadd.f32 %v5865_v26, %v1184_v50  ;;  %v5935_v21 = vld [vmem:[%s4905_s16 + $0x38] sm:$0xff] }
 0x2af   : > { %v3153_v14 = vmax.f32 %v3077_v8, 0.0  ;;  %4563 = vmatprep.mubr.f32.mxu0 %v3152_v45  ;;  %v1328_v37 = vadd.f32 %v5916_v51, %v1190_v43 }
 0x2b0   : > { %v4166_v5 = vpop.f32.mrb[22].mxu0  ;;  %v1327_v9 = vadd.f32 %v5905_v46, %v1185_v31  ;;  %v5944_v31 = vld [vmem:[%s4905_s16 + $0x80] sm:$0xff] }
 0x2b1   : > { %v1194_v11 = vpop.f32.mrb[23].mxu0  ;;  %v4497_v32 = vpop.f32.mrb[132].mxu1  ;;  %4564 = vmatmul.mubr.f32.gmra.mrb[128].mxu0 %v3153_v14  ;;  %v1200_v61 = vadd.f32 %v4166_v5, %v5865_v26 }
 0x2b2   : > { %v3089_v20 = vpop.f32.mrb[133].mxu1  ;;  %4566 = vmatprep.mubr.f32.mxu0 %v3154_v53  ;;  %1357 = vxpose.xlu0.b32.cont [3/16] (narrow) %v1325_v12, 8  ;;  %v3098_v25 = vadd.f32 %v4497_v32, %v5847_v47  ;;  %v1195_v10 = vadd.f32 %v5865_v26, %v1194_v11 }
 0x2b3   : > { %v3090_v2 = vadd.f32 %v5847_v47, %v3089_v20  ;;  %v4498_v33 = vpop.f32.mrb[134].mxu1  ;;  %v1330_v14 = vadd.f32 %v5935_v21, %v1200_v61  ;;  %v5983_v61 = vld [vmem:[%s4905_s16 + $0x58] sm:$0xff] }
 0x2b4   : > { %v5893_v7 = vpop.f32.mrb[24].mxu0  ;;  %v3092_v62 = vpop.f32.mrb[135].mxu1  ;;  %v3101_v24 = vadd.f32 %v4498_v33, %v5847_v47  ;;  %v3158_v52 = vmax.f32 %v3098_v25, 0.0  ;;  %v1329_v55 = vadd.f32 %v5927_v60, %v1195_v10 }
 0x2b5   : > { %v3156_v49 = vmax.f32 %v3090_v2, 0.0  ;;  %v3093_v6 = vadd.f32 %v5847_v47, %v3092_v62  ;;  %v1204_v54 = vpop.f32.mrb[25].mxu0  ;;  %4567 = vmatmul.mubr.f32.gmra.mrb[130].mxu0 %v3155_v58  ;;  %v1210_v62 = vadd.f32 %v5893_v7, %v5865_v26 }
 0x2b6   : > { %1358 = vxpose.xlu0.b32.cont [4/16] (narrow) %v1326_v18, 8  ;;  %v3159_v41 = vmax.f32 %v3101_v24, 0.0  ;;  %v1205_v29 = vadd.f32 %v5865_v26, %v1204_v54 }
 0x2b7   : > { %v3157_v48 = vmax.f32 %v3093_v6, 0.0  ;;  %4569 = vmatprep.mubr.f32.mxu0 %v3156_v49  ;;  %v5950_v49 = vld [vmem:[%s4905_s16 + $0x40] sm:$0xff] }
 0x2b8   : > { %v5902_v13 = vpop.f32.mrb[26].mxu0 }
 0x2b9   : > { %v5908_v57 = vpop.f32.mrb[27].mxu0  ;;  %v4501_v3 = vpop.f32.mrb[136].mxu1  ;;  %4570 = vmatmul.mubr.f32.gmra.mrb[132].mxu0 %v3157_v48  ;;  %v5955_v48 = vld [vmem:[%s4905_s16 + $0x88] sm:$0xff] }
 0x2ba   : > { %v3105_v0 = vpop.f32.mrb[137].mxu1  ;;  %4572 = vmatprep.mubr.f32.mxu0 %v3158_v52  ;;  %1359 = vxpose.xlu0.b32.cont [5/16] (narrow) %v1327_v9, 8  ;;  %v3114_v44 = vadd.f32 %v4501_v3, %v5847_v47  ;;  %v1215_v43 = vadd.f32 %v5865_v26, %v5908_v57  ;;  %v5961_v9 = vld [vmem:[%s4905_s16 + $0x48] sm:$0xff]  ;;  %v1220_v57 = vadd.f32 %v5902_v13, %v5865_v26 }
 0x2bb   : > { %v3106_v35 = vadd.f32 %v5847_v47, %v3105_v0  ;;  %v4502_v36 = vpop.f32.mrb[138].mxu1  ;;  %v1332_v3 = vadd.f32 %v5961_v9, %v1210_v62 }
 0x2bc   : > { %v5913_v56 = vpop.f32.mrb[28].mxu0  ;;  %v3108_v16 = vpop.f32.mrb[139].mxu1  ;;  %v3117_v27 = vadd.f32 %v4502_v36, %v5847_v47  ;;  %v3162_v22 = vmax.f32 %v3114_v44, 0.0  ;;  %v5972_v44 = vld [vmem:[%s4905_s16 + $0x50] sm:$0xff] }
 0x2bd   : > { %v3160_v17 = vmax.f32 %v3106_v35, 0.0  ;;  %v3109_v59 = vadd.f32 %v5847_v47, %v3108_v16  ;;  %v5920_v4 = vpop.f32.mrb[29].mxu0  ;;  %4573 = vmatmul.mubr.f32.gmra.mrb[134].mxu0 %v3159_v41  ;;  %v5966_v35 = vld [vmem:[%s4905_s16 + $0x90] sm:$0xff]  ;;  %v1333_v16 = vadd.f32 %v5972_v44, %v1215_v43 }
 0x2be   : > { %1360 = vxpose.xlu0.b32.cont [6/16] (narrow) %v1328_v37, 8  ;;  %v3163_v30 = vmax.f32 %v3117_v27, 0.0 }
 0x2bf   : > { %v3161_v1 = vmax.f32 %v3109_v59, 0.0  ;;  %4575 = vmatprep.mubr.f32.mxu0 %v3160_v17  ;;  %v5977_v59 = vld [vmem:[%s4905_s16 + $0x98] sm:$0xff] }
 0x2c0   : > { %v5924_v28 = vpop.f32.mrb[30].mxu0 }
 0x2c1   : > { %v5930_v23 = vpop.f32.mrb[31].mxu0  ;;  %v4505_v19 = vpop.f32.mrb[140].mxu1  ;;  %4576 = vmatmul.mubr.f32.gmra.mrb[136].mxu0 %v3161_v1  ;;  %v1225_v1 = vadd.f32 %v5865_v26, %v5920_v4 }
 0x2c2   : > { %v3121_v63 = vpop.f32.mrb[141].mxu1  ;;  %4578 = vmatprep.mubr.f32.mxu0 %v3162_v22  ;;  %1361 = vxpose.xlu0.b32.cont [7/16] (narrow) %v1329_v55, 8  ;;  %v3130_v45 = vadd.f32 %v4505_v19, %v5847_v47  ;;  %v1334_v22 = vadd.f32 %v5983_v61, %v1220_v57 }
 0x2c3   : > { %v3122_v40 = vadd.f32 %v5847_v47, %v3121_v63  ;;  %v4506_v38 = vpop.f32.mrb[142].mxu1  ;;  %v5988_v63 = vld [vmem:[%s4905_s16 + $0xa0] sm:$0xff] }
 0x2c4   : > { %v4181_v8 = vpop.f32.mrb[32].mxu0  ;;  %v3124_v50 = vpop.f32.mrb[143].mxu1  ;;  %v3133_v32 = vadd.f32 %v4506_v38, %v5847_v47  ;;  %v3166_v58 = vmax.f32 %v3130_v45, 0.0  ;;  %v5994_v38 = vld [vmem:[%s4905_s16 + $0x60] sm:$0xff] }
 0x2c5   : > { %v3164_v53 = vmax.f32 %v3122_v40, 0.0  ;;  %v3125_v5 = vadd.f32 %v5847_v47, %v3124_v50  ;;  %v1244_v12 = vpop.f32.mrb[33].mxu0  ;;  %4579 = vmatmul.mubr.f32.gmra.mrb[138].mxu0 %v3163_v30  ;;  %v1250_v2 = vadd.f32 %v4181_v8, %v5865_v26  ;;  %v1331_v47 = vadd.f32 %v5950_v49, %v1205_v29 }
 0x2c6   : > { %v1245_v11 = vadd.f32 %v5865_v26, %v1244_v12  ;;  %1362 = vxpose.xlu0.b32.cont [8/16] (narrow) %v1330_v14, 8  ;;  %v3167_v6 = vmax.f32 %v3133_v32, 0.0  ;;  %v1230_v40 = vadd.f32 %v5913_v56, %v5865_v26  ;;  %v1335_v45 = vadd.f32 %v5994_v38, %v1225_v1  ;;  %v6001_v14 = vld [vmem:[%s4905_s16 + $0xa8] sm:$0xff] }
 0x2c7   : > { %v3165_v20 = vmax.f32 %v3125_v5, 0.0  ;;  %4581 = vmatprep.mubr.f32.mxu0 %v3164_v53  ;;  %v1340_v7 = vadd.f32 %v5955_v48, %v1250_v2  ;;  %v1235_v56 = vadd.f32 %v5865_v26, %v5930_v23  ;;  %v6007_v5 = vld [vmem:[%s4905_s16 + $0x68] sm:$0xff]  ;;  %v1240_v23 = vadd.f32 %v5924_v28, %v5865_v26 }
 0x2c8   : > { %v4184_v33 = vpop.f32.mrb[34].mxu0  ;;  %v1339_v25 = vadd.f32 %v5944_v31, %v1245_v11  ;;  %v1336_v12 = vadd.f32 %v6007_v5, %v1230_v40 }
 0x2c9   : > { %v1254_v18 = vpop.f32.mrb[35].mxu0  ;;  %4582 = vmatmul.mubr.f32.gmra.mrb[140].mxu0 %v3165_v20  ;;  %v1260_v0 = vadd.f32 %v4184_v33, %v5865_v26  ;;  %v6014_v20 = vld [vmem:[%s4905_s16 + $0xb0] sm:$0xff] }
 0x2ca   : > { %4584 = vmatprep.mubr.f32.mxu0 %v3166_v58  ;;  %1387 = vxpose.xlu1.b32.start [1/16] (narrow) %v1339_v25, 8  ;;  %v1255_v54 = vadd.f32 %v5865_v26, %v1254_v18  ;;  %v6020_v33 = vld [vmem:[%s4905_s16 + $0x70] sm:$0xff] }
 0x2cb   : > { %1363 = vxpose.xlu0.b32.cont [9/16] (narrow) %v1331_v47, 8  ;;  %v1342_v27 = vadd.f32 %v5977_v59, %v1260_v0  ;;  %v1337_v25 = vadd.f32 %v6020_v33, %v1235_v56  ;;  %v6025_v47 = vld [vmem:[%s4905_s16 + $0xb8] sm:$0xff] }
 0x2cc   : > { %v4187_v24 = vpop.f32.mrb[36].mxu0  ;;  %v1341_v36 = vadd.f32 %v5966_v35, %v1255_v54 }
 0x2cd   : > { %v1264_v52 = vpop.f32.mrb[37].mxu0  ;;  %4585 = vmatmul.mubr.f32.gmra.mrb[142].mxu0 %v3167_v6  ;;  %v1270_v55 = vadd.f32 %v4187_v24, %v5865_v26  ;;  %v6029_v24 = vld [vmem:[%s4905_s16 + $0x78] sm:$0xff] }
 0x2ce   : > { %1388 = vxpose.xlu1.b32.cont [2/16] (narrow) %v1340_v7, 8  ;;  %v1265_v37 = vadd.f32 %v5865_v26, %v1264_v52  ;;  %v1338_v28 = vadd.f32 %v6029_v24, %v1240_v23 }
 0x2cf   : > { %1364 = vxpose.xlu0.b32.cont [10/16] (narrow) %v1332_v3, 8  ;;  %v1344_v29 = vadd.f32 %v6001_v14, %v1270_v55  ;;  %v6035_v3 = vld [vmem:[%s4905_s16 + $0xc0] sm:$0xff] }
 0x2d0   : > { %v4190_v41 = vpop.f32.mrb[38].mxu0  ;;  %v1343_v30 = vadd.f32 %v5988_v63, %v1265_v37  ;;  %v6042_v37 = vld [vmem:[%s4905_s16 + $0xc8] sm:$0xff] }
 0x2d1   : > { %v1274_v10 = vpop.f32.mrb[39].mxu0  ;;  %v1280_v11 = vadd.f32 %v4190_v41, %v5865_v26 }
 0x2d2   : > { %1389 = vxpose.xlu1.b32.cont [3/16] (narrow) %v1341_v36, 8  ;;  %v1275_v8 = vadd.f32 %v5865_v26, %v1274_v10 }
 0x2d3   : > { %1365 = vxpose.xlu0.b32.cont [11/16] (narrow) %v1333_v16, 8  ;;  %v1346_v6 = vadd.f32 %v6025_v47, %v1280_v11 }
 0x2d4   : > { %v4193_v17 = vpop.f32.mrb[40].mxu0  ;;  %v1345_v58 = vadd.f32 %v6014_v20, %v1275_v8 }
 0x2d5   : > { %v1284_v13 = vpop.f32.mrb[41].mxu0  ;;  %v1290_v43 = vadd.f32 %v4193_v17, %v5865_v26 }
 0x2d6   : > { %1390 = vxpose.xlu1.b32.cont [4/16] (narrow) %v1342_v27, 8  ;;  %v1285_v62 = vadd.f32 %v5865_v26, %v1284_v13 }
 0x2d7   : > { %1366 = vxpose.xlu0.b32.cont [12/16] (narrow) %v1334_v22, 8  ;;  %v1348_v17 = vadd.f32 %v6042_v37, %v1290_v43 }
 0x2d8   : > { %v4196_v19 = vpop.f32.mrb[42].mxu0  ;;  %v1347_v0 = vadd.f32 %v6035_v3, %v1285_v62 }
 0x2d9   : > { %v1294_v4 = vpop.f32.mrb[43].mxu0  ;;  %v1300_v22 = vadd.f32 %v4196_v19, %v5865_v26 }
 0x2da   : > { %1391 = vxpose.xlu1.b32.cont [5/16] (narrow) %v1343_v30, 8  ;;  %v1295_v10 = vadd.f32 %v5865_v26, %v1294_v4  ;;  %v6049_v30 = vld [vmem:[%s4905_s16 + $0xd0] sm:$0xff] }
 0x2db   : > { %1367 = vxpose.xlu0.b32.cont [13/16] (narrow) %v1335_v45, 8 }
 0x2dc   : > { %v5998_v50 = vpop.f32.mrb[44].mxu0  ;;  %v1349_v40 = vadd.f32 %v6049_v30, %v1295_v10 }
 0x2dd   : > { %v1304_v53 = vpop.f32.mrb[45].mxu0 }
 0x2de   : > { %1392 = vxpose.xlu1.b32.cont [6/16] (narrow) %v1344_v29, 8  ;;  %v1305_v29 = vadd.f32 %v5865_v26, %v1304_v53 }
 0x2df   : > { %1368 = vxpose.xlu0.b32.cont [14/16] (narrow) %v1336_v12, 8  ;;  %v6056_v12 = vld [vmem:[%s4905_s16 + $0xd8] sm:$0xff] }
 0x2e0   : > { %v6011_v32 = vpop.f32.mrb[46].mxu0  ;;  %v1350_v19 = vadd.f32 %v6056_v12, %v1300_v22  ;;  %v6087_v22 = vld [vmem:[%s4905_s16 + $0xf8] sm:$0xff] }
 0x2e1   : > { %v1314_v2 = vpop.f32.mrb[47].mxu0 }
 0x2e2   : > { %1393 = vxpose.xlu1.b32.cont [7/16] (narrow) %v1345_v58, 8 }
 0x2e3   : > { %1369 = vxpose.xlu0.b32.cont [15/16] (narrow) %v1337_v25, 8  ;;  %v1310_v25 = vadd.f32 %v5998_v50, %v5865_v26 }
 0x2e4   : > { %v4285_v18 = vpop.f32.mrb[48].mxu0 }
 0x2e5   : > { %v1861_v54 = vpop.f32.mrb[49].mxu0  ;;  %v1867_v36 = vadd.f32 %v4285_v18, %v5865_v26  ;;  %v6064_v18 = vld [vmem:[%s4905_s16 + $0xe0] sm:$0xff] }
 0x2e6   : > { %v1862_v7 = vadd.f32 %v5865_v26, %v1861_v54  ;;  %1394 = vxpose.xlu1.b32.cont [8/16] (narrow) %v1346_v6, 8  ;;  %v1351_v53 = vadd.f32 %v6064_v18, %v1305_v29 }
 0x2e7   : > { %1370 = vxpose.xlu0.b32.end [16/16] (narrow) %v1338_v28, 8  ;;  %v2021_v27 = vadd.f32 %v5880_v15, %v1867_v36 }
 0x2e8   : > { %v4288_v52 = vpop.f32.mrb[50].mxu0  ;;  %v2020_v41 = vadd.f32 %v5873_v42, %v1862_v7  ;;  %v1315_v7 = vadd.f32 %v5865_v26, %v1314_v2 }
 0x2e9   : > { %v1871_v57 = vpop.f32.mrb[51].mxu0  ;;  %v1877_v4 = vadd.f32 %v4288_v52, %v5865_v26  ;;  %v6071_v52 = vld [vmem:[%s4905_s16 + $0xe8] sm:$0xff] }
 0x2ea   : > { %1395 = vxpose.xlu1.b32.cont [9/16] (narrow) %v1347_v0, 8  ;;  %v1872_v1 = vadd.f32 %v5865_v26, %v1871_v57  ;;  %v1352_v50 = vadd.f32 %v6071_v52, %v1310_v25  ;;  %v1320_v57 = vadd.f32 %v6011_v32, %v5865_v26 }
 0x2eb   : > { %2052 = vxpose.xlu0.b32.start [1/16] (narrow) %v2020_v41, 8  ;;  %v2023_v11 = vadd.f32 %v5896_v39, %v1877_v4 }
 0x2ec   : > { %v4291_v16 = vpop.f32.mrb[52].mxu0  ;;  %v2022_v45 = vadd.f32 %v5887_v34, %v1872_v1 }
 0x2ed   : > { %v1881_v13 = vpop.f32.mrb[53].mxu0  ;;  %v1887_v6 = vadd.f32 %v4291_v16, %v5865_v26  ;;  %v6081_v16 = vld [vmem:[%s4905_s16 + $0xf0] sm:$0xff]  ;;  %s3703_s16 = sshll.u32 %s6345_s27, 5 }
 0x2ee   : > { %1396 = vxpose.xlu1.b32.cont [10/16] (narrow) %v1348_v17, 8  ;;  %v1882_v58 = vadd.f32 %v5865_v26, %v1881_v13  ;;  %v1353_v2 = vadd.f32 %v6081_v16, %v1315_v7  ;;  %s6170_s25 = scalar_lea.vmem %s6309_s8, %s3703_s16 }
 0x2ef   : > { %2053 = vxpose.xlu0.b32.cont [2/16] (narrow) %v2021_v27, 8  ;;  %v2025_v0 = vadd.f32 %v5916_v51, %v1887_v6 }
 0x2f0   : > { %v4294_v55 = vpop.f32.mrb[54].mxu0  ;;  %v2024_v54 = vadd.f32 %v5905_v46, %v1882_v58 }
 0x2f1   : > { %v1891_v8 = vpop.f32.mrb[55].mxu0  ;;  %v1897_v17 = vadd.f32 %v4294_v55, %v5865_v26 }
 0x2f2   : > { %1397 = vxpose.xlu1.b32.cont [11/16] (narrow) %v1349_v40, 8  ;;  %v1892_v41 = vadd.f32 %v5865_v26, %v1891_v8  ;;  %v1354_v40 = vadd.f32 %v6087_v22, %v1320_v57 }
 0x2f3   : > { %2054 = vxpose.xlu0.b32.cont [3/16] (narrow) %v2022_v45, 8  ;;  %v2027_v32 = vadd.f32 %v5935_v21, %v1897_v17 }
 0x2f4   : > { %v4297_v56 = vpop.f32.mrb[56].mxu0  ;;  %v2026_v27 = vadd.f32 %v5927_v60, %v1892_v41 }
 0x2f5   : > { %v1901_v23 = vpop.f32.mrb[57].mxu0 }
 0x2f6   : > { %1398 = vxpose.xlu1.b32.cont [12/16] (narrow) %v1350_v19, 8  ;;  %v1902_v4 = vadd.f32 %v5865_v26, %v1901_v23 }
 0x2f7   : > { %2055 = vxpose.xlu0.b32.cont [4/16] (narrow) %v2023_v11, 8  ;;  %v1907_v11 = vadd.f32 %v4297_v56, %v5865_v26 }
 0x2f8   : > { %v4300_v62 = vpop.f32.mrb[58].mxu0  ;;  %v2028_v58 = vadd.f32 %v5950_v49, %v1902_v4 }
 0x2f9   : > { %v1911_v28 = vpop.f32.mrb[59].mxu0  ;;  %v1917_v57 = vadd.f32 %v4300_v62, %v5865_v26 }
 0x2fa   : > { %1399 = vxpose.xlu1.b32.cont [13/16] (narrow) %v1351_v53, 8  ;;  %v1912_v7 = vadd.f32 %v5865_v26, %v1911_v28 }
 0x2fb   : > { %2056 = vxpose.xlu0.b32.cont [5/16] (narrow) %v2024_v54, 8  ;;  %v2029_v54 = vadd.f32 %v5961_v9, %v1907_v11 }
 0x2fc   : > { %v4303_v43 = vpop.f32.mrb[60].mxu0 }
 0x2fd   : > { %v1921_v36 = vpop.f32.mrb[61].mxu0 }
 0x2fe   : > { %1400 = vxpose.xlu1.b32.cont [14/16] (narrow) %v1352_v50, 8 }
 0x2ff   : > { %2057 = vxpose.xlu0.b32.cont [6/16] (narrow) %v2025_v0, 8 }
 0x300   : > { %v6078_v10 = vpop.f32.mrb[62].mxu0 }
 0x301   : > { %v1931_v1 = vpop.f32.mrb[63].mxu0 }
 0x302   : > { %1401 = vxpose.xlu1.b32.cont [15/16] (narrow) %v1353_v2, 8  ;;  %v2030_v2 = vadd.f32 %v5972_v44, %v1912_v7  ;;  %v1937_v7 = vadd.f32 %v6078_v10, %v5865_v26 }
 0x303   : > { %2058 = vxpose.xlu0.b32.cont [7/16] (narrow) %v2026_v27, 8 }
 0x304   : > { %v4309_v13 = vpop.f32.mrb[64].mxu0 }
 0x305   : > { %v1941_v45 = vpop.f32.mrb[65].mxu0  ;;  %v1947_v55 = vadd.f32 %v4309_v13, %v5865_v26 }
 0x306   : > { %v1942_v8 = vadd.f32 %v5865_v26, %v1941_v45  ;;  %1402 = vxpose.xlu1.b32.end [16/16] (narrow) %v1354_v40, 8  ;;  %v2031_v40 = vadd.f32 %v5983_v61, %v1917_v57 }
 0x307   : > { %2059 = vxpose.xlu0.b32.cont [8/16] (narrow) %v2027_v32, 8  ;;  %v2037_v53 = vadd.f32 %v5955_v48, %v1947_v55  ;;  %v1922_v32 = vadd.f32 %v5865_v26, %v1921_v36  ;;  %v1927_v55 = vadd.f32 %v4303_v43, %v5865_v26 }
 0x308   : > { %v4312_v29 = vpop.f32.mrb[66].mxu0  ;;  %v2036_v19 = vadd.f32 %v5944_v31, %v1942_v8 }
 0x309   : > { %v1951_v25 = vpop.f32.mrb[67].mxu0  ;;  %v1957_v0 = vadd.f32 %v4312_v29, %v5865_v26  ;;  %v2032_v29 = vadd.f32 %v5994_v38, %v1922_v32 }
 0x30a   : > { %2084 = vxpose.xlu1.b32.start [1/16] (narrow) %v2036_v19, 8  ;;  %v1952_v23 = vadd.f32 %v5865_v26, %v1951_v25  ;;  %v2033_v25 = vadd.f32 %v6007_v5, %v1927_v55 }
 0x30b   : > { %2060 = vxpose.xlu0.b32.cont [9/16] (narrow) %v2028_v58, 8  ;;  %v2039_v27 = vadd.f32 %v5977_v59, %v1957_v0 }
 0x30c   : > { %v4315_v6 = vpop.f32.mrb[68].mxu0  ;;  %v2038_v56 = vadd.f32 %v5966_v35, %v1952_v23 }
 0x30d   : > { %v1961_v50 = vpop.f32.mrb[69].mxu0  ;;  %v1967_v45 = vadd.f32 %v4315_v6, %v5865_v26 }
 0x30e   : > { %2085 = vxpose.xlu1.b32.cont [2/16] (narrow) %v2037_v53, 8  ;;  %v1962_v13 = vadd.f32 %v5865_v26, %v1961_v50  ;;  %v1932_v53 = vadd.f32 %v5865_v26, %v1931_v1 }
 0x30f   : > { %2061 = vxpose.xlu0.b32.cont [10/16] (narrow) %v2029_v54, 8  ;;  %v2041_v11 = vadd.f32 %v6001_v14, %v1967_v45 }
 0x310   : > { %v4318_v41 = vpop.f32.mrb[70].mxu0  ;;  %v2040_v62 = vadd.f32 %v5988_v63, %v1962_v13  ;;  %v2034_v50 = vadd.f32 %v6020_v33, %v1932_v53 }
 0x311   : > { %v1971_v17 = vpop.f32.mrb[71].mxu0  ;;  %v1977_v6 = vadd.f32 %v4318_v41, %v5865_v26 }
 0x312   : > { %2086 = vxpose.xlu1.b32.cont [3/16] (narrow) %v2038_v56, 8  ;;  %v1972_v58 = vadd.f32 %v5865_v26, %v1971_v17 }
 0x313   : > { %2062 = vxpose.xlu0.b32.cont [11/16] (narrow) %v2030_v2, 8  ;;  %v2043_v56 = vadd.f32 %v6025_v47, %v1977_v6  ;;  %v2035_v2 = vadd.f32 %v6029_v24, %v1937_v7 }
 0x314   : > { %v4321_v28 = vpop.f32.mrb[72].mxu0  ;;  %v2042_v43 = vadd.f32 %v6014_v20, %v1972_v58 }
 0x315   : > { %v1981_v4 = vpop.f32.mrb[73].mxu0 }
 0x316   : > { %2087 = vxpose.xlu1.b32.cont [4/16] (narrow) %v2039_v27, 8  ;;  %v1982_v1 = vadd.f32 %v5865_v26, %v1981_v4  ;;  %v1987_v27 = vadd.f32 %v4321_v28, %v5865_v26 }
 0x317   : > { %2063 = vxpose.xlu0.b32.cont [12/16] (narrow) %v2031_v40, 8 }
 0x318   : > { %v4324_v8 = vpop.f32.mrb[74].mxu0  ;;  %v2044_v10 = vadd.f32 %v6035_v3, %v1982_v1  ;;  %v2045_v4 = vadd.f32 %v6042_v37, %v1987_v27 }
 0x319   : > { %v1991_v19 = vpop.f32.mrb[75].mxu0  ;;  %v1997_v58 = vadd.f32 %v4324_v8, %v5865_v26 }
 0x31a   : > { %2088 = vxpose.xlu1.b32.cont [5/16] (narrow) %v2040_v62, 8  ;;  %v1992_v62 = vadd.f32 %v5865_v26, %v1991_v19 }
 0x31b   : > { %2064 = vxpose.xlu0.b32.cont [13/16] (narrow) %v2032_v29, 8  ;;  %v2047_v19 = vadd.f32 %v6056_v12, %v1997_v58 }
 0x31c   : > { %v4327_v36 = vpop.f32.mrb[76].mxu0 }
 0x31d   : > { %v2001_v23 = vpop.f32.mrb[77].mxu0 }
 0x31e   : > { %2089 = vxpose.xlu1.b32.cont [6/16] (narrow) %v2041_v11, 8 }
 0x31f   : > { %2065 = vxpose.xlu0.b32.cont [14/16] (narrow) %v2033_v25, 8  ;;  %v2046_v25 = vadd.f32 %v6049_v30, %v1992_v62 }
 0x320   : > { %v4330_v54 = vpop.f32.mrb[78].mxu0 }
 0x321   : > { %v2011_v0 = vpop.f32.mrb[79].mxu0  ;;  %v2017_v62 = vadd.f32 %v4330_v54, %v5865_v26 }
 0x322   : > { %2090 = vxpose.xlu1.b32.cont [7/16] (narrow) %v2042_v43, 8 }
 0x323   : > { %2066 = vxpose.xlu0.b32.cont [15/16] (narrow) %v2034_v50, 8  ;;  %v2002_v50 = vadd.f32 %v5865_v26, %v2001_v23  ;;  %v2051_v58 = vadd.f32 %v6087_v22, %v2017_v62 }
 0x324   : > { %v4413_v57 = vpop.f32.mrb[80].mxu0 }
 0x325   : > { %v2559_v17 = vpop.f32.mrb[81].mxu0  ;;  %v2565_v32 = vadd.f32 %v4413_v57, %v5865_v26 }
 0x326   : > { %v2560_v41 = vadd.f32 %v5865_v26, %v2559_v17  ;;  %2091 = vxpose.xlu1.b32.cont [8/16] (narrow) %v2043_v56, 8  ;;  %v2048_v17 = vadd.f32 %v6064_v18, %v2002_v50 }
 0x327   : > { %2067 = vxpose.xlu0.b32.end [16/16] (narrow) %v2035_v2, 8  ;;  %v2719_v29 = vadd.f32 %v5880_v15, %v2565_v32  ;;  %v2007_v2 = vadd.f32 %v4327_v36, %v5865_v26 }
 0x328   : > { %v4416_v13 = vpop.f32.mrb[82].mxu0  ;;  %v2718_v40 = vadd.f32 %v5873_v42, %v2560_v41 }
 0x329   : > { %v2569_v45 = vpop.f32.mrb[83].mxu0  ;;  %v2575_v6 = vadd.f32 %v4416_v13, %v5865_v26  ;;  %v2049_v23 = vadd.f32 %v6071_v52, %v2007_v2 }
 0x32a   : > { %2092 = vxpose.xlu1.b32.cont [9/16] (narrow) %v2044_v10, 8  ;;  %v2570_v11 = vadd.f32 %v5865_v26, %v2569_v45 }
 0x32b   : > { %2750 = vxpose.xlu0.b32.start [1/16] (narrow) %v2718_v40, 8  ;;  %v2721_v1 = vadd.f32 %v5896_v39, %v2575_v6  ;;  %v2012_v40 = vadd.f32 %v5865_v26, %v2011_v0 }
 0x32c   : > { %v4419_v55 = vpop.f32.mrb[84].mxu0  ;;  %v2720_v43 = vadd.f32 %v5887_v34, %v2570_v11 }
 0x32d   : > { %v2579_v28 = vpop.f32.mrb[85].mxu0  ;;  %v2585_v27 = vadd.f32 %v4419_v55, %v5865_v26  ;;  %v2050_v55 = vadd.f32 %v6081_v16, %v2012_v40 }
 0x32e   : > { %2093 = vxpose.xlu1.b32.cont [10/16] (narrow) %v2045_v4, 8  ;;  %v2580_v57 = vadd.f32 %v5865_v26, %v2579_v28 }
 0x32f   : > { %2751 = vxpose.xlu0.b32.cont [2/16] (narrow) %v2719_v29, 8  ;;  %v2723_v45 = vadd.f32 %v5916_v51, %v2585_v27 }
 0x330   : > { %v4422_v53 = vpop.f32.mrb[86].mxu0  ;;  %v2722_v10 = vadd.f32 %v5905_v46, %v2580_v57 }
 0x331   : > { %v2589_v7 = vpop.f32.mrb[87].mxu0  ;;  %v2595_v11 = vadd.f32 %v4422_v53, %v5865_v26 }
 0x332   : > { %2094 = vxpose.xlu1.b32.cont [11/16] (narrow) %v2046_v25, 8  ;;  %v2590_v36 = vadd.f32 %v5865_v26, %v2589_v7 }
 0x333   : > { %2752 = vxpose.xlu0.b32.cont [3/16] (narrow) %v2720_v43, 8  ;;  %v2725_v6 = vadd.f32 %v5935_v21, %v2595_v11 }
 0x334   : > { %v4425_v56 = vpop.f32.mrb[88].mxu0  ;;  %v2724_v0 = vadd.f32 %v5927_v60, %v2590_v36 }
 0x335   : > { %v2599_v8 = vpop.f32.mrb[89].mxu0  ;;  %v2605_v57 = vadd.f32 %v4425_v56, %v5865_v26 }
 0x336   : > { %2095 = vxpose.xlu1.b32.cont [12/16] (narrow) %v2047_v19, 8  ;;  %v2600_v43 = vadd.f32 %v5865_v26, %v2599_v8 }
 0x337   : > { %2753 = vxpose.xlu0.b32.cont [4/16] (narrow) %v2721_v1, 8  ;;  %v1371_v1 = vpop.trf.xlu0  ;;  %v2727_v56 = vadd.f32 %v5961_v9, %v2605_v57 }
 0x338   : > { %v4428_v41 = vpop.f32.mrb[90].mxu0  ;;  %v2726_v2 = vadd.f32 %v5950_v49, %v2600_v43 }
 0x339   : > { %v2609_v13 = vpop.f32.mrb[91].mxu0 }
 0x33a   : > { %2096 = vxpose.xlu1.b32.cont [13/16] (narrow) %v2048_v17, 8 }
 0x33b   : > { %2754 = vxpose.xlu0.b32.cont [5/16] (narrow) %v2722_v10, 8 }
 0x33c   : > { %v6148_v32 = vpop.f32.mrb[92].mxu0 }
 0x33d   : > { %v2619_v4 = vpop.f32.mrb[93].mxu0 }
 0x33e   : > { %2097 = vxpose.xlu1.b32.cont [14/16] (narrow) %v2049_v23, 8 }
 0x33f   : > { %2755 = vxpose.xlu0.b32.cont [6/16] (narrow) %v2723_v45, 8  ;;  %v2610_v45 = vadd.f32 %v5865_v26, %v2609_v13 }
 0x340   : > { %v6154_v29 = vpop.f32.mrb[94].mxu0 }
 0x341   : > { %v2629_v28 = vpop.f32.mrb[95].mxu0 }
 0x342   : > { %2098 = vxpose.xlu1.b32.cont [15/16] (narrow) %v2050_v55, 8 }
 0x343   : > { %2756 = vxpose.xlu0.b32.cont [7/16] (narrow) %v2724_v0, 8  ;;  %v2615_v0 = vadd.f32 %v4428_v41, %v5865_v26 }
 0x344   : > { %v4437_v25 = vpop.f32.mrb[96].mxu0 }
 0x345   : > { %v2639_v54 = vpop.f32.mrb[97].mxu0  ;;  %v2645_v53 = vadd.f32 %v4437_v25, %v5865_v26 }
 0x346   : > { %v2640_v7 = vadd.f32 %v5865_v26, %v2639_v54  ;;  %2099 = vxpose.xlu1.b32.end [16/16] (narrow) %v2051_v58, 8  ;;  %v2728_v58 = vadd.f32 %v5972_v44, %v2610_v45  ;;  %v2729_v54 = vadd.f32 %v5983_v61, %v2615_v0  ;;  %v2635_v45 = vadd.f32 %v6154_v29, %v5865_v26 }
 0x347   : > { %2757 = vxpose.xlu0.b32.cont [8/16] (narrow) %v2725_v6, 8  ;;  %v2735_v10 = vadd.f32 %v5955_v48, %v2645_v53 }
 0x348   : > { %v4440_v19 = vpop.f32.mrb[98].mxu0  ;;  %v2734_v50 = vadd.f32 %v5944_v31, %v2640_v7  ;;  %v2620_v7 = vadd.f32 %v5865_v26, %v2619_v4 }
 0x349   : > { %v2649_v17 = vpop.f32.mrb[99].mxu0  ;;  %v2655_v62 = vadd.f32 %v4440_v19, %v5865_v26 }
 0x34a   : > { %2782 = vxpose.xlu1.b32.start [1/16] (narrow) %v2734_v50, 8  ;;  %v1403_v27 = vpop.trf.xlu1  ;;  %v2650_v23 = vadd.f32 %v5865_v26, %v2649_v17  ;;  %v2730_v57 = vadd.f32 %v5994_v38, %v2620_v7 }
 0x34b   : > { %2758 = vxpose.xlu0.b32.cont [9/16] (narrow) %v2726_v2, 8  ;;  %v1421_v8 = vcombine.low %v1371_v1, %v1403_v27  ;;  %v2737_v6 = vadd.f32 %v5977_v59, %v2655_v62  ;;  %v2625_v1 = vadd.f32 %v6148_v32, %v5865_v26 }
 0x34c   : > { %v4443_v40 = vpop.f32.mrb[100].mxu0  ;;  %v2736_v55 = vadd.f32 %v5966_v35, %v2650_v23 }
 0x34d   : > { %v2659_v36 = vpop.f32.mrb[101].mxu0  ;;  %1423 = vst [vmem:[%s6170_s25] sm:$0x77] %v1421_v8  ;;  %v2665_v19 = vadd.f32 %v4443_v40, %v5865_v26  ;;  %v2731_v8 = vadd.f32 %v6007_v5, %v2625_v1 }
 0x34e   : > { %2783 = vxpose.xlu1.b32.cont [2/16] (narrow) %v2735_v10, 8  ;;  %v2660_v13 = vadd.f32 %v5865_v26, %v2659_v36  ;;  %v2630_v10 = vadd.f32 %v5865_v26, %v2629_v28 }
 0x34f   : > { %2759 = vxpose.xlu0.b32.cont [10/16] (narrow) %v2727_v56, 8  ;;  %v2739_v17 = vadd.f32 %v6001_v14, %v2665_v19 }
 0x350   : > { %v4446_v11 = vpop.f32.mrb[102].mxu0  ;;  %v2738_v41 = vadd.f32 %v5988_v63, %v2660_v13  ;;  %v2732_v36 = vadd.f32 %v6020_v33, %v2630_v10 }
 0x351   : > { %v2669_v25 = vpop.f32.mrb[103].mxu0  ;;  %v2675_v40 = vadd.f32 %v4446_v11, %v5865_v26 }
 0x352   : > { %2784 = vxpose.xlu1.b32.cont [3/16] (narrow) %v2736_v55, 8  ;;  %v2670_v4 = vadd.f32 %v5865_v26, %v2669_v25 }
 0x353   : > { %2760 = vxpose.xlu0.b32.cont [11/16] (narrow) %v2728_v58, 8  ;;  %v2741_v55 = vadd.f32 %v6025_v47, %v2675_v40  ;;  %v2733_v58 = vadd.f32 %v6029_v24, %v2635_v45 }
 0x354   : > { %v4449_v43 = vpop.f32.mrb[104].mxu0  ;;  %v2740_v32 = vadd.f32 %v6014_v20, %v2670_v4 }
 0x355   : > { %v2679_v53 = vpop.f32.mrb[105].mxu0 }
 0x356   : > { %2785 = vxpose.xlu1.b32.cont [4/16] (narrow) %v2737_v6, 8  ;;  %v2680_v28 = vadd.f32 %v5865_v26, %v2679_v53  ;;  %v2685_v6 = vadd.f32 %v4449_v43, %v5865_v26 }
 0x357   : > { %2761 = vxpose.xlu0.b32.cont [12/16] (narrow) %v2729_v54, 8 }
 0x358   : > { %v4452_v50 = vpop.f32.mrb[106].mxu0  ;;  %v2742_v29 = vadd.f32 %v6035_v3, %v2680_v28  ;;  %v2743_v53 = vadd.f32 %v6042_v37, %v2685_v6 }
 0x359   : > { %v2689_v2 = vpop.f32.mrb[107].mxu0  ;;  %v2695_v4 = vadd.f32 %v4452_v50, %v5865_v26 }
 0x35a   : > { %2786 = vxpose.xlu1.b32.cont [5/16] (narrow) %v2738_v41, 8  ;;  %v2690_v41 = vadd.f32 %v5865_v26, %v2689_v2 }
 0x35b   : > { %2762 = vxpose.xlu0.b32.cont [13/16] (narrow) %v2730_v57, 8  ;;  %v2745_v2 = vadd.f32 %v6056_v12, %v2695_v4 }
 0x35c   : > { %v4455_v27 = vpop.f32.mrb[108].mxu0 }
 0x35d   : > { %v2699_v23 = vpop.f32.mrb[109].mxu0  ;;  %v2705_v28 = vadd.f32 %v4455_v27, %v5865_v26 }
 0x35e   : > { %2787 = vxpose.xlu1.b32.cont [6/16] (narrow) %v2739_v17, 8 }
 0x35f   : > { %2763 = vxpose.xlu0.b32.cont [14/16] (narrow) %v2731_v8, 8 }
 0x360   : > { %v4458_v56 = vpop.f32.mrb[110].mxu0 }
 0x361   : > { %v2709_v62 = vpop.f32.mrb[111].mxu0 }
 0x362   : > { %2788 = vxpose.xlu1.b32.cont [7/16] (narrow) %v2740_v32, 8 }
 0x363   : > { %2764 = vxpose.xlu0.b32.cont [15/16] (narrow) %v2732_v36, 8 }
 0x364   : > { %v4541_v0 = vpop.f32.mrb[112].mxu0 }
 0x365   : > { %v3257_v25 = vpop.f32.mrb[113].mxu0  ;;  %v3263_v7 = vadd.f32 %v4541_v0, %v5865_v26 }
 0x366   : > { %v3258_v11 = vadd.f32 %v5865_v26, %v3257_v25  ;;  %2789 = vxpose.xlu1.b32.cont [8/16] (narrow) %v2741_v55, 8 }
 0x367   : > { %2765 = vxpose.xlu0.b32.end [16/16] (narrow) %v2733_v58, 8  ;;  %v3417_v57 = vadd.f32 %v5880_v15, %v3263_v7  ;;  %v2700_v15 = vadd.f32 %v5865_v26, %v2699_v23  ;;  %v2747_v23 = vadd.f32 %v6071_v52, %v2705_v28 }
 0x368   : > { %v4544_v13 = vpop.f32.mrb[114].mxu0  ;;  %v3416_v54 = vadd.f32 %v5873_v42, %v3258_v11  ;;  %v2744_v42 = vadd.f32 %v6049_v30, %v2690_v41 }
 0x369   : > { %v3267_v19 = vpop.f32.mrb[115].mxu0  ;;  %v3273_v10 = vadd.f32 %v4544_v13, %v5865_v26  ;;  %v2746_v0 = vadd.f32 %v6064_v18, %v2700_v15 }
 0x36a   : > { %2790 = vxpose.xlu1.b32.cont [9/16] (narrow) %v2742_v29, 8  ;;  %v3268_v17 = vadd.f32 %v5865_v26, %v3267_v19 }
 0x36b   : > { %3448 = vxpose.xlu0.b32.start [1/16] (narrow) %v3416_v54, 8  ;;  %v3419_v36 = vadd.f32 %v5896_v39, %v3273_v10  ;;  %v2710_v39 = vadd.f32 %v5865_v26, %v2709_v62  ;;  %v2715_v54 = vadd.f32 %v4458_v56, %v5865_v26 }
 0x36c   : > { %v4547_v1 = vpop.f32.mrb[116].mxu0  ;;  %v3418_v40 = vadd.f32 %v5887_v34, %v3268_v17 }
 0x36d   : > { %v3277_v43 = vpop.f32.mrb[117].mxu0  ;;  %v3283_v58 = vadd.f32 %v4547_v1, %v5865_v26  ;;  %v2748_v7 = vadd.f32 %v6081_v16, %v2710_v39 }
 0x36e   : > { %2791 = vxpose.xlu1.b32.cont [10/16] (narrow) %v2743_v53, 8  ;;  %v3278_v55 = vadd.f32 %v5865_v26, %v3277_v43  ;;  %v6240_v43 = vld [vmem:[%s6308_s7] ss:$0 sm:$0xff] }
 0x36f   : > { %3449 = vxpose.xlu0.b32.cont [2/16] (narrow) %v3417_v57, 8  ;;  %v3421_v29 = vadd.f32 %v5916_v51, %v3283_v58  ;;  %v2749_v51 = vadd.f32 %v6087_v22, %v2715_v54 }
 0x370   : > { %v4550_v8 = vpop.f32.mrb[118].mxu0  ;;  %v3420_v25 = vadd.f32 %v5905_v46, %v3278_v55 }
 0x371   : > { %v3287_v32 = vpop.f32.mrb[119].mxu0  ;;  %v3293_v19 = vadd.f32 %v4550_v8, %v5865_v26  ;;  %v2068_v8 = vpop.trf.xlu0 }
 0x372   : > { %2792 = vxpose.xlu1.b32.cont [11/16] (narrow) %v2744_v42, 8  ;;  %v3288_v13 = vadd.f32 %v5865_v26, %v3287_v32 }
 0x373   : > { %3450 = vxpose.xlu0.b32.cont [3/16] (narrow) %v3418_v40, 8  ;;  %v3423_v1 = vadd.f32 %v5935_v21, %v3293_v19 }
 0x374   : > { %v4553_v45 = vpop.f32.mrb[120].mxu0  ;;  %v3422_v53 = vadd.f32 %v5927_v60, %v3288_v13 }
 0x375   : > { %v3297_v50 = vpop.f32.mrb[121].mxu0  ;;  %v3303_v21 = vadd.f32 %v6240_v43, %v4553_v45 }
 0x376   : > { %2793 = vxpose.xlu1.b32.cont [12/16] (narrow) %v2745_v2, 8  ;;  %v3298_v57 = vadd.f32 %v5865_v26, %v3297_v50 }
 0x377   : > { %3451 = vxpose.xlu0.b32.cont [4/16] (narrow) %v3419_v36, 8  ;;  %v3425_v55 = vadd.f32 %v5961_v9, %v3303_v21 }
 0x378   : > { %v4556_v34 = vpop.f32.mrb[122].mxu0  ;;  %v3424_v10 = vadd.f32 %v5950_v49, %v3298_v57 }
 0x379   : > { %v3307_v11 = vpop.f32.mrb[123].mxu0 }
 0x37a   : > { %2794 = vxpose.xlu1.b32.cont [13/16] (narrow) %v2746_v0, 8  ;;  %v3308_v50 = vadd.f32 %v6240_v43, %v3307_v11  ;;  %v3313_v0 = vadd.f32 %v6240_v43, %v4556_v34 }
 0x37b   : > { %3452 = vxpose.xlu0.b32.cont [5/16] (narrow) %v3420_v25, 8 }
 0x37c   : > { %v4559_v6 = vpop.f32.mrb[124].mxu0 }
 0x37d   : > { %v3317_v27 = vpop.f32.mrb[125].mxu0  ;;  %v3323_v13 = vadd.f32 %v6240_v43, %v4559_v6 }
 0x37e   : > { %2795 = vxpose.xlu1.b32.cont [14/16] (narrow) %v2747_v23, 8  ;;  %v3427_v23 = vadd.f32 %v5983_v61, %v3313_v0  ;;  %v3318_v39 = vadd.f32 %v6240_v43, %v3317_v27 }
 0x37f   : > { %3453 = vxpose.xlu0.b32.cont [6/16] (narrow) %v3421_v29, 8  ;;  %v3429_v19 = vadd.f32 %v6007_v5, %v3323_v13 }
 0x380   : > { %v6229_v46 = vpop.f32.mrb[126].mxu0  ;;  %v3428_v54 = vadd.f32 %v5994_v38, %v3318_v39 }
 0x381   : > { %v3327_v41 = vpop.f32.mrb[127].mxu0 }
 0x382   : > { %2796 = vxpose.xlu1.b32.cont [15/16] (narrow) %v2748_v7, 8 }
 0x383   : > { %3454 = vxpose.xlu0.b32.cont [7/16] (narrow) %v3422_v53, 8  ;;  %v3328_v53 = vadd.f32 %v6240_v43, %v3327_v41 }
 0x384   : > { %v4565_v62 = vpop.f32.mrb[128].mxu0 }
 0x385   : > { %v3337_v17 = vpop.f32.mrb[129].mxu0  ;;  %v3343_v60 = vadd.f32 %v6240_v43, %v4565_v62  ;;  %v3333_v62 = vadd.f32 %v6240_v43, %v6229_v46 }
 0x386   : > { %v3338_v56 = vadd.f32 %v5865_v26, %v3337_v17  ;;  %2797 = vxpose.xlu1.b32.end [16/16] (narrow) %v2749_v51, 8 }
 0x387   : > { %3455 = vxpose.xlu0.b32.cont [8/16] (narrow) %v3423_v1, 8  ;;  %v3433_v2 = vadd.f32 %v5955_v48, %v3343_v60  ;;  %v3426_v48 = vadd.f32 %v5972_v44, %v3308_v50  ;;  %v3431_v57 = vadd.f32 %v6029_v24, %v3333_v62 }
 0x388   : > { %v4568_v4 = vpop.f32.mrb[130].mxu0  ;;  %v3432_v42 = vadd.f32 %v5944_v31, %v3338_v56 }
 0x389   : > { %v3347_v40 = vpop.f32.mrb[131].mxu0  ;;  %v3353_v49 = vadd.f32 %v6240_v43, %v4568_v4 }
 0x38a   : > { %3480 = vxpose.xlu1.b32.start [1/16] (narrow) %v3432_v42, 8  ;;  %v2100_v26 = vpop.trf.xlu1  ;;  %v3348_v15 = vadd.f32 %v6240_v43, %v3347_v40 }
 0x38b   : > { %3456 = vxpose.xlu0.b32.cont [9/16] (narrow) %v3424_v10, 8  ;;  %v2118_v32 = vcombine.low %v2068_v8, %v2100_v26  ;;  %v3435_v9 = vadd.f32 %v5977_v59, %v3353_v49 }
 0x38c   : > { %v4571_v36 = vpop.f32.mrb[132].mxu0  ;;  %v3434_v45 = vadd.f32 %v5966_v35, %v3348_v15 }
 0x38d   : > { %v3357_v31 = vpop.f32.mrb[133].mxu0  ;;  %3677 = vst [vmem:[%s6170_s25 + $0x8] sm:$0x77] %v2118_v32  ;;  %v3363_v35 = vadd.f32 %v6240_v43, %v4571_v36 }
 0x38e   : > { %3481 = vxpose.xlu1.b32.cont [2/16] (narrow) %v3433_v2, 8  ;;  %v3358_v25 = vadd.f32 %v6240_v43, %v3357_v31 }
 0x38f   : > { %3457 = vxpose.xlu0.b32.cont [10/16] (narrow) %v3425_v55, 8  ;;  %v3437_v7 = vadd.f32 %v6001_v14, %v3363_v35  ;;  %v3430_v14 = vadd.f32 %v6020_v33, %v3328_v53 }
 0x390   : > { %v4574_v28 = vpop.f32.mrb[134].mxu0  ;;  %v3436_v34 = vadd.f32 %v5988_v63, %v3358_v25 }
 0x391   : > { %v3367_v58 = vpop.f32.mrb[135].mxu0  ;;  %v3373_v63 = vadd.f32 %v6240_v43, %v4574_v28 }
 0x392   : > { %3482 = vxpose.xlu1.b32.cont [3/16] (narrow) %v3434_v45, 8  ;;  %v3368_v61 = vadd.f32 %v6240_v43, %v3367_v58 }
 0x393   : > { %3458 = vxpose.xlu0.b32.cont [11/16] (narrow) %v3426_v48, 8  ;;  %v3439_v5 = vadd.f32 %v6025_v47, %v3373_v63 }
 0x394   : > { %v4577_v11 = vpop.f32.mrb[136].mxu0  ;;  %v3438_v6 = vadd.f32 %v6014_v20, %v3368_v61 }
 0x395   : > { %v3377_v29 = vpop.f32.mrb[137].mxu0  ;;  %v3383_v17 = vadd.f32 %v6240_v43, %v4577_v11 }
 0x396   : > { %3483 = vxpose.xlu1.b32.cont [4/16] (narrow) %v3435_v9, 8  ;;  %v3378_v41 = vadd.f32 %v6240_v43, %v3377_v29 }
 0x397   : > { %3459 = vxpose.xlu0.b32.cont [12/16] (narrow) %v3427_v23, 8  ;;  %v3441_v46 = vadd.f32 %v6042_v37, %v3383_v17 }
 0x398   : > { %v4580_v44 = vpop.f32.mrb[138].mxu0  ;;  %v3440_v20 = vadd.f32 %v6035_v3, %v3378_v41 }
 0x399   : > { %v3387_v59 = vpop.f32.mrb[139].mxu0  ;;  %v3393_v56 = vadd.f32 %v6240_v43, %v4580_v44 }
 0x39a   : > { %3484 = vxpose.xlu1.b32.cont [5/16] (narrow) %v3436_v34, 8  ;;  %v3388_v33 = vadd.f32 %v6240_v43, %v3387_v59 }
 0x39b   : > { %3460 = vxpose.xlu0.b32.cont [13/16] (narrow) %v3428_v54, 8  ;;  %v3443_v60 = vadd.f32 %v6056_v12, %v3393_v56 }
 0x39c   : > { %v4583_v27 = vpop.f32.mrb[140].mxu0  ;;  %v3442_v47 = vadd.f32 %v6049_v30, %v3388_v33 }
 0x39d   : > { %v3397_v51 = vpop.f32.mrb[141].mxu0  ;;  %v3403_v4 = vadd.f32 %v6240_v43, %v4583_v27 }
 0x39e   : > { %3485 = vxpose.xlu1.b32.cont [6/16] (narrow) %v3437_v7, 8  ;;  %v3398_v24 = vadd.f32 %v6240_v43, %v3397_v51 }
 0x39f   : > { %3461 = vxpose.xlu0.b32.cont [14/16] (narrow) %v3429_v19, 8  ;;  %v3445_v37 = vadd.f32 %v6071_v52, %v3403_v4 }
 0x3a0   : > { %v4586_v38 = vpop.f32.mrb[142].mxu0  ;;  %v3444_v3 = vadd.f32 %v6064_v18, %v3398_v24 }
 0x3a1   : > { %v3407_v1 = vpop.f32.mrb[143].mxu0  ;;  %v3413_v30 = vadd.f32 %v6240_v43, %v4586_v38 }
 0x3a2   : > { %3486 = vxpose.xlu1.b32.cont [7/16] (narrow) %v3438_v6, 8  ;;  %v3408_v42 = vadd.f32 %v6240_v43, %v3407_v1 }
 0x3a3   : > { %3462 = vxpose.xlu0.b32.cont [15/16] (narrow) %v3430_v14, 8  ;;  %v3447_v12 = vadd.f32 %v6087_v22, %v3413_v30 }
 0x3a4   : > { %v3446_v8 = vadd.f32 %v6081_v16, %v3408_v42 }
 0x3a6   : > { %3487 = vxpose.xlu1.b32.cont [8/16] (narrow) %v3439_v5, 8 }
 0x3a7   : > { %3463 = vxpose.xlu0.b32.end [16/16] (narrow) %v3431_v57, 8 }
 0x3aa   : > { %3488 = vxpose.xlu1.b32.cont [9/16] (narrow) %v3440_v20, 8 }
 0x3ab   : > { %v2766_v21 = vpop.trf.xlu0 }
 0x3ae   : > { %3489 = vxpose.xlu1.b32.cont [10/16] (narrow) %v3441_v46, 8 }
 0x3b2   : > { %3490 = vxpose.xlu1.b32.cont [11/16] (narrow) %v3442_v47, 8 }
 0x3b6   : > { %3491 = vxpose.xlu1.b32.cont [12/16] (narrow) %v3443_v60, 8 }
 0x3ba   : > { %3492 = vxpose.xlu1.b32.cont [13/16] (narrow) %v3444_v3, 8 }
 0x3be   : > { %3493 = vxpose.xlu1.b32.cont [14/16] (narrow) %v3445_v37, 8 }
 0x3c2   : > { %3494 = vxpose.xlu1.b32.cont [15/16] (narrow) %v3446_v8, 8 }
 0x3c6   : > { %3495 = vxpose.xlu1.b32.end [16/16] (narrow) %v3447_v12, 8 }
 0x3ca   : > { %v2798_v10 = vpop.trf.xlu1 }
 0x3cb   : > { %v2816_v40 = vcombine.low %v2766_v21, %v2798_v10 }
 0x3cd   : > { %3688 = vst [vmem:[%s6170_s25 + $0x10] sm:$0x77] %v2816_v40 }
 0x3eb   : > { %v3464_v18 = vpop.trf.xlu0 }
 0x40a   : > { %v3496_v26 = vpop.trf.xlu1 }
 0x40b   : > { %v3514_v32 = vcombine.low %v3464_v18, %v3496_v26 }
 0x40d   : > { %3699 = vst [vmem:[%s6170_s25 + $0x18] sm:$0x77] %v3514_v32 }
 0x40e PF: > { %s18_s29 = sadd.s32 1, %s4828_s29   ;;  %s6340_s27 = smov %s4824_s28 }
 0x40f   : > { %p15_p5 = scmp.ge.s32.totalorder %s18_s29, 4   ;;  %s6341_s28 = smov %s6343_s30 }
 0x411   :  { %17 = sbr.rel (!%p15_p5) target bundleno = 2 (0x2), region = 88 }

</bundles_post_ra>
